<compile_context>
chip_gen: v6e
topology: v6e:2x2x1
jax: 0.10.0
libtpu: 0.0.40
codegen_flags: <defaults>
</compile_context>

<pallas_src>
import functools

import jax
import jax.numpy as jnp
from jax.experimental import pallas as pl
from jax.experimental.pallas import tpu as pltpu


def _round_up(x, m):
    return (x + m - 1) // m * m


def _pick_tm(m, target=512):
    """Row-tile size: multiple of 16 (bf16 sublane packing), capped at `target`."""
    return min(target, _round_up(m, 16))


# ------------------------------ Pallas kernels --------------------------------
def _mm_bias_kernel(x_ref, w_ref, b_ref, o_ref, *, relu):
    # x: (tm, K) bf16, w: (K, N) bf16, b: (1, N) f32 -> o: (tm, N)
    acc = jnp.dot(x_ref[...], w_ref[...], preferred_element_type=jnp.float32)
    acc = acc + b_ref[...]
    if relu:
        acc = jnp.maximum(acc, 0.0)
    o_ref[...] = acc.astype(o_ref.dtype)


def matmul_bias(x, w, b, *, relu, out_dtype):
    """out = relu?(x @ w + b). Grid over M rows, W/b resident across steps."""
    M, K = x.shape
    K2, N = w.shape
    assert K == K2 and K % 128 == 0 and N % 128 == 0
    tm = _pick_tm(M)
    grid = (pl.cdiv(M, tm),)
    cost = pl.CostEstimate(
        flops=2 * M * K * N,
        transcendentals=0,
        bytes_accessed=(x.size * x.dtype.itemsize + w.size * w.dtype.itemsize
                        + b.size * b.dtype.itemsize
                        + M * N * jnp.dtype(out_dtype).itemsize),
    )
    return pl.pallas_call(
        functools.partial(_mm_bias_kernel, relu=relu),
        out_shape=jax.ShapeDtypeStruct((M, N), out_dtype),
        grid=grid,
        in_specs=[
            pl.BlockSpec((tm, K), lambda i: (i, 0)),   # row tile, pipelined
            pl.BlockSpec((K, N), lambda i: (0, 0)),    # full weight, resident
            pl.BlockSpec((1, N), lambda i: (0, 0)),    # bias, resident
        ],
        out_specs=pl.BlockSpec((tm, N), lambda i: (i, 0)),
        compiler_params=pltpu.CompilerParams(dimension_semantics=("parallel",)),
        cost_estimate=cost,
    )(x, w, b)


def _conv1_stencil_kernel(col_ref, w_ref, b_ref, o_ref):
    # col: (tm, 16) f32 (taps 0..8 valid), w: (16, 128) f32, b: (1, 128) f32.
    # Cin=1 3x3 stencil -> 9 VPU broadcast-FMAs; avoids a 93%-zero K=128 matmul.
    x = col_ref[...]
    w = w_ref[...]
    acc = jnp.zeros(o_ref.shape, jnp.float32)
    for t in range(9):                                  # unrolled at trace time
        acc = acc + x[:, t:t + 1] * w[t:t + 1, :]
    acc = acc + b_ref[...]
    o_ref[...] = jnp.maximum(acc, 0.0).astype(o_ref.dtype)


def conv1_stencil(col, w, b, *, out_dtype=jnp.bfloat16):
    M, Kt = col.shape
    _, N = w.shape
    tm = _pick_tm(M)
    grid = (pl.cdiv(M, tm),)
    cost = pl.CostEstimate(
        flops=2 * M * 9 * N,
        transcendentals=0,
        bytes_accessed=(col.size * col.dtype.itemsize + w.size * 4 + b.size * 4
                        + M * N * jnp.dtype(out_dtype).itemsize),
    )
    return pl.pallas_call(
        _conv1_stencil_kernel,
        out_shape=jax.ShapeDtypeStruct((M, N), out_dtype),
        grid=grid,
        in_specs=[
            pl.BlockSpec((tm, Kt), lambda i: (i, 0)),
            pl.BlockSpec((Kt, N), lambda i: (0, 0)),
            pl.BlockSpec((1, N), lambda i: (0, 0)),
        ],
        out_specs=pl.BlockSpec((tm, N), lambda i: (i, 0)),
        compiler_params=pltpu.CompilerParams(dimension_semantics=("parallel",)),
        cost_estimate=cost,
    )(col, w, b)


# ------------------------------ host-side glue --------------------------------
def _im2col_conv1(x):
    """x: (N,1,28,28) f32 -> (N*196, 16) f32; tap order (kh,kw), cols 9..15 = 0."""
    n = x.shape[0]
    xp = jnp.pad(x[:, 0], ((0, 0), (1, 1), (1, 1)))                 # (N,30,30)
    taps = [xp[:, i:i + 28:2, j:j + 28:2] for i in range(3) for j in range(3)]
    col = jnp.stack(taps, axis=-1)                                  # (N,14,14,9)
    col = jnp.pad(col, ((0, 0), (0, 0), (0, 0), (0, 7)))            # (N,14,14,16)
    return col.reshape(n * 196, 16)


def _im2col_conv2(h1):
    """h1: (N*196, 128) bf16, NHWC with C padded to 128 -> (N*49, 1152) bf16."""
    n = h1.shape[0] // 196
    h4 = h1.reshape(n, 14, 14, 128)
    hp = jnp.pad(h4, ((0, 0), (1, 1), (1, 1), (0, 0)))              # (N,16,16,128)
    taps = [hp[:, i:i + 14:2, j:j + 14:2, :] for i in range(3) for j in range(3)]
    col = jnp.concatenate(taps, axis=-1)                            # (N,7,7,1152)
    return col.reshape(n * 49, 9 * 128)


def init_params(key):
    """Parameters in PyTorch layout (Conv2d / Linear conventions)."""
    k1, k2, k3 = jax.random.split(key, 3)
    scale = 0.05
    return {
        "conv1_w": scale * jax.random.normal(k1, (32, 1, 3, 3), jnp.float32),
        "conv1_b": jnp.zeros((32,), jnp.float32),
        "conv2_w": scale * jax.random.normal(k2, (64, 32, 3, 3), jnp.float32),
        "conv2_b": jnp.zeros((64,), jnp.float32),
        # PyTorch Linear(3136, 128): weight (128, 3136), y = x @ W.T + b
        "fc_w": scale * jax.random.normal(k3, (128, 64 * 7 * 7), jnp.float32),
        "fc_b": jnp.zeros((128,), jnp.float32),
    }


def prepare_params(params):
    """One-time padding / transposition / cast into the kernels' layouts."""
    # conv1: (32,1,3,3) -> (9,32) -> padded (16,128) f32 (VPU stencil weights).
    w1 = params["conv1_w"].reshape(32, 9).T
    w1 = jnp.zeros((16, 128), jnp.float32).at[:9, :32].set(w1)
    b1 = jnp.zeros((1, 128), jnp.float32).at[0, :32].set(params["conv1_b"])

    # conv2: (64,32,3,3) -> K index = (kh*3+kw)*128 + cin (cin zero-padded to 128).
    w2 = jnp.transpose(params["conv2_w"], (2, 3, 1, 0))             # (3,3,32,64)
    w2 = jnp.pad(w2, ((0, 0), (0, 0), (0, 96), (0, 0)))             # (3,3,128,64)
    w2 = jnp.pad(w2.reshape(1152, 64), ((0, 0), (0, 64)))           # (1152,128)
    b2 = jnp.zeros((1, 128), jnp.float32).at[0, :64].set(params["conv2_b"])

    # fc: fold the NCHW channel-major flatten permutation into the weight:
    # row index = p*128 + c  (p = oh*7+ow, c = channel, padded 64->128).
    wf = params["fc_w"].reshape(128, 64, 49)                        # (out, c, p)
    wf = jnp.transpose(wf, (2, 1, 0))                               # (p, c, out)
    wf = jnp.pad(wf, ((0, 0), (0, 64), (0, 0))).reshape(49 * 128, 128)
    bf = params["fc_b"].reshape(1, 128).astype(jnp.float32)

    return {
        "w1": w1, "b1": b1,
        "w2": w2.astype(jnp.bfloat16), "b2": b2,
        "w_fc": wf.astype(jnp.bfloat16), "b_fc": bf,
    }


def mnist_supcon_forward(x, prep):
    """x: (N,1,28,28) f32 -> z: (N,128) f32 (SupCon embedding)."""
    n = x.shape[0]
    # dropout p=0.0 and batch-norm disabled => omitted (matches the module).
    col1 = _im2col_conv1(x)                                           # (N*196, 16) f32
    h1 = conv1_stencil(col1, prep["w1"], prep["b1"])                  # (N*196, 128) bf16
    col2 = _im2col_conv2(h1)                                          # (N*49, 1152) bf16
    h2 = matmul_bias(col2, prep["w2"], prep["b2"],
                     relu=True, out_dtype=jnp.bfloat16)               # (N*49, 128) bf16
    flat = h2.reshape(n, 49 * 128)                                    # free reshape
    z = matmul_bias(flat, prep["w_fc"], prep["b_fc"],
                    relu=False, out_dtype=jnp.float32)                # (N, 128) f32
    return z


if __name__ == "__main__":
    key = jax.random.PRNGKey(0)
    kx, kp = jax.random.split(key)
    x = jax.random.normal(kx, (2, 1, 28, 28), jnp.float32)   # NCHW, MNIST-shaped
    params = init_params(kp)
    prep = prepare_params(params)                            # one-time weight prep

    fwd = jax.jit(mnist_supcon_forward)
    z = fwd(x, prep)
    jax.block_until_ready(z)
    assert z.shape == (2, 128) and z.dtype == jnp.float32
    print("KERNEL_OK")
</pallas_src>

<mosaic_0001>
module attributes {stable_mosaic.version = 11 : i64} {
  func.func @_conv1_stencil_kernel(%arg0: i32, %arg1: memref<400x16xf32, #tpu.memory_space<vmem>>, %arg2: memref<16x128xf32, #tpu.memory_space<vmem>>, %arg3: memref<1x128xf32, #tpu.memory_space<vmem>>, %arg4: memref<400x128xbf16, #tpu.memory_space<vmem>>) attributes {dimension_semantics = [#tpu.dimension_semantics<parallel>], iteration_bounds = array<i64: 1>, scalar_prefetch = 0 : i64, scratch_operands = 0 : i64, tpu.core_type = #tpu.core_type<tc>, window_params = [{transform_indices = @transform_0, window_bounds = array<i64: 400, 16>}, {pipeline_mode = #tpu.pipeline_mode<synchronous>, transform_indices = @transform_1, window_bounds = array<i64: 16, 128>}, {pipeline_mode = #tpu.pipeline_mode<synchronous>, transform_indices = @transform_2, window_bounds = array<i64: 1, 128>}, {transform_indices = @transform_3, window_bounds = array<i64: 400, 128>}]} {
    %c0 = arith.constant 0 : index
    %c0_0 = arith.constant 0 : index
    %0 = vector.load %arg1[%c0, %c0_0] : memref<400x16xf32, #tpu.memory_space<vmem>>, vector<400x16xf32>
    %c0_1 = arith.constant 0 : index
    %c0_2 = arith.constant 0 : index
    %1 = vector.load %arg2[%c0_1, %c0_2] : memref<16x128xf32, #tpu.memory_space<vmem>>, vector<16x128xf32>
    %cst = arith.constant 0.000000e+00 : f32
    %2 = vector.broadcast %cst : f32 to vector<400x128xf32>
    %3 = vector.extract_strided_slice %0 {offsets = [0, 0], sizes = [400, 1], strides = [1, 1]} : vector<400x16xf32> to vector<400x1xf32>
    %4 = vector.extract_strided_slice %1 {offsets = [0, 0], sizes = [1, 128], strides = [1, 1]} : vector<16x128xf32> to vector<1x128xf32>
    %5 = vector.broadcast %3 : vector<400x1xf32> to vector<400x128xf32>
    %6 = vector.broadcast %4 : vector<1x128xf32> to vector<400x128xf32>
    %7 = arith.mulf %5, %6 : vector<400x128xf32>
    %8 = arith.addf %2, %7 : vector<400x128xf32>
    %9 = vector.extract_strided_slice %0 {offsets = [0, 1], sizes = [400, 1], strides = [1, 1]} : vector<400x16xf32> to vector<400x1xf32>
    %10 = vector.extract_strided_slice %1 {offsets = [1, 0], sizes = [1, 128], strides = [1, 1]} : vector<16x128xf32> to vector<1x128xf32>
    %11 = vector.broadcast %9 : vector<400x1xf32> to vector<400x128xf32>
    %12 = vector.broadcast %10 : vector<1x128xf32> to vector<400x128xf32>
    %13 = arith.mulf %11, %12 : vector<400x128xf32>
    %14 = arith.addf %8, %13 : vector<400x128xf32>
    %15 = vector.extract_strided_slice %0 {offsets = [0, 2], sizes = [400, 1], strides = [1, 1]} : vector<400x16xf32> to vector<400x1xf32>
    %16 = vector.extract_strided_slice %1 {offsets = [2, 0], sizes = [1, 128], strides = [1, 1]} : vector<16x128xf32> to vector<1x128xf32>
    %17 = vector.broadcast %15 : vector<400x1xf32> to vector<400x128xf32>
    %18 = vector.broadcast %16 : vector<1x128xf32> to vector<400x128xf32>
    %19 = arith.mulf %17, %18 : vector<400x128xf32>
    %20 = arith.addf %14, %19 : vector<400x128xf32>
    %21 = vector.extract_strided_slice %0 {offsets = [0, 3], sizes = [400, 1], strides = [1, 1]} : vector<400x16xf32> to vector<400x1xf32>
    %22 = vector.extract_strided_slice %1 {offsets = [3, 0], sizes = [1, 128], strides = [1, 1]} : vector<16x128xf32> to vector<1x128xf32>
    %23 = vector.broadcast %21 : vector<400x1xf32> to vector<400x128xf32>
    %24 = vector.broadcast %22 : vector<1x128xf32> to vector<400x128xf32>
    %25 = arith.mulf %23, %24 : vector<400x128xf32>
    %26 = arith.addf %20, %25 : vector<400x128xf32>
    %27 = vector.extract_strided_slice %0 {offsets = [0, 4], sizes = [400, 1], strides = [1, 1]} : vector<400x16xf32> to vector<400x1xf32>
    %28 = vector.extract_strided_slice %1 {offsets = [4, 0], sizes = [1, 128], strides = [1, 1]} : vector<16x128xf32> to vector<1x128xf32>
    %29 = vector.broadcast %27 : vector<400x1xf32> to vector<400x128xf32>
    %30 = vector.broadcast %28 : vector<1x128xf32> to vector<400x128xf32>
    %31 = arith.mulf %29, %30 : vector<400x128xf32>
    %32 = arith.addf %26, %31 : vector<400x128xf32>
    %33 = vector.extract_strided_slice %0 {offsets = [0, 5], sizes = [400, 1], strides = [1, 1]} : vector<400x16xf32> to vector<400x1xf32>
    %34 = vector.extract_strided_slice %1 {offsets = [5, 0], sizes = [1, 128], strides = [1, 1]} : vector<16x128xf32> to vector<1x128xf32>
    %35 = vector.broadcast %33 : vector<400x1xf32> to vector<400x128xf32>
    %36 = vector.broadcast %34 : vector<1x128xf32> to vector<400x128xf32>
    %37 = arith.mulf %35, %36 : vector<400x128xf32>
    %38 = arith.addf %32, %37 : vector<400x128xf32>
    %39 = vector.extract_strided_slice %0 {offsets = [0, 6], sizes = [400, 1], strides = [1, 1]} : vector<400x16xf32> to vector<400x1xf32>
    %40 = vector.extract_strided_slice %1 {offsets = [6, 0], sizes = [1, 128], strides = [1, 1]} : vector<16x128xf32> to vector<1x128xf32>
    %41 = vector.broadcast %39 : vector<400x1xf32> to vector<400x128xf32>
    %42 = vector.broadcast %40 : vector<1x128xf32> to vector<400x128xf32>
    %43 = arith.mulf %41, %42 : vector<400x128xf32>
    %44 = arith.addf %38, %43 : vector<400x128xf32>
    %45 = vector.extract_strided_slice %0 {offsets = [0, 7], sizes = [400, 1], strides = [1, 1]} : vector<400x16xf32> to vector<400x1xf32>
    %46 = vector.extract_strided_slice %1 {offsets = [7, 0], sizes = [1, 128], strides = [1, 1]} : vector<16x128xf32> to vector<1x128xf32>
    %47 = vector.broadcast %45 : vector<400x1xf32> to vector<400x128xf32>
    %48 = vector.broadcast %46 : vector<1x128xf32> to vector<400x128xf32>
    %49 = arith.mulf %47, %48 : vector<400x128xf32>
    %50 = arith.addf %44, %49 : vector<400x128xf32>
    %51 = vector.extract_strided_slice %0 {offsets = [0, 8], sizes = [400, 1], strides = [1, 1]} : vector<400x16xf32> to vector<400x1xf32>
    %52 = vector.extract_strided_slice %1 {offsets = [8, 0], sizes = [1, 128], strides = [1, 1]} : vector<16x128xf32> to vector<1x128xf32>
    %53 = vector.broadcast %51 : vector<400x1xf32> to vector<400x128xf32>
    %54 = vector.broadcast %52 : vector<1x128xf32> to vector<400x128xf32>
    %55 = arith.mulf %53, %54 : vector<400x128xf32>
    %56 = arith.addf %50, %55 : vector<400x128xf32>
    %c0_3 = arith.constant 0 : index
    %c0_4 = arith.constant 0 : index
    %57 = vector.load %arg3[%c0_3, %c0_4] : memref<1x128xf32, #tpu.memory_space<vmem>>, vector<1x128xf32>
    %58 = vector.broadcast %57 : vector<1x128xf32> to vector<400x128xf32>
    %59 = arith.addf %56, %58 : vector<400x128xf32>
    %cst_5 = arith.constant 0.000000e+00 : f32
    %60 = vector.broadcast %cst_5 : f32 to vector<400x128xf32>
    %61 = arith.maximumf %59, %60 : vector<400x128xf32>
    %62 = arith.truncf %61 : vector<400x128xf32> to vector<400x128xbf16>
    %c0_6 = arith.constant 0 : index
    %c0_7 = arith.constant 0 : index
    %63 = vector.load %arg4[%c0_6, %c0_7] : memref<400x128xbf16, #tpu.memory_space<vmem>>, vector<400x128xbf16>
    tpu.vector_store %arg4[%c0_6, %c0_7], %62 {strides = array<i32>} : memref<400x128xbf16, #tpu.memory_space<vmem>>, vector<400x128xbf16>,
    return
  }
  func.func @transform_0(%arg0: i32) -> (i32, i32) {
    %c0_i32 = arith.constant 0 : i32
    %c0_i32_0 = arith.constant 0 : i32
    return %arg0, %c0_i32 : i32, i32
  }
  func.func @transform_1(%arg0: i32) -> (i32, i32) {
    %c0_i32 = arith.constant 0 : i32
    %c0_i32_0 = arith.constant 0 : i32
    %c0_i32_1 = arith.constant 0 : i32
    return %c0_i32, %c0_i32_0 : i32, i32
  }
  func.func @transform_2(%arg0: i32) -> (i32, i32) {
    %c0_i32 = arith.constant 0 : i32
    %c0_i32_0 = arith.constant 0 : i32
    %c0_i32_1 = arith.constant 0 : i32
    return %c0_i32, %c0_i32_0 : i32, i32
  }
  func.func @transform_3(%arg0: i32) -> (i32, i32) {
    %c0_i32 = arith.constant 0 : i32
    %c0_i32_0 = arith.constant 0 : i32
    return %arg0, %c0_i32 : i32, i32
  }
}

module attributes {stable_mosaic.version = 11 : i64} {
  func.func @_mm_bias_kernel(%arg0: i32, %arg1: memref<112x1152xbf16, #tpu.memory_space<vmem>>, %arg2: memref<1152x128xbf16, #tpu.memory_space<vmem>>, %arg3: memref<1x128xf32, #tpu.memory_space<vmem>>, %arg4: memref<112x128xbf16, #tpu.memory_space<vmem>>) attributes {dimension_semantics = [#tpu.dimension_semantics<parallel>], iteration_bounds = array<i64: 1>, scalar_prefetch = 0 : i64, scratch_operands = 0 : i64, tpu.core_type = #tpu.core_type<tc>, window_params = [{transform_indices = @transform_0, window_bounds = array<i64: 112, 1152>}, {pipeline_mode = #tpu.pipeline_mode<synchronous>, transform_indices = @transform_1, window_bounds = array<i64: 1152, 128>}, {pipeline_mode = #tpu.pipeline_mode<synchronous>, transform_indices = @transform_2, window_bounds = array<i64: 1, 128>}, {transform_indices = @transform_3, window_bounds = array<i64: 112, 128>}]} {
    %c0 = arith.constant 0 : index
    %c0_0 = arith.constant 0 : index
    %0 = vector.load %arg1[%c0, %c0_0] : memref<112x1152xbf16, #tpu.memory_space<vmem>>, vector<112x1152xbf16>
    %c0_1 = arith.constant 0 : index
    %c0_2 = arith.constant 0 : index
    %1 = vector.load %arg2[%c0_1, %c0_2] : memref<1152x128xbf16, #tpu.memory_space<vmem>>, vector<1152x128xbf16>
    %cst = arith.constant dense<0.000000e+00> : vector<112x128xf32>
    %2 = tpu.matmul %0, %1, %cst {dimension_numbers = #tpu.dot_dimension_numbers<[1], [0], [0], [1], [0, 0, 1, 1], [], []>} : vector<112x1152xbf16>, vector<1152x128xbf16>, vector<112x128xf32> -> vector<112x128xf32>
    %c0_3 = arith.constant 0 : index
    %c0_4 = arith.constant 0 : index
    %3 = vector.load %arg3[%c0_3, %c0_4] : memref<1x128xf32, #tpu.memory_space<vmem>>, vector<1x128xf32>
    %4 = vector.broadcast %3 : vector<1x128xf32> to vector<112x128xf32>
    %5 = arith.addf %2, %4 : vector<112x128xf32>
    %cst_5 = arith.constant 0.000000e+00 : f32
    %6 = vector.broadcast %cst_5 : f32 to vector<112x128xf32>
    %7 = arith.maximumf %5, %6 : vector<112x128xf32>
    %8 = arith.truncf %7 : vector<112x128xf32> to vector<112x128xbf16>
    %c0_6 = arith.constant 0 : index
    %c0_7 = arith.constant 0 : index
    %9 = vector.load %arg4[%c0_6, %c0_7] : memref<112x128xbf16, #tpu.memory_space<vmem>>, vector<112x128xbf16>
    tpu.vector_store %arg4[%c0_6, %c0_7], %8 {strides = array<i32>} : memref<112x128xbf16, #tpu.memory_space<vmem>>, vector<112x128xbf16>,
    return
  }
  func.func @transform_0(%arg0: i32) -> (i32, i32) {
    %c0_i32 = arith.constant 0 : i32
    %c0_i32_0 = arith.constant 0 : i32
    return %arg0, %c0_i32 : i32, i32
  }
  func.func @transform_1(%arg0: i32) -> (i32, i32) {
    %c0_i32 = arith.constant 0 : i32
    %c0_i32_0 = arith.constant 0 : i32
    %c0_i32_1 = arith.constant 0 : i32
    return %c0_i32, %c0_i32_0 : i32, i32
  }
  func.func @transform_2(%arg0: i32) -> (i32, i32) {
    %c0_i32 = arith.constant 0 : i32
    %c0_i32_0 = arith.constant 0 : i32
    %c0_i32_1 = arith.constant 0 : i32
    return %c0_i32, %c0_i32_0 : i32, i32
  }
  func.func @transform_3(%arg0: i32) -> (i32, i32) {
    %c0_i32 = arith.constant 0 : i32
    %c0_i32_0 = arith.constant 0 : i32
    return %arg0, %c0_i32 : i32, i32
  }
}

module attributes {stable_mosaic.version = 11 : i64} {
  func.func @_mm_bias_kernel(%arg0: i32, %arg1: memref<16x6272xbf16, #tpu.memory_space<vmem>>, %arg2: memref<6272x128xbf16, #tpu.memory_space<vmem>>, %arg3: memref<1x128xf32, #tpu.memory_space<vmem>>, %arg4: memref<16x128xf32, #tpu.memory_space<vmem>>) attributes {dimension_semantics = [#tpu.dimension_semantics<parallel>], iteration_bounds = array<i64: 1>, scalar_prefetch = 0 : i64, scratch_operands = 0 : i64, tpu.core_type = #tpu.core_type<tc>, window_params = [{transform_indices = @transform_0, window_bounds = array<i64: 16, 6272>}, {pipeline_mode = #tpu.pipeline_mode<synchronous>, transform_indices = @transform_1, window_bounds = array<i64: 6272, 128>}, {pipeline_mode = #tpu.pipeline_mode<synchronous>, transform_indices = @transform_2, window_bounds = array<i64: 1, 128>}, {transform_indices = @transform_3, window_bounds = array<i64: 16, 128>}]} {
    %c0 = arith.constant 0 : index
    %c0_0 = arith.constant 0 : index
    %0 = vector.load %arg1[%c0, %c0_0] : memref<16x6272xbf16, #tpu.memory_space<vmem>>, vector<16x6272xbf16>
    %c0_1 = arith.constant 0 : index
    %c0_2 = arith.constant 0 : index
    %1 = vector.load %arg2[%c0_1, %c0_2] : memref<6272x128xbf16, #tpu.memory_space<vmem>>, vector<6272x128xbf16>
    %cst = arith.constant dense<0.000000e+00> : vector<16x128xf32>
    %2 = tpu.matmul %0, %1, %cst {dimension_numbers = #tpu.dot_dimension_numbers<[1], [0], [0], [1], [0, 0, 1, 1], [], []>} : vector<16x6272xbf16>, vector<6272x128xbf16>, vector<16x128xf32> -> vector<16x128xf32>
    %c0_3 = arith.constant 0 : index
    %c0_4 = arith.constant 0 : index
    %3 = vector.load %arg3[%c0_3, %c0_4] : memref<1x128xf32, #tpu.memory_space<vmem>>, vector<1x128xf32>
    %4 = vector.broadcast %3 : vector<1x128xf32> to vector<16x128xf32>
    %5 = arith.addf %2, %4 : vector<16x128xf32>
    %c0_5 = arith.constant 0 : index
    %c0_6 = arith.constant 0 : index
    %6 = vector.load %arg4[%c0_5, %c0_6] : memref<16x128xf32, #tpu.memory_space<vmem>>, vector<16x128xf32>
    tpu.vector_store %arg4[%c0_5, %c0_6], %5 {strides = array<i32>} : memref<16x128xf32, #tpu.memory_space<vmem>>, vector<16x128xf32>,
    return
  }
  func.func @transform_0(%arg0: i32) -> (i32, i32) {
    %c0_i32 = arith.constant 0 : i32
    %c0_i32_0 = arith.constant 0 : i32
    return %arg0, %c0_i32 : i32, i32
  }
  func.func @transform_1(%arg0: i32) -> (i32, i32) {
    %c0_i32 = arith.constant 0 : i32
    %c0_i32_0 = arith.constant 0 : i32
    %c0_i32_1 = arith.constant 0 : i32
    return %c0_i32, %c0_i32_0 : i32, i32
  }
  func.func @transform_2(%arg0: i32) -> (i32, i32) {
    %c0_i32 = arith.constant 0 : i32
    %c0_i32_0 = arith.constant 0 : i32
    %c0_i32_1 = arith.constant 0 : i32
    return %c0_i32, %c0_i32_0 : i32, i32
  }
  func.func @transform_3(%arg0: i32) -> (i32, i32) {
    %c0_i32 = arith.constant 0 : i32
    %c0_i32_0 = arith.constant 0 : i32
    return %arg0, %c0_i32 : i32, i32
  }
}

</mosaic_0001>

<bundles_post_ra>
// kernel: mnist_supcon_forward.3
= control target key start
LH: loop header
LB: loop body
LE: loop exit
PB: predicated region body
PF: predicated region fallthrough
CT: control target
= control target key end

     0   :  { %v3802_v2 = vmov 0   ;;  %v3803_v51 = vmov 1   ;;  %s7684_s0 = inlined_call_operand.vmem [shape: f32[392,16], index: 0, kind: input, shape index: {}]   ;;  %s7685_s1 = inlined_call_operand.vmem [shape: f32[16,128], index: 1, kind: input, shape index: {}]   ;;  %s7686_s2 = inlined_call_operand.vmem [shape: f32[1,128], index: 2, kind: input, shape index: {}]   ;;  %s7687_s3 = inlined_call_operand.vmem [shape: bf16[392,128], index: 3, kind: output, shape index: {}]  }
   0x1   :  { %v3834_v0 = vld [vmem:[%s7684_s0 + $0x10] sm:$0xff]  ;;  %v3839_v1 = vld [vmem:[%s7684_s0] sm:$0xff]  ;;  %3710 = vset.pattern.permute.xlu1 %v3802_v2  ;;  %3709 = vset.pattern.permute.xlu0 %v3802_v2  ;;  %v3846_v3 = vld [vmem:[%s7684_s0 + $0x18] sm:$0xff] }
   0x2   :  { %78 = vperm.xlu1 %3710, %v3834_v0   ;;  %68 = vperm.xlu0 %3709, %v3839_v1   ;;  %v3851_v4 = vld [vmem:[%s7684_s0 + $0x8] sm:$0xff]  ;;  %v3863_v6 = vld [vmem:[%s7684_s0 + $0x20] sm:$0xff]  ;;  %v3870_v7 = vld [vmem:[%s7684_s0 + $0x38] sm:$0xff] }
   0x3   :  { %v3858_v5 = vld [vmem:[%s7684_s0 + $0x28] sm:$0xff]  ;;  %v3875_v8 = vld [vmem:[%s7684_s0 + $0x30] sm:$0xff]  ;;  %v3887_v10 = vld [vmem:[%s7684_s0 + $0x40] sm:$0xff] }
   0x4   :  { %v3882_v9 = vld [vmem:[%s7684_s0 + $0x48] sm:$0xff]  ;;  %v3894_v11 = vld [vmem:[%s7684_s0 + $0x58] sm:$0xff]  ;;  %v3899_v12 = vld [vmem:[%s7684_s0 + $0x50] sm:$0xff] }
   0x5   :  { %v3906_v13 = vld [vmem:[%s7684_s0 + $0x68] sm:$0xff]  ;;  %v3911_v14 = vld [vmem:[%s7684_s0 + $0x60] sm:$0xff]  ;;  %v3918_v15 = vld [vmem:[%s7684_s0 + $0x78] sm:$0xff] }
   0x6   :  { %83 = vperm.xlu1 %3710, %v3846_v3   ;;  %73 = vperm.xlu0 %3709, %v3851_v4   ;;  %v3923_v16 = vld [vmem:[%s7684_s0 + $0x70] sm:$0xff]  ;;  %v3930_v17 = vld [vmem:[%s7684_s0 + $0x88] sm:$0xff]  ;;  %v3935_v18 = vld [vmem:[%s7684_s0 + $0x80] sm:$0xff] }
   0x7   :  { %v3942_v19 = vld [vmem:[%s7684_s0 + $0x98] sm:$0xff]  ;;  %v3947_v20 = vld [vmem:[%s7684_s0 + $0x90] sm:$0xff]  ;;  %v3954_v21 = vld [vmem:[%s7684_s0 + $0xa8] sm:$0xff] }
   0x8   :  { %v3959_v22 = vld [vmem:[%s7684_s0 + $0xa0] sm:$0xff]  ;;  %v3966_v23 = vld [vmem:[%s7684_s0 + $0xb8] sm:$0xff]  ;;  %v3971_v24 = vld [vmem:[%s7684_s0 + $0xb0] sm:$0xff] }
   0x9   :  { %v3978_v25 = vld [vmem:[%s7684_s0 + $0xc8] sm:$0xff]  ;;  %v3983_v26 = vld [vmem:[%s7684_s0 + $0xc0] sm:$0xff]  ;;  %v3990_v27 = vld [vmem:[%s7684_s0 + $0xd8] sm:$0xff] }
   0xa   :  { %93 = vperm.xlu1 %3710, %v3858_v5   ;;  %88 = vperm.xlu0 %3709, %v3863_v6   ;;  %v3995_v28 = vld [vmem:[%s7684_s0 + $0xd0] sm:$0xff]  ;;  %v4002_v29 = vld [vmem:[%s7684_s0 + $0xe8] sm:$0xff]  ;;  %v4007_v30 = vld [vmem:[%s7684_s0 + $0xe0] sm:$0xff] }
   0xb   :  { %v4014_v31 = vld [vmem:[%s7684_s0 + $0xf8] sm:$0xff]  ;;  %v4019_v32 = vld [vmem:[%s7684_s0 + $0xf0] sm:$0xff]  ;;  %v4026_v33 = vld [vmem:[%s7684_s0 + $0x108] sm:$0xff] }
   0xc   :  { %v4031_v34 = vld [vmem:[%s7684_s0 + $0x100] sm:$0xff]  ;;  %v4038_v35 = vld [vmem:[%s7684_s0 + $0x118] sm:$0xff]  ;;  %v4043_v36 = vld [vmem:[%s7684_s0 + $0x110] sm:$0xff] }
   0xd   :  { %v4050_v37 = vld [vmem:[%s7684_s0 + $0x128] sm:$0xff]  ;;  %v4055_v38 = vld [vmem:[%s7684_s0 + $0x120] sm:$0xff]  ;;  %v4062_v39 = vld [vmem:[%s7684_s0 + $0x138] sm:$0xff] }
   0xe   :  { %103 = vperm.xlu1 %3710, %v3870_v7   ;;  %98 = vperm.xlu0 %3709, %v3875_v8   ;;  %v4067_v40 = vld [vmem:[%s7684_s0 + $0x130] sm:$0xff]  ;;  %v4074_v41 = vld [vmem:[%s7684_s0 + $0x148] sm:$0xff]  ;;  %v4079_v42 = vld [vmem:[%s7684_s0 + $0x140] sm:$0xff] }
   0xf   :  { %v4086_v43 = vld [vmem:[%s7684_s0 + $0x158] sm:$0xff]  ;;  %v4091_v44 = vld [vmem:[%s7684_s0 + $0x150] sm:$0xff]  ;;  %v4098_v45 = vld [vmem:[%s7684_s0 + $0x168] sm:$0xff] }
  0x10   :  { %v4103_v46 = vld [vmem:[%s7684_s0 + $0x160] sm:$0xff]  ;;  %v4110_v47 = vld [vmem:[%s7684_s0 + $0x178] sm:$0xff]  ;;  %v4115_v48 = vld [vmem:[%s7684_s0 + $0x170] sm:$0xff] }
  0x11   :  { %v4122_v49 = vld [vmem:[%s7684_s0 + $0x188] sm:$0xff]  ;;  %v4127_v50 = vld [vmem:[%s7684_s0 + $0x180] sm:$0xff] }
  0x12   :  { %113 = vperm.xlu1 %3710, %v3882_v9   ;;  %108 = vperm.xlu0 %3709, %v3887_v10  }
  0x16   :  { %123 = vperm.xlu1 %3710, %v3894_v11   ;;  %118 = vperm.xlu0 %3709, %v3899_v12  }
  0x1a   :  { %133 = vperm.xlu1 %3710, %v3906_v13   ;;  %128 = vperm.xlu0 %3709, %v3911_v14  }
  0x1e   :  { %143 = vperm.xlu1 %3710, %v3918_v15   ;;  %138 = vperm.xlu0 %3709, %v3923_v16  }
  0x22   :  { %153 = vperm.xlu1 %3710, %v3930_v17   ;;  %148 = vperm.xlu0 %3709, %v3935_v18  }
  0x26   :  { %163 = vperm.xlu1 %3710, %v3942_v19   ;;  %158 = vperm.xlu0 %3709, %v3947_v20  }
  0x2a   :  { %173 = vperm.xlu1 %3710, %v3954_v21   ;;  %168 = vperm.xlu0 %3709, %v3959_v22  }
  0x2e   :  { %183 = vperm.xlu1 %3710, %v3966_v23   ;;  %178 = vperm.xlu0 %3709, %v3971_v24  }
  0x32   :  { %193 = vperm.xlu1 %3710, %v3978_v25   ;;  %188 = vperm.xlu0 %3709, %v3983_v26  }
  0x36   :  { %203 = vperm.xlu1 %3710, %v3990_v27   ;;  %198 = vperm.xlu0 %3709, %v3995_v28  }
  0x3a   :  { %213 = vperm.xlu1 %3710, %v4002_v29   ;;  %208 = vperm.xlu0 %3709, %v4007_v30  }
  0x3e   :  { %223 = vperm.xlu1 %3710, %v4014_v31   ;;  %218 = vperm.xlu0 %3709, %v4019_v32  }
  0x42   :  { %233 = vperm.xlu1 %3710, %v4026_v33   ;;  %228 = vperm.xlu0 %3709, %v4031_v34  }
  0x46   :  { %243 = vperm.xlu1 %3710, %v4038_v35   ;;  %238 = vperm.xlu0 %3709, %v4043_v36  }
  0x4a   :  { %253 = vperm.xlu1 %3710, %v4050_v37   ;;  %248 = vperm.xlu0 %3709, %v4055_v38  }
  0x4e   :  { %263 = vperm.xlu1 %3710, %v4062_v39   ;;  %258 = vperm.xlu0 %3709, %v4067_v40  }
  0x52   :  { %273 = vperm.xlu1 %3710, %v4074_v41   ;;  %268 = vperm.xlu0 %3709, %v4079_v42  }
  0x56   :  { %283 = vperm.xlu1 %3710, %v4086_v43   ;;  %278 = vperm.xlu0 %3709, %v4091_v44  }
  0x5a   :  { %293 = vperm.xlu1 %3710, %v4098_v45   ;;  %288 = vperm.xlu0 %3709, %v4103_v46  }
  0x5e   :  { %303 = vperm.xlu1 %3710, %v4110_v47   ;;  %298 = vperm.xlu0 %3709, %v4115_v48  }
  0x62   :  { %313 = vperm.xlu1 %3710, %v4122_v49   ;;  %308 = vperm.xlu0 %3709, %v4127_v50  }
  0x66   :  { %3712 = vset.pattern.permute.xlu1 %v3803_v51  ;;  %3711 = vset.pattern.permute.xlu0 %v3803_v51 }
  0x67   :  { %425 = vperm.xlu1 %3712, %v3851_v4   ;;  %421 = vperm.xlu0 %3711, %v3839_v1  }
  0x6b   :  { %429 = vperm.xlu1 %3712, %v3834_v0   ;;  %433 = vperm.xlu0 %3711, %v3846_v3  }
  0x6f   :  { %437 = vperm.xlu1 %3712, %v3863_v6   ;;  %441 = vperm.xlu0 %3711, %v3858_v5  }
  0x73   :  { %445 = vperm.xlu1 %3712, %v3875_v8   ;;  %449 = vperm.xlu0 %3711, %v3870_v7  }
  0x77   :  { %453 = vperm.xlu1 %3712, %v3887_v10   ;;  %457 = vperm.xlu0 %3711, %v3882_v9  }
  0x7b   :  { %461 = vperm.xlu1 %3712, %v3899_v12   ;;  %465 = vperm.xlu0 %3711, %v3894_v11  }
  0x7d   :  { %v4143_v52 = vpop.permute.xlu1 %78  ;;  %v4145_v53 = vpop.permute.xlu0 %68 }
  0x7f   :  { %469 = vperm.xlu1 %3712, %v3911_v14   ;;  %473 = vperm.xlu0 %3711, %v3906_v13  }
  0x81   :  { %v4149_v54 = vpop.permute.xlu1 %83  ;;  %v4151_v55 = vpop.permute.xlu0 %73 }
  0x83   :  { %477 = vperm.xlu1 %3712, %v3923_v16   ;;  %481 = vperm.xlu0 %3711, %v3918_v15  }
  0x85   :  { %v4155_v56 = vpop.permute.xlu1 %93  ;;  %v4157_v57 = vpop.permute.xlu0 %88 }
  0x87   :  { %485 = vperm.xlu1 %3712, %v3935_v18   ;;  %489 = vperm.xlu0 %3711, %v3930_v17  }
  0x89   :  { %v4161_v58 = vpop.permute.xlu1 %103  ;;  %v4163_v59 = vpop.permute.xlu0 %98 }
  0x8a   :  { %7714 = vst [vmem:[#allocation3_spill] sm:$0xff] %v4163_v59  ;;  %v3804_v59 = vmov 2  }
  0x8b   :  { %493 = vperm.xlu1 %3712, %v3947_v20   ;;  %497 = vperm.xlu0 %3711, %v3942_v19  }
  0x8d   :  { %v4167_v60 = vpop.permute.xlu1 %113  ;;  %v4169_v61 = vpop.permute.xlu0 %108 }
  0x8e   :  { %7715 = vst [vmem:[#allocation4_spill] sm:$0xff] %v4167_v60  ;;  %7716 = vst [vmem:[#allocation5_spill] sm:$0xff] %v4169_v61 }
  0x8f   :  { %501 = vperm.xlu1 %3712, %v3959_v22   ;;  %505 = vperm.xlu0 %3711, %v3954_v21  }
  0x91   :  { %v4173_v62 = vpop.permute.xlu1 %123  ;;  %v4175_v63 = vpop.permute.xlu0 %118 }
  0x92   :  { %7717 = vst [vmem:[#allocation6_spill] sm:$0xff] %v4173_v62  ;;  %7718 = vst [vmem:[#allocation7_spill] sm:$0xff] %v4175_v63 }
  0x93   :  { %509 = vperm.xlu1 %3712, %v3971_v24   ;;  %513 = vperm.xlu0 %3711, %v3966_v23  }
  0x95   :  { %v4179_v2 = vpop.permute.xlu1 %133  ;;  %v4181_v51 = vpop.permute.xlu0 %128 }
  0x96   :  { %7719 = vst [vmem:[#allocation8_spill] sm:$0xff] %v4179_v2  ;;  %7720 = vst [vmem:[#allocation9_spill] sm:$0xff] %v4181_v51 }
  0x97   :  { %517 = vperm.xlu1 %3712, %v3983_v26   ;;  %521 = vperm.xlu0 %3711, %v3978_v25  }
  0x99   :  { %v4185_v61 = vpop.permute.xlu1 %143  ;;  %v4187_v60 = vpop.permute.xlu0 %138 }
  0x9a   :  { %7721 = vst [vmem:[#allocation10_spill] sm:$0xff] %v4185_v61  ;;  %7722 = vst [vmem:[#allocation11_spill] sm:$0xff] %v4187_v60 }
  0x9b   :  { %525 = vperm.xlu1 %3712, %v3995_v28   ;;  %529 = vperm.xlu0 %3711, %v3990_v27  }
  0x9d   :  { %v4191_v63 = vpop.permute.xlu1 %153  ;;  %v4193_v62 = vpop.permute.xlu0 %148 }
  0x9e   :  { %7723 = vst [vmem:[#allocation12_spill] sm:$0xff] %v4191_v63  ;;  %7724 = vst [vmem:[#allocation13_spill] sm:$0xff] %v4193_v62 }
  0x9f   :  { %533 = vperm.xlu1 %3712, %v4007_v30   ;;  %537 = vperm.xlu0 %3711, %v4002_v29  }
  0xa1   :  { %v4197_v51 = vpop.permute.xlu1 %163  ;;  %v4199_v2 = vpop.permute.xlu0 %158 }
  0xa2   :  { %7725 = vst [vmem:[#allocation14_spill] sm:$0xff] %v4197_v51  ;;  %7726 = vst [vmem:[#allocation15_spill] sm:$0xff] %v4199_v2 }
  0xa3   :  { %541 = vperm.xlu1 %3712, %v4019_v32   ;;  %545 = vperm.xlu0 %3711, %v4014_v31  }
  0xa5   :  { %v4203_v60 = vpop.permute.xlu1 %173  ;;  %v4205_v61 = vpop.permute.xlu0 %168 }
  0xa6   :  { %7727 = vst [vmem:[#allocation16_spill] sm:$0xff] %v4203_v60  ;;  %7728 = vst [vmem:[#allocation17_spill] sm:$0xff] %v4205_v61 }
  0xa7   :  { %549 = vperm.xlu1 %3712, %v4031_v34   ;;  %553 = vperm.xlu0 %3711, %v4026_v33  }
  0xa9   :  { %v4209_v62 = vpop.permute.xlu1 %183  ;;  %v4211_v63 = vpop.permute.xlu0 %178 }
  0xaa   :  { %7729 = vst [vmem:[#allocation18_spill] sm:$0xff] %v4209_v62  ;;  %7730 = vst [vmem:[#allocation19_spill] sm:$0xff] %v4211_v63 }
  0xab   :  { %557 = vperm.xlu1 %3712, %v4043_v36   ;;  %561 = vperm.xlu0 %3711, %v4038_v35  }
  0xad   :  { %v4215_v2 = vpop.permute.xlu1 %193  ;;  %v4217_v51 = vpop.permute.xlu0 %188 }
  0xae   :  { %7731 = vst [vmem:[#allocation20_spill] sm:$0xff] %v4215_v2  ;;  %7732 = vst [vmem:[#allocation21_spill] sm:$0xff] %v4217_v51 }
  0xaf   :  { %565 = vperm.xlu1 %3712, %v4055_v38   ;;  %569 = vperm.xlu0 %3711, %v4050_v37  }
  0xb1   :  { %v4221_v61 = vpop.permute.xlu1 %203  ;;  %v4223_v60 = vpop.permute.xlu0 %198 }
  0xb2   :  { %7733 = vst [vmem:[#allocation22_spill] sm:$0xff] %v4221_v61  ;;  %7734 = vst [vmem:[#allocation23_spill] sm:$0xff] %v4223_v60 }
  0xb3   :  { %573 = vperm.xlu1 %3712, %v4067_v40   ;;  %577 = vperm.xlu0 %3711, %v4062_v39  }
  0xb5   :  { %v4227_v63 = vpop.permute.xlu1 %213  ;;  %v4229_v62 = vpop.permute.xlu0 %208 }
  0xb6   :  { %7735 = vst [vmem:[#allocation24_spill] sm:$0xff] %v4227_v63  ;;  %7736 = vst [vmem:[#allocation25_spill] sm:$0xff] %v4229_v62 }
  0xb7   :  { %581 = vperm.xlu1 %3712, %v4079_v42   ;;  %585 = vperm.xlu0 %3711, %v4074_v41  }
  0xb9   :  { %v4233_v51 = vpop.permute.xlu1 %223  ;;  %v4235_v2 = vpop.permute.xlu0 %218 }
  0xba   :  { %7737 = vst [vmem:[#allocation26_spill] sm:$0xff] %v4233_v51  ;;  %7738 = vst [vmem:[#allocation27_spill] sm:$0xff] %v4235_v2 }
  0xbb   :  { %589 = vperm.xlu1 %3712, %v4091_v44   ;;  %593 = vperm.xlu0 %3711, %v4086_v43  }
  0xbd   :  { %v4239_v60 = vpop.permute.xlu1 %233  ;;  %v4241_v61 = vpop.permute.xlu0 %228 }
  0xbe   :  { %7739 = vst [vmem:[#allocation28_spill] sm:$0xff] %v4239_v60  ;;  %7740 = vst [vmem:[#allocation29_spill] sm:$0xff] %v4241_v61 }
  0xbf   :  { %597 = vperm.xlu1 %3712, %v4103_v46   ;;  %601 = vperm.xlu0 %3711, %v4098_v45  }
  0xc1   :  { %v4245_v62 = vpop.permute.xlu1 %243  ;;  %v4247_v63 = vpop.permute.xlu0 %238 }
  0xc2   :  { %7741 = vst [vmem:[#allocation30_spill] sm:$0xff] %v4245_v62  ;;  %7742 = vst [vmem:[#allocation31_spill] sm:$0xff] %v4247_v63 }
  0xc3   :  { %605 = vperm.xlu1 %3712, %v4115_v48   ;;  %609 = vperm.xlu0 %3711, %v4110_v47  }
  0xc5   :  { %v4251_v2 = vpop.permute.xlu1 %253  ;;  %v4253_v51 = vpop.permute.xlu0 %248 }
  0xc6   :  { %7743 = vst [vmem:[#allocation32_spill] sm:$0xff] %v4251_v2  ;;  %7744 = vst [vmem:[#allocation33_spill] sm:$0xff] %v4253_v51 }
  0xc7   :  { %613 = vperm.xlu1 %3712, %v4127_v50   ;;  %617 = vperm.xlu0 %3711, %v4122_v49  }
  0xc9   :  { %v4257_v61 = vpop.permute.xlu1 %263  ;;  %v4259_v60 = vpop.permute.xlu0 %258 }
  0xca   :  { %7745 = vst [vmem:[#allocation34_spill] sm:$0xff] %v4257_v61  ;;  %7746 = vst [vmem:[#allocation35_spill] sm:$0xff] %v4259_v60 }
  0xcb   :  { %3713 = vset.pattern.permute.xlu1 %v3804_v59  ;;  %3714 = vset.pattern.permute.xlu0 %v3804_v59 }
  0xcc   :  { %725 = vperm.xlu1 %3713, %v3839_v1   ;;  %729 = vperm.xlu0 %3714, %v3851_v4  }
  0xcd   :  { %v4263_v63 = vpop.permute.xlu1 %273  ;;  %v4265_v2 = vpop.permute.xlu0 %268 }
  0xce   :  { %7747 = vst [vmem:[#allocation36_spill] sm:$0xff] %v4263_v63  ;;  %7748 = vst [vmem:[#allocation37_spill] sm:$0xff] %v4265_v2 }
  0xd0   :  { %733 = vperm.xlu1 %3713, %v3834_v0   ;;  %741 = vperm.xlu0 %3714, %v3863_v6  }
  0xd1   :  { %v4269_v51 = vpop.permute.xlu1 %283  ;;  %v4271_v61 = vpop.permute.xlu0 %278 }
  0xd2   :  { %7749 = vst [vmem:[#allocation38_spill] sm:$0xff] %v4269_v51  ;;  %7750 = vst [vmem:[#allocation39_spill] sm:$0xff] %v4271_v61 }
  0xd4   :  { %737 = vperm.xlu1 %3713, %v3846_v3   ;;  %749 = vperm.xlu0 %3714, %v3875_v8  }
  0xd5   :  { %v4275_v59 = vpop.permute.xlu1 %293  ;;  %v4277_v60 = vpop.permute.xlu0 %288 }
  0xd6   :  { %7751 = vst [vmem:[#allocation40_spill] sm:$0xff] %v4275_v59  ;;  %7752 = vst [vmem:[#allocation41_spill] sm:$0xff] %v4277_v60 }
  0xd8   :  { %745 = vperm.xlu1 %3713, %v3858_v5   ;;  %757 = vperm.xlu0 %3714, %v3887_v10  }
  0xd9   :  { %v4281_v2 = vpop.permute.xlu1 %303  ;;  %v4283_v63 = vpop.permute.xlu0 %298 }
  0xda   :  { %7753 = vst [vmem:[#allocation42_spill] sm:$0xff] %v4281_v2  ;;  %7754 = vst [vmem:[#allocation43_spill] sm:$0xff] %v4283_v63 }
  0xdc   :  { %753 = vperm.xlu1 %3713, %v3870_v7   ;;  %765 = vperm.xlu0 %3714, %v3899_v12  }
  0xdd   :  { %v4287_v61 = vpop.permute.xlu1 %313  ;;  %v4289_v51 = vpop.permute.xlu0 %308 }
  0xde   :  { %7755 = vst [vmem:[#allocation44_spill] sm:$0xff] %v4287_v61  ;;  %7756 = vst [vmem:[#allocation45_spill] sm:$0xff] %v4289_v51 }
  0xe0   :  { %761 = vperm.xlu1 %3713, %v3882_v9   ;;  %773 = vperm.xlu0 %3714, %v3911_v14  }
  0xe2   :  { %v4293_v60 = vpop.permute.xlu1 %425  ;;  %v4295_v59 = vpop.permute.xlu0 %421 }
  0xe3   :  { %7757 = vst [vmem:[#allocation46_spill] sm:$0xff] %v4293_v60  ;;  %7758 = vst [vmem:[#allocation47_spill] sm:$0xff] %v4295_v59 }
  0xe4   :  { %769 = vperm.xlu1 %3713, %v3894_v11   ;;  %781 = vperm.xlu0 %3714, %v3923_v16  }
  0xe6   :  { %v4299_v63 = vpop.permute.xlu1 %429  ;;  %v4301_v2 = vpop.permute.xlu0 %433 }
  0xe7   :  { %7759 = vst [vmem:[#allocation48_spill] sm:$0xff] %v4299_v63  ;;  %7760 = vst [vmem:[#allocation49_spill] sm:$0xff] %v4301_v2 }
  0xe8   :  { %777 = vperm.xlu1 %3713, %v3906_v13   ;;  %789 = vperm.xlu0 %3714, %v3935_v18  }
  0xea   :  { %v4305_v51 = vpop.permute.xlu1 %437  ;;  %v4307_v61 = vpop.permute.xlu0 %441 }
  0xeb   :  { %7761 = vst [vmem:[#allocation50_spill] sm:$0xff] %v4305_v51  ;;  %7762 = vst [vmem:[#allocation51_spill] sm:$0xff] %v4307_v61 }
  0xec   :  { %785 = vperm.xlu1 %3713, %v3918_v15   ;;  %797 = vperm.xlu0 %3714, %v3947_v20  }
  0xee   :  { %v4311_v59 = vpop.permute.xlu1 %445  ;;  %v4313_v60 = vpop.permute.xlu0 %449 }
  0xef   :  { %7763 = vst [vmem:[#allocation52_spill] sm:$0xff] %v4311_v59  ;;  %7764 = vst [vmem:[#allocation53_spill] sm:$0xff] %v4313_v60 }
  0xf0   :  { %793 = vperm.xlu1 %3713, %v3930_v17   ;;  %805 = vperm.xlu0 %3714, %v3959_v22  }
  0xf2   :  { %v4317_v2 = vpop.permute.xlu1 %453  ;;  %v4319_v63 = vpop.permute.xlu0 %457 }
  0xf3   :  { %7765 = vst [vmem:[#allocation54_spill] sm:$0xff] %v4317_v2  ;;  %7766 = vst [vmem:[#allocation55_spill] sm:$0xff] %v4319_v63 }
  0xf4   :  { %801 = vperm.xlu1 %3713, %v3942_v19   ;;  %813 = vperm.xlu0 %3714, %v3971_v24  }
  0xf6   :  { %v4323_v61 = vpop.permute.xlu1 %461  ;;  %v4325_v51 = vpop.permute.xlu0 %465 }
  0xf7   :  { %7767 = vst [vmem:[#allocation56_spill] sm:$0xff] %v4323_v61  ;;  %7768 = vst [vmem:[#allocation57_spill] sm:$0xff] %v4325_v51 }
  0xf8   :  { %809 = vperm.xlu1 %3713, %v3954_v21   ;;  %821 = vperm.xlu0 %3714, %v3983_v26  }
  0xfa   :  { %v4329_v60 = vpop.permute.xlu1 %469  ;;  %v4331_v59 = vpop.permute.xlu0 %473 }
  0xfb   :  { %7769 = vst [vmem:[#allocation58_spill] sm:$0xff] %v4329_v60  ;;  %7770 = vst [vmem:[#allocation59_spill] sm:$0xff] %v4331_v59 }
  0xfc   :  { %817 = vperm.xlu1 %3713, %v3966_v23   ;;  %829 = vperm.xlu0 %3714, %v3995_v28  }
  0xfe   :  { %v4335_v63 = vpop.permute.xlu1 %477  ;;  %v4337_v2 = vpop.permute.xlu0 %481 }
  0xff   :  { %7771 = vst [vmem:[#allocation60_spill] sm:$0xff] %v4335_v63  ;;  %7772 = vst [vmem:[#allocation61_spill] sm:$0xff] %v4337_v2 }
 0x100   :  { %825 = vperm.xlu1 %3713, %v3978_v25   ;;  %837 = vperm.xlu0 %3714, %v4007_v30  }
 0x102   :  { %v4341_v51 = vpop.permute.xlu1 %485  ;;  %v4343_v61 = vpop.permute.xlu0 %489 }
 0x103   :  { %7773 = vst [vmem:[#allocation62_spill] sm:$0xff] %v4341_v51  ;;  %7774 = vst [vmem:[#allocation63_spill] sm:$0xff] %v4343_v61 }
 0x104   :  { %833 = vperm.xlu1 %3713, %v3990_v27   ;;  %845 = vperm.xlu0 %3714, %v4019_v32  }
 0x106   :  { %v4347_v59 = vpop.permute.xlu1 %493  ;;  %v4349_v60 = vpop.permute.xlu0 %497 }
 0x107   :  { %7775 = vst [vmem:[#allocation64_spill] sm:$0xff] %v4347_v59  ;;  %7776 = vst [vmem:[#allocation65_spill] sm:$0xff] %v4349_v60 }
 0x108   :  { %841 = vperm.xlu1 %3713, %v4002_v29   ;;  %853 = vperm.xlu0 %3714, %v4031_v34  }
 0x10a   :  { %v4353_v2 = vpop.permute.xlu1 %501  ;;  %v4355_v63 = vpop.permute.xlu0 %505 }
 0x10b   :  { %7777 = vst [vmem:[#allocation66_spill] sm:$0xff] %v4353_v2  ;;  %7778 = vst [vmem:[#allocation67_spill] sm:$0xff] %v4355_v63 }
 0x10c   :  { %849 = vperm.xlu1 %3713, %v4014_v31   ;;  %861 = vperm.xlu0 %3714, %v4043_v36  }
 0x10e   :  { %v4359_v61 = vpop.permute.xlu1 %509  ;;  %v4361_v51 = vpop.permute.xlu0 %513 }
 0x10f   :  { %7779 = vst [vmem:[#allocation68_spill] sm:$0xff] %v4359_v61  ;;  %7780 = vst [vmem:[#allocation69_spill] sm:$0xff] %v4361_v51 }
 0x110   :  { %857 = vperm.xlu1 %3713, %v4026_v33   ;;  %869 = vperm.xlu0 %3714, %v4055_v38  }
 0x112   :  { %v4365_v60 = vpop.permute.xlu1 %517  ;;  %v4367_v59 = vpop.permute.xlu0 %521 }
 0x113   :  { %7781 = vst [vmem:[#allocation70_spill] sm:$0xff] %v4365_v60  ;;  %7782 = vst [vmem:[#allocation71_spill] sm:$0xff] %v4367_v59 }
 0x114   :  { %865 = vperm.xlu1 %3713, %v4038_v35   ;;  %877 = vperm.xlu0 %3714, %v4067_v40  }
 0x116   :  { %v4371_v63 = vpop.permute.xlu1 %525  ;;  %v4373_v2 = vpop.permute.xlu0 %529 }
 0x117   :  { %7783 = vst [vmem:[#allocation72_spill] sm:$0xff] %v4371_v63  ;;  %7784 = vst [vmem:[#allocation73_spill] sm:$0xff] %v4373_v2 }
 0x118   :  { %873 = vperm.xlu1 %3713, %v4050_v37   ;;  %885 = vperm.xlu0 %3714, %v4079_v42  }
 0x11a   :  { %v4377_v51 = vpop.permute.xlu1 %533  ;;  %v4379_v61 = vpop.permute.xlu0 %537 }
 0x11b   :  { %7785 = vst [vmem:[#allocation74_spill] sm:$0xff] %v4377_v51  ;;  %7786 = vst [vmem:[#allocation75_spill] sm:$0xff] %v4379_v61 }
 0x11c   :  { %881 = vperm.xlu1 %3713, %v4062_v39   ;;  %893 = vperm.xlu0 %3714, %v4091_v44  }
 0x11e   :  { %v4383_v59 = vpop.permute.xlu1 %541  ;;  %v4385_v60 = vpop.permute.xlu0 %545 }
 0x11f   :  { %7787 = vst [vmem:[#allocation76_spill] sm:$0xff] %v4383_v59  ;;  %7788 = vst [vmem:[#allocation77_spill] sm:$0xff] %v4385_v60 }
 0x120   :  { %889 = vperm.xlu1 %3713, %v4074_v41   ;;  %901 = vperm.xlu0 %3714, %v4103_v46  }
 0x122   :  { %v4389_v2 = vpop.permute.xlu1 %549  ;;  %v4391_v63 = vpop.permute.xlu0 %553 }
 0x123   :  { %7789 = vst [vmem:[#allocation78_spill] sm:$0xff] %v4389_v2  ;;  %7790 = vst [vmem:[#allocation79_spill] sm:$0xff] %v4391_v63  ;;  %v3805_v2 = vmov 3  }
 0x124   :  { %897 = vperm.xlu1 %3713, %v4086_v43   ;;  %909 = vperm.xlu0 %3714, %v4115_v48  }
 0x126   :  { %v4395_v61 = vpop.permute.xlu1 %557  ;;  %v4397_v51 = vpop.permute.xlu0 %561 }
 0x127   :  { %7791 = vst [vmem:[#allocation80_spill] sm:$0xff] %v4395_v61  ;;  %7792 = vst [vmem:[#allocation81_spill] sm:$0xff] %v4397_v51 }
 0x128   :  { %905 = vperm.xlu1 %3713, %v4098_v45   ;;  %917 = vperm.xlu0 %3714, %v4127_v50  }
 0x12a   :  { %v4401_v60 = vpop.permute.xlu1 %565  ;;  %v4403_v59 = vpop.permute.xlu0 %569 }
 0x12b   :  { %7793 = vst [vmem:[#allocation82_spill] sm:$0xff] %v4401_v60  ;;  %7794 = vst [vmem:[#allocation83_spill] sm:$0xff] %v4403_v59 }
 0x12c   :  { %913 = vperm.xlu1 %3713, %v4110_v47   ;;  %3715 = vset.pattern.permute.xlu0 %v3805_v2 }
 0x12d   :  { %1029 = vperm.xlu0 %3715, %v3839_v1  }
 0x12e   :  { %v4407_v63 = vpop.permute.xlu1 %573  ;;  %v4409_v62 = vpop.permute.xlu0 %577 }
 0x12f   :  { %7795 = vst [vmem:[#allocation84_spill] sm:$0xff] %v4407_v63  ;;  %7796 = vst [vmem:[#allocation85_spill] sm:$0xff] %v4409_v62 }
 0x130   :  { %921 = vperm.xlu1 %3713, %v4122_v49  }
 0x131   :  { %1041 = vperm.xlu0 %3715, %v3846_v3  }
 0x132   :  { %v4413_v51 = vpop.permute.xlu1 %581  ;;  %v4415_v61 = vpop.permute.xlu0 %585 }
 0x133   :  { %7797 = vst [vmem:[#allocation86_spill] sm:$0xff] %v4413_v51  ;;  %7798 = vst [vmem:[#allocation87_spill] sm:$0xff] %v4415_v61 }
 0x134   :  { %3716 = vset.pattern.permute.xlu1 %v3805_v2 }
 0x135   :  { %1033 = vperm.xlu1 %3716, %v3851_v4   ;;  %1049 = vperm.xlu0 %3715, %v3858_v5  }
 0x136   :  { %v4419_v59 = vpop.permute.xlu1 %589  ;;  %v4421_v60 = vpop.permute.xlu0 %593 }
 0x137   :  { %7799 = vst [vmem:[#allocation88_spill] sm:$0xff] %v4419_v59  ;;  %7800 = vst [vmem:[#allocation89_spill] sm:$0xff] %v4421_v60 }
 0x139   :  { %1037 = vperm.xlu1 %3716, %v3834_v0   ;;  %1057 = vperm.xlu0 %3715, %v3870_v7  }
 0x13a   :  { %v4425_v62 = vpop.permute.xlu1 %597  ;;  %v4427_v63 = vpop.permute.xlu0 %601 }
 0x13b   :  { %7801 = vst [vmem:[#allocation90_spill] sm:$0xff] %v4425_v62  ;;  %7802 = vst [vmem:[#allocation91_spill] sm:$0xff] %v4427_v63 }
 0x13d   :  { %1045 = vperm.xlu1 %3716, %v3863_v6   ;;  %1065 = vperm.xlu0 %3715, %v3882_v9  }
 0x13e   :  { %v4431_v2 = vpop.permute.xlu1 %605  ;;  %v4433_v61 = vpop.permute.xlu0 %609 }
 0x13f   :  { %7803 = vst [vmem:[#allocation92_spill] sm:$0xff] %v4431_v2  ;;  %7804 = vst [vmem:[#allocation93_spill] sm:$0xff] %v4433_v61 }
 0x141   :  { %1053 = vperm.xlu1 %3716, %v3875_v8   ;;  %1073 = vperm.xlu0 %3715, %v3894_v11  }
 0x142   :  { %v4437_v60 = vpop.permute.xlu1 %613  ;;  %v4439_v59 = vpop.permute.xlu0 %617 }
 0x143   :  { %7805 = vst [vmem:[#allocation94_spill] sm:$0xff] %v4437_v60  ;;  %7806 = vst [vmem:[#allocation95_spill] sm:$0xff] %v4439_v59 }
 0x145   :  { %1061 = vperm.xlu1 %3716, %v3887_v10   ;;  %1081 = vperm.xlu0 %3715, %v3906_v13  }
 0x147   :  { %v4443_v63 = vpop.permute.xlu1 %725  ;;  %v4445_v62 = vpop.permute.xlu0 %729 }
 0x148   :  { %7807 = vst [vmem:[#allocation96_spill] sm:$0xff] %v4443_v63  ;;  %7808 = vst [vmem:[#allocation97_spill] sm:$0xff] %v4445_v62 }
 0x149   :  { %1069 = vperm.xlu1 %3716, %v3899_v12   ;;  %1089 = vperm.xlu0 %3715, %v3918_v15  }
 0x14b   :  { %v4449_v61 = vpop.permute.xlu1 %733  ;;  %v4451_v2 = vpop.permute.xlu0 %741 }
 0x14c   :  { %7809 = vst [vmem:[#allocation98_spill] sm:$0xff] %v4449_v61  ;;  %7810 = vst [vmem:[#allocation99_spill] sm:$0xff] %v4451_v2 }
 0x14d   :  { %1077 = vperm.xlu1 %3716, %v3911_v14   ;;  %1097 = vperm.xlu0 %3715, %v3930_v17  }
 0x14f   :  { %v4455_v59 = vpop.permute.xlu1 %737  ;;  %v4457_v60 = vpop.permute.xlu0 %749 }
 0x150   :  { %7811 = vst [vmem:[#allocation100_spill] sm:$0xff] %v4455_v59  ;;  %7812 = vst [vmem:[#allocation101_spill] sm:$0xff] %v4457_v60 }
 0x151   :  { %1085 = vperm.xlu1 %3716, %v3923_v16   ;;  %1105 = vperm.xlu0 %3715, %v3942_v19  }
 0x153   :  { %v4461_v62 = vpop.permute.xlu1 %745  ;;  %v4463_v63 = vpop.permute.xlu0 %757 }
 0x154   :  { %7813 = vst [vmem:[#allocation102_spill] sm:$0xff] %v4461_v62  ;;  %7814 = vst [vmem:[#allocation103_spill] sm:$0xff] %v4463_v63 }
 0x155   :  { %1093 = vperm.xlu1 %3716, %v3935_v18   ;;  %1113 = vperm.xlu0 %3715, %v3954_v21  }
 0x157   :  { %v4467_v2 = vpop.permute.xlu1 %753  ;;  %v4469_v61 = vpop.permute.xlu0 %765 }
 0x158   :  { %7815 = vst [vmem:[#allocation104_spill] sm:$0xff] %v4467_v2  ;;  %7816 = vst [vmem:[#allocation105_spill] sm:$0xff] %v4469_v61 }
 0x159   :  { %1101 = vperm.xlu1 %3716, %v3947_v20   ;;  %1121 = vperm.xlu0 %3715, %v3966_v23  }
 0x15b   :  { %v4473_v60 = vpop.permute.xlu1 %761  ;;  %v4475_v59 = vpop.permute.xlu0 %773 }
 0x15c   :  { %7817 = vst [vmem:[#allocation106_spill] sm:$0xff] %v4473_v60  ;;  %7818 = vst [vmem:[#allocation107_spill] sm:$0xff] %v4475_v59 }
 0x15d   :  { %1109 = vperm.xlu1 %3716, %v3959_v22   ;;  %1129 = vperm.xlu0 %3715, %v3978_v25  }
 0x15f   :  { %v4479_v63 = vpop.permute.xlu1 %769  ;;  %v4481_v62 = vpop.permute.xlu0 %781 }
 0x160   :  { %7819 = vst [vmem:[#allocation108_spill] sm:$0xff] %v4479_v63  ;;  %7820 = vst [vmem:[#allocation109_spill] sm:$0xff] %v4481_v62 }
 0x161   :  { %1117 = vperm.xlu1 %3716, %v3971_v24   ;;  %1137 = vperm.xlu0 %3715, %v3990_v27  }
 0x163   :  { %v4485_v61 = vpop.permute.xlu1 %777  ;;  %v4487_v2 = vpop.permute.xlu0 %789 }
 0x164   :  { %7821 = vst [vmem:[#allocation110_spill] sm:$0xff] %v4485_v61  ;;  %7822 = vst [vmem:[#allocation111_spill] sm:$0xff] %v4487_v2 }
 0x165   :  { %1125 = vperm.xlu1 %3716, %v3983_v26   ;;  %1145 = vperm.xlu0 %3715, %v4002_v29  }
 0x167   :  { %v4491_v59 = vpop.permute.xlu1 %785  ;;  %v4493_v60 = vpop.permute.xlu0 %797 }
 0x168   :  { %7823 = vst [vmem:[#allocation112_spill] sm:$0xff] %v4491_v59  ;;  %7824 = vst [vmem:[#allocation113_spill] sm:$0xff] %v4493_v60 }
 0x169   :  { %1133 = vperm.xlu1 %3716, %v3995_v28   ;;  %1153 = vperm.xlu0 %3715, %v4014_v31  }
 0x16b   :  { %v4497_v62 = vpop.permute.xlu1 %793  ;;  %v4499_v63 = vpop.permute.xlu0 %805 }
 0x16c   :  { %7825 = vst [vmem:[#allocation114_spill] sm:$0xff] %v4497_v62  ;;  %7826 = vst [vmem:[#allocation115_spill] sm:$0xff] %v4499_v63 }
 0x16d   :  { %1141 = vperm.xlu1 %3716, %v4007_v30   ;;  %1161 = vperm.xlu0 %3715, %v4026_v33  }
 0x16f   :  { %v4503_v2 = vpop.permute.xlu1 %801  ;;  %v4505_v61 = vpop.permute.xlu0 %813 }
 0x170   :  { %7827 = vst [vmem:[#allocation116_spill] sm:$0xff] %v4503_v2  ;;  %7828 = vst [vmem:[#allocation117_spill] sm:$0xff] %v4505_v61 }
 0x171   :  { %1149 = vperm.xlu1 %3716, %v4019_v32   ;;  %1169 = vperm.xlu0 %3715, %v4038_v35  }
 0x173   :  { %v4509_v60 = vpop.permute.xlu1 %809  ;;  %v4511_v59 = vpop.permute.xlu0 %821 }
 0x174   :  { %7829 = vst [vmem:[#allocation118_spill] sm:$0xff] %v4509_v60  ;;  %7830 = vst [vmem:[#allocation119_spill] sm:$0xff] %v4511_v59 }
 0x175   :  { %1157 = vperm.xlu1 %3716, %v4031_v34   ;;  %1177 = vperm.xlu0 %3715, %v4050_v37  }
 0x177   :  { %v4515_v63 = vpop.permute.xlu1 %817  ;;  %v4517_v62 = vpop.permute.xlu0 %829 }
 0x178   :  { %7831 = vst [vmem:[#allocation120_spill] sm:$0xff] %v4515_v63  ;;  %7832 = vst [vmem:[#allocation121_spill] sm:$0xff] %v4517_v62 }
 0x179   :  { %1165 = vperm.xlu1 %3716, %v4043_v36   ;;  %1185 = vperm.xlu0 %3715, %v4062_v39  }
 0x17b   :  { %v4521_v61 = vpop.permute.xlu1 %825  ;;  %v4523_v2 = vpop.permute.xlu0 %837 }
 0x17c   :  { %7833 = vst [vmem:[#allocation122_spill] sm:$0xff] %v4521_v61  ;;  %7834 = vst [vmem:[#allocation123_spill] sm:$0xff] %v4523_v2 }
 0x17d   :  { %1173 = vperm.xlu1 %3716, %v4055_v38   ;;  %1193 = vperm.xlu0 %3715, %v4074_v41  }
 0x17f   :  { %v4527_v59 = vpop.permute.xlu1 %833  ;;  %v4529_v60 = vpop.permute.xlu0 %845 }
 0x180   :  { %7835 = vst [vmem:[#allocation124_spill] sm:$0xff] %v4527_v59  ;;  %7836 = vst [vmem:[#allocation125_spill] sm:$0xff] %v4529_v60 }
 0x181   :  { %1181 = vperm.xlu1 %3716, %v4067_v40   ;;  %1201 = vperm.xlu0 %3715, %v4086_v43  }
 0x183   :  { %v4533_v62 = vpop.permute.xlu1 %841  ;;  %v4535_v63 = vpop.permute.xlu0 %853 }
 0x184   :  { %7837 = vst [vmem:[#allocation126_spill] sm:$0xff] %v4533_v62  ;;  %7838 = vst [vmem:[#allocation127_spill] sm:$0xff] %v4535_v63 }
 0x185   :  { %1189 = vperm.xlu1 %3716, %v4079_v42   ;;  %1209 = vperm.xlu0 %3715, %v4098_v45  }
 0x187   :  { %v4539_v2 = vpop.permute.xlu1 %849  ;;  %v4541_v61 = vpop.permute.xlu0 %861 }
 0x188   :  { %7839 = vst [vmem:[#allocation128_spill] sm:$0xff] %v4539_v2  ;;  %7840 = vst [vmem:[#allocation129_spill] sm:$0xff] %v4541_v61  ;;  %v3806_v2 = vmov 4  }
 0x189   :  { %1197 = vperm.xlu1 %3716, %v4091_v44   ;;  %1217 = vperm.xlu0 %3715, %v4110_v47  }
 0x18b   :  { %v4545_v60 = vpop.permute.xlu1 %857  ;;  %v4547_v59 = vpop.permute.xlu0 %869 }
 0x18c   :  { %7841 = vst [vmem:[#allocation130_spill] sm:$0xff] %v4545_v60  ;;  %7842 = vst [vmem:[#allocation131_spill] sm:$0xff] %v4547_v59 }
 0x18d   :  { %1205 = vperm.xlu1 %3716, %v4103_v46   ;;  %1225 = vperm.xlu0 %3715, %v4122_v49  }
 0x18f   :  { %v4551_v63 = vpop.permute.xlu1 %865  ;;  %v4553_v62 = vpop.permute.xlu0 %877 }
 0x190   :  { %7843 = vst [vmem:[#allocation132_spill] sm:$0xff] %v4551_v63  ;;  %7844 = vst [vmem:[#allocation133_spill] sm:$0xff] %v4553_v62 }
 0x191   :  { %1213 = vperm.xlu1 %3716, %v4115_v48   ;;  %3718 = vset.pattern.permute.xlu0 %v3806_v2 }
 0x192   :  { %1337 = vperm.xlu0 %3718, %v3851_v4  }
 0x193   :  { %v4557_v61 = vpop.permute.xlu1 %873  ;;  %v4559_v51 = vpop.permute.xlu0 %885 }
 0x194   :  { %7845 = vst [vmem:[#allocation134_spill] sm:$0xff] %v4557_v61  ;;  %7846 = vst [vmem:[#allocation135_spill] sm:$0xff] %v4559_v51 }
 0x195   :  { %1221 = vperm.xlu1 %3716, %v4127_v50  }
 0x196   :  { %1349 = vperm.xlu0 %3718, %v3863_v6  }
 0x197   :  { %v4563_v59 = vpop.permute.xlu1 %881  ;;  %v4565_v60 = vpop.permute.xlu0 %893 }
 0x198   :  { %7847 = vst [vmem:[#allocation136_spill] sm:$0xff] %v4563_v59  ;;  %7848 = vst [vmem:[#allocation137_spill] sm:$0xff] %v4565_v60 }
 0x199   :  { %3717 = vset.pattern.permute.xlu1 %v3806_v2 }
 0x19a   :  { %1333 = vperm.xlu1 %3717, %v3839_v1   ;;  %1357 = vperm.xlu0 %3718, %v3875_v8  }
 0x19b   :  { %v4569_v62 = vpop.permute.xlu1 %889  ;;  %v4571_v63 = vpop.permute.xlu0 %901 }
 0x19c   :  { %7849 = vst [vmem:[#allocation138_spill] sm:$0xff] %v4569_v62  ;;  %7850 = vst [vmem:[#allocation139_spill] sm:$0xff] %v4571_v63  ;;  %v5260_v63 = vld [vmem:[%s7684_s0 + $0x178] sm:$0xff]  ;;  %v5271_v62 = vld [vmem:[%s7684_s0 + $0x188] sm:$0xff] }
 0x19e   :  { %1341 = vperm.xlu1 %3717, %v3834_v0   ;;  %1365 = vperm.xlu0 %3718, %v3887_v10  }
 0x19f   :  { %v4575_v51 = vpop.permute.xlu1 %897  ;;  %v4577_v6 = vpop.permute.xlu0 %909 }
 0x1a0   :  { %7851 = vst [vmem:[#allocation140_spill] sm:$0xff] %v4575_v51  ;;  %7852 = vst [vmem:[#allocation141_spill] sm:$0xff] %v4577_v6  ;;  %v5249_v51 = vld [vmem:[%s7684_s0 + $0x168] sm:$0xff] }
 0x1a2   :  { %1345 = vperm.xlu1 %3717, %v3846_v3   ;;  %1373 = vperm.xlu0 %3718, %v3899_v12  }
 0x1a3   :  { %v4581_v2 = vpop.permute.xlu1 %905  ;;  %v4583_v60 = vpop.permute.xlu0 %917 }
 0x1a4   :  { %7853 = vst [vmem:[#allocation142_spill] sm:$0xff] %v4581_v2  ;;  %7854 = vst [vmem:[#allocation143_spill] sm:$0xff] %v4583_v60  ;;  %v5238_v2 = vld [vmem:[%s7684_s0 + $0x158] sm:$0xff] }
 0x1a6   :  { %1353 = vperm.xlu1 %3717, %v3858_v5   ;;  %1381 = vperm.xlu0 %3718, %v3911_v14  }
 0x1a7   :  { %v4587_v8 = vpop.permute.xlu1 %913 }
 0x1a8   :  { %7855 = vst [vmem:[#allocation144_spill] sm:$0xff] %v4587_v8  ;;  %v4589_v0 = vpop.permute.xlu0 %1029 }
 0x1a9   :  { %7856 = vst [vmem:[#allocation145_spill] sm:$0xff] %v4589_v0 }
 0x1aa   :  { %1361 = vperm.xlu1 %3717, %v3870_v7   ;;  %1389 = vperm.xlu0 %3718, %v3923_v16  }
 0x1ab   :  { %v4593_v10 = vpop.permute.xlu1 %921 }
 0x1ac   :  { %7857 = vst [vmem:[#allocation146_spill] sm:$0xff] %v4593_v10  ;;  %v4595_v6 = vpop.permute.xlu0 %1041 }
 0x1ad   :  { %7858 = vst [vmem:[#allocation147_spill] sm:$0xff] %v4595_v6 }
 0x1ae   :  { %1369 = vperm.xlu1 %3717, %v3882_v9   ;;  %1397 = vperm.xlu0 %3718, %v3935_v18  }
 0x1b0   :  { %v4599_v12 = vpop.permute.xlu1 %1033  ;;  %v4601_v60 = vpop.permute.xlu0 %1049 }
 0x1b1   :  { %7859 = vst [vmem:[#allocation148_spill] sm:$0xff] %v4599_v12  ;;  %7860 = vst [vmem:[#allocation149_spill] sm:$0xff] %v4601_v60  ;;  %v5216_v12 = vld [vmem:[%s7684_s0 + $0x138] sm:$0xff] }
 0x1b2   :  { %1377 = vperm.xlu1 %3717, %v3894_v11   ;;  %1405 = vperm.xlu0 %3718, %v3947_v20  }
 0x1b4   :  { %v4605_v14 = vpop.permute.xlu1 %1037  ;;  %v4607_v0 = vpop.permute.xlu0 %1057 }
 0x1b5   :  { %7861 = vst [vmem:[#allocation150_spill] sm:$0xff] %v4605_v14  ;;  %7862 = vst [vmem:[#allocation151_spill] sm:$0xff] %v4607_v0  ;;  %v5205_v14 = vld [vmem:[%s7684_s0 + $0x128] sm:$0xff] }
 0x1b6   :  { %1385 = vperm.xlu1 %3717, %v3906_v13   ;;  %1413 = vperm.xlu0 %3718, %v3959_v22  }
 0x1b8   :  { %v4611_v16 = vpop.permute.xlu1 %1045  ;;  %v4613_v6 = vpop.permute.xlu0 %1065 }
 0x1b9   :  { %7863 = vst [vmem:[#allocation152_spill] sm:$0xff] %v4611_v16  ;;  %7864 = vst [vmem:[#allocation153_spill] sm:$0xff] %v4613_v6  ;;  %v5194_v16 = vld [vmem:[%s7684_s0 + $0x118] sm:$0xff] }
 0x1ba   :  { %1393 = vperm.xlu1 %3717, %v3918_v15   ;;  %1421 = vperm.xlu0 %3718, %v3971_v24  }
 0x1bc   :  { %v4617_v18 = vpop.permute.xlu1 %1053  ;;  %v4619_v60 = vpop.permute.xlu0 %1073 }
 0x1bd   :  { %7865 = vst [vmem:[#allocation154_spill] sm:$0xff] %v4617_v18  ;;  %7866 = vst [vmem:[#allocation155_spill] sm:$0xff] %v4619_v60  ;;  %v5183_v18 = vld [vmem:[%s7684_s0 + $0x108] sm:$0xff] }
 0x1be   :  { %1401 = vperm.xlu1 %3717, %v3930_v17   ;;  %1429 = vperm.xlu0 %3718, %v3983_v26  }
 0x1c0   :  { %v4623_v20 = vpop.permute.xlu1 %1061  ;;  %v4625_v0 = vpop.permute.xlu0 %1081 }
 0x1c1   :  { %7867 = vst [vmem:[#allocation156_spill] sm:$0xff] %v4623_v20  ;;  %7868 = vst [vmem:[#allocation157_spill] sm:$0xff] %v4625_v0  ;;  %v5172_v20 = vld [vmem:[%s7684_s0 + $0xf8] sm:$0xff] }
 0x1c2   :  { %1409 = vperm.xlu1 %3717, %v3942_v19   ;;  %1437 = vperm.xlu0 %3718, %v3995_v28  }
 0x1c4   :  { %v4629_v22 = vpop.permute.xlu1 %1069  ;;  %v4631_v6 = vpop.permute.xlu0 %1089 }
 0x1c5   :  { %7869 = vst [vmem:[#allocation158_spill] sm:$0xff] %v4629_v22  ;;  %7870 = vst [vmem:[#allocation159_spill] sm:$0xff] %v4631_v6  ;;  %v5161_v22 = vld [vmem:[%s7684_s0 + $0xe8] sm:$0xff] }
 0x1c6   :  { %1417 = vperm.xlu1 %3717, %v3954_v21   ;;  %1445 = vperm.xlu0 %3718, %v4007_v30  }
 0x1c8   :  { %v4635_v24 = vpop.permute.xlu1 %1077  ;;  %v4637_v60 = vpop.permute.xlu0 %1097 }
 0x1c9   :  { %7871 = vst [vmem:[#allocation160_spill] sm:$0xff] %v4635_v24  ;;  %7872 = vst [vmem:[#allocation161_spill] sm:$0xff] %v4637_v60  ;;  %v5150_v24 = vld [vmem:[%s7684_s0 + $0xd8] sm:$0xff] }
 0x1ca   :  { %1425 = vperm.xlu1 %3717, %v3966_v23   ;;  %1453 = vperm.xlu0 %3718, %v4019_v32  }
 0x1cc   :  { %v4641_v26 = vpop.permute.xlu1 %1085  ;;  %v4643_v0 = vpop.permute.xlu0 %1105 }
 0x1cd   :  { %7873 = vst [vmem:[#allocation162_spill] sm:$0xff] %v4641_v26  ;;  %7874 = vst [vmem:[#allocation163_spill] sm:$0xff] %v4643_v0  ;;  %v5139_v26 = vld [vmem:[%s7684_s0 + $0xc8] sm:$0xff] }
 0x1ce   :  { %1433 = vperm.xlu1 %3717, %v3978_v25   ;;  %1461 = vperm.xlu0 %3718, %v4031_v34  }
 0x1d0   :  { %v4647_v28 = vpop.permute.xlu1 %1093  ;;  %v4649_v6 = vpop.permute.xlu0 %1113 }
 0x1d1   :  { %7875 = vst [vmem:[#allocation164_spill] sm:$0xff] %v4647_v28  ;;  %7876 = vst [vmem:[#allocation165_spill] sm:$0xff] %v4649_v6  ;;  %v5128_v28 = vld [vmem:[%s7684_s0 + $0xb8] sm:$0xff] }
 0x1d2   :  { %1441 = vperm.xlu1 %3717, %v3990_v27   ;;  %1469 = vperm.xlu0 %3718, %v4043_v36   ;;  %7991 = vst [vmem:[#allocation280_spill] sm:$0xff] %v5128_v28 }
 0x1d4   :  { %v4653_v30 = vpop.permute.xlu1 %1101  ;;  %v4655_v60 = vpop.permute.xlu0 %1121 }
 0x1d5   :  { %7877 = vst [vmem:[#allocation166_spill] sm:$0xff] %v4653_v30  ;;  %7878 = vst [vmem:[#allocation167_spill] sm:$0xff] %v4655_v60  ;;  %v5117_v30 = vld [vmem:[%s7684_s0 + $0xa8] sm:$0xff] }
 0x1d6   :  { %1449 = vperm.xlu1 %3717, %v4002_v29   ;;  %1477 = vperm.xlu0 %3718, %v4055_v38   ;;  %7988 = vst [vmem:[#allocation277_spill] sm:$0xff] %v5117_v30 }
 0x1d8   :  { %v4659_v32 = vpop.permute.xlu1 %1109  ;;  %v4661_v0 = vpop.permute.xlu0 %1129 }
 0x1d9   :  { %7879 = vst [vmem:[#allocation168_spill] sm:$0xff] %v4659_v32  ;;  %7880 = vst [vmem:[#allocation169_spill] sm:$0xff] %v4661_v0  ;;  %v5106_v32 = vld [vmem:[%s7684_s0 + $0x98] sm:$0xff] }
 0x1da   :  { %1457 = vperm.xlu1 %3717, %v4014_v31   ;;  %1485 = vperm.xlu0 %3718, %v4067_v40   ;;  %7985 = vst [vmem:[#allocation274_spill] sm:$0xff] %v5106_v32 }
 0x1dc   :  { %v4665_v34 = vpop.permute.xlu1 %1117  ;;  %v4667_v6 = vpop.permute.xlu0 %1137 }
 0x1dd   :  { %7881 = vst [vmem:[#allocation170_spill] sm:$0xff] %v4665_v34  ;;  %7882 = vst [vmem:[#allocation171_spill] sm:$0xff] %v4667_v6  ;;  %v5095_v34 = vld [vmem:[%s7684_s0 + $0x88] sm:$0xff] }
 0x1de   :  { %1465 = vperm.xlu1 %3717, %v4026_v33   ;;  %1493 = vperm.xlu0 %3718, %v4079_v42   ;;  %7982 = vst [vmem:[#allocation271_spill] sm:$0xff] %v5095_v34 }
 0x1e0   :  { %v4671_v36 = vpop.permute.xlu1 %1125  ;;  %v4673_v60 = vpop.permute.xlu0 %1145 }
 0x1e1   :  { %7883 = vst [vmem:[#allocation172_spill] sm:$0xff] %v4671_v36  ;;  %7884 = vst [vmem:[#allocation173_spill] sm:$0xff] %v4673_v60  ;;  %v5084_v36 = vld [vmem:[%s7684_s0 + $0x78] sm:$0xff] }
 0x1e2   :  { %1473 = vperm.xlu1 %3717, %v4038_v35   ;;  %1501 = vperm.xlu0 %3718, %v4091_v44   ;;  %7979 = vst [vmem:[#allocation268_spill] sm:$0xff] %v5084_v36 }
 0x1e4   :  { %v4677_v38 = vpop.permute.xlu1 %1133  ;;  %v4679_v0 = vpop.permute.xlu0 %1153 }
 0x1e5   :  { %7885 = vst [vmem:[#allocation174_spill] sm:$0xff] %v4677_v38  ;;  %7886 = vst [vmem:[#allocation175_spill] sm:$0xff] %v4679_v0  ;;  %v5073_v38 = vld [vmem:[%s7684_s0 + $0x68] sm:$0xff] }
 0x1e6   :  { %1481 = vperm.xlu1 %3717, %v4050_v37   ;;  %1509 = vperm.xlu0 %3718, %v4103_v46   ;;  %v3807_v46 = vmov 5   ;;  %7976 = vst [vmem:[#allocation265_spill] sm:$0xff] %v5073_v38 }
 0x1e8   :  { %v4683_v40 = vpop.permute.xlu1 %1141  ;;  %v4685_v6 = vpop.permute.xlu0 %1161 }
 0x1e9   :  { %7887 = vst [vmem:[#allocation176_spill] sm:$0xff] %v4683_v40  ;;  %7888 = vst [vmem:[#allocation177_spill] sm:$0xff] %v4685_v6  ;;  %v5062_v40 = vld [vmem:[%s7684_s0 + $0x58] sm:$0xff] }
 0x1ea   :  { %1489 = vperm.xlu1 %3717, %v4062_v39   ;;  %1517 = vperm.xlu0 %3718, %v4115_v48   ;;  %7973 = vst [vmem:[#allocation262_spill] sm:$0xff] %v5062_v40 }
 0x1ec   :  { %v4689_v42 = vpop.permute.xlu1 %1149  ;;  %v4691_v60 = vpop.permute.xlu0 %1169 }
 0x1ed   :  { %7889 = vst [vmem:[#allocation178_spill] sm:$0xff] %v4689_v42  ;;  %7890 = vst [vmem:[#allocation179_spill] sm:$0xff] %v4691_v60  ;;  %v5051_v42 = vld [vmem:[%s7684_s0 + $0x48] sm:$0xff] }
 0x1ee   :  { %1497 = vperm.xlu1 %3717, %v4074_v41   ;;  %1525 = vperm.xlu0 %3718, %v4127_v50   ;;  %7970 = vst [vmem:[#allocation259_spill] sm:$0xff] %v5051_v42 }
 0x1f0   :  { %v4695_v44 = vpop.permute.xlu1 %1157  ;;  %v4697_v0 = vpop.permute.xlu0 %1177 }
 0x1f1   :  { %7891 = vst [vmem:[#allocation180_spill] sm:$0xff] %v4695_v44  ;;  %7892 = vst [vmem:[#allocation181_spill] sm:$0xff] %v4697_v0 }
 0x1f2   :  { %1505 = vperm.xlu1 %3717, %v4086_v43   ;;  %3719 = vset.pattern.permute.xlu0 %v3807_v46 }
 0x1f3   :  { %1637 = vperm.xlu0 %3719, %v3839_v1  }
 0x1f4   :  { %v4701_v6 = vpop.permute.xlu1 %1165  ;;  %v4703_v48 = vpop.permute.xlu0 %1185 }
 0x1f5   :  { %7893 = vst [vmem:[#allocation182_spill] sm:$0xff] %v4701_v6  ;;  %7894 = vst [vmem:[#allocation183_spill] sm:$0xff] %v4703_v48  ;;  %v5040_v6 = vld [vmem:[%s7684_s0 + $0x38] sm:$0xff] }
 0x1f6   :  { %1513 = vperm.xlu1 %3717, %v4098_v45   ;;  %7967 = vst [vmem:[#allocation256_spill] sm:$0xff] %v5040_v6 }
 0x1f7   :  { %1649 = vperm.xlu0 %3719, %v3846_v3  }
 0x1f8   :  { %v4707_v60 = vpop.permute.xlu1 %1173  ;;  %v4709_v50 = vpop.permute.xlu0 %1193 }
 0x1f9   :  { %7895 = vst [vmem:[#allocation184_spill] sm:$0xff] %v4707_v60  ;;  %7896 = vst [vmem:[#allocation185_spill] sm:$0xff] %v4709_v50  ;;  %v5029_v60 = vld [vmem:[%s7684_s0 + $0x28] sm:$0xff] }
 0x1fa   :  { %1521 = vperm.xlu1 %3717, %v4110_v47   ;;  %7964 = vst [vmem:[#allocation253_spill] sm:$0xff] %v5029_v60 }
 0x1fb   :  { %1657 = vperm.xlu0 %3719, %v3858_v5  }
 0x1fc   :  { %v4713_v0 = vpop.permute.xlu1 %1181  ;;  %v4715_v44 = vpop.permute.xlu0 %1201 }
 0x1fd   :  { %7897 = vst [vmem:[#allocation186_spill] sm:$0xff] %v4713_v0  ;;  %7898 = vst [vmem:[#allocation187_spill] sm:$0xff] %v4715_v44  ;;  %v4732_v44 = vld [vmem:[%s7684_s0 + $0x10] sm:$0xff]  ;;  %v4990_v0 = vld [vmem:[%s7684_s0 + $0x180] sm:$0xff] }
 0x1fe   :  { %1529 = vperm.xlu1 %3717, %v4122_v49  }
 0x1ff   :  { %1665 = vperm.xlu0 %3719, %v3870_v7  }
 0x200   :  { %v4719_v1 = vpop.permute.xlu1 %1189  ;;  %v4721_v48 = vpop.permute.xlu0 %1209 }
 0x201   :  { %7899 = vst [vmem:[#allocation188_spill] sm:$0xff] %v4719_v1  ;;  %7900 = vst [vmem:[#allocation189_spill] sm:$0xff] %v4721_v48  ;;  %v4979_v1 = vld [vmem:[%s7684_s0 + $0x170] sm:$0xff] }
 0x202   :  { %3720 = vset.pattern.permute.xlu1 %v3807_v46 }
 0x203   :  { %1641 = vperm.xlu1 %3720, %v3851_v4   ;;  %1673 = vperm.xlu0 %3719, %v3882_v9   ;;  %v4743_v4 = vld [vmem:[%s7684_s0 + $0x20] sm:$0xff] }
 0x204   :  { %v4725_v3 = vpop.permute.xlu1 %1197  ;;  %v4727_v5 = vpop.permute.xlu0 %1217 }
 0x205   :  { %7901 = vst [vmem:[#allocation190_spill] sm:$0xff] %v4725_v3  ;;  %7902 = vst [vmem:[#allocation191_spill] sm:$0xff] %v4727_v5 }
 0x207   :  { %1645 = vperm.xlu1 %3720, %v4732_v44   ;;  %1681 = vperm.xlu0 %3719, %v3894_v11   ;;  %v4754_v11 = vld [vmem:[%s7684_s0 + $0x30] sm:$0xff] }
 0x208   :  { %v4736_v7 = vpop.permute.xlu1 %1205  ;;  %v4738_v46 = vpop.permute.xlu0 %1225 }
 0x209   :  { %7903 = vst [vmem:[#allocation192_spill] sm:$0xff] %v4736_v7  ;;  %7904 = vst [vmem:[#allocation193_spill] sm:$0xff] %v4738_v46 }
 0x20b   :  { %1653 = vperm.xlu1 %3720, %v4743_v4   ;;  %1689 = vperm.xlu0 %3719, %v3906_v13   ;;  %v4765_v13 = vld [vmem:[%s7684_s0 + $0x40] sm:$0xff] }
 0x20c   :  { %v4747_v9 = vpop.permute.xlu1 %1213 }
 0x20d   :  { %7905 = vst [vmem:[#allocation194_spill] sm:$0xff] %v4747_v9  ;;  %v4749_v5 = vpop.permute.xlu0 %1337 }
 0x20e   :  { %7906 = vst [vmem:[#allocation195_spill] sm:$0xff] %v4749_v5 }
 0x20f   :  { %1661 = vperm.xlu1 %3720, %v4754_v11   ;;  %1697 = vperm.xlu0 %3719, %v3918_v15   ;;  %v4776_v15 = vld [vmem:[%s7684_s0 + $0x50] sm:$0xff] }
 0x210   :  { %v4758_v46 = vpop.permute.xlu1 %1221 }
 0x211   :  { %7907 = vst [vmem:[#allocation196_spill] sm:$0xff] %v4758_v46  ;;  %v4760_v7 = vpop.permute.xlu0 %1349 }
 0x212   :  { %7908 = vst [vmem:[#allocation197_spill] sm:$0xff] %v4760_v7 }
 0x213   :  { %1669 = vperm.xlu1 %3720, %v4765_v13   ;;  %1705 = vperm.xlu0 %3719, %v3930_v17   ;;  %v4787_v17 = vld [vmem:[%s7684_s0 + $0x60] sm:$0xff] }
 0x215   :  { %v4769_v5 = vpop.permute.xlu1 %1333  ;;  %v4771_v9 = vpop.permute.xlu0 %1357 }
 0x216   :  { %7909 = vst [vmem:[#allocation198_spill] sm:$0xff] %v4769_v5  ;;  %7910 = vst [vmem:[#allocation199_spill] sm:$0xff] %v4771_v9 }
 0x217   :  { %1677 = vperm.xlu1 %3720, %v4776_v15   ;;  %1713 = vperm.xlu0 %3719, %v3942_v19   ;;  %v4798_v19 = vld [vmem:[%s7684_s0 + $0x70] sm:$0xff] }
 0x219   :  { %v4780_v7 = vpop.permute.xlu1 %1341  ;;  %v4782_v46 = vpop.permute.xlu0 %1365 }
 0x21a   :  { %7911 = vst [vmem:[#allocation200_spill] sm:$0xff] %v4780_v7  ;;  %7912 = vst [vmem:[#allocation201_spill] sm:$0xff] %v4782_v46 }
 0x21b   :  { %1685 = vperm.xlu1 %3720, %v4787_v17   ;;  %1721 = vperm.xlu0 %3719, %v3954_v21   ;;  %v4809_v21 = vld [vmem:[%s7684_s0 + $0x80] sm:$0xff] }
 0x21d   :  { %v4791_v9 = vpop.permute.xlu1 %1345  ;;  %v4793_v5 = vpop.permute.xlu0 %1373 }
 0x21e   :  { %7913 = vst [vmem:[#allocation202_spill] sm:$0xff] %v4791_v9  ;;  %7914 = vst [vmem:[#allocation203_spill] sm:$0xff] %v4793_v5 }
 0x21f   :  { %1693 = vperm.xlu1 %3720, %v4798_v19   ;;  %1729 = vperm.xlu0 %3719, %v3966_v23   ;;  %v4820_v23 = vld [vmem:[%s7684_s0 + $0x90] sm:$0xff] }
 0x220   :  { %7919 = vst [vmem:[#allocation208_spill] sm:$0xff] %v4820_v23 }
 0x221   :  { %v4802_v46 = vpop.permute.xlu1 %1353  ;;  %v4804_v7 = vpop.permute.xlu0 %1381 }
 0x222   :  { %7915 = vst [vmem:[#allocation204_spill] sm:$0xff] %v4802_v46  ;;  %7916 = vst [vmem:[#allocation205_spill] sm:$0xff] %v4804_v7 }
 0x223   :  { %1701 = vperm.xlu1 %3720, %v4809_v21   ;;  %1737 = vperm.xlu0 %3719, %v3978_v25   ;;  %v4831_v25 = vld [vmem:[%s7684_s0 + $0xa0] sm:$0xff] }
 0x224   :  { %7922 = vst [vmem:[#allocation211_spill] sm:$0xff] %v4831_v25 }
 0x225   :  { %v4813_v5 = vpop.permute.xlu1 %1361  ;;  %v4815_v9 = vpop.permute.xlu0 %1389 }
 0x226   :  { %7917 = vst [vmem:[#allocation206_spill] sm:$0xff] %v4813_v5  ;;  %7918 = vst [vmem:[#allocation207_spill] sm:$0xff] %v4815_v9 }
 0x227   :  { %1709 = vperm.xlu1 %3720, %v4820_v23   ;;  %1745 = vperm.xlu0 %3719, %v3990_v27   ;;  %v4842_v27 = vld [vmem:[%s7684_s0 + $0xb0] sm:$0xff] }
 0x228   :  { %7925 = vst [vmem:[#allocation214_spill] sm:$0xff] %v4842_v27 }
 0x229   :  { %v4824_v7 = vpop.permute.xlu1 %1369  ;;  %v4826_v46 = vpop.permute.xlu0 %1397 }
 0x22a   :  { %7920 = vst [vmem:[#allocation209_spill] sm:$0xff] %v4824_v7  ;;  %7921 = vst [vmem:[#allocation210_spill] sm:$0xff] %v4826_v46 }
 0x22b   :  { %1717 = vperm.xlu1 %3720, %v4831_v25   ;;  %1753 = vperm.xlu0 %3719, %v4002_v29   ;;  %v4853_v29 = vld [vmem:[%s7684_s0 + $0xc0] sm:$0xff] }
 0x22c   :  { %7928 = vst [vmem:[#allocation217_spill] sm:$0xff] %v4853_v29 }
 0x22d   :  { %v4835_v9 = vpop.permute.xlu1 %1377  ;;  %v4837_v5 = vpop.permute.xlu0 %1405 }
 0x22e   :  { %7923 = vst [vmem:[#allocation212_spill] sm:$0xff] %v4835_v9  ;;  %7924 = vst [vmem:[#allocation213_spill] sm:$0xff] %v4837_v5 }
 0x22f   :  { %1725 = vperm.xlu1 %3720, %v4842_v27   ;;  %1761 = vperm.xlu0 %3719, %v4014_v31   ;;  %v4864_v31 = vld [vmem:[%s7684_s0 + $0xd0] sm:$0xff] }
 0x230   :  { %7931 = vst [vmem:[#allocation220_spill] sm:$0xff] %v4864_v31 }
 0x231   :  { %v4846_v46 = vpop.permute.xlu1 %1385  ;;  %v4848_v7 = vpop.permute.xlu0 %1413 }
 0x232   :  { %7926 = vst [vmem:[#allocation215_spill] sm:$0xff] %v4846_v46  ;;  %7927 = vst [vmem:[#allocation216_spill] sm:$0xff] %v4848_v7 }
 0x233   :  { %1733 = vperm.xlu1 %3720, %v4853_v29   ;;  %1769 = vperm.xlu0 %3719, %v4026_v33   ;;  %v4875_v33 = vld [vmem:[%s7684_s0 + $0xe0] sm:$0xff] }
 0x234   :  { %7934 = vst [vmem:[#allocation223_spill] sm:$0xff] %v4875_v33 }
 0x235   :  { %v4857_v5 = vpop.permute.xlu1 %1393  ;;  %v4859_v9 = vpop.permute.xlu0 %1421 }
 0x236   :  { %7929 = vst [vmem:[#allocation218_spill] sm:$0xff] %v4857_v5  ;;  %7930 = vst [vmem:[#allocation219_spill] sm:$0xff] %v4859_v9 }
 0x237   :  { %1741 = vperm.xlu1 %3720, %v4864_v31   ;;  %1777 = vperm.xlu0 %3719, %v4038_v35   ;;  %v4886_v35 = vld [vmem:[%s7684_s0 + $0xf0] sm:$0xff] }
 0x239   :  { %v4868_v7 = vpop.permute.xlu1 %1401  ;;  %v4870_v46 = vpop.permute.xlu0 %1429 }
 0x23a   :  { %7932 = vst [vmem:[#allocation221_spill] sm:$0xff] %v4868_v7  ;;  %7933 = vst [vmem:[#allocation222_spill] sm:$0xff] %v4870_v46 }
 0x23b   :  { %1749 = vperm.xlu1 %3720, %v4875_v33   ;;  %1785 = vperm.xlu0 %3719, %v4050_v37   ;;  %v4897_v37 = vld [vmem:[%s7684_s0 + $0x100] sm:$0xff] }
 0x23d   :  { %v4879_v9 = vpop.permute.xlu1 %1409  ;;  %v4881_v5 = vpop.permute.xlu0 %1437 }
 0x23e   :  { %7935 = vst [vmem:[#allocation224_spill] sm:$0xff] %v4879_v9  ;;  %7936 = vst [vmem:[#allocation225_spill] sm:$0xff] %v4881_v5 }
 0x23f   :  { %1757 = vperm.xlu1 %3720, %v4886_v35   ;;  %1793 = vperm.xlu0 %3719, %v4062_v39   ;;  %v4908_v39 = vld [vmem:[%s7684_s0 + $0x110] sm:$0xff] }
 0x241   :  { %v4890_v46 = vpop.permute.xlu1 %1417  ;;  %v4892_v7 = vpop.permute.xlu0 %1445 }
 0x242   :  { %7937 = vst [vmem:[#allocation226_spill] sm:$0xff] %v4890_v46  ;;  %7938 = vst [vmem:[#allocation227_spill] sm:$0xff] %v4892_v7 }
 0x243   :  { %1765 = vperm.xlu1 %3720, %v4897_v37   ;;  %1801 = vperm.xlu0 %3719, %v4074_v41   ;;  %v4919_v41 = vld [vmem:[%s7684_s0 + $0x120] sm:$0xff] }
 0x245   :  { %v4901_v5 = vpop.permute.xlu1 %1425  ;;  %v4903_v9 = vpop.permute.xlu0 %1453 }
 0x246   :  { %7939 = vst [vmem:[#allocation228_spill] sm:$0xff] %v4901_v5  ;;  %7940 = vst [vmem:[#allocation229_spill] sm:$0xff] %v4903_v9 }
 0x247   :  { %1773 = vperm.xlu1 %3720, %v4908_v39   ;;  %1809 = vperm.xlu0 %3719, %v4086_v43   ;;  %v4930_v43 = vld [vmem:[%s7684_s0 + $0x130] sm:$0xff] }
 0x249   :  { %v4912_v7 = vpop.permute.xlu1 %1433  ;;  %v4914_v46 = vpop.permute.xlu0 %1461 }
 0x24a   :  { %7941 = vst [vmem:[#allocation230_spill] sm:$0xff] %v4912_v7  ;;  %7942 = vst [vmem:[#allocation231_spill] sm:$0xff] %v4914_v46 }
 0x24b   :  { %1781 = vperm.xlu1 %3720, %v4919_v41   ;;  %1817 = vperm.xlu0 %3719, %v4098_v45   ;;  %v4941_v45 = vld [vmem:[%s7684_s0 + $0x140] sm:$0xff] }
 0x24d   :  { %v4923_v9 = vpop.permute.xlu1 %1441  ;;  %v4925_v5 = vpop.permute.xlu0 %1469 }
 0x24e   :  { %7943 = vst [vmem:[#allocation232_spill] sm:$0xff] %v4923_v9  ;;  %7944 = vst [vmem:[#allocation233_spill] sm:$0xff] %v4925_v5 }
 0x24f   :  { %1789 = vperm.xlu1 %3720, %v4930_v43   ;;  %1825 = vperm.xlu0 %3719, %v4110_v47   ;;  %v4952_v47 = vld [vmem:[%s7684_s0 + $0x150] sm:$0xff] }
 0x251   :  { %v4934_v46 = vpop.permute.xlu1 %1449  ;;  %v4936_v7 = vpop.permute.xlu0 %1477 }
 0x252   :  { %7945 = vst [vmem:[#allocation234_spill] sm:$0xff] %v4934_v46  ;;  %7946 = vst [vmem:[#allocation235_spill] sm:$0xff] %v4936_v7  ;;  %v3808_v7 = vmov 6   ;;  %v4958_v46 = vld [vmem:[%s7684_s0 + $0x8] sm:$0xff] }
 0x253   :  { %1797 = vperm.xlu1 %3720, %v4941_v45   ;;  %1833 = vperm.xlu0 %3719, %v4122_v49  }
 0x255   :  { %v4945_v5 = vpop.permute.xlu1 %1457  ;;  %v4947_v9 = vpop.permute.xlu0 %1485 }
 0x256   :  { %7947 = vst [vmem:[#allocation236_spill] sm:$0xff] %v4945_v5  ;;  %7948 = vst [vmem:[#allocation237_spill] sm:$0xff] %v4947_v9  ;;  %v4968_v9 = vld [vmem:[%s7684_s0 + $0x160] sm:$0xff] }
 0x257   :  { %1805 = vperm.xlu1 %3720, %v4952_v47   ;;  %3722 = vset.pattern.permute.xlu0 %v3808_v7 }
 0x258   :  { %1945 = vperm.xlu0 %3722, %v4958_v46  }
 0x259   :  { %v4961_v49 = vpop.permute.xlu1 %1465  ;;  %v4963_v5 = vpop.permute.xlu0 %1493 }
 0x25a   :  { %7949 = vst [vmem:[#allocation238_spill] sm:$0xff] %v4961_v49  ;;  %7950 = vst [vmem:[#allocation239_spill] sm:$0xff] %v4963_v5 }
 0x25b   :  { %1813 = vperm.xlu1 %3720, %v4968_v9  }
 0x25c   :  { %1957 = vperm.xlu0 %3722, %v4743_v4  }
 0x25d   :  { %v4972_v3 = vpop.permute.xlu1 %1473  ;;  %v4974_v48 = vpop.permute.xlu0 %1501 }
 0x25e   :  { %7951 = vst [vmem:[#allocation240_spill] sm:$0xff] %v4972_v3  ;;  %7952 = vst [vmem:[#allocation241_spill] sm:$0xff] %v4974_v48 }
 0x25f   :  { %1821 = vperm.xlu1 %3720, %v4979_v1  }
 0x260   :  { %1965 = vperm.xlu0 %3722, %v4754_v11  }
 0x261   :  { %v4983_v5 = vpop.permute.xlu1 %1481  ;;  %v4985_v49 = vpop.permute.xlu0 %1509 }
 0x262   :  { %7953 = vst [vmem:[#allocation242_spill] sm:$0xff] %v4983_v5  ;;  %7954 = vst [vmem:[#allocation243_spill] sm:$0xff] %v4985_v49  ;;  %v5001_v5 = vld [vmem:[%s7684_s0] sm:$0xff] }
 0x263   :  { %1829 = vperm.xlu1 %3720, %v4990_v0  }
 0x264   :  { %1973 = vperm.xlu0 %3722, %v4765_v13  }
 0x265   :  { %v4994_v48 = vpop.permute.xlu1 %1489  ;;  %v4996_v3 = vpop.permute.xlu0 %1517 }
 0x266   :  { %7955 = vst [vmem:[#allocation244_spill] sm:$0xff] %v4994_v48  ;;  %7956 = vst [vmem:[#allocation245_spill] sm:$0xff] %v4996_v3  ;;  %v5018_v3 = vld [vmem:[%s7684_s0 + $0x18] sm:$0xff] }
 0x267   :  { %3721 = vset.pattern.permute.xlu1 %v3808_v7  ;;  %7961 = vst [vmem:[#allocation250_spill] sm:$0xff] %v5018_v3 }
 0x268   :  { %1941 = vperm.xlu1 %3721, %v5001_v5   ;;  %1981 = vperm.xlu0 %3722, %v4776_v15  }
 0x269   :  { %v5005_v49 = vpop.permute.xlu1 %1497  ;;  %v5007_v50 = vpop.permute.xlu0 %1525 }
 0x26a   :  { %7957 = vst [vmem:[#allocation246_spill] sm:$0xff] %v5005_v49  ;;  %7958 = vst [vmem:[#allocation247_spill] sm:$0xff] %v5007_v50 }
 0x26c   :  { %1949 = vperm.xlu1 %3721, %v4732_v44   ;;  %1989 = vperm.xlu0 %3722, %v4787_v17  }
 0x26d   :  { %v5011_v48 = vpop.permute.xlu1 %1505 }
 0x26e   :  { %7959 = vst [vmem:[#allocation248_spill] sm:$0xff] %v5011_v48  ;;  %v5013_v7 = vpop.permute.xlu0 %1637 }
 0x26f   :  { %7960 = vst [vmem:[#allocation249_spill] sm:$0xff] %v5013_v7 }
 0x270   :  { %1953 = vperm.xlu1 %3721, %v5018_v3   ;;  %1997 = vperm.xlu0 %3722, %v4798_v19  }
 0x271   :  { %v5022_v49 = vpop.permute.xlu1 %1513 }
 0x272   :  { %7962 = vst [vmem:[#allocation251_spill] sm:$0xff] %v5022_v49  ;;  %v5024_v50 = vpop.permute.xlu0 %1649 }
 0x273   :  { %7963 = vst [vmem:[#allocation252_spill] sm:$0xff] %v5024_v50 }
 0x274   :  { %1961 = vperm.xlu1 %3721, %v5029_v60   ;;  %2005 = vperm.xlu0 %3722, %v4809_v21  }
 0x275   :  { %v5033_v7 = vpop.permute.xlu1 %1521 }
 0x276   :  { %7965 = vst [vmem:[#allocation254_spill] sm:$0xff] %v5033_v7  ;;  %v5035_v48 = vpop.permute.xlu0 %1657 }
 0x277   :  { %7966 = vst [vmem:[#allocation255_spill] sm:$0xff] %v5035_v48 }
 0x278   :  { %1969 = vperm.xlu1 %3721, %v5040_v6   ;;  %2013 = vperm.xlu0 %3722, %v4820_v23  }
 0x279   :  { %v5044_v50 = vpop.permute.xlu1 %1529 }
 0x27a   :  { %7968 = vst [vmem:[#allocation257_spill] sm:$0xff] %v5044_v50  ;;  %v5046_v49 = vpop.permute.xlu0 %1665 }
 0x27b   :  { %7969 = vst [vmem:[#allocation258_spill] sm:$0xff] %v5046_v49 }
 0x27c   :  { %1977 = vperm.xlu1 %3721, %v5051_v42   ;;  %2021 = vperm.xlu0 %3722, %v4831_v25  }
 0x27e   :  { %v5055_v48 = vpop.permute.xlu1 %1641  ;;  %v5057_v7 = vpop.permute.xlu0 %1673 }
 0x27f   :  { %7971 = vst [vmem:[#allocation260_spill] sm:$0xff] %v5055_v48  ;;  %7972 = vst [vmem:[#allocation261_spill] sm:$0xff] %v5057_v7 }
 0x280   :  { %1985 = vperm.xlu1 %3721, %v5062_v40   ;;  %2029 = vperm.xlu0 %3722, %v4842_v27  }
 0x282   :  { %v5066_v49 = vpop.permute.xlu1 %1645  ;;  %v5068_v50 = vpop.permute.xlu0 %1681 }
 0x283   :  { %7974 = vst [vmem:[#allocation263_spill] sm:$0xff] %v5066_v49  ;;  %7975 = vst [vmem:[#allocation264_spill] sm:$0xff] %v5068_v50 }
 0x284   :  { %1993 = vperm.xlu1 %3721, %v5073_v38   ;;  %2037 = vperm.xlu0 %3722, %v4853_v29  }
 0x286   :  { %v5077_v7 = vpop.permute.xlu1 %1653  ;;  %v5079_v48 = vpop.permute.xlu0 %1689 }
 0x287   :  { %7977 = vst [vmem:[#allocation266_spill] sm:$0xff] %v5077_v7  ;;  %7978 = vst [vmem:[#allocation267_spill] sm:$0xff] %v5079_v48 }
 0x288   :  { %2001 = vperm.xlu1 %3721, %v5084_v36   ;;  %2045 = vperm.xlu0 %3722, %v4864_v31  }
 0x28a   :  { %v5088_v50 = vpop.permute.xlu1 %1661  ;;  %v5090_v49 = vpop.permute.xlu0 %1697 }
 0x28b   :  { %7980 = vst [vmem:[#allocation269_spill] sm:$0xff] %v5088_v50  ;;  %7981 = vst [vmem:[#allocation270_spill] sm:$0xff] %v5090_v49 }
 0x28c   :  { %2009 = vperm.xlu1 %3721, %v5095_v34   ;;  %2053 = vperm.xlu0 %3722, %v4875_v33  }
 0x28e   :  { %v5099_v48 = vpop.permute.xlu1 %1669  ;;  %v5101_v7 = vpop.permute.xlu0 %1705 }
 0x28f   :  { %7983 = vst [vmem:[#allocation272_spill] sm:$0xff] %v5099_v48  ;;  %7984 = vst [vmem:[#allocation273_spill] sm:$0xff] %v5101_v7 }
 0x290   :  { %2017 = vperm.xlu1 %3721, %v5106_v32   ;;  %2061 = vperm.xlu0 %3722, %v4886_v35  }
 0x292   :  { %v5110_v49 = vpop.permute.xlu1 %1677  ;;  %v5112_v50 = vpop.permute.xlu0 %1713 }
 0x293   :  { %7986 = vst [vmem:[#allocation275_spill] sm:$0xff] %v5110_v49  ;;  %7987 = vst [vmem:[#allocation276_spill] sm:$0xff] %v5112_v50 }
 0x294   :  { %2025 = vperm.xlu1 %3721, %v5117_v30   ;;  %2069 = vperm.xlu0 %3722, %v4897_v37  }
 0x296   :  { %v5121_v7 = vpop.permute.xlu1 %1685  ;;  %v5123_v48 = vpop.permute.xlu0 %1721 }
 0x297   :  { %7989 = vst [vmem:[#allocation278_spill] sm:$0xff] %v5121_v7  ;;  %7990 = vst [vmem:[#allocation279_spill] sm:$0xff] %v5123_v48 }
 0x298   :  { %2033 = vperm.xlu1 %3721, %v5128_v28   ;;  %2077 = vperm.xlu0 %3722, %v4908_v39  }
 0x29a   :  { %v5132_v50 = vpop.permute.xlu1 %1693  ;;  %v5134_v49 = vpop.permute.xlu0 %1729 }
 0x29b   :  { %7992 = vst [vmem:[#allocation281_spill] sm:$0xff] %v5132_v50  ;;  %7993 = vst [vmem:[#allocation282_spill] sm:$0xff] %v5134_v49 }
 0x29c   :  { %2041 = vperm.xlu1 %3721, %v5139_v26   ;;  %2085 = vperm.xlu0 %3722, %v4919_v41  }
 0x29e   :  { %v5143_v48 = vpop.permute.xlu1 %1701  ;;  %v5145_v7 = vpop.permute.xlu0 %1737 }
 0x29f   :  { %7994 = vst [vmem:[#allocation283_spill] sm:$0xff] %v5143_v48  ;;  %7995 = vst [vmem:[#allocation284_spill] sm:$0xff] %v5145_v7 }
 0x2a0   :  { %2049 = vperm.xlu1 %3721, %v5150_v24   ;;  %2093 = vperm.xlu0 %3722, %v4930_v43  }
 0x2a2   :  { %v5154_v49 = vpop.permute.xlu1 %1709  ;;  %v5156_v50 = vpop.permute.xlu0 %1745 }
 0x2a3   :  { %7996 = vst [vmem:[#allocation285_spill] sm:$0xff] %v5154_v49  ;;  %7997 = vst [vmem:[#allocation286_spill] sm:$0xff] %v5156_v50 }
 0x2a4   :  { %2057 = vperm.xlu1 %3721, %v5161_v22   ;;  %2101 = vperm.xlu0 %3722, %v4941_v45  }
 0x2a6   :  { %v5165_v7 = vpop.permute.xlu1 %1717  ;;  %v5167_v48 = vpop.permute.xlu0 %1753 }
 0x2a7   :  { %7998 = vst [vmem:[#allocation287_spill] sm:$0xff] %v5165_v7  ;;  %7999 = vst [vmem:[#allocation288_spill] sm:$0xff] %v5167_v48 }
 0x2a8   :  { %2065 = vperm.xlu1 %3721, %v5172_v20   ;;  %2109 = vperm.xlu0 %3722, %v4952_v47  }
 0x2aa   :  { %v5176_v50 = vpop.permute.xlu1 %1725  ;;  %v5178_v49 = vpop.permute.xlu0 %1761 }
 0x2ab   :  { %8000 = vst [vmem:[#allocation289_spill] sm:$0xff] %v5176_v50  ;;  %8001 = vst [vmem:[#allocation290_spill] sm:$0xff] %v5178_v49 }
 0x2ac   :  { %2073 = vperm.xlu1 %3721, %v5183_v18   ;;  %2117 = vperm.xlu0 %3722, %v4968_v9  }
 0x2ae   :  { %v5187_v48 = vpop.permute.xlu1 %1733  ;;  %v5189_v7 = vpop.permute.xlu0 %1769 }
 0x2af   :  { %8002 = vst [vmem:[#allocation291_spill] sm:$0xff] %v5187_v48  ;;  %8003 = vst [vmem:[#allocation292_spill] sm:$0xff] %v5189_v7 }
 0x2b0   :  { %2081 = vperm.xlu1 %3721, %v5194_v16   ;;  %2125 = vperm.xlu0 %3722, %v4979_v1  }
 0x2b2   :  { %v5198_v49 = vpop.permute.xlu1 %1741  ;;  %v5200_v50 = vpop.permute.xlu0 %1777 }
 0x2b3   :  { %8004 = vst [vmem:[#allocation293_spill] sm:$0xff] %v5198_v49  ;;  %8005 = vst [vmem:[#allocation294_spill] sm:$0xff] %v5200_v50  ;;  %v3809_v50 = vmov 7  }
 0x2b4   :  { %2089 = vperm.xlu1 %3721, %v5205_v14   ;;  %2133 = vperm.xlu0 %3722, %v4990_v0  }
 0x2b6   :  { %v5209_v7 = vpop.permute.xlu1 %1749  ;;  %v5211_v48 = vpop.permute.xlu0 %1785 }
 0x2b7   :  { %8006 = vst [vmem:[#allocation295_spill] sm:$0xff] %v5209_v7  ;;  %8007 = vst [vmem:[#allocation296_spill] sm:$0xff] %v5211_v48  ;;  %v5227_v7 = vld [vmem:[%s7684_s0 + $0x148] sm:$0xff] }
 0x2b8   :  { %2097 = vperm.xlu1 %3721, %v5216_v12   ;;  %3723 = vset.pattern.permute.xlu0 %v3809_v50 }
 0x2b9   :  { %2245 = vperm.xlu0 %3723, %v5001_v5  }
 0x2ba   :  { %v5220_v49 = vpop.permute.xlu1 %1757  ;;  %v5222_v10 = vpop.permute.xlu0 %1793 }
 0x2bb   :  { %8008 = vst [vmem:[#allocation297_spill] sm:$0xff] %v5220_v49  ;;  %8009 = vst [vmem:[#allocation298_spill] sm:$0xff] %v5222_v10 }
 0x2bc   :  { %2105 = vperm.xlu1 %3721, %v5227_v7  }
 0x2bd   :  { %2257 = vperm.xlu0 %3723, %v5018_v3   ;;  %v8108_v3 = vld [vmem:[#allocation38_spill] sm:$0xff] }
 0x2be   :  { %v5231_v48 = vpop.permute.xlu1 %1765  ;;  %v5233_v8 = vpop.permute.xlu0 %1801 }
 0x2bf   :  { %8010 = vst [vmem:[#allocation299_spill] sm:$0xff] %v5231_v48  ;;  %8011 = vst [vmem:[#allocation300_spill] sm:$0xff] %v5233_v8 }
 0x2c0   :  { %2113 = vperm.xlu1 %3721, %v5238_v2  }
 0x2c1   :  { %2265 = vperm.xlu0 %3723, %v5029_v60  }
 0x2c2   :  { %v5242_v10 = vpop.permute.xlu1 %1773  ;;  %v5244_v49 = vpop.permute.xlu0 %1809 }
 0x2c3   :  { %8012 = vst [vmem:[#allocation301_spill] sm:$0xff] %v5242_v10  ;;  %8013 = vst [vmem:[#allocation302_spill] sm:$0xff] %v5244_v49 }
 0x2c4   :  { %2121 = vperm.xlu1 %3721, %v5249_v51  }
 0x2c5   :  { %2273 = vperm.xlu0 %3723, %v5040_v6   ;;  %v8097_v6 = vld [vmem:[#allocation33_spill] sm:$0xff] }
 0x2c6   :  { %v5253_v8 = vpop.permute.xlu1 %1781  ;;  %v5255_v48 = vpop.permute.xlu0 %1817 }
 0x2c7   :  { %8014 = vst [vmem:[#allocation303_spill] sm:$0xff] %v5253_v8  ;;  %8015 = vst [vmem:[#allocation304_spill] sm:$0xff] %v5255_v48 }
 0x2c8   :  { %2129 = vperm.xlu1 %3721, %v5260_v63  }
 0x2c9   :  { %2281 = vperm.xlu0 %3723, %v5051_v42   ;;  %v8091_v42 = vld [vmem:[#allocation30_spill] sm:$0xff] }
 0x2ca   :  { %v5264_v49 = vpop.permute.xlu1 %1789  ;;  %v5266_v10 = vpop.permute.xlu0 %1825 }
 0x2cb   :  { %8016 = vst [vmem:[#allocation305_spill] sm:$0xff] %v5264_v49  ;;  %8017 = vst [vmem:[#allocation306_spill] sm:$0xff] %v5266_v10 }
 0x2cc   :  { %2137 = vperm.xlu1 %3721, %v5271_v62  }
 0x2cd   :  { %2289 = vperm.xlu0 %3723, %v5062_v40   ;;  %v8088_v40 = vld [vmem:[#allocation28_spill] sm:$0xff] }
 0x2ce   :  { %v5275_v48 = vpop.permute.xlu1 %1797  ;;  %v5277_v8 = vpop.permute.xlu0 %1833 }
 0x2cf   :  { %8018 = vst [vmem:[#allocation307_spill] sm:$0xff] %v5275_v48  ;;  %8019 = vst [vmem:[#allocation308_spill] sm:$0xff] %v5277_v8 }
 0x2d0   :  { %3724 = vset.pattern.permute.xlu1 %v3809_v50 }
 0x2d1   :  { %2249 = vperm.xlu1 %3724, %v4958_v46   ;;  %2297 = vperm.xlu0 %3723, %v5073_v38  }
 0x2d2   :  { %v5281_v49 = vpop.permute.xlu1 %1805 }
 0x2d3   :  { %8020 = vst [vmem:[#allocation309_spill] sm:$0xff] %v5281_v49  ;;  %v5283_v10 = vpop.permute.xlu0 %1945 }
 0x2d4   :  { %8021 = vst [vmem:[#allocation310_spill] sm:$0xff] %v5283_v10 }
 0x2d5   :  { %2253 = vperm.xlu1 %3724, %v4732_v44   ;;  %2305 = vperm.xlu0 %3723, %v5084_v36   ;;  %v8083_v36 = vld [vmem:[#allocation25_spill] sm:$0xff] }
 0x2d6   :  { %v5287_v59 = vpop.permute.xlu1 %1813 }
 0x2d7   :  { %8022 = vst [vmem:[#allocation311_spill] sm:$0xff] %v5287_v59  ;;  %v5289_v61 = vpop.permute.xlu0 %1957 }
 0x2d8   :  { %8023 = vst [vmem:[#allocation312_spill] sm:$0xff] %v5289_v61 }
 0x2d9   :  { %2261 = vperm.xlu1 %3724, %v4743_v4   ;;  %2313 = vperm.xlu0 %3723, %v5095_v34   ;;  %v8082_v34 = vld [vmem:[#allocation24_spill] sm:$0xff] }
 0x2da   :  { %v5293_v50 = vpop.permute.xlu1 %1821 }
 0x2db   :  { %8024 = vst [vmem:[#allocation313_spill] sm:$0xff] %v5293_v50  ;;  %v5295_v8 = vpop.permute.xlu0 %1965 }
 0x2dc   :  { %8025 = vst [vmem:[#allocation314_spill] sm:$0xff] %v5295_v8 }
 0x2dd   :  { %2269 = vperm.xlu1 %3724, %v4754_v11   ;;  %2321 = vperm.xlu0 %3723, %v5106_v32  }
 0x2de   :  { %v5299_v49 = vpop.permute.xlu1 %1829 }
 0x2df   :  { %8026 = vst [vmem:[#allocation315_spill] sm:$0xff] %v5299_v49  ;;  %v5301_v48 = vpop.permute.xlu0 %1973 }
 0x2e0   :  { %8027 = vst [vmem:[#allocation316_spill] sm:$0xff] %v5301_v48 }
 0x2e1   :  { %2277 = vperm.xlu1 %3724, %v4765_v13   ;;  %2329 = vperm.xlu0 %3723, %v5117_v30  }
 0x2e3   :  { %v5305_v61 = vpop.permute.xlu1 %1941  ;;  %v5307_v59 = vpop.permute.xlu0 %1981 }
 0x2e4   :  { %8028 = vst [vmem:[#allocation317_spill] sm:$0xff] %v5305_v61  ;;  %8029 = vst [vmem:[#allocation318_spill] sm:$0xff] %v5307_v59 }
 0x2e5   :  { %2285 = vperm.xlu1 %3724, %v4776_v15   ;;  %2337 = vperm.xlu0 %3723, %v5128_v28  }
 0x2e7   :  { %v5311_v8 = vpop.permute.xlu1 %1949  ;;  %v5313_v50 = vpop.permute.xlu0 %1989 }
 0x2e8   :  { %8030 = vst [vmem:[#allocation319_spill] sm:$0xff] %v5311_v8  ;;  %8031 = vst [vmem:[#allocation320_spill] sm:$0xff] %v5313_v50 }
 0x2e9   :  { %2293 = vperm.xlu1 %3724, %v4787_v17   ;;  %2345 = vperm.xlu0 %3723, %v5139_v26  }
 0x2eb   :  { %v5317_v48 = vpop.permute.xlu1 %1953  ;;  %v5319_v49 = vpop.permute.xlu0 %1997 }
 0x2ec   :  { %8032 = vst [vmem:[#allocation321_spill] sm:$0xff] %v5317_v48  ;;  %8033 = vst [vmem:[#allocation322_spill] sm:$0xff] %v5319_v49  ;;  %v8076_v48 = vld [vmem:[#allocation18_spill] sm:$0xff] }
 0x2ed   :  { %2301 = vperm.xlu1 %3724, %v4798_v19   ;;  %2353 = vperm.xlu0 %3723, %v5150_v24  }
 0x2ef   :  { %v5323_v59 = vpop.permute.xlu1 %1961  ;;  %v5325_v61 = vpop.permute.xlu0 %2005 }
 0x2f0   :  { %8034 = vst [vmem:[#allocation323_spill] sm:$0xff] %v5323_v59  ;;  %8035 = vst [vmem:[#allocation324_spill] sm:$0xff] %v5325_v61  ;;  %v8075_v59 = vld [vmem:[#allocation17_spill] sm:$0xff] }
 0x2f1   :  { %2309 = vperm.xlu1 %3724, %v4809_v21   ;;  %2361 = vperm.xlu0 %3723, %v5161_v22  }
 0x2f3   :  { %v5329_v50 = vpop.permute.xlu1 %1969  ;;  %v5331_v8 = vpop.permute.xlu0 %2013 }
 0x2f4   :  { %8036 = vst [vmem:[#allocation325_spill] sm:$0xff] %v5329_v50  ;;  %8037 = vst [vmem:[#allocation326_spill] sm:$0xff] %v5331_v8  ;;  %v8073_v50 = vld [vmem:[#allocation15_spill] sm:$0xff] }
 0x2f5   :  { %2317 = vperm.xlu1 %3724, %v4820_v23   ;;  %2369 = vperm.xlu0 %3723, %v5172_v20  }
 0x2f7   :  { %v5335_v26 = vpop.permute.xlu1 %1977  ;;  %v5337_v49 = vpop.permute.xlu0 %2021 }
 0x2f8   :  { %8038 = vst [vmem:[#allocation327_spill] sm:$0xff] %v5335_v26  ;;  %8039 = vst [vmem:[#allocation328_spill] sm:$0xff] %v5337_v49  ;;  %v8072_v26 = vld [vmem:[#allocation14_spill] sm:$0xff] }
 0x2f9   :  { %2325 = vperm.xlu1 %3724, %v4831_v25   ;;  %2377 = vperm.xlu0 %3723, %v5183_v18  }
 0x2fb   :  { %v5341_v24 = vpop.permute.xlu1 %1985  ;;  %v5343_v61 = vpop.permute.xlu0 %2029 }
 0x2fc   :  { %8040 = vst [vmem:[#allocation329_spill] sm:$0xff] %v5341_v24  ;;  %8041 = vst [vmem:[#allocation330_spill] sm:$0xff] %v5343_v61  ;;  %v8071_v24 = vld [vmem:[#allocation13_spill] sm:$0xff] }
 0x2fd   :  { %2333 = vperm.xlu1 %3724, %v4842_v27   ;;  %2385 = vperm.xlu0 %3723, %v5194_v16   ;;  %v8095_v27 = vld [vmem:[#allocation32_spill] sm:$0xff] }
 0x2ff   :  { %v5347_v22 = vpop.permute.xlu1 %1993  ;;  %v5349_v8 = vpop.permute.xlu0 %2037 }
 0x300   :  { %8042 = vst [vmem:[#allocation331_spill] sm:$0xff] %v5347_v22  ;;  %8043 = vst [vmem:[#allocation332_spill] sm:$0xff] %v5349_v8  ;;  %v8070_v22 = vld [vmem:[#allocation12_spill] sm:$0xff] }
 0x301   :  { %2341 = vperm.xlu1 %3724, %v4853_v29   ;;  %2393 = vperm.xlu0 %3723, %v5205_v14   ;;  %v316_v14 = vlaneseq  ;;  %v8090_v29 = vld [vmem:[#allocation29_spill] sm:$0xff] }
 0x303   :  { %v5353_v20 = vpop.permute.xlu1 %2001  ;;  %v5355_v49 = vpop.permute.xlu0 %2045 }
 0x304   :  { %8044 = vst [vmem:[#allocation333_spill] sm:$0xff] %v5353_v20  ;;  %8045 = vst [vmem:[#allocation334_spill] sm:$0xff] %v5355_v49 }
 0x305   :  { %2349 = vperm.xlu1 %3724, %v4864_v31   ;;  %2401 = vperm.xlu0 %3723, %v5216_v12   ;;  %v8087_v31 = vld [vmem:[#allocation27_spill] sm:$0xff] }
 0x307   :  { %v5359_v18 = vpop.permute.xlu1 %2009  ;;  %v5361_v61 = vpop.permute.xlu0 %2053 }
 0x308   :  { %8046 = vst [vmem:[#allocation335_spill] sm:$0xff] %v5359_v18  ;;  %8047 = vst [vmem:[#allocation336_spill] sm:$0xff] %v5361_v61  ;;  %v5375_v18 = vshrl.u32 %v316_v14, 7 }
 0x309   :  { %2357 = vperm.xlu1 %3724, %v4875_v33   ;;  %2409 = vperm.xlu0 %3723, %v5227_v7  }
 0x30b   :  { %v5365_v16 = vpop.permute.xlu1 %2017  ;;  %v5367_v8 = vpop.permute.xlu0 %2061 }
 0x30c   :  { %8048 = vst [vmem:[#allocation337_spill] sm:$0xff] %v5365_v16  ;;  %8049 = vst [vmem:[#allocation338_spill] sm:$0xff] %v5367_v8  ;;  %v7688_v8 = vsub.s32 0, %v5375_v18 }
 0x30d   :  { %2365 = vperm.xlu1 %3724, %v4886_v35   ;;  %2417 = vperm.xlu0 %3723, %v5238_v2   ;;  %v5387_v2 = vld [vmem:[%s7685_s1] sm:$0xff]  ;;  %v622_v35 = vsub.s32 1, %v5375_v18 }
 0x30e   :  { %8054 = vst [vmem:[#allocation343_spill] sm:$0xff] %v5387_v2  ;;  %v5399_v14 = vrot.slane %v5387_v2, %v7688_v8  ;;  %v8059_v8 = vld [vmem:[#allocation3_spill] sm:$0xff] }
 0x30f   :  { %v5371_v49 = vpop.permute.xlu1 %2025  ;;  %v5373_v12 = vpop.permute.xlu0 %2069 }
 0x310   :  { %8050 = vst [vmem:[#allocation339_spill] sm:$0xff] %v5371_v49  ;;  %8051 = vst [vmem:[#allocation340_spill] sm:$0xff] %v5373_v12 }
 0x311   :  { %2373 = vperm.xlu1 %3724, %v4897_v37   ;;  %2425 = vperm.xlu0 %3723, %v5249_v51  }
 0x313   :  { %v5379_v7 = vpop.permute.xlu1 %2033  ;;  %v5381_v16 = vpop.permute.xlu0 %2077 }
 0x314   :  { %8052 = vst [vmem:[#allocation341_spill] sm:$0xff] %v5379_v7  ;;  %8053 = vst [vmem:[#allocation342_spill] sm:$0xff] %v5381_v16  ;;  %v5404_v16 = vrot.slane %v5387_v2, %v622_v35  ;;  %v5428_v35 = vmul.f32 %v5399_v14, %v4155_v56  ;;  %v8062_v7 = vld [vmem:[#allocation6_spill] sm:$0xff] }
 0x315   :  { %2381 = vperm.xlu1 %3724, %v4908_v39   ;;  %2433 = vperm.xlu0 %3723, %v5260_v63  }
 0x317   :  { %v5392_v37 = vpop.permute.xlu1 %2041  ;;  %v5394_v51 = vpop.permute.xlu0 %2085 }
 0x318   :  { %8055 = vst [vmem:[#allocation344_spill] sm:$0xff] %v5392_v37  ;;  %8056 = vst [vmem:[#allocation345_spill] sm:$0xff] %v5394_v51  ;;  %v5412_v37 = vmul.f32 %v5399_v14, %v4143_v52  ;;  %v5416_v51 = vmul.f32 %v5399_v14, %v4145_v53  ;;  %v5432_v52 = vmul.f32 %v5399_v14, %v4157_v57 }
 0x319   :  { %2389 = vperm.xlu1 %3724, %v4919_v41   ;;  %2441 = vperm.xlu0 %3723, %v5271_v62   ;;  %v5420_v41 = vmul.f32 %v5399_v14, %v4149_v54  ;;  %v5424_v62 = vmul.f32 %v5399_v14, %v4151_v55  ;;  %v5436_v53 = vmul.f32 %v5399_v14, %v4161_v58  ;;  %v7689_v54 = vmov 8  }
 0x31a   :  { %v5442_v55 = vmul.f32 %v5399_v14, %v8059_v8  ;;  %v5454_v58 = vmul.f32 %v5399_v14, %v8062_v7  ;;  %v8064_v8 = vld [vmem:[#allocation8_spill] sm:$0xff] }
 0x31b   :  { %v5406_v39 = vpop.permute.xlu1 %2049  ;;  %v5408_v63 = vpop.permute.xlu0 %2093  ;;  %v5463_v12 = vmul.f32 %v5399_v14, %v8064_v8  ;;  %v5483_v8 = vmul.f32 %v5399_v14, %v8070_v22  ;;  %v5503_v22 = vmul.f32 %v5399_v14, %v8075_v59  ;;  %v926_v59 = vsub.s32 2, %v5375_v18 }
 0x31c   :  { %8057 = vst [vmem:[#allocation346_spill] sm:$0xff] %v5406_v39  ;;  %8058 = vst [vmem:[#allocation347_spill] sm:$0xff] %v5408_v63  ;;  %v8060_v63 = vld [vmem:[#allocation4_spill] sm:$0xff]  ;;  %v8061_v39 = vld [vmem:[#allocation5_spill] sm:$0xff] }
 0x31d   :  { %2397 = vperm.xlu1 %3724, %v4930_v43   ;;  %3726 = vset.pattern.permute.xlu0 %v7689_v54  ;;  %v5446_v56 = vmul.f32 %v5399_v14, %v8060_v63  ;;  %v5450_v57 = vmul.f32 %v5399_v14, %v8061_v39  ;;  %v8063_v43 = vld [vmem:[#allocation7_spill] sm:$0xff]  ;;  %v8065_v63 = vld [vmem:[#allocation9_spill] sm:$0xff]  ;;  %v8066_v39 = vld [vmem:[#allocation10_spill] sm:$0xff] }
 0x31e   :  { %2553 = vperm.xlu0 %3726, %v4958_v46   ;;  %v5459_v54 = vmul.f32 %v5399_v14, %v8063_v43  ;;  %v5467_v49 = vmul.f32 %v5399_v14, %v8065_v63  ;;  %v5471_v61 = vmul.f32 %v5399_v14, %v8066_v39  ;;  %v8069_v46 = vld [vmem:[#allocation11_spill] sm:$0xff]  ;;  %v5487_v63 = vmul.f32 %v5399_v14, %v8071_v24 }
 0x31f   :  { %v5473_v7 = vpop.permute.xlu1 %2057  ;;  %v5475_v20 = vpop.permute.xlu0 %2101  ;;  %v5479_v43 = vmul.f32 %v5399_v14, %v8069_v46  ;;  %v5491_v39 = vmul.f32 %v5399_v14, %v8072_v26  ;;  %v5507_v24 = vmul.f32 %v5399_v14, %v8076_v48  ;;  %v8077_v26 = vld [vmem:[#allocation19_spill] sm:$0xff]  ;;  %v8080_v48 = vld [vmem:[#allocation22_spill] sm:$0xff] }
 0x320   :  { %8067 = vst [vmem:[#allocation3_spill] sm:$0xff] %v5473_v7  ;;  %8068 = vst [vmem:[#allocation4_spill] sm:$0xff] %v5475_v20  ;;  %v5495_v7 = vmul.f32 %v5399_v14, %v8073_v50  ;;  %v8074_v20 = vld [vmem:[#allocation16_spill] sm:$0xff]  ;;  %v5512_v10 = vmul.f32 %v5399_v14, %v8077_v26  ;;  %v5526_v32 = vmul.f32 %v5399_v14, %v8080_v48 }
 0x321   :  { %v5499_v46 = vmul.f32 %v5399_v14, %v8074_v20  ;;  %2405 = vperm.xlu1 %3724, %v4941_v45   ;;  %v8078_v50 = vld [vmem:[#allocation20_spill] sm:$0xff]  ;;  %v8079_v20 = vld [vmem:[#allocation21_spill] sm:$0xff]  ;;  %v8081_v45 = vld [vmem:[#allocation23_spill] sm:$0xff] }
 0x322   :  { %v5516_v28 = vmul.f32 %v5399_v14, %v8078_v50  ;;  %v5520_v30 = vmul.f32 %v5399_v14, %v8079_v20  ;;  %2565 = vperm.xlu0 %3726, %v4743_v4   ;;  %v5530_v26 = vmul.f32 %v5399_v14, %v8081_v45  ;;  %v5534_v50 = vmul.f32 %v5399_v14, %v8082_v34  ;;  %v8086_v4 = vld [vmem:[#allocation26_spill] sm:$0xff] }
 0x323   :  { %v5538_v20 = vmul.f32 %v5399_v14, %v8083_v36  ;;  %v5540_v33 = vpop.permute.xlu1 %2065  ;;  %v5542_v38 = vpop.permute.xlu0 %2109  ;;  %v5546_v48 = vmul.f32 %v5399_v14, %v8086_v4  ;;  %v5550_v45 = vmul.f32 %v5399_v14, %v8087_v31  ;;  %v5554_v34 = vmul.f32 %v5399_v14, %v8088_v40 }
 0x324   :  { %8084 = vst [vmem:[#allocation5_spill] sm:$0xff] %v5540_v33  ;;  %8085 = vst [vmem:[#allocation6_spill] sm:$0xff] %v5542_v38  ;;  %v5558_v36 = vmul.f32 %v5399_v14, %v8090_v29  ;;  %v5562_v33 = vmul.f32 %v5399_v14, %v8091_v42  ;;  %v8093_v38 = vld [vmem:[#allocation31_spill] sm:$0xff]  ;;  %v5570_v31 = vmul.f32 %v5399_v14, %v8095_v27  ;;  %v8099_v29 = vld [vmem:[#allocation34_spill] sm:$0xff] }
 0x325   :  { %8089 = vst [vmem:[#allocation7_spill] sm:$0xff] %v5554_v34  ;;  %v5566_v4 = vmul.f32 %v5399_v14, %v8093_v38  ;;  %v5574_v40 = vmul.f32 %v5399_v14, %v8097_v6  ;;  %2413 = vperm.xlu1 %3724, %v4952_v47   ;;  %v5579_v25 = vmul.f32 %v5399_v14, %v8099_v29  ;;  %v8101_v42 = vld [vmem:[#allocation35_spill] sm:$0xff]  ;;  %v8103_v38 = vld [vmem:[#allocation36_spill] sm:$0xff]  ;;  %v8106_v6 = vld [vmem:[#allocation37_spill] sm:$0xff] }
 0x326   :  { %8092 = vst [vmem:[#allocation8_spill] sm:$0xff] %v5562_v33  ;;  %8096 = vst [vmem:[#allocation10_spill] sm:$0xff] %v5570_v31  ;;  %v5583_v60 = vmul.f32 %v5399_v14, %v8101_v42  ;;  %v5587_v23 = vmul.f32 %v5399_v14, %v8103_v38  ;;  %v5590_v27 = vrot.slane %v5387_v2, %v926_v59  ;;  %2573 = vperm.xlu0 %3726, %v4754_v11   ;;  %v8115_v11 = vld [vmem:[#allocation40_spill] sm:$0xff]  ;;  %v8121_v31 = vld [vmem:[#allocation42_spill] sm:$0xff] }
 0x327   :  { %8094 = vst [vmem:[#allocation9_spill] sm:$0xff] %v5566_v4  ;;  %8098 = vst [vmem:[#allocation11_spill] sm:$0xff] %v5574_v40  ;;  %v5595_v47 = vmul.f32 %v5399_v14, %v8106_v6  ;;  %v5599_v29 = vmul.f32 %v5399_v14, %v8108_v3  ;;  %v5609_v59 = vpop.permute.xlu0 %2117  ;;  %v8117_v6 = vld [vmem:[#allocation41_spill] sm:$0xff]  ;;  %v8119_v3 = vld [vmem:[#allocation47_spill] sm:$0xff] }
 0x328   :  { %8100 = vst [vmem:[#allocation12_spill] sm:$0xff] %v5579_v25  ;;  %8102 = vst [vmem:[#allocation13_spill] sm:$0xff] %v5583_v60  ;;  %v8110_v25 = vld [vmem:[#allocation39_spill] sm:$0xff]  ;;  %v8112_v60 = vld [vmem:[#allocation46_spill] sm:$0xff] }
 0x329   :  { %8104 = vst [vmem:[#allocation14_spill] sm:$0xff] %v5587_v23  ;;  %8105 = vst [vmem:[#allocation15_spill] sm:$0xff] %v5590_v27  ;;  %v5603_v42 = vmul.f32 %v5399_v14, %v8110_v25  ;;  %v625_v38 = vmul.f32 %v5404_v16, %v8112_v60  ;;  %v5607_v23 = vpop.permute.xlu1 %2073  ;;  %v5613_v27 = vmul.f32 %v5399_v14, %v8115_v11  ;;  %v8120_v25 = vld [vmem:[#allocation48_spill] sm:$0xff]  ;;  %v8124_v40 = vld [vmem:[#allocation50_spill] sm:$0xff]  ;;  %2421 = vperm.xlu1 %3724, %v4968_v9  }
 0x32a   :  { %8107 = vst [vmem:[#allocation16_spill] sm:$0xff] %v5595_v47  ;;  %8109 = vst [vmem:[#allocation17_spill] sm:$0xff] %v5599_v29  ;;  %v5617_v47 = vmul.f32 %v5399_v14, %v8117_v6  ;;  %v624_v29 = vmul.f32 %v5404_v16, %v8119_v3  ;;  %v5625_v60 = vmul.f32 %v5399_v14, %v8121_v31  ;;  %v8129_v31 = vld [vmem:[#allocation53_spill] sm:$0xff]  ;;  %v8130_v33 = vld [vmem:[#allocation54_spill] sm:$0xff]  ;;  %2581 = vperm.xlu0 %3726, %v4765_v13  }
 0x32b   :  { %8111 = vst [vmem:[#allocation18_spill] sm:$0xff] %v5603_v42  ;;  %8113 = vst [vmem:[#allocation19_spill] sm:$0xff] %v5607_v23  ;;  %v626_v42 = vmul.f32 %v5404_v16, %v8120_v25  ;;  %v8123_v23 = vld [vmem:[#allocation49_spill] sm:$0xff]  ;;  %v628_v11 = vmul.f32 %v5404_v16, %v8124_v40  ;;  %v8128_v25 = vld [vmem:[#allocation52_spill] sm:$0xff]  ;;  %v5660_v34 = vpop.permute.xlu0 %2125 }
 0x32c   :  { %8114 = vst [vmem:[#allocation20_spill] sm:$0xff] %v5609_v59  ;;  %8116 = vst [vmem:[#allocation21_spill] sm:$0xff] %v5613_v27  ;;  %v627_v59 = vmul.f32 %v5404_v16, %v8123_v23  ;;  %v8125_v27 = vld [vmem:[#allocation51_spill] sm:$0xff]  ;;  %v630_v2 = vmul.f32 %v5404_v16, %v8128_v25  ;;  %v632_v23 = vmul.f32 %v5404_v16, %v8130_v33  ;;  %v8131_v40 = vld [vmem:[#allocation44_spill] sm:$0xff] }
 0x32d   :  { %8118 = vst [vmem:[#allocation22_spill] sm:$0xff] %v5617_v47  ;;  %8122 = vst [vmem:[#allocation23_spill] sm:$0xff] %v5625_v60  ;;  %v629_v6 = vmul.f32 %v5404_v16, %v8125_v27  ;;  %v8126_v47 = vld [vmem:[#allocation43_spill] sm:$0xff]  ;;  %v631_v60 = vmul.f32 %v5404_v16, %v8129_v31  ;;  %v5647_v27 = vmul.f32 %v5399_v14, %v8131_v40  ;;  %v8132_v9 = vld [vmem:[#allocation45_spill] sm:$0xff]  ;;  %v5658_v31 = vpop.permute.xlu1 %2081  ;;  %2429 = vperm.xlu1 %3724, %v4979_v1  }
 0x32e   :  { %v5636_v3 = vmul.f32 %v5399_v14, %v8126_v47  ;;  %v5651_v4 = vmul.f32 %v5399_v14, %v8132_v9  ;;  %v5654_v47 = vadd.f32 %v625_v38, %v5424_v62  ;;  %v8133_v25 = vld [vmem:[#allocation55_spill] sm:$0xff]  ;;  %8134 = vst [vmem:[#allocation25_spill] sm:$0xff] %v5658_v31  ;;  %8135 = vst [vmem:[#allocation26_spill] sm:$0xff] %v5660_v34  ;;  %v8136_v40 = vld [vmem:[#allocation56_spill] sm:$0xff]  ;;  %2589 = vperm.xlu0 %3726, %v4776_v15  }
 0x32f   :  { %v5663_v13 = vadd.f32 %v624_v29, %v5416_v51  ;;  %v5666_v33 = vadd.f32 %v626_v42, %v5412_v37  ;;  %v634_v14 = vmul.f32 %v5404_v16, %v8136_v40  ;;  %v8137_v9 = vld [vmem:[#allocation57_spill] sm:$0xff]  ;;  %v5673_v38 = vadd.f32 %v627_v59, %v5420_v41  ;;  %v8138_v51 = vld [vmem:[#allocation58_spill] sm:$0xff]  ;;  %v8139_v59 = vld [vmem:[#allocation59_spill] sm:$0xff] }
 0x330   :  { %8127 = vst [vmem:[#allocation24_spill] sm:$0xff] %v5636_v3  ;;  %v633_v3 = vmul.f32 %v5404_v16, %v8133_v25  ;;  %v635_v62 = vmul.f32 %v5404_v16, %v8137_v9  ;;  %v5676_v25 = vadd.f32 %v628_v11, %v5432_v52  ;;  %v5679_v34 = vadd.f32 %v629_v6, %v5428_v35  ;;  %v8140_v11 = vld [vmem:[#allocation60_spill] sm:$0xff]  ;;  %v8141_v6 = vld [vmem:[#allocation61_spill] sm:$0xff] }
 0x331   :  { %v636_v29 = vmul.f32 %v5404_v16, %v8138_v51  ;;  %v5685_v37 = vadd.f32 %v630_v2, %v5442_v55  ;;  %v5688_v42 = vadd.f32 %v631_v60, %v5436_v53  ;;  %v5691_v41 = vadd.f32 %v632_v23, %v5450_v57  ;;  %v8142_v55 = vld [vmem:[#allocation62_spill] sm:$0xff]  ;;  %v5705_v60 = vpop.permute.xlu1 %2089  ;;  %v5707_v57 = vpop.permute.xlu0 %2133  ;;  %v8146_v40 = vld [vmem:[#allocation64_spill] sm:$0xff]  ;;  %2437 = vperm.xlu1 %3724, %v4990_v0  }
 0x332   :  { %v637_v52 = vmul.f32 %v5404_v16, %v8139_v59  ;;  %v5697_v35 = vadd.f32 %v633_v3, %v5446_v56  ;;  %v638_v1 = vmul.f32 %v5404_v16, %v8140_v11  ;;  %v639_v2 = vmul.f32 %v5404_v16, %v8141_v6  ;;  %8143 = vst [vmem:[#allocation27_spill] sm:$0xff] %v5705_v60  ;;  %v8145_v56 = vld [vmem:[#allocation63_spill] sm:$0xff]  ;;  %v8147_v59 = vld [vmem:[#allocation65_spill] sm:$0xff]  ;;  %v8148_v6 = vld [vmem:[#allocation66_spill] sm:$0xff] }
 0x333   :  { %v640_v53 = vmul.f32 %v5404_v16, %v8142_v55  ;;  %8144 = vst [vmem:[#allocation28_spill] sm:$0xff] %v5707_v57  ;;  %v5710_v23 = vadd.f32 %v634_v14, %v5459_v54  ;;  %v5713_v15 = vadd.f32 %v635_v62, %v5454_v58  ;;  %v641_v3 = vmul.f32 %v5404_v16, %v8145_v56  ;;  %v8149_v54 = vld [vmem:[#allocation67_spill] sm:$0xff]  ;;  %v8150_v62 = vld [vmem:[#allocation68_spill] sm:$0xff] }
 0x334   :  { %v642_v9 = vmul.f32 %v5404_v16, %v8146_v40  ;;  %v5720_v51 = vadd.f32 %v636_v29, %v5467_v49  ;;  %v643_v11 = vmul.f32 %v5404_v16, %v8147_v59  ;;  %v644_v55 = vmul.f32 %v5404_v16, %v8148_v6  ;;  %v8151_v40 = vld [vmem:[#allocation69_spill] sm:$0xff]  ;;  %v8152_v29 = vld [vmem:[#allocation70_spill] sm:$0xff]  ;;  %2597 = vperm.xlu0 %3726, %v4787_v17   ;;  %v8155_v17 = vld [vmem:[#allocation72_spill] sm:$0xff] }
 0x335   :  { %v645_v14 = vmul.f32 %v5404_v16, %v8149_v54  ;;  %v5730_v58 = vadd.f32 %v637_v52, %v5463_v12  ;;  %v646_v56 = vmul.f32 %v5404_v16, %v8150_v62  ;;  %v647_v49 = vmul.f32 %v5404_v16, %v8151_v40  ;;  %v8153_v12 = vld [vmem:[#allocation71_spill] sm:$0xff]  ;;  %v5750_v62 = vpop.permute.xlu1 %2097 }
 0x336   :  { %v648_v59 = vmul.f32 %v5404_v16, %v8152_v29  ;;  %v5740_v6 = vadd.f32 %v638_v1, %v5479_v43  ;;  %v5743_v54 = vadd.f32 %v639_v2, %v5471_v61  ;;  %v5746_v0 = vadd.f32 %v640_v53, %v5487_v63  ;;  %8154 = vst [vmem:[#allocation29_spill] sm:$0xff] %v5750_v62  ;;  %v8156_v1 = vld [vmem:[#allocation73_spill] sm:$0xff]  ;;  %v5762_v2 = vpop.permute.xlu0 %2245 }
 0x337   :  { %v649_v52 = vmul.f32 %v5404_v16, %v8153_v12  ;;  %v5753_v40 = vadd.f32 %v641_v3, %v5483_v8  ;;  %v5756_v29 = vadd.f32 %v642_v9, %v5495_v7  ;;  %v650_v43 = vmul.f32 %v5404_v16, %v8155_v17  ;;  %8157 = vst [vmem:[#allocation30_spill] sm:$0xff] %v5762_v2  ;;  %v8158_v3 = vld [vmem:[#allocation74_spill] sm:$0xff] }
 0x338   :  { %v651_v61 = vmul.f32 %v5404_v16, %v8156_v1  ;;  %v5765_v63 = vadd.f32 %v643_v11, %v5491_v39  ;;  %v5768_v53 = vadd.f32 %v644_v55, %v5503_v22  ;;  %v5771_v8 = vadd.f32 %v645_v14, %v5499_v46  ;;  %2605 = vperm.xlu0 %3726, %v4798_v19   ;;  %v8160_v22 = vld [vmem:[#allocation75_spill] sm:$0xff]  ;;  %v8161_v55 = vld [vmem:[#allocation76_spill] sm:$0xff]  ;;  %v8162_v14 = vld [vmem:[#allocation77_spill] sm:$0xff] }
 0x339   :  { %v652_v7 = vmul.f32 %v5404_v16, %v8158_v3  ;;  %v8159_v9 = vmov 8   ;;  %v5777_v12 = vadd.f32 %v646_v56, %v5512_v10  ;;  %v5780_v17 = vadd.f32 %v647_v49, %v5507_v24  ;;  %v5796_v56 = vpop.permute.xlu1 %2105  ;;  %v8164_v19 = vld [vmem:[#allocation78_spill] sm:$0xff]  ;;  %v8165_v49 = vld [vmem:[#allocation79_spill] sm:$0xff]  ;;  %v8167_v3 = vld [vmem:[#allocation80_spill] sm:$0xff] }
 0x33a   :  { %3725 = vset.pattern.permute.xlu1 %v8159_v9  ;;  %v5783_v39 = vadd.f32 %v648_v59, %v5520_v30  ;;  %v5788_v46 = vadd.f32 %v649_v52, %v5516_v28  ;;  %v653_v11 = vmul.f32 %v5404_v16, %v8160_v22  ;;  %v654_v10 = vmul.f32 %v5404_v16, %v8161_v55  ;;  %v5808_v52 = vpop.permute.xlu0 %2257  ;;  %v8168_v22 = vld [vmem:[#allocation81_spill] sm:$0xff]  ;;  %v8170_v55 = vld [vmem:[#allocation83_spill] sm:$0xff] }
 0x33b   :  { %2549 = vperm.xlu1 %3725, %v5001_v5   ;;  %v655_v24 = vmul.f32 %v5404_v16, %v8162_v14  ;;  %8163 = vst [vmem:[#allocation31_spill] sm:$0xff] %v5796_v56  ;;  %v5799_v30 = vadd.f32 %v650_v43, %v5530_v26  ;;  %v5802_v5 = vadd.f32 %v651_v61, %v5526_v32  ;;  %8166 = vst [vmem:[#allocation32_spill] sm:$0xff] %v5808_v52  ;;  %v8169_v43 = vld [vmem:[#allocation82_spill] sm:$0xff] }
 0x33c   :  { %v656_v28 = vmul.f32 %v5404_v16, %v8164_v19  ;;  %v657_v59 = vmul.f32 %v5404_v16, %v8165_v49  ;;  %v5811_v1 = vadd.f32 %v652_v7, %v5538_v20  ;;  %v658_v9 = vmul.f32 %v5404_v16, %v8167_v3  ;;  %v8171_v19 = vld [vmem:[#allocation84_spill] sm:$0xff]  ;;  %2613 = vperm.xlu0 %3726, %v4809_v21   ;;  %v8176_v21 = vld [vmem:[#allocation86_spill] sm:$0xff] }
 0x33d   :  { %v659_v26 = vmul.f32 %v5404_v16, %v8168_v22  ;;  %v1230_v32 = vsub.s32 3, %v5375_v18  ;;  %v660_v61 = vmul.f32 %v5404_v16, %v8169_v43  ;;  %v661_v14 = vmul.f32 %v5404_v16, %v8170_v55  ;;  %v8172_v22 = vld [vmem:[#allocation85_spill] sm:$0xff]  ;;  %v5837_v55 = vpop.permute.xlu1 %2113 }
 0x33e   :  { %v662_v49 = vmul.f32 %v5404_v16, %v8171_v19  ;;  %v5827_v20 = vadd.f32 %v653_v11, %v5534_v50  ;;  %v5830_v7 = vadd.f32 %v654_v10, %v5550_v45  ;;  %v5833_v3 = vadd.f32 %v655_v24, %v5546_v48  ;;  %8173 = vst [vmem:[#allocation33_spill] sm:$0xff] %v5837_v55  ;;  %v8177_v11 = vld [vmem:[#allocation87_spill] sm:$0xff]  ;;  %v5849_v10 = vpop.permute.xlu0 %2265  ;;  %v8179_v48 = vld [vmem:[#allocation9_spill] sm:$0xff]  ;;  %v8182_v55 = vld [vmem:[#allocation88_spill] sm:$0xff] }
 0x33f   :  { %2557 = vperm.xlu1 %3725, %v4732_v44   ;;  %v663_v43 = vmul.f32 %v5404_v16, %v8172_v22  ;;  %v5840_v19 = vadd.f32 %v656_v28, %v5558_v36  ;;  %v8174_v44 = vld [vmem:[#allocation7_spill] sm:$0xff]  ;;  %v664_v50 = vmul.f32 %v5404_v16, %v8176_v21  ;;  %v665_v45 = vmul.f32 %v5404_v16, %v8177_v11  ;;  %v8180_v22 = vld [vmem:[#allocation8_spill] sm:$0xff]  ;;  %v8187_v21 = vld [vmem:[#allocation10_spill] sm:$0xff] }
 0x340   :  { %v5843_v57 = vadd.f32 %v657_v59, %v8174_v44  ;;  %8178 = vst [vmem:[#allocation35_spill] sm:$0xff] %v5849_v10  ;;  %v5852_v24 = vadd.f32 %v658_v9, %v8179_v48  ;;  %v5855_v56 = vadd.f32 %v659_v26, %v8180_v22  ;;  %v666_v36 = vmul.f32 %v5404_v16, %v8182_v55  ;;  %v8183_v28 = vld [vmem:[#allocation343_spill] sm:$0xff]  ;;  %v8189_v11 = vld [vmem:[#allocation13_spill] sm:$0xff]  ;;  %v8191_v9 = vld [vmem:[#allocation250_spill] sm:$0xff] }
 0x341   :  { %v5860_v59 = vrot.slane %v8183_v28, %v1230_v32  ;;  %v8185_v44 = vld [vmem:[#allocation11_spill] sm:$0xff]  ;;  %v5866_v60 = vadd.f32 %v661_v14, %v8187_v21  ;;  %v5869_v31 = vadd.f32 %v662_v49, %v8189_v11  ;;  %v8192_v48 = vld [vmem:[#allocation208_spill] sm:$0xff]  ;;  %v8195_v55 = vld [vmem:[#allocation89_spill] sm:$0xff]  ;;  %v5882_v21 = vpop.permute.xlu1 %2121 }
 0x342   :  { %8175 = vst [vmem:[#allocation34_spill] sm:$0xff] %v5843_v57  ;;  %8181 = vst [vmem:[#allocation36_spill] sm:$0xff] %v5855_v56  ;;  %v5863_v62 = vadd.f32 %v660_v61, %v8185_v44  ;;  %2621 = vperm.xlu0 %3726, %v8192_v48   ;;  %v8193_v26 = vld [vmem:[#allocation12_spill] sm:$0xff]  ;;  %v667_v32 = vmul.f32 %v5404_v16, %v8195_v55  ;;  %v8196_v10 = vld [vmem:[#allocation90_spill] sm:$0xff]  ;;  %v5894_v2 = vpop.permute.xlu0 %2273 }
 0x343   :  { %8184 = vst [vmem:[#allocation37_spill] sm:$0xff] %v5860_v59  ;;  %8188 = vst [vmem:[#allocation39_spill] sm:$0xff] %v5866_v60  ;;  %2561 = vperm.xlu1 %3725, %v8191_v9   ;;  %v5874_v22 = vadd.f32 %v663_v43, %v8193_v26  ;;  %v668_v61 = vmul.f32 %v5404_v16, %v8196_v10  ;;  %v8197_v44 = vld [vmem:[#allocation91_spill] sm:$0xff]  ;;  %v8199_v49 = vld [vmem:[#allocation16_spill] sm:$0xff] }
 0x344   :  { %8186 = vst [vmem:[#allocation38_spill] sm:$0xff] %v5863_v62  ;;  %8190 = vst [vmem:[#allocation46_spill] sm:$0xff] %v5869_v31  ;;  %v669_v14 = vmul.f32 %v5404_v16, %v8197_v44  ;;  %v5885_v11 = vadd.f32 %v664_v50, %v8199_v49  ;;  %v8201_v9 = vld [vmem:[#allocation14_spill] sm:$0xff]  ;;  %v8203_v48 = vld [vmem:[#allocation92_spill] sm:$0xff] }
 0x345   :  { %8194 = vst [vmem:[#allocation40_spill] sm:$0xff] %v5874_v22  ;;  %8198 = vst [vmem:[#allocation41_spill] sm:$0xff] %v5882_v21  ;;  %v5888_v52 = vadd.f32 %v665_v45, %v8201_v9  ;;  %v670_v43 = vmul.f32 %v5404_v16, %v8203_v48  ;;  %v8204_v26 = vld [vmem:[#allocation93_spill] sm:$0xff]  ;;  %v8206_v10 = vld [vmem:[#allocation18_spill] sm:$0xff] }
 0x346   :  { %8200 = vst [vmem:[#allocation47_spill] sm:$0xff] %v5885_v11  ;;  %v671_v55 = vmul.f32 %v5404_v16, %v8204_v26  ;;  %8205 = vst [vmem:[#allocation42_spill] sm:$0xff] %v5894_v2  ;;  %v5897_v59 = vadd.f32 %v666_v36, %v8206_v10  ;;  %v8208_v44 = vld [vmem:[#allocation94_spill] sm:$0xff]  ;;  %v8209_v22 = vld [vmem:[#allocation95_spill] sm:$0xff] }
 0x347   :  { %8202 = vst [vmem:[#allocation48_spill] sm:$0xff] %v5888_v52  ;;  %v672_v21 = vmul.f32 %v5404_v16, %v8208_v44  ;;  %v673_v50 = vmul.f32 %v5404_v16, %v8209_v22  ;;  %v8210_v49 = vld [vmem:[#allocation96_spill] sm:$0xff]  ;;  %v8211_v45 = vld [vmem:[#allocation15_spill] sm:$0xff]  ;;  %v8212_v52 = vld [vmem:[#allocation97_spill] sm:$0xff] }
 0x348   :  { %8207 = vst [vmem:[#allocation49_spill] sm:$0xff] %v5897_v59  ;;  %v928_v9 = vmul.f32 %v8211_v45, %v8210_v49  ;;  %v929_v48 = vmul.f32 %v8211_v45, %v8212_v52  ;;  %v8213_v11 = vld [vmem:[#allocation98_spill] sm:$0xff]  ;;  %v8214_v60 = vld [vmem:[#allocation99_spill] sm:$0xff]  ;;  %v8215_v36 = vld [vmem:[#allocation253_spill] sm:$0xff] }
 0x349   :  { %v930_v26 = vmul.f32 %v8211_v45, %v8213_v11  ;;  %v932_v2 = vmul.f32 %v8211_v45, %v8214_v60  ;;  %2569 = vperm.xlu1 %3725, %v8215_v36   ;;  %v8216_v10 = vld [vmem:[#allocation211_spill] sm:$0xff]  ;;  %v8217_v44 = vld [vmem:[#allocation17_spill] sm:$0xff]  ;;  %v8218_v16 = vld [vmem:[#allocation22_spill] sm:$0xff]  ;;  %v5924_v11 = vpop.permute.xlu1 %2129 }
 0x34a   :  { %2629 = vperm.xlu0 %3726, %v8216_v10   ;;  %v5914_v59 = vadd.f32 %v667_v32, %v8217_v44  ;;  %v5917_v22 = vadd.f32 %v668_v61, %v8218_v16  ;;  %v8219_v49 = vld [vmem:[#allocation21_spill] sm:$0xff]  ;;  %v8220_v52 = vld [vmem:[#allocation100_spill] sm:$0xff]  ;;  %8221 = vst [vmem:[#allocation50_spill] sm:$0xff] %v5924_v11  ;;  %v8223_v36 = vld [vmem:[#allocation23_spill] sm:$0xff]  ;;  %v5936_v16 = vpop.permute.xlu0 %2281 }
 0x34b   :  { %v5920_v31 = vadd.f32 %v669_v14, %v8219_v49  ;;  %v931_v56 = vmul.f32 %v8211_v45, %v8220_v52  ;;  %v8222_v62 = vld [vmem:[#allocation24_spill] sm:$0xff]  ;;  %v5930_v57 = vadd.f32 %v671_v55, %v8223_v36  ;;  %v8224_v10 = vld [vmem:[#allocation101_spill] sm:$0xff]  ;;  %v8225_v44 = vld [vmem:[#allocation102_spill] sm:$0xff]  ;;  %8226 = vst [vmem:[#allocation51_spill] sm:$0xff] %v5936_v16  ;;  %v5939_v14 = vadd.f32 %v672_v21, %v5651_v4 }
 0x34c   :  { %v5927_v60 = vadd.f32 %v670_v43, %v8222_v62  ;;  %v934_v32 = vmul.f32 %v8211_v45, %v8224_v10  ;;  %v933_v61 = vmul.f32 %v8211_v45, %v8225_v44  ;;  %v5942_v49 = vadd.f32 %v673_v50, %v5647_v27  ;;  %v8227_v43 = vld [vmem:[#allocation103_spill] sm:$0xff]  ;;  %v8228_v4 = vld [vmem:[#allocation256_spill] sm:$0xff]  ;;  %v8229_v21 = vld [vmem:[#allocation214_spill] sm:$0xff] }
 0x34d   :  { %v5945_v62 = vadd.f32 %v928_v9, %v5663_v13  ;;  %v936_v55 = vmul.f32 %v8211_v45, %v8227_v43  ;;  %v5950_v52 = vadd.f32 %v929_v48, %v5654_v47  ;;  %v5953_v36 = vadd.f32 %v930_v26, %v5666_v33  ;;  %2577 = vperm.xlu1 %3725, %v8228_v4   ;;  %v8230_v13 = vld [vmem:[#allocation104_spill] sm:$0xff]  ;;  %v8231_v9 = vld [vmem:[#allocation105_spill] sm:$0xff]  ;;  %v8232_v48 = vld [vmem:[#allocation106_spill] sm:$0xff]  ;;  %v5969_v26 = vpop.permute.xlu1 %2137 }
 0x34e   :  { %v5956_v10 = vadd.f32 %v932_v2, %v5676_v25  ;;  %2637 = vperm.xlu0 %3726, %v8229_v21   ;;  %v5961_v27 = vadd.f32 %v931_v56, %v5673_v38  ;;  %v935_v50 = vmul.f32 %v8211_v45, %v8230_v13  ;;  %v938_v47 = vmul.f32 %v8211_v45, %v8231_v9  ;;  %v8234_v44 = vld [vmem:[#allocation107_spill] sm:$0xff]  ;;  %v8235_v56 = vld [vmem:[#allocation108_spill] sm:$0xff]  ;;  %v5981_v4 = vpop.permute.xlu0 %2289  ;;  %v8237_v13 = vld [vmem:[#allocation109_spill] sm:$0xff] }
 0x34f   :  { %v937_v33 = vmul.f32 %v8211_v45, %v8232_v48  ;;  %8233 = vst [vmem:[#allocation43_spill] sm:$0xff] %v5969_v26  ;;  %v5972_v25 = vadd.f32 %v934_v32, %v5685_v37  ;;  %v5975_v2 = vadd.f32 %v933_v61, %v5679_v34  ;;  %v940_v38 = vmul.f32 %v8211_v45, %v8234_v44  ;;  %v8238_v48 = vld [vmem:[#allocation110_spill] sm:$0xff]  ;;  %v8239_v32 = vld [vmem:[#allocation111_spill] sm:$0xff]  ;;  %v8240_v61 = vld [vmem:[#allocation112_spill] sm:$0xff] }
 0x350   :  { %v939_v43 = vmul.f32 %v8211_v45, %v8235_v56  ;;  %8236 = vst [vmem:[#allocation52_spill] sm:$0xff] %v5981_v4  ;;  %v5984_v21 = vadd.f32 %v936_v55, %v5691_v41  ;;  %v942_v9 = vmul.f32 %v8211_v45, %v8237_v13  ;;  %v941_v37 = vmul.f32 %v8211_v45, %v8238_v48  ;;  %v8241_v26 = vld [vmem:[#allocation113_spill] sm:$0xff]  ;;  %v8242_v11 = vld [vmem:[#allocation114_spill] sm:$0xff]  ;;  %v8243_v41 = vld [vmem:[#allocation259_spill] sm:$0xff] }
 0x351   :  { %v944_v34 = vmul.f32 %v8211_v45, %v8239_v32  ;;  %v943_v44 = vmul.f32 %v8211_v45, %v8240_v61  ;;  %v946_v56 = vmul.f32 %v8211_v45, %v8241_v26  ;;  %v945_v4 = vmul.f32 %v8211_v45, %v8242_v11  ;;  %2585 = vperm.xlu1 %3725, %v8243_v41   ;;  %v8244_v55 = vld [vmem:[#allocation217_spill] sm:$0xff]  ;;  %v8245_v61 = vld [vmem:[#allocation115_spill] sm:$0xff]  ;;  %v8246_v41 = vld [vmem:[#allocation116_spill] sm:$0xff] }
 0x352   :  { %2645 = vperm.xlu0 %3726, %v8244_v55   ;;  %v6001_v13 = vadd.f32 %v935_v50, %v5688_v42  ;;  %v6004_v48 = vadd.f32 %v938_v47, %v5710_v23  ;;  %v6007_v32 = vadd.f32 %v937_v33, %v5697_v35  ;;  %v948_v16 = vmul.f32 %v8211_v45, %v8245_v61  ;;  %v8247_v42 = vld [vmem:[#allocation117_spill] sm:$0xff]  ;;  %v6021_v23 = vpop.permute.xlu1 %2249  ;;  %v6023_v47 = vpop.permute.xlu0 %2297 }
 0x353   :  { %v6012_v26 = vadd.f32 %v940_v38, %v5720_v51  ;;  %v6015_v11 = vadd.f32 %v939_v43, %v5713_v15  ;;  %v947_v55 = vmul.f32 %v8211_v45, %v8246_v41  ;;  %v950_v50 = vmul.f32 %v8211_v45, %v8247_v42  ;;  %8248 = vst [vmem:[#allocation53_spill] sm:$0xff] %v6021_v23  ;;  %v8250_v15 = vld [vmem:[#allocation118_spill] sm:$0xff]  ;;  %v8270_v23 = vld [vmem:[#allocation131_spill] sm:$0xff] }
 0x354   :  { %8249 = vst [vmem:[#allocation54_spill] sm:$0xff] %v6023_v47  ;;  %v6026_v35 = vadd.f32 %v942_v9, %v5740_v6  ;;  %v6029_v33 = vadd.f32 %v941_v37, %v5730_v58  ;;  %v6032_v51 = vadd.f32 %v944_v34, %v5746_v0  ;;  %v949_v38 = vmul.f32 %v8211_v45, %v8250_v15  ;;  %v8251_v6 = vld [vmem:[#allocation262_spill] sm:$0xff]  ;;  %v8252_v9 = vld [vmem:[#allocation220_spill] sm:$0xff]  ;;  %v8253_v0 = vld [vmem:[#allocation119_spill] sm:$0xff] }
 0x355   :  { %v6037_v43 = vadd.f32 %v943_v44, %v5743_v54  ;;  %v6040_v61 = vadd.f32 %v946_v56, %v5756_v29  ;;  %v6043_v41 = vadd.f32 %v945_v4, %v5753_v40  ;;  %2593 = vperm.xlu1 %3725, %v8251_v6   ;;  %v6048_v58 = vadd.f32 %v948_v16, %v5768_v53  ;;  %v8254_v34 = vld [vmem:[#allocation120_spill] sm:$0xff]  ;;  %v8255_v44 = vld [vmem:[#allocation121_spill] sm:$0xff]  ;;  %v8256_v4 = vld [vmem:[#allocation122_spill] sm:$0xff] }
 0x356   :  { %2653 = vperm.xlu0 %3726, %v8252_v9   ;;  %v952_v37 = vmul.f32 %v8211_v45, %v8253_v0  ;;  %v951_v54 = vmul.f32 %v8211_v45, %v8254_v34  ;;  %v954_v29 = vmul.f32 %v8211_v45, %v8255_v44  ;;  %v6057_v56 = vadd.f32 %v947_v55, %v5765_v63  ;;  %v8257_v53 = vld [vmem:[#allocation123_spill] sm:$0xff]  ;;  %v6066_v15 = vpop.permute.xlu1 %2253  ;;  %v6068_v6 = vpop.permute.xlu0 %2305  ;;  %v8260_v0 = vld [vmem:[#allocation124_spill] sm:$0xff]  ;;  %v8261_v55 = vld [vmem:[#allocation125_spill] sm:$0xff] }
 0x357   :  { %v6060_v40 = vadd.f32 %v950_v50, %v5777_v12  ;;  %v953_v42 = vmul.f32 %v8211_v45, %v8256_v4  ;;  %v956_v16 = vmul.f32 %v8211_v45, %v8257_v53  ;;  %8258 = vst [vmem:[#allocation44_spill] sm:$0xff] %v6066_v15  ;;  %8259 = vst [vmem:[#allocation45_spill] sm:$0xff] %v6068_v6  ;;  %v8262_v50 = vld [vmem:[#allocation126_spill] sm:$0xff]  ;;  %v8263_v44 = vld [vmem:[#allocation127_spill] sm:$0xff] }
 0x358   :  { %v6071_v9 = vadd.f32 %v949_v38, %v5771_v8  ;;  %v955_v63 = vmul.f32 %v8211_v45, %v8260_v0  ;;  %v958_v12 = vmul.f32 %v8211_v45, %v8261_v55  ;;  %v957_v34 = vmul.f32 %v8211_v45, %v8262_v50  ;;  %v8264_v53 = vld [vmem:[#allocation128_spill] sm:$0xff]  ;;  %v8265_v15 = vld [vmem:[#allocation129_spill] sm:$0xff]  ;;  %v8267_v38 = vld [vmem:[#allocation223_spill] sm:$0xff] }
 0x359   :  { %v960_v4 = vmul.f32 %v8211_v45, %v8263_v44  ;;  %v959_v47 = vmul.f32 %v8211_v45, %v8264_v53  ;;  %v962_v6 = vmul.f32 %v8211_v45, %v8265_v15  ;;  %v8266_v8 = vld [vmem:[#allocation265_spill] sm:$0xff]  ;;  %v6088_v0 = vadd.f32 %v952_v37, %v5783_v39 }
 0x35a   :  { %2601 = vperm.xlu1 %3725, %v8266_v8   ;;  %2661 = vperm.xlu0 %3726, %v8267_v38   ;;  %v6091_v55 = vadd.f32 %v951_v54, %v5780_v17  ;;  %v6094_v50 = vadd.f32 %v954_v29, %v5799_v30  ;;  %v1534_v44 = vsub.s32 4, %v5375_v18  ;;  %v6098_v53 = vadd.f32 %v953_v42, %v5788_v46  ;;  %v8269_v8 = vld [vmem:[#allocation130_spill] sm:$0xff]  ;;  %v6107_v37 = vpop.permute.xlu1 %2261  ;;  %v6109_v17 = vpop.permute.xlu0 %2313 }
 0x35b   :  { %v6101_v15 = vadd.f32 %v956_v16, %v5811_v1  ;;  %v961_v38 = vmul.f32 %v8211_v45, %v8269_v8  ;;  %v964_v39 = vmul.f32 %v8211_v45, %v8270_v23  ;;  %8271 = vst [vmem:[#allocation56_spill] sm:$0xff] %v6107_v37  ;;  %8272 = vst [vmem:[#allocation57_spill] sm:$0xff] %v6109_v17  ;;  %v8274_v1 = vld [vmem:[#allocation132_spill] sm:$0xff] }
 0x35c   :  { %v6112_v30 = vadd.f32 %v955_v63, %v5802_v5  ;;  %v6115_v54 = vadd.f32 %v958_v12, %v5830_v7  ;;  %v6118_v46 = vadd.f32 %v957_v34, %v5827_v20  ;;  %v963_v29 = vmul.f32 %v8211_v45, %v8274_v1  ;;  %v8278_v5 = vld [vmem:[#allocation268_spill] sm:$0xff]  ;;  %v8279_v20 = vld [vmem:[#allocation133_spill] sm:$0xff]  ;;  %v8280_v12 = vld [vmem:[#allocation134_spill] sm:$0xff] }
 0x35d   :  { %8268 = vst [vmem:[#allocation55_spill] sm:$0xff] %v6101_v15  ;;  %v6123_v42 = vadd.f32 %v960_v4, %v5840_v19  ;;  %v6126_v23 = vadd.f32 %v959_v47, %v5833_v3  ;;  %v6129_v16 = vadd.f32 %v962_v6, %v5852_v24  ;;  %v3777_v7 = vld [vmem:[%s7684_s0 + $0xf0] sm:$0xff]  ;;  %v966_v63 = vmul.f32 %v8211_v45, %v8279_v20  ;;  %v8281_v34 = vld [vmem:[#allocation135_spill] sm:$0xff]  ;;  %v8283_v24 = vld [vmem:[#allocation34_spill] sm:$0xff] }
 0x35e   :  { %8273 = vst [vmem:[#allocation58_spill] sm:$0xff] %v6115_v54  ;;  %2609 = vperm.xlu1 %3725, %v8278_v5   ;;  %2669 = vperm.xlu0 %3726, %v3777_v7   ;;  %v965_v19 = vmul.f32 %v8211_v45, %v8280_v12  ;;  %v968_v3 = vmul.f32 %v8211_v45, %v8281_v34  ;;  %v8285_v4 = vld [vmem:[#allocation38_spill] sm:$0xff]  ;;  %v8287_v1 = vld [vmem:[#allocation136_spill] sm:$0xff]  ;;  %v8288_v7 = vld [vmem:[#allocation137_spill] sm:$0xff]  ;;  %v6154_v17 = vpop.permute.xlu1 %2269  ;;  %v6156_v12 = vpop.permute.xlu0 %2321 }
 0x35f   :  { %8275 = vst [vmem:[#allocation59_spill] sm:$0xff] %v6123_v42  ;;  %8276 = vst [vmem:[#allocation60_spill] sm:$0xff] %v6126_v23  ;;  %v6142_v47 = vrot.slane %v8183_v28, %v1534_v44  ;;  %v6145_v6 = vadd.f32 %v961_v38, %v8283_v24  ;;  %v6148_v8 = vadd.f32 %v964_v39, %v8285_v4  ;;  %v8291_v34 = vld [vmem:[#allocation36_spill] sm:$0xff]  ;;  %v8293_v44 = vld [vmem:[#allocation138_spill] sm:$0xff] }
 0x360   :  { %8277 = vst [vmem:[#allocation61_spill] sm:$0xff] %v6129_v16  ;;  %v967_v5 = vmul.f32 %v8211_v45, %v8287_v1  ;;  %v970_v20 = vmul.f32 %v8211_v45, %v8288_v7  ;;  %8289 = vst [vmem:[#allocation65_spill] sm:$0xff] %v6154_v17  ;;  %v6159_v37 = vadd.f32 %v963_v29, %v8291_v34  ;;  %v8294_v24 = vld [vmem:[#allocation139_spill] sm:$0xff]  ;;  %v8295_v4 = vld [vmem:[#allocation140_spill] sm:$0xff] }
 0x361   :  { %8282 = vst [vmem:[#allocation62_spill] sm:$0xff] %v6142_v47  ;;  %8284 = vst [vmem:[#allocation63_spill] sm:$0xff] %v6145_v6  ;;  %v969_v38 = vmul.f32 %v8211_v45, %v8293_v44  ;;  %v972_v39 = vmul.f32 %v8211_v45, %v8294_v24  ;;  %v971_v47 = vmul.f32 %v8211_v45, %v8295_v4  ;;  %v8296_v1 = vld [vmem:[#allocation141_spill] sm:$0xff]  ;;  %v8297_v7 = vld [vmem:[#allocation142_spill] sm:$0xff] }
 0x362   :  { %8286 = vst [vmem:[#allocation64_spill] sm:$0xff] %v6148_v8  ;;  %8290 = vst [vmem:[#allocation66_spill] sm:$0xff] %v6156_v12  ;;  %v974_v8 = vmul.f32 %v8211_v45, %v8296_v1  ;;  %v973_v17 = vmul.f32 %v8211_v45, %v8297_v7  ;;  %v8298_v16 = vld [vmem:[#allocation143_spill] sm:$0xff]  ;;  %v3778_v34 = vld [vmem:[%s7684_s0 + $0x100] sm:$0xff] }
 0x363   :  { %8292 = vst [vmem:[#allocation67_spill] sm:$0xff] %v6159_v37  ;;  %v976_v12 = vmul.f32 %v8211_v45, %v8298_v16  ;;  %v8299_v29 = vld [vmem:[#allocation271_spill] sm:$0xff]  ;;  %2677 = vperm.xlu0 %3726, %v3778_v34   ;;  %v8300_v44 = vld [vmem:[#allocation46_spill] sm:$0xff]  ;;  %v8303_v7 = vld [vmem:[#allocation144_spill] sm:$0xff] }
 0x364   :  { %2617 = vperm.xlu1 %3725, %v8299_v29   ;;  %v6178_v24 = vadd.f32 %v966_v63, %v8300_v44  ;;  %v8301_v4 = vld [vmem:[#allocation39_spill] sm:$0xff]  ;;  %v975_v54 = vmul.f32 %v8211_v45, %v8303_v7  ;;  %v8304_v16 = vld [vmem:[#allocation40_spill] sm:$0xff]  ;;  %v8305_v29 = vld [vmem:[#allocation49_spill] sm:$0xff]  ;;  %v6206_v7 = vadd.f32 %v972_v39, %v5917_v22 }
 0x365   :  { %v6181_v42 = vadd.f32 %v965_v19, %v8301_v4  ;;  %v8302_v1 = vld [vmem:[#allocation47_spill] sm:$0xff]  ;;  %v6189_v28 = vadd.f32 %v967_v5, %v8304_v16  ;;  %v6192_v6 = vadd.f32 %v970_v20, %v8305_v29  ;;  %v8306_v15 = vld [vmem:[#allocation145_spill] sm:$0xff]  ;;  %v8308_v63 = vld [vmem:[#allocation146_spill] sm:$0xff]  ;;  %v6198_v19 = vpop.permute.xlu1 %2277  ;;  %v6200_v4 = vpop.permute.xlu0 %2329  ;;  %v6209_v5 = vadd.f32 %v971_v47, %v5914_v59 }
 0x366   :  { %v6184_v37 = vadd.f32 %v968_v3, %v8302_v1  ;;  %v8307_v34 = vld [vmem:[#allocation37_spill] sm:$0xff]  ;;  %v977_v44 = vmul.f32 %v8211_v45, %v8308_v63  ;;  %8309 = vst [vmem:[#allocation68_spill] sm:$0xff] %v6198_v19  ;;  %8310 = vst [vmem:[#allocation69_spill] sm:$0xff] %v6200_v4  ;;  %v8311_v3 = vld [vmem:[#allocation48_spill] sm:$0xff]  ;;  %v6217_v45 = vadd.f32 %v973_v17, %v5920_v31 }
 0x367   :  { %v1232_v23 = vmul.f32 %v8307_v34, %v8306_v15  ;;  %v6203_v1 = vadd.f32 %v969_v38, %v8311_v3  ;;  %v8312_v20 = vld [vmem:[#allocation147_spill] sm:$0xff]  ;;  %v6214_v15 = vadd.f32 %v974_v8, %v5927_v60  ;;  %v6220_v29 = vadd.f32 %v976_v12, %v5939_v14  ;;  %v8313_v38 = vld [vmem:[#allocation274_spill] sm:$0xff]  ;;  %v3779_v22 = vld [vmem:[%s7684_s0 + $0x110] sm:$0xff] }
 0x368   :  { %v1235_v16 = vmul.f32 %v8307_v34, %v8312_v20  ;;  %2625 = vperm.xlu1 %3725, %v8313_v38   ;;  %2685 = vperm.xlu0 %3726, %v3779_v22   ;;  %v6227_v59 = vadd.f32 %v975_v54, %v5930_v57  ;;  %v8314_v47 = vld [vmem:[#allocation148_spill] sm:$0xff]  ;;  %v8315_v8 = vld [vmem:[#allocation149_spill] sm:$0xff]  ;;  %v8316_v17 = vld [vmem:[#allocation150_spill] sm:$0xff]  ;;  %v6239_v39 = vadd.f32 %v977_v44, %v5942_v49 }
 0x369   :  { %v1233_v60 = vmul.f32 %v8307_v34, %v8314_v47  ;;  %v1237_v31 = vmul.f32 %v8307_v34, %v8315_v8  ;;  %v1234_v14 = vmul.f32 %v8307_v34, %v8316_v17  ;;  %v6236_v12 = vadd.f32 %v1232_v23, %v5945_v62  ;;  %v8317_v63 = vld [vmem:[#allocation151_spill] sm:$0xff]  ;;  %v8318_v57 = vld [vmem:[#allocation152_spill] sm:$0xff]  ;;  %v6245_v20 = vpop.permute.xlu1 %2285  ;;  %v6247_v38 = vpop.permute.xlu0 %2337  ;;  %v8321_v47 = vld [vmem:[#allocation153_spill] sm:$0xff] }
 0x36a   :  { %v1239_v3 = vmul.f32 %v8307_v34, %v8317_v63  ;;  %v1236_v54 = vmul.f32 %v8307_v34, %v8318_v57  ;;  %8319 = vst [vmem:[#allocation70_spill] sm:$0xff] %v6245_v20  ;;  %8320 = vst [vmem:[#allocation71_spill] sm:$0xff] %v6247_v38  ;;  %v6250_v22 = vadd.f32 %v1235_v16, %v5961_v27  ;;  %v8322_v23 = vld [vmem:[#allocation154_spill] sm:$0xff]  ;;  %v8323_v44 = vld [vmem:[#allocation155_spill] sm:$0xff] }
 0x36b   :  { %v1241_v62 = vmul.f32 %v8307_v34, %v8321_v47  ;;  %v1238_v49 = vmul.f32 %v8307_v34, %v8322_v23  ;;  %v1243_v8 = vmul.f32 %v8307_v34, %v8323_v44  ;;  %v8324_v17 = vld [vmem:[#allocation156_spill] sm:$0xff]  ;;  %v8325_v57 = vld [vmem:[#allocation157_spill] sm:$0xff]  ;;  %v8326_v20 = vld [vmem:[#allocation158_spill] sm:$0xff]  ;;  %v6269_v47 = vadd.f32 %v1233_v60, %v5950_v52 }
 0x36c   :  { %v1240_v63 = vmul.f32 %v8307_v34, %v8324_v17  ;;  %v1245_v4 = vmul.f32 %v8307_v34, %v8325_v57  ;;  %v1242_v38 = vmul.f32 %v8307_v34, %v8326_v20  ;;  %v8327_v27 = vld [vmem:[#allocation277_spill] sm:$0xff]  ;;  %v3780_v16 = vld [vmem:[%s7684_s0 + $0x120] sm:$0xff]  ;;  %v6272_v23 = vadd.f32 %v1237_v31, %v5975_v2  ;;  %v8328_v17 = vld [vmem:[#allocation159_spill] sm:$0xff] }
 0x36d   :  { %2633 = vperm.xlu1 %3725, %v8327_v27   ;;  %2693 = vperm.xlu0 %3726, %v3780_v16   ;;  %v6275_v44 = vadd.f32 %v1234_v14, %v5953_v36  ;;  %v1247_v57 = vmul.f32 %v8307_v34, %v8328_v17  ;;  %v6280_v20 = vadd.f32 %v1239_v3, %v6001_v13  ;;  %v8329_v19 = vld [vmem:[#allocation160_spill] sm:$0xff]  ;;  %v8330_v52 = vld [vmem:[#allocation161_spill] sm:$0xff]  ;;  %v6289_v2 = vpop.permute.xlu1 %2293  ;;  %v6291_v31 = vpop.permute.xlu0 %2345 }
 0x36e   :  { %v6283_v27 = vadd.f32 %v1236_v54, %v5956_v10  ;;  %v1244_v16 = vmul.f32 %v8307_v34, %v8329_v19  ;;  %v1249_v60 = vmul.f32 %v8307_v34, %v8330_v52  ;;  %8331 = vst [vmem:[#allocation72_spill] sm:$0xff] %v6289_v2  ;;  %8332 = vst [vmem:[#allocation73_spill] sm:$0xff] %v6291_v31  ;;  %v8333_v10 = vld [vmem:[#allocation162_spill] sm:$0xff]  ;;  %v8350_v2 = vld [vmem:[#allocation175_spill] sm:$0xff] }
 0x36f   :  { %v6294_v36 = vadd.f32 %v1241_v62, %v6007_v32  ;;  %v6297_v14 = vadd.f32 %v1238_v49, %v5972_v25  ;;  %v6300_v13 = vadd.f32 %v1243_v8, %v6015_v11  ;;  %v1246_v3 = vmul.f32 %v8307_v34, %v8333_v10  ;;  %v8334_v32 = vld [vmem:[#allocation280_spill] sm:$0xff]  ;;  %v8335_v62 = vld [vmem:[#allocation163_spill] sm:$0xff] }
 0x370   :  { %v6305_v19 = vadd.f32 %v1240_v63, %v5984_v21  ;;  %v6308_v54 = vadd.f32 %v1245_v4, %v6029_v33  ;;  %v6311_v17 = vadd.f32 %v1242_v38, %v6004_v48  ;;  %v3781_v25 = vld [vmem:[%s7684_s0 + $0x130] sm:$0xff]  ;;  %v6318_v11 = vadd.f32 %v1247_v57, %v6037_v43  ;;  %v8337_v4 = vld [vmem:[#allocation165_spill] sm:$0xff]  ;;  %v8338_v63 = vld [vmem:[#allocation166_spill] sm:$0xff] }
 0x371   :  { %2641 = vperm.xlu1 %3725, %v8334_v32   ;;  %2701 = vperm.xlu0 %3726, %v3781_v25   ;;  %v1251_v21 = vmul.f32 %v8307_v34, %v8335_v62  ;;  %v8336_v49 = vld [vmem:[#allocation164_spill] sm:$0xff]  ;;  %v1253_v48 = vmul.f32 %v8307_v34, %v8337_v4  ;;  %v6327_v38 = vadd.f32 %v1244_v16, %v6012_v26  ;;  %v8339_v43 = vld [vmem:[#allocation167_spill] sm:$0xff]  ;;  %v6336_v10 = vpop.permute.xlu1 %2301  ;;  %v6338_v32 = vpop.permute.xlu0 %2353  ;;  %v8343_v16 = vld [vmem:[#allocation169_spill] sm:$0xff] }
 0x372   :  { %v1248_v33 = vmul.f32 %v8307_v34, %v8336_v49  ;;  %v6330_v8 = vadd.f32 %v1249_v60, %v6043_v41  ;;  %v1250_v52 = vmul.f32 %v8307_v34, %v8338_v63  ;;  %v1255_v57 = vmul.f32 %v8307_v34, %v8339_v43  ;;  %8340 = vst [vmem:[#allocation74_spill] sm:$0xff] %v6336_v10  ;;  %v8342_v62 = vld [vmem:[#allocation168_spill] sm:$0xff]  ;;  %v8344_v60 = vld [vmem:[#allocation170_spill] sm:$0xff]  ;;  %v8345_v4 = vld [vmem:[#allocation171_spill] sm:$0xff] }
 0x373   :  { %8341 = vst [vmem:[#allocation75_spill] sm:$0xff] %v6338_v32  ;;  %v6341_v25 = vadd.f32 %v1246_v3, %v6026_v35  ;;  %v1252_v26 = vmul.f32 %v8307_v34, %v8342_v62  ;;  %v1257_v41 = vmul.f32 %v8307_v34, %v8343_v16  ;;  %v1254_v49 = vmul.f32 %v8307_v34, %v8344_v60  ;;  %v8346_v43 = vld [vmem:[#allocation172_spill] sm:$0xff]  ;;  %v8347_v10 = vld [vmem:[#allocation173_spill] sm:$0xff]  ;;  %v3782_v35 = vld [vmem:[%s7684_s0 + $0xc8] sm:$0xff] }
 0x374   :  { %v1259_v63 = vmul.f32 %v8307_v34, %v8345_v4  ;;  %v1256_v31 = vmul.f32 %v8307_v34, %v8346_v43  ;;  %v1261_v32 = vmul.f32 %v8307_v34, %v8347_v10  ;;  %v3783_v3 = vld [vmem:[%s7684_s0 + $0x140] sm:$0xff]  ;;  %v6362_v62 = vadd.f32 %v1251_v21, %v6057_v56  ;;  %v8351_v56 = vld [vmem:[#allocation176_spill] sm:$0xff] }
 0x375   :  { %2649 = vperm.xlu1 %3725, %v3782_v35   ;;  %2709 = vperm.xlu0 %3726, %v3783_v3   ;;  %v6365_v16 = vadd.f32 %v1248_v33, %v6032_v51  ;;  %v6368_v60 = vadd.f32 %v1253_v48, %v6071_v9  ;;  %v8348_v10 = vld [vmem:[#allocation174_spill] sm:$0xff]  ;;  %v6373_v43 = vadd.f32 %v1250_v52, %v6040_v61  ;;  %v6382_v51 = vpop.permute.xlu1 %2309  ;;  %v6384_v33 = vpop.permute.xlu0 %2361 }
 0x376   :  { %v1258_v4 = vmul.f32 %v8307_v34, %v8348_v10  ;;  %v6376_v35 = vadd.f32 %v1255_v57, %v6091_v55  ;;  %v1263_v3 = vmul.f32 %v8307_v34, %v8350_v2  ;;  %v1260_v21 = vmul.f32 %v8307_v34, %v8351_v56  ;;  %8352 = vst [vmem:[#allocation77_spill] sm:$0xff] %v6382_v51  ;;  %v8355_v55 = vld [vmem:[#allocation177_spill] sm:$0xff]  ;;  %v8363_v56 = vld [vmem:[#allocation55_spill] sm:$0xff] }
 0x377   :  { %8353 = vst [vmem:[#allocation78_spill] sm:$0xff] %v6384_v33  ;;  %v6387_v9 = vadd.f32 %v1252_v26, %v6048_v58  ;;  %v6390_v48 = vadd.f32 %v1257_v41, %v6098_v53  ;;  %v6393_v61 = vadd.f32 %v1254_v49, %v6060_v40  ;;  %v1265_v52 = vmul.f32 %v8307_v34, %v8355_v55  ;;  %v3784_v53 = vld [vmem:[%s7684_s0 + $0xd8] sm:$0xff]  ;;  %v3785_v40 = vld [vmem:[%s7684_s0 + $0x150] sm:$0xff] }
 0x378   :  { %8349 = vst [vmem:[#allocation76_spill] sm:$0xff] %v6376_v35  ;;  %v6398_v2 = vadd.f32 %v1259_v63, %v6112_v30  ;;  %v6401_v57 = vadd.f32 %v1256_v31, %v6088_v0  ;;  %v6404_v10 = vadd.f32 %v1261_v32, %v6118_v46  ;;  %v1838_v58 = vsub.s32 5, %v5375_v18  ;;  %v8358_v0 = vld [vmem:[#allocation178_spill] sm:$0xff]  ;;  %v8359_v46 = vld [vmem:[#allocation179_spill] sm:$0xff]  ;;  %v8360_v26 = vld [vmem:[#allocation180_spill] sm:$0xff] }
 0x379   :  { %8354 = vst [vmem:[#allocation79_spill] sm:$0xff] %v6390_v48  ;;  %2657 = vperm.xlu1 %3725, %v3784_v53   ;;  %2717 = vperm.xlu0 %3726, %v3785_v40   ;;  %v6414_v30 = vadd.f32 %v1258_v4, %v6094_v50  ;;  %v1262_v31 = vmul.f32 %v8307_v34, %v8358_v0  ;;  %v8361_v49 = vld [vmem:[#allocation60_spill] sm:$0xff]  ;;  %v8364_v53 = vld [vmem:[#allocation181_spill] sm:$0xff]  ;;  %v8365_v50 = vld [vmem:[#allocation182_spill] sm:$0xff]  ;;  %v6432_v33 = vpop.permute.xlu1 %2317  ;;  %v6434_v0 = vpop.permute.xlu0 %2369 }
 0x37a   :  { %8356 = vst [vmem:[#allocation80_spill] sm:$0xff] %v6398_v2  ;;  %8357 = vst [vmem:[#allocation81_spill] sm:$0xff] %v6404_v10  ;;  %v1267_v32 = vmul.f32 %v8307_v34, %v8359_v46  ;;  %v1264_v41 = vmul.f32 %v8307_v34, %v8360_v26  ;;  %v6423_v63 = vadd.f32 %v1263_v3, %v8361_v49  ;;  %v8368_v46 = vld [vmem:[#allocation63_spill] sm:$0xff]  ;;  %v8371_v49 = vld [vmem:[#allocation184_spill] sm:$0xff] }
 0x37b   :  { %v6426_v55 = vadd.f32 %v1260_v21, %v8363_v56  ;;  %v1269_v40 = vmul.f32 %v8307_v34, %v8364_v53  ;;  %v1266_v4 = vmul.f32 %v8307_v34, %v8365_v50  ;;  %8366 = vst [vmem:[#allocation83_spill] sm:$0xff] %v6432_v33  ;;  %8367 = vst [vmem:[#allocation84_spill] sm:$0xff] %v6434_v0  ;;  %v8370_v26 = vld [vmem:[#allocation183_spill] sm:$0xff]  ;;  %v8372_v56 = vld [vmem:[#allocation185_spill] sm:$0xff] }
 0x37c   :  { %8362 = vst [vmem:[#allocation82_spill] sm:$0xff] %v6423_v63  ;;  %v6437_v51 = vadd.f32 %v1265_v52, %v8368_v46  ;;  %v1271_v3 = vmul.f32 %v8307_v34, %v8370_v26  ;;  %v1268_v21 = vmul.f32 %v8307_v34, %v8371_v49  ;;  %v1273_v63 = vmul.f32 %v8307_v34, %v8372_v56  ;;  %v8373_v53 = vld [vmem:[#allocation186_spill] sm:$0xff]  ;;  %v8374_v50 = vld [vmem:[#allocation187_spill] sm:$0xff]  ;;  %v8382_v35 = vld [vmem:[#allocation189_spill] sm:$0xff] }
 0x37d   :  { %v1270_v10 = vmul.f32 %v8307_v34, %v8373_v53  ;;  %v1275_v33 = vmul.f32 %v8307_v34, %v8374_v50  ;;  %v8375_v2 = vld [vmem:[#allocation343_spill] sm:$0xff]  ;;  %v3787_v46 = vld [vmem:[%s7684_s0 + $0x160] sm:$0xff] }
 0x37e   :  { %8369 = vst [vmem:[#allocation85_spill] sm:$0xff] %v6437_v51  ;;  %v6450_v0 = vrot.slane %v8375_v2, %v1838_v58  ;;  %v3786_v52 = vld [vmem:[%s7684_s0 + $0xe8] sm:$0xff]  ;;  %2725 = vperm.xlu0 %3726, %v3787_v46   ;;  %v8377_v26 = vld [vmem:[#allocation58_spill] sm:$0xff]  ;;  %v8380_v2 = vld [vmem:[#allocation188_spill] sm:$0xff]  ;;  %v1277_v46 = vmul.f32 %v8307_v34, %v8382_v35 }
 0x37f   :  { %2665 = vperm.xlu1 %3725, %v3786_v52   ;;  %v6459_v49 = vadd.f32 %v1262_v31, %v8377_v26  ;;  %v8378_v56 = vld [vmem:[#allocation67_spill] sm:$0xff]  ;;  %v1272_v58 = vmul.f32 %v8307_v34, %v8380_v2  ;;  %v8381_v52 = vld [vmem:[#allocation61_spill] sm:$0xff]  ;;  %v8383_v31 = vld [vmem:[#allocation190_spill] sm:$0xff]  ;;  %v6495_v35 = vadd.f32 %v1270_v10, %v6178_v24 }
 0x380   :  { %8376 = vst [vmem:[#allocation7_spill] sm:$0xff] %v6450_v0  ;;  %v6462_v53 = vadd.f32 %v1267_v32, %v8378_v56  ;;  %v8379_v50 = vld [vmem:[#allocation59_spill] sm:$0xff]  ;;  %v6470_v0 = vadd.f32 %v1269_v40, %v6181_v42  ;;  %v6473_v48 = vadd.f32 %v1266_v4, %v8381_v52  ;;  %v1274_v26 = vmul.f32 %v8307_v34, %v8383_v31  ;;  %v6479_v32 = vpop.permute.xlu1 %2325  ;;  %v6481_v56 = vpop.permute.xlu0 %2377  ;;  %v8388_v31 = vld [vmem:[#allocation192_spill] sm:$0xff]  ;;  %v8389_v24 = vld [vmem:[#allocation193_spill] sm:$0xff] }
 0x381   :  { %v6465_v51 = vadd.f32 %v1264_v41, %v8379_v50  ;;  %8384 = vst [vmem:[#allocation86_spill] sm:$0xff] %v6479_v32  ;;  %8385 = vst [vmem:[#allocation87_spill] sm:$0xff] %v6481_v56  ;;  %v6484_v41 = vadd.f32 %v1271_v3, %v6189_v28  ;;  %v8386_v50 = vld [vmem:[#allocation64_spill] sm:$0xff]  ;;  %v6490_v42 = vadd.f32 %v1273_v63, %v6203_v1  ;;  %v8387_v40 = vld [vmem:[#allocation191_spill] sm:$0xff] }
 0x382   :  { %v6487_v2 = vadd.f32 %v1268_v21, %v8386_v50  ;;  %v1279_v4 = vmul.f32 %v8307_v34, %v8387_v40  ;;  %v6498_v52 = vadd.f32 %v1275_v33, %v6209_v5  ;;  %v1276_v56 = vmul.f32 %v8307_v34, %v8388_v31  ;;  %v3788_v28 = vld [vmem:[%s7684_s0 + $0xf8] sm:$0xff]  ;;  %v3789_v1 = vld [vmem:[%s7684_s0 + $0x170] sm:$0xff]  ;;  %v8390_v33 = vld [vmem:[#allocation194_spill] sm:$0xff] }
 0x383   :  { %2673 = vperm.xlu1 %3725, %v3788_v28   ;;  %2733 = vperm.xlu0 %3726, %v3789_v1   ;;  %v6509_v63 = vadd.f32 %v1272_v58, %v6184_v37  ;;  %v1281_v5 = vmul.f32 %v8307_v34, %v8389_v24  ;;  %v1278_v10 = vmul.f32 %v8307_v34, %v8390_v33  ;;  %v8391_v3 = vld [vmem:[#allocation195_spill] sm:$0xff]  ;;  %v8392_v21 = vld [vmem:[#allocation62_spill] sm:$0xff]  ;;  %v8394_v28 = vld [vmem:[#allocation196_spill] sm:$0xff] }
 0x384   :  { %v1537_v50 = vmul.f32 %v8392_v21, %v8391_v3  ;;  %v6518_v40 = vadd.f32 %v1277_v46, %v6217_v45  ;;  %v6521_v31 = vadd.f32 %v1274_v26, %v6192_v6  ;;  %v1280_v1 = vmul.f32 %v8307_v34, %v8394_v28  ;;  %v8395_v37 = vld [vmem:[#allocation197_spill] sm:$0xff]  ;;  %v6527_v32 = vpop.permute.xlu1 %2333  ;;  %v6529_v24 = vpop.permute.xlu0 %2385  ;;  %v8398_v3 = vld [vmem:[#allocation198_spill] sm:$0xff]  ;;  %v8399_v46 = vld [vmem:[#allocation199_spill] sm:$0xff] }
 0x385   :  { %v1540_v58 = vmul.f32 %v8392_v21, %v8395_v37  ;;  %8396 = vst [vmem:[#allocation8_spill] sm:$0xff] %v6527_v32  ;;  %8397 = vst [vmem:[#allocation88_spill] sm:$0xff] %v6529_v24  ;;  %v6532_v33 = vadd.f32 %v1279_v4, %v6227_v59  ;;  %v1536_v45 = vmul.f32 %v8392_v21, %v8398_v3  ;;  %v8400_v26 = vld [vmem:[#allocation200_spill] sm:$0xff]  ;;  %v8401_v28 = vld [vmem:[#allocation201_spill] sm:$0xff] }
 0x386   :  { %8393 = vst [vmem:[#allocation9_spill] sm:$0xff] %v6518_v40  ;;  %v1542_v6 = vmul.f32 %v8392_v21, %v8399_v46  ;;  %v1538_v40 = vmul.f32 %v8392_v21, %v8400_v26  ;;  %v6541_v34 = vadd.f32 %v1276_v56, %v6206_v7  ;;  %v1544_v37 = vmul.f32 %v8392_v21, %v8401_v28  ;;  %v8402_v32 = vld [vmem:[#allocation202_spill] sm:$0xff]  ;;  %v3790_v59 = vld [vmem:[%s7684_s0 + $0x108] sm:$0xff] }
 0x387   :  { %v1539_v24 = vmul.f32 %v8392_v21, %v8402_v32  ;;  %2681 = vperm.xlu1 %3725, %v3790_v59   ;;  %v3791_v4 = vld [vmem:[%s7684_s0 + $0x180] sm:$0xff]  ;;  %v6554_v3 = vadd.f32 %v1281_v5, %v6239_v39  ;;  %v6557_v7 = vadd.f32 %v1278_v10, %v6214_v15  ;;  %v6560_v56 = vadd.f32 %v1537_v50, %v6269_v47  ;;  %v8403_v32 = vld [vmem:[#allocation203_spill] sm:$0xff]  ;;  %v8404_v59 = vld [vmem:[#allocation204_spill] sm:$0xff] }
 0x388   :  { %2741 = vperm.xlu0 %3726, %v3791_v4   ;;  %v1546_v46 = vmul.f32 %v8392_v21, %v8403_v32  ;;  %v6565_v26 = vadd.f32 %v1280_v1, %v6220_v29  ;;  %v6568_v28 = vadd.f32 %v1540_v58, %v6283_v27  ;;  %v1541_v4 = vmul.f32 %v8392_v21, %v8404_v59  ;;  %v8405_v39 = vld [vmem:[#allocation205_spill] sm:$0xff]  ;;  %v6574_v15 = vpop.permute.xlu1 %2341  ;;  %v6576_v10 = vpop.permute.xlu0 %2393  ;;  %v8408_v27 = vld [vmem:[#allocation206_spill] sm:$0xff]  ;;  %v8409_v59 = vld [vmem:[#allocation207_spill] sm:$0xff] }
 0x389   :  { %v1548_v5 = vmul.f32 %v8392_v21, %v8405_v39  ;;  %8406 = vst [vmem:[#allocation11_spill] sm:$0xff] %v6574_v15  ;;  %8407 = vst [vmem:[#allocation10_spill] sm:$0xff] %v6576_v10  ;;  %v6579_v47 = vadd.f32 %v1536_v45, %v6236_v12  ;;  %v6582_v50 = vadd.f32 %v1542_v6, %v6297_v14  ;;  %v8410_v12 = vld [vmem:[#allocation209_spill] sm:$0xff]  ;;  %v8412_v6 = vld [vmem:[#allocation212_spill] sm:$0xff] }
 0x38a   :  { %v6585_v29 = vadd.f32 %v1538_v40, %v6275_v44  ;;  %v1543_v1 = vmul.f32 %v8392_v21, %v8408_v27  ;;  %v6590_v58 = vadd.f32 %v1544_v37, %v6305_v19  ;;  %v6593_v32 = vadd.f32 %v1539_v24, %v6250_v22  ;;  %v3792_v44 = vld [vmem:[%s7684_s0 + $0x118] sm:$0xff]  ;;  %v8411_v40 = vld [vmem:[#allocation210_spill] sm:$0xff] }
 0x38b   :  { %v1550_v39 = vmul.f32 %v8392_v21, %v8409_v59  ;;  %v1545_v45 = vmul.f32 %v8392_v21, %v8410_v12  ;;  %2689 = vperm.xlu1 %3725, %v3792_v44   ;;  %v6603_v14 = vadd.f32 %v1546_v46, %v6311_v17  ;;  %v1552_v19 = vmul.f32 %v8392_v21, %v8411_v40  ;;  %v8413_v24 = vld [vmem:[#allocation213_spill] sm:$0xff]  ;;  %v8414_v12 = vld [vmem:[#allocation215_spill] sm:$0xff]  ;;  %v8415_v17 = vld [vmem:[#allocation216_spill] sm:$0xff] }
 0x38c   :  { %v1547_v22 = vmul.f32 %v8392_v21, %v8412_v6  ;;  %v1554_v37 = vmul.f32 %v8392_v21, %v8413_v24  ;;  %v6612_v27 = vadd.f32 %v1541_v4, %v6272_v23  ;;  %v6615_v59 = vadd.f32 %v1548_v5, %v6327_v38  ;;  %v6621_v10 = vpop.permute.xlu1 %2349  ;;  %v6623_v40 = vpop.permute.xlu0 %2401  ;;  %v8418_v24 = vld [vmem:[#allocation218_spill] sm:$0xff]  ;;  %v8419_v4 = vld [vmem:[#allocation219_spill] sm:$0xff]  ;;  %v8420_v5 = vld [vmem:[#allocation221_spill] sm:$0xff] }
 0x38d   :  { %v1549_v44 = vmul.f32 %v8392_v21, %v8414_v12  ;;  %v1556_v46 = vmul.f32 %v8392_v21, %v8415_v17  ;;  %8416 = vst [vmem:[#allocation13_spill] sm:$0xff] %v6621_v10  ;;  %8417 = vst [vmem:[#allocation250_spill] sm:$0xff] %v6623_v40  ;;  %v6626_v6 = vadd.f32 %v1543_v1, %v6280_v20  ;;  %v8421_v10 = vld [vmem:[#allocation222_spill] sm:$0xff]  ;;  %v8422_v20 = vld [vmem:[#allocation224_spill] sm:$0xff] }
 0x38e   :  { %v1551_v23 = vmul.f32 %v8392_v21, %v8418_v24  ;;  %v1558_v38 = vmul.f32 %v8392_v21, %v8419_v4  ;;  %v1553_v15 = vmul.f32 %v8392_v21, %v8420_v5  ;;  %v6635_v12 = vadd.f32 %v1550_v39, %v6341_v25  ;;  %v3793_v24 = vld [vmem:[%s7684_s0 + $0x128] sm:$0xff]  ;;  %v8423_v39 = vld [vmem:[#allocation225_spill] sm:$0xff] }
 0x38f   :  { %v6638_v17 = vadd.f32 %v1545_v45, %v6294_v36  ;;  %v1560_v40 = vmul.f32 %v8392_v21, %v8421_v10  ;;  %v1555_v1 = vmul.f32 %v8392_v21, %v8422_v20  ;;  %2697 = vperm.xlu1 %3725, %v3793_v24   ;;  %v6648_v4 = vadd.f32 %v1552_v19, %v6365_v16  ;;  %v8424_v20 = vld [vmem:[#allocation226_spill] sm:$0xff]  ;;  %v8425_v16 = vld [vmem:[#allocation227_spill] sm:$0xff] }
 0x390   :  { %v6651_v25 = vadd.f32 %v1547_v22, %v6300_v13  ;;  %v6654_v36 = vadd.f32 %v1554_v37, %v6373_v43  ;;  %v1562_v10 = vmul.f32 %v8392_v21, %v8423_v39  ;;  %v6659_v45 = vadd.f32 %v1549_v44, %v6308_v54  ;;  %v6668_v13 = vpop.permute.xlu1 %2357  ;;  %v6670_v22 = vpop.permute.xlu0 %2409 }
 0x391   :  { %v6662_v5 = vadd.f32 %v1556_v46, %v6387_v9  ;;  %v1557_v24 = vmul.f32 %v8392_v21, %v8424_v20  ;;  %v1564_v19 = vmul.f32 %v8392_v21, %v8425_v16  ;;  %8426 = vst [vmem:[#allocation208_spill] sm:$0xff] %v6668_v13  ;;  %8427 = vst [vmem:[#allocation12_spill] sm:$0xff] %v6670_v22  ;;  %v8429_v9 = vld [vmem:[#allocation228_spill] sm:$0xff]  ;;  %v8431_v20 = vld [vmem:[#allocation229_spill] sm:$0xff] }
 0x392   :  { %v6673_v43 = vadd.f32 %v1551_v23, %v6318_v11  ;;  %v6676_v37 = vadd.f32 %v1558_v38, %v6393_v61  ;;  %v6679_v54 = vadd.f32 %v1553_v15, %v6330_v8  ;;  %v1559_v44 = vmul.f32 %v8392_v21, %v8429_v9  ;;  %v8432_v11 = vld [vmem:[#allocation230_spill] sm:$0xff]  ;;  %v3794_v8 = vld [vmem:[%s7684_s0 + $0x138] sm:$0xff]  ;;  %v8434_v15 = vld [vmem:[#allocation231_spill] sm:$0xff] }
 0x393   :  { %v6684_v46 = vadd.f32 %v1560_v40, %v6401_v57  ;;  %v6687_v39 = vadd.f32 %v1555_v1, %v6362_v62  ;;  %v1566_v16 = vmul.f32 %v8392_v21, %v8431_v20  ;;  %v1561_v23 = vmul.f32 %v8392_v21, %v8432_v11  ;;  %2705 = vperm.xlu1 %3725, %v3794_v8   ;;  %v8435_v40 = vld [vmem:[#allocation232_spill] sm:$0xff]  ;;  %v8436_v38 = vld [vmem:[#allocation233_spill] sm:$0xff]  ;;  %v8438_v11 = vld [vmem:[#allocation234_spill] sm:$0xff] }
 0x394   :  { %8428 = vst [vmem:[#allocation89_spill] sm:$0xff] %v6676_v37  ;;  %v6697_v61 = vadd.f32 %v1562_v10, %v6414_v30  ;;  %v1568_v57 = vmul.f32 %v8392_v21, %v8434_v15  ;;  %v1563_v62 = vmul.f32 %v8392_v21, %v8435_v40  ;;  %v1570_v1 = vmul.f32 %v8392_v21, %v8436_v38  ;;  %v6714_v10 = vpop.permute.xlu1 %2365  ;;  %v6716_v15 = vpop.permute.xlu0 %2417  ;;  %v8441_v22 = vld [vmem:[#allocation76_spill] sm:$0xff]  ;;  %v8442_v13 = vld [vmem:[#allocation235_spill] sm:$0xff]  ;;  %v8454_v37 = vld [vmem:[#allocation242_spill] sm:$0xff] }
 0x395   :  { %8430 = vst [vmem:[#allocation90_spill] sm:$0xff] %v6684_v46  ;;  %v6706_v9 = vadd.f32 %v1557_v24, %v6368_v60  ;;  %v6709_v20 = vadd.f32 %v1564_v19, %v6426_v55  ;;  %v1565_v8 = vmul.f32 %v8392_v21, %v8438_v11  ;;  %v2142_v30 = vsub.s32 6, %v5375_v18  ;;  %8439 = vst [vmem:[#allocation14_spill] sm:$0xff] %v6714_v10  ;;  %v8443_v60 = vld [vmem:[#allocation236_spill] sm:$0xff]  ;;  %v8444_v55 = vld [vmem:[#allocation237_spill] sm:$0xff] }
 0x396   :  { %8433 = vst [vmem:[#allocation91_spill] sm:$0xff] %v6697_v61  ;;  %8440 = vst [vmem:[#allocation92_spill] sm:$0xff] %v6716_v15  ;;  %v6719_v40 = vadd.f32 %v1559_v44, %v8441_v22  ;;  %v1572_v38 = vmul.f32 %v8392_v21, %v8442_v13  ;;  %v1567_v24 = vmul.f32 %v8392_v21, %v8443_v60  ;;  %v8447_v10 = vld [vmem:[#allocation238_spill] sm:$0xff]  ;;  %v8448_v22 = vld [vmem:[#allocation239_spill] sm:$0xff] }
 0x397   :  { %8437 = vst [vmem:[#allocation16_spill] sm:$0xff] %v6709_v20  ;;  %v1574_v19 = vmul.f32 %v8392_v21, %v8444_v55  ;;  %v6728_v11 = vadd.f32 %v1566_v16, %v6459_v49  ;;  %v8446_v20 = vld [vmem:[#allocation79_spill] sm:$0xff]  ;;  %v1569_v15 = vmul.f32 %v8392_v21, %v8447_v10  ;;  %v1576_v44 = vmul.f32 %v8392_v21, %v8448_v22  ;;  %v8449_v55 = vld [vmem:[#allocation80_spill] sm:$0xff]  ;;  %v8452_v10 = vld [vmem:[#allocation81_spill] sm:$0xff] }
 0x398   :  { %v6731_v61 = vadd.f32 %v1561_v23, %v8446_v20  ;;  %v3795_v13 = vld [vmem:[%s7684_s0 + $0x148] sm:$0xff]  ;;  %v6741_v60 = vadd.f32 %v1568_v57, %v6465_v51  ;;  %v6744_v49 = vadd.f32 %v1563_v62, %v8449_v55  ;;  %v6747_v16 = vadd.f32 %v1570_v1, %v6473_v48  ;;  %v8451_v23 = vld [vmem:[#allocation240_spill] sm:$0xff]  ;;  %v8453_v22 = vld [vmem:[#allocation241_spill] sm:$0xff]  ;;  %v6766_v57 = vpop.permute.xlu1 %2373  ;;  %v6768_v62 = vpop.permute.xlu0 %2425 }
 0x399   :  { %8445 = vst [vmem:[#allocation93_spill] sm:$0xff] %v6728_v11  ;;  %2713 = vperm.xlu1 %3725, %v3795_v13   ;;  %v1571_v20 = vmul.f32 %v8392_v21, %v8451_v23  ;;  %v6752_v11 = vadd.f32 %v1565_v8, %v8452_v10  ;;  %v1578_v46 = vmul.f32 %v8392_v21, %v8453_v22  ;;  %v6761_v51 = vld [vmem:[%s7685_s1] sm:$0xff]  ;;  %8455 = vst [vmem:[#allocation94_spill] sm:$0xff] %v6766_v57  ;;  %v8459_v23 = vld [vmem:[#allocation243_spill] sm:$0xff] }
 0x39a   :  { %8450 = vst [vmem:[#allocation18_spill] sm:$0xff] %v6747_v16  ;;  %v1573_v13 = vmul.f32 %v8392_v21, %v8454_v37  ;;  %v6764_v48 = vrot.slane %v6761_v51, %v2142_v30  ;;  %8456 = vst [vmem:[#allocation95_spill] sm:$0xff] %v6768_v62  ;;  %v6771_v1 = vadd.f32 %v1572_v38, %v6487_v2  ;;  %v8457_v8 = vld [vmem:[#allocation82_spill] sm:$0xff]  ;;  %v8460_v22 = vld [vmem:[#allocation85_spill] sm:$0xff] }
 0x39b   :  { %v6774_v55 = vadd.f32 %v1567_v24, %v8457_v8  ;;  %v6777_v37 = vadd.f32 %v1574_v19, %v6495_v35  ;;  %v1580_v10 = vmul.f32 %v8392_v21, %v8459_v23  ;;  %v6782_v16 = vadd.f32 %v1569_v15, %v8460_v22  ;;  %v8462_v57 = vld [vmem:[#allocation244_spill] sm:$0xff]  ;;  %v8463_v2 = vld [vmem:[#allocation245_spill] sm:$0xff]  ;;  %v8464_v19 = vld [vmem:[#allocation246_spill] sm:$0xff] }
 0x39c   :  { %v6785_v30 = vadd.f32 %v1576_v44, %v6509_v63  ;;  %v1575_v62 = vmul.f32 %v8392_v21, %v8462_v57  ;;  %v1582_v38 = vmul.f32 %v8392_v21, %v8463_v2  ;;  %v3797_v35 = vld [vmem:[%s7684_s0 + $0x158] sm:$0xff]  ;;  %v6795_v24 = vadd.f32 %v1571_v20, %v6462_v53  ;;  %v8465_v8 = vld [vmem:[#allocation247_spill] sm:$0xff]  ;;  %v8466_v44 = vld [vmem:[#allocation248_spill] sm:$0xff] }
 0x39d   :  { %8458 = vst [vmem:[#allocation96_spill] sm:$0xff] %v6777_v37  ;;  %2721 = vperm.xlu1 %3725, %v3797_v35   ;;  %v1577_v15 = vmul.f32 %v8392_v21, %v8464_v19  ;;  %v1584_v63 = vmul.f32 %v8392_v21, %v8465_v8  ;;  %v1579_v57 = vmul.f32 %v8392_v21, %v8466_v44  ;;  %v8468_v2 = vld [vmem:[#allocation249_spill] sm:$0xff]  ;;  %v8469_v35 = vld [vmem:[#allocation7_spill] sm:$0xff]  ;;  %v6813_v37 = vpop.permute.xlu1 %2381  ;;  %v6815_v19 = vpop.permute.xlu0 %2433  ;;  %v8473_v44 = vld [vmem:[#allocation252_spill] sm:$0xff] }
 0x39e   :  { %8461 = vst [vmem:[#allocation15_spill] sm:$0xff] %v6785_v30  ;;  %v6804_v23 = vadd.f32 %v1578_v46, %v6521_v31  ;;  %v6807_v22 = vadd.f32 %v1573_v13, %v6470_v0  ;;  %v1840_v30 = vmul.f32 %v8469_v35, %v8468_v2  ;;  %v8470_v53 = vld [vmem:[#allocation251_spill] sm:$0xff]  ;;  %8471 = vst [vmem:[#allocation98_spill] sm:$0xff] %v6813_v37  ;;  %v8474_v46 = vld [vmem:[#allocation254_spill] sm:$0xff] }
 0x39f   :  { %v1581_v20 = vmul.f32 %v8392_v21, %v8470_v53  ;;  %8472 = vst [vmem:[#allocation99_spill] sm:$0xff] %v6815_v19  ;;  %v6818_v8 = vadd.f32 %v1580_v10, %v6541_v34  ;;  %v1843_v31 = vmul.f32 %v8469_v35, %v8473_v44  ;;  %v1583_v0 = vmul.f32 %v8392_v21, %v8474_v46  ;;  %v8475_v13 = vld [vmem:[#allocation255_spill] sm:$0xff]  ;;  %v8476_v37 = vld [vmem:[#allocation257_spill] sm:$0xff]  ;;  %v8477_v34 = vld [vmem:[#allocation258_spill] sm:$0xff] }
 0x3a0   :  { %8467 = vst [vmem:[#allocation97_spill] sm:$0xff] %v6804_v23  ;;  %v1845_v23 = vmul.f32 %v8469_v35, %v8475_v13  ;;  %v6827_v2 = vadd.f32 %v1575_v62, %v6484_v41  ;;  %v6830_v53 = vadd.f32 %v1582_v38, %v6557_v7  ;;  %v1585_v19 = vmul.f32 %v8392_v21, %v8476_v37  ;;  %v3798_v44 = vld [vmem:[%s7684_s0 + $0x168] sm:$0xff]  ;;  %v8478_v62 = vld [vmem:[#allocation260_spill] sm:$0xff]  ;;  %v8479_v38 = vld [vmem:[#allocation9_spill] sm:$0xff] }
 0x3a1   :  { %v1847_v10 = vmul.f32 %v8469_v35, %v8477_v34  ;;  %2729 = vperm.xlu1 %3725, %v3798_v44   ;;  %v6840_v46 = vadd.f32 %v1577_v15, %v6490_v42  ;;  %v6843_v41 = vadd.f32 %v1584_v63, %v6565_v26  ;;  %v6846_v7 = vadd.f32 %v1579_v57, %v6498_v52  ;;  %v8480_v34 = vld [vmem:[#allocation261_spill] sm:$0xff]  ;;  %v8481_v42 = vld [vmem:[#allocation263_spill] sm:$0xff]  ;;  %v6860_v26 = vpop.permute.xlu1 %2389  ;;  %v6862_v63 = vpop.permute.xlu0 %2441 }
 0x3a2   :  { %v1841_v21 = vmul.f32 %v8469_v35, %v8478_v62  ;;  %v6851_v37 = vadd.f32 %v1840_v30, %v6579_v47  ;;  %v6854_v13 = vadd.f32 %v1581_v20, %v8479_v38  ;;  %v1849_v44 = vmul.f32 %v8469_v35, %v8480_v34  ;;  %8482 = vst [vmem:[#allocation253_spill] sm:$0xff] %v6860_v26  ;;  %v8484_v30 = vld [vmem:[#allocation264_spill] sm:$0xff]  ;;  %v8486_v34 = vld [vmem:[#allocation266_spill] sm:$0xff] }
 0x3a3   :  { %v1842_v15 = vmul.f32 %v8469_v35, %v8481_v42  ;;  %8483 = vst [vmem:[#allocation211_spill] sm:$0xff] %v6862_v63  ;;  %v6865_v52 = vadd.f32 %v1843_v31, %v6593_v32  ;;  %v6868_v57 = vadd.f32 %v1583_v0, %v6532_v33  ;;  %v6871_v47 = vadd.f32 %v1845_v23, %v6612_v27  ;;  %v8487_v32 = vld [vmem:[#allocation267_spill] sm:$0xff]  ;;  %v3799_v33 = vld [vmem:[%s7684_s0 + $0x178] sm:$0xff]  ;;  %v8490_v0 = vld [vmem:[#allocation272_spill] sm:$0xff] }
 0x3a4   :  { %v1851_v20 = vmul.f32 %v8469_v35, %v8484_v30  ;;  %v6876_v62 = vadd.f32 %v1585_v19, %v6554_v3  ;;  %v6879_v38 = vadd.f32 %v1847_v10, %v6626_v6  ;;  %v1844_v42 = vmul.f32 %v8469_v35, %v8486_v34  ;;  %v8488_v23 = vld [vmem:[#allocation269_spill] sm:$0xff]  ;;  %v8489_v19 = vld [vmem:[#allocation270_spill] sm:$0xff]  ;;  %v8500_v26 = vld [vmem:[#allocation284_spill] sm:$0xff] }
 0x3a5   :  { %v1853_v31 = vmul.f32 %v8469_v35, %v8487_v32  ;;  %2737 = vperm.xlu1 %3725, %v3799_v33   ;;  %v6889_v27 = vadd.f32 %v1841_v21, %v6560_v56  ;;  %v1846_v3 = vmul.f32 %v8469_v35, %v8488_v23  ;;  %v1855_v6 = vmul.f32 %v8469_v35, %v8489_v19  ;;  %v8491_v32 = vld [vmem:[#allocation273_spill] sm:$0xff]  ;;  %v8492_v56 = vld [vmem:[#allocation275_spill] sm:$0xff]  ;;  %v6907_v63 = vpop.permute.xlu1 %2397  ;;  %v8494_v19 = vld [vmem:[#allocation276_spill] sm:$0xff] }
 0x3a6   :  { %8485 = vst [vmem:[#allocation17_spill] sm:$0xff] %v6876_v62  ;;  %v1848_v10 = vmul.f32 %v8469_v35, %v8490_v0  ;;  %v6898_v30 = vadd.f32 %v1849_v44, %v6638_v17  ;;  %v6901_v34 = vadd.f32 %v1842_v15, %v6585_v29  ;;  %v1857_v33 = vmul.f32 %v8469_v35, %v8491_v32  ;;  %v8495_v62 = vld [vmem:[#allocation278_spill] sm:$0xff]  ;;  %v8496_v44 = vld [vmem:[#allocation279_spill] sm:$0xff]  ;;  %v6918_v15 = vpop.permute.xlu0 %2553 }
 0x3a7   :  { %v1850_v21 = vmul.f32 %v8469_v35, %v8492_v56  ;;  %8493 = vst [vmem:[#allocation22_spill] sm:$0xff] %v6907_v63  ;;  %v6910_v23 = vadd.f32 %v1851_v20, %v6651_v25  ;;  %v1859_v0 = vmul.f32 %v8469_v35, %v8494_v19  ;;  %v1852_v17 = vmul.f32 %v8469_v35, %v8495_v62  ;;  %v8497_v63 = vld [vmem:[#allocation281_spill] sm:$0xff]  ;;  %v8498_v20 = vld [vmem:[#allocation282_spill] sm:$0xff]  ;;  %v3800_v62 = vld [vmem:[%s7684_s0 + $0x188] sm:$0xff] }
 0x3a8   :  { %v1861_v29 = vmul.f32 %v8469_v35, %v8496_v44  ;;  %v6921_v32 = vadd.f32 %v1844_v42, %v6568_v28  ;;  %v6924_v56 = vadd.f32 %v1853_v31, %v6659_v45  ;;  %v1854_v25 = vmul.f32 %v8469_v35, %v8497_v63  ;;  %v8499_v42 = vld [vmem:[#allocation283_spill] sm:$0xff] }
 0x3a9   :  { %v1863_v19 = vmul.f32 %v8469_v35, %v8498_v20  ;;  %2745 = vperm.xlu1 %3725, %v3800_v62   ;;  %v6934_v44 = vadd.f32 %v1846_v3, %v6582_v50  ;;  %v6937_v28 = vadd.f32 %v1855_v6, %v6673_v43  ;;  %v6940_v45 = vadd.f32 %v1848_v10, %v6590_v58  ;;  %v8501_v50 = vld [vmem:[#allocation285_spill] sm:$0xff]  ;;  %v6954_v43 = vpop.permute.xlu1 %2405  ;;  %v8504_v10 = vld [vmem:[#allocation286_spill] sm:$0xff] }
 0x3aa   :  { %v1856_v63 = vmul.f32 %v8469_v35, %v8499_v42  ;;  %v6945_v31 = vadd.f32 %v1857_v33, %v6679_v54  ;;  %v6948_v20 = vadd.f32 %v1850_v21, %v6603_v14  ;;  %v1865_v62 = vmul.f32 %v8469_v35, %v8500_v26  ;;  %8502 = vst [vmem:[#allocation21_spill] sm:$0xff] %v6954_v43  ;;  %v6967_v33 = vpop.permute.xlu0 %2565  ;;  %v8506_v42 = vld [vmem:[#allocation287_spill] sm:$0xff] }
 0x3ab   :  { %v1858_v3 = vmul.f32 %v8469_v35, %v8501_v50  ;;  %v6957_v58 = vadd.f32 %v1859_v0, %v6687_v39  ;;  %v6960_v6 = vadd.f32 %v1852_v17, %v6615_v59  ;;  %v6963_v54 = vadd.f32 %v1861_v29, %v6706_v9  ;;  %v8507_v0 = vld [vmem:[#allocation288_spill] sm:$0xff]  ;;  %v8508_v17 = vld [vmem:[#allocation289_spill] sm:$0xff]  ;;  %v8509_v50 = vld [vmem:[#allocation290_spill] sm:$0xff] }
 0x3ac   :  { %v1867_v14 = vmul.f32 %v8469_v35, %v8504_v10  ;;  %v6970_v26 = vadd.f32 %v1854_v25, %v6635_v12  ;;  %v6973_v21 = vadd.f32 %v1863_v19, %v6719_v40  ;;  %v1860_v39 = vmul.f32 %v8469_v35, %v8506_v42  ;;  %v8510_v12 = vld [vmem:[#allocation291_spill] sm:$0xff]  ;;  %v8512_v42 = vld [vmem:[#allocation292_spill] sm:$0xff] }
 0x3ad   :  { %8503 = vst [vmem:[#allocation100_spill] sm:$0xff] %v6963_v54  ;;  %v1869_v59 = vmul.f32 %v8469_v35, %v8507_v0  ;;  %v6980_v9 = vadd.f32 %v1856_v63, %v6648_v4  ;;  %v1862_v29 = vmul.f32 %v8469_v35, %v8508_v17  ;;  %v1871_v10 = vmul.f32 %v8469_v35, %v8509_v50  ;;  %v6997_v63 = vpop.permute.xlu1 %2413  ;;  %v8515_v50 = vld [vmem:[#allocation293_spill] sm:$0xff] }
 0x3ae   :  { %8505 = vst [vmem:[#allocation24_spill] sm:$0xff] %v6973_v21  ;;  %v1864_v25 = vmul.f32 %v8469_v35, %v8510_v12  ;;  %v6989_v40 = vadd.f32 %v1865_v62, %v6731_v61  ;;  %v6992_v19 = vadd.f32 %v1858_v3, %v6654_v36  ;;  %v1873_v0 = vmul.f32 %v8469_v35, %v8512_v42  ;;  %v8516_v12 = vld [vmem:[#allocation294_spill] sm:$0xff]  ;;  %v8517_v62 = vld [vmem:[#allocation295_spill] sm:$0xff]  ;;  %v7008_v3 = vpop.permute.xlu0 %2573 }
 0x3af   :  { %v2446_v4 = vsub.s32 7, %v5375_v18  ;;  %8513 = vst [vmem:[#allocation101_spill] sm:$0xff] %v6997_v63  ;;  %v7000_v17 = vadd.f32 %v1867_v14, %v6744_v49  ;;  %v1866_v43 = vmul.f32 %v8469_v35, %v8515_v50  ;;  %v1875_v61 = vmul.f32 %v8469_v35, %v8516_v12  ;;  %v8519_v63 = vld [vmem:[#allocation296_spill] sm:$0xff]  ;;  %v8520_v14 = vld [vmem:[#allocation297_spill] sm:$0xff] }
 0x3b0   :  { %8511 = vst [vmem:[#allocation23_spill] sm:$0xff] %v6989_v40  ;;  %v1868_v36 = vmul.f32 %v8469_v35, %v8517_v62  ;;  %v7011_v42 = vadd.f32 %v1860_v39, %v6662_v5  ;;  %v7014_v40 = vadd.f32 %v1869_v59, %v6752_v11  ;;  %v1877_v49 = vmul.f32 %v8469_v35, %v8519_v63  ;;  %v8522_v62 = vld [vmem:[#allocation90_spill] sm:$0xff]  ;;  %v8525_v59 = vld [vmem:[#allocation299_spill] sm:$0xff] }
 0x3b1   :  { %8514 = vst [vmem:[#allocation102_spill] sm:$0xff] %v7000_v17  ;;  %v1870_v50 = vmul.f32 %v8469_v35, %v8520_v14  ;;  %v8521_v17 = vld [vmem:[#allocation89_spill] sm:$0xff]  ;;  %v7024_v12 = vadd.f32 %v1871_v10, %v6774_v55  ;;  %v7027_v54 = vadd.f32 %v1864_v25, %v8522_v62  ;;  %v8523_v5 = vld [vmem:[#allocation298_spill] sm:$0xff]  ;;  %v7032_v11 = vadd.f32 %v1873_v0, %v6782_v16  ;;  %v7041_v55 = vpop.permute.xlu1 %2421  ;;  %v8528_v10 = vld [vmem:[#allocation91_spill] sm:$0xff] }
 0x3b2   :  { %8518 = vst [vmem:[#allocation103_spill] sm:$0xff] %v7014_v40  ;;  %v7021_v21 = vadd.f32 %v1862_v29, %v8521_v17  ;;  %v1879_v39 = vmul.f32 %v8469_v35, %v8523_v5  ;;  %v1872_v63 = vmul.f32 %v8469_v35, %v8525_v59  ;;  %v8526_v40 = vld [vmem:[#allocation300_spill] sm:$0xff]  ;;  %v7039_v29 = vrot.slane %v6761_v51, %v2446_v4  ;;  %v8531_v0 = vld [vmem:[#allocation301_spill] sm:$0xff]  ;;  %v7057_v51 = vpop.permute.xlu0 %2581 }
 0x3b3   :  { %8524 = vst [vmem:[#allocation256_spill] sm:$0xff] %v7032_v11  ;;  %v1881_v14 = vmul.f32 %v8469_v35, %v8526_v40  ;;  %8527 = vst [vmem:[#allocation214_spill] sm:$0xff] %v7041_v55  ;;  %v7044_v25 = vadd.f32 %v1866_v43, %v8528_v10  ;;  %v7047_v17 = vadd.f32 %v1875_v61, %v6795_v24  ;;  %v8530_v62 = vld [vmem:[#allocation16_spill] sm:$0xff]  ;;  %v65_v40 = vld [vmem:[%s7685_s1 + $0x8] sm:$0xff] }
 0x3b4   :  { %v7050_v16 = vadd.f32 %v1868_v36, %v8530_v62  ;;  %v1874_v5 = vmul.f32 %v8469_v35, %v8531_v0  ;;  %v7060_v4 = vadd.f32 %v1877_v49, %v6807_v22  ;;  %v8533_v43 = vld [vmem:[#allocation93_spill] sm:$0xff]  ;;  %v8534_v24 = vld [vmem:[#allocation302_spill] sm:$0xff]  ;;  %v8535_v36 = vld [vmem:[#allocation303_spill] sm:$0xff]  ;;  %v7070_v62 = vadd.f32 %v1879_v39, %v6827_v2 }
 0x3b5   :  { %8529 = vst [vmem:[#allocation104_spill] sm:$0xff] %v7047_v17  ;;  %v7063_v59 = vadd.f32 %v1870_v50, %v8533_v43  ;;  %v1883_v61 = vmul.f32 %v8469_v35, %v8534_v24  ;;  %v1876_v10 = vmul.f32 %v8469_v35, %v8535_v36  ;;  %v8537_v0 = vld [vmem:[#allocation304_spill] sm:$0xff]  ;;  %v8538_v17 = vld [vmem:[#allocation305_spill] sm:$0xff]  ;;  %v8539_v22 = vld [vmem:[#allocation306_spill] sm:$0xff]  ;;  %v7079_v50 = vadd.f32 %v1872_v63, %v6741_v60 }
 0x3b6   :  { %8532 = vst [vmem:[#allocation105_spill] sm:$0xff] %v7060_v4  ;;  %8536 = vst [vmem:[#allocation106_spill] sm:$0xff] %v7070_v62  ;;  %v1885_v55 = vmul.f32 %v8469_v35, %v8537_v0  ;;  %v1878_v11 = vmul.f32 %v8469_v35, %v8538_v17  ;;  %v1887_v49 = vmul.f32 %v8469_v35, %v8539_v22  ;;  %v8541_v24 = vld [vmem:[#allocation310_spill] sm:$0xff]  ;;  %v8542_v2 = vsub.s32 0, %v5375_v18  ;;  %v7090_v0 = vpop.permute.xlu1 %2429  ;;  %v8545_v4 = vld [vmem:[#allocation307_spill] sm:$0xff] }
 0x3b7   :  { %v7082_v43 = vadd.f32 %v1881_v14, %v6840_v46  ;;  %v2145_v36 = vmul.f32 %v6764_v48, %v8541_v24  ;;  %8543 = vst [vmem:[#allocation108_spill] sm:$0xff] %v7090_v0  ;;  %v8544_v62 = vld [vmem:[#allocation18_spill] sm:$0xff]  ;;  %v1880_v22 = vmul.f32 %v8469_v35, %v8545_v4  ;;  %v8546_v60 = vld [vmem:[#allocation309_spill] sm:$0xff]  ;;  %v8547_v46 = vld [vmem:[#allocation311_spill] sm:$0xff]  ;;  %v7104_v18 = vadd.f32 %v1883_v61, %v6846_v7 }
 0x3b8   :  { %v7088_v39 = vrot.slane %v65_v40, %v8542_v2  ;;  %v7093_v17 = vadd.f32 %v1874_v5, %v8544_v62  ;;  %v1882_v63 = vmul.f32 %v8469_v35, %v8546_v60  ;;  %v1884_v14 = vmul.f32 %v8469_v35, %v8547_v46  ;;  %v8549_v24 = vld [vmem:[#allocation312_spill] sm:$0xff]  ;;  %v8550_v62 = vld [vmem:[#allocation53_spill] sm:$0xff] }
 0x3b9   :  { %8540 = vst [vmem:[#allocation107_spill] sm:$0xff] %v7082_v43  ;;  %v7101_v43 = vpop.permute.xlu0 %2589  ;;  %8548 = vst [vmem:[#allocation109_spill] sm:$0xff] %v7104_v18  ;;  %v7107_v40 = vadd.f32 %v1876_v10, %v6771_v1  ;;  %v2148_v5 = vmul.f32 %v6764_v48, %v8549_v24  ;;  %v2449_v4 = vmul.f32 %v7039_v29, %v8550_v62  ;;  %v8552_v60 = vld [vmem:[#allocation96_spill] sm:$0xff]  ;;  %v8554_v7 = vld [vmem:[#allocation313_spill] sm:$0xff] }
 0x3ba   :  { %v7114_v2 = vadd.f32 %v1885_v55, %v6854_v13  ;;  %v7117_v0 = vadd.f32 %v1878_v11, %v8552_v60  ;;  %v7120_v46 = vadd.f32 %v1887_v49, %v6868_v57  ;;  %v1886_v61 = vmul.f32 %v8469_v35, %v8554_v7  ;;  %v8555_v1 = vld [vmem:[#allocation308_spill] sm:$0xff]  ;;  %v8557_v18 = vld [vmem:[#allocation317_spill] sm:$0xff]  ;;  %v7133_v11 = vpop.permute.xlu1 %2437  ;;  %v8559_v55 = vld [vmem:[#allocation15_spill] sm:$0xff] }
 0x3bb   :  { %v7126_v10 = vmul.f32 %v8469_v35, %v8555_v1  ;;  %v2195_v24 = vadd.f32 %v2145_v36, %v6889_v27  ;;  %v2144_v62 = vmul.f32 %v6764_v48, %v8557_v18  ;;  %v2753_v13 = vmul.f32 %v7088_v39, %v6918_v15  ;;  %8558 = vst [vmem:[#allocation113_spill] sm:$0xff] %v7133_v11  ;;  %v8560_v49 = vld [vmem:[#allocation97_spill] sm:$0xff]  ;;  %v8563_v1 = vld [vmem:[#allocation314_spill] sm:$0xff]  ;;  %v8569_v11 = vld [vmem:[#allocation319_spill] sm:$0xff] }
 0x3bc   :  { %8551 = vst [vmem:[#allocation110_spill] sm:$0xff] %v7114_v2  ;;  %8553 = vst [vmem:[#allocation111_spill] sm:$0xff] %v7120_v46  ;;  %v7136_v57 = vadd.f32 %v1880_v22, %v8559_v55  ;;  %v7139_v60 = vadd.f32 %v1882_v63, %v8560_v49  ;;  %v7142_v7 = vadd.f32 %v1884_v14, %v6818_v8  ;;  %v8565_v46 = vld [vmem:[#allocation30_spill] sm:$0xff]  ;;  %v8567_v49 = vld [vmem:[#allocation316_spill] sm:$0xff] }
 0x3bd   :  { %8556 = vst [vmem:[#allocation112_spill] sm:$0xff] %v7126_v10  ;;  %v2150_v27 = vmul.f32 %v6764_v48, %v8563_v1  ;;  %v7146_v36 = vpop.permute.xlu0 %2597  ;;  %v2198_v18 = vadd.f32 %v2148_v5, %v6921_v32  ;;  %v8564_v10 = vld [vmem:[#allocation315_spill] sm:$0xff]  ;;  %v2448_v22 = vmul.f32 %v7039_v29, %v8565_v46  ;;  %v2499_v55 = vadd.f32 %v2449_v4, %v2195_v24  ;;  %v8568_v14 = vld [vmem:[#allocation318_spill] sm:$0xff]  ;;  %v8570_v5 = vld [vmem:[#allocation320_spill] sm:$0xff] }
 0x3be   :  { %8561 = vst [vmem:[#allocation114_spill] sm:$0xff] %v7139_v60  ;;  %8562 = vst [vmem:[#allocation259_spill] sm:$0xff] %v7142_v7  ;;  %v1888_v15 = vmul.f32 %v8469_v35, %v8564_v10  ;;  %v7154_v63 = vadd.f32 %v1886_v61, %v6830_v53  ;;  %v2152_v8 = vmul.f32 %v6764_v48, %v8567_v49  ;;  %v8571_v10 = vld [vmem:[#allocation321_spill] sm:$0xff]  ;;  %v8572_v61 = vld [vmem:[#allocation322_spill] sm:$0xff] }
 0x3bf   :  { %v2154_v1 = vmul.f32 %v6764_v48, %v8568_v14  ;;  %v2146_v2 = vmul.f32 %v6764_v48, %v8569_v11  ;;  %v2194_v32 = vadd.f32 %v2144_v62, %v6851_v37  ;;  %v2156_v35 = vmul.f32 %v6764_v48, %v8570_v5  ;;  %v8573_v49 = vld [vmem:[#allocation323_spill] sm:$0xff]  ;;  %v7177_v37 = vld [vmem:[%s7686_s2] ss:$0 sm:$0xff]  ;;  %v2550_v62 = vpop.permute.xlu1 %2549  ;;  %v8577_v7 = vld [vmem:[#allocation325_spill] sm:$0xff] }
 0x3c0   :  { %8566 = vst [vmem:[#allocation217_spill] sm:$0xff] %v7154_v63  ;;  %v2147_v4 = vmul.f32 %v6764_v48, %v8571_v10  ;;  %v2803_v46 = vadd.f32 %v2753_v13, %v2499_v55  ;;  %v2200_v53 = vadd.f32 %v2150_v27, %v6934_v44  ;;  %v2158_v24 = vmul.f32 %v6764_v48, %v8572_v61  ;;  %v8574_v63 = vld [vmem:[#allocation324_spill] sm:$0xff] }
 0x3c1   :  { %v2149_v14 = vmul.f32 %v6764_v48, %v8573_v49  ;;  %v2160_v11 = vmul.f32 %v6764_v48, %v8574_v63  ;;  %v7179_v5 = vpop.permute.xlu0 %2605  ;;  %v7182_v13 = vadd.f32 %v1888_v15, %v6843_v41  ;;  %v2498_v44 = vadd.f32 %v2448_v22, %v2194_v32  ;;  %v8576_v27 = vld [vmem:[#allocation44_spill] sm:$0xff] }
 0x3c2   :  { %v2450_v55 = vmul.f32 %v7039_v29, %v8576_v27  ;;  %v2752_v10 = vmul.f32 %v7088_v39, %v2550_v62  ;;  %v7188_v61 = vadd.f32 %v2152_v8, %v6940_v45  ;;  %v7191_v63 = vadd.f32 %v2154_v1, %v6948_v20 }
 0x3c3   :  { %8575 = vst [vmem:[#allocation115_spill] sm:$0xff] %v7182_v13  ;;  %v2196_v49 = vadd.f32 %v2146_v2, %v6901_v34  ;;  %v2151_v60 = vmul.f32 %v6764_v48, %v8577_v7  ;;  %v7197_v41 = vadd.f32 %v2156_v35, %v6960_v6  ;;  %v2197_v15 = vadd.f32 %v2147_v4, %v6865_v52  ;;  %v8578_v34 = vld [vmem:[#allocation56_spill] sm:$0xff]  ;;  %v2558_v7 = vpop.permute.xlu1 %2557  ;;  %v8586_v13 = vld [vmem:[#allocation35_spill] sm:$0xff] }
 0x3c4   :  { %v2860_v22 = vadd.f32 %v7177_v37, %v2803_v46  ;;  %v2802_v32 = vadd.f32 %v2752_v10, %v2498_v44  ;;  %v7202_v62 = vadd.f32 %v2158_v24, %v6970_v26  ;;  %v2199_v45 = vadd.f32 %v2149_v14, %v6871_v47  ;;  %v8579_v6 = vld [vmem:[#allocation32_spill] sm:$0xff]  ;;  %v8580_v47 = vld [vmem:[#allocation326_spill] sm:$0xff]  ;;  %v8581_v46 = vld [vmem:[#allocation327_spill] sm:$0xff] }
 0x3c5   :  { %v7206_v20 = vadd.f32 %v2160_v11, %v6980_v9  ;;  %v2452_v2 = vmul.f32 %v7039_v29, %v8578_v34  ;;  %v7210_v8 = vpop.permute.xlu0 %2613  ;;  %v2451_v52 = vmul.f32 %v7039_v29, %v8579_v6  ;;  %v2500_v1 = vadd.f32 %v2450_v55, %v2196_v49  ;;  %v8582_v11 = vld [vmem:[#allocation328_spill] sm:$0xff]  ;;  %v8583_v49 = vld [vmem:[#allocation329_spill] sm:$0xff]  ;;  %v8584_v34 = vld [vmem:[#allocation330_spill] sm:$0xff] }
 0x3c6   :  { %v2859_v35 = vadd.f32 %v7177_v37, %v2802_v32  ;;  %v2754_v26 = vmul.f32 %v7088_v39, %v2558_v7  ;;  %v2201_v4 = vadd.f32 %v2151_v60, %v6879_v38  ;;  %v2162_v9 = vmul.f32 %v6764_v48, %v8580_v47  ;;  %v8585_v7 = vld [vmem:[#allocation65_spill] sm:$0xff] }
 0x3c7   :  { %v2153_v24 = vmul.f32 %v6764_v48, %v8581_v46  ;;  %v2756_v14 = vmul.f32 %v7088_v39, %v6967_v33  ;;  %v2164_v44 = vmul.f32 %v6764_v48, %v8582_v11  ;;  %v2910_v27 = vmax.f32 %v2860_v22, 0.0  ;;  %v2562_v47 = vpop.permute.xlu1 %2561 }
 0x3c8   :  { %v2909_v55 = vmax.f32 %v2859_v35, 0.0  ;;  %v2804_v10 = vadd.f32 %v2754_v26, %v2500_v1  ;;  %v2155_v32 = vmul.f32 %v6764_v48, %v8583_v49  ;;  %v2166_v38 = vmul.f32 %v6764_v48, %v8584_v34  ;;  %v8587_v26 = vld [vmem:[#allocation331_spill] sm:$0xff] }
 0x3c9   :  { %v2502_v60 = vadd.f32 %v2452_v2, %v2198_v18  ;;  %v2454_v6 = vmul.f32 %v7039_v29, %v8585_v7  ;;  %v7231_v46 = vpop.permute.xlu0 %2621  ;;  %v2501_v33 = vadd.f32 %v2451_v52, %v2197_v15  ;;  %v2453_v11 = vmul.f32 %v7039_v29, %v8586_v13 }
 0x3ca   :  { %v3554_v22 = vpack.c.bf16 %v2910_v27, %v2909_v55  ;;  %v2755_v1 = vmul.f32 %v7088_v39, %v2562_v47  ;;  %v7237_v35 = vadd.f32 %v2162_v9, %v6992_v19  ;;  %v2157_v49 = vmul.f32 %v6764_v48, %v8587_v26  ;;  %v8588_v9 = vld [vmem:[#allocation42_spill] sm:$0xff] }
 0x3cb   :  { %v2806_v18 = vadd.f32 %v2756_v14, %v2502_v60  ;;  %v2758_v2 = vmul.f32 %v7088_v39, %v7008_v3  ;;  %v2203_v34 = vadd.f32 %v2153_v24, %v6898_v30  ;;  %v7245_v15 = vadd.f32 %v2164_v44, %v7011_v42  ;;  %v2570_v3 = vpop.permute.xlu1 %2569  ;;  %v8589_v42 = vld [vmem:[#allocation68_spill] sm:$0xff]  ;;  %v8593_v26 = vld [vmem:[#allocation70_spill] sm:$0xff] }
 0x3cc   :  { %3555 = vst [vmem:[#allocation2] sm:$0xff] %v3554_v22   ;;  %v2861_v13 = vadd.f32 %v7177_v37, %v2804_v10  ;;  %v2805_v52 = vadd.f32 %v2755_v1, %v2501_v33  ;;  %v7249_v27 = vadd.f32 %v2155_v32, %v6910_v23  ;;  %v7252_v19 = vadd.f32 %v2166_v38, %v7021_v21  ;;  %v8590_v21 = vld [vmem:[#allocation332_spill] sm:$0xff]  ;;  %v8591_v33 = vld [vmem:[#allocation333_spill] sm:$0xff]  ;;  %v8592_v1 = vld [vmem:[#allocation51_spill] sm:$0xff] }
 0x3cd   :  { %v2455_v14 = vmul.f32 %v7039_v29, %v8588_v9  ;;  %v2504_v55 = vadd.f32 %v2454_v6, %v2200_v53  ;;  %v7256_v60 = vpop.permute.xlu0 %2629  ;;  %v2503_v30 = vadd.f32 %v2453_v11, %v2199_v45  ;;  %v2456_v24 = vmul.f32 %v7039_v29, %v8589_v42 }
 0x3ce   :  { %v2862_v44 = vadd.f32 %v7177_v37, %v2805_v52  ;;  %v2757_v10 = vmul.f32 %v7088_v39, %v2570_v3  ;;  %v7263_v23 = vadd.f32 %v2157_v49, %v6924_v56  ;;  %v2168_v32 = vmul.f32 %v6764_v48, %v8590_v21 }
 0x3cf   :  { %v2863_v38 = vadd.f32 %v7177_v37, %v2806_v18  ;;  %v2808_v53 = vadd.f32 %v2758_v2, %v2504_v55  ;;  %v2760_v7 = vmul.f32 %v7088_v39, %v7057_v51  ;;  %v2911_v45 = vmax.f32 %v2861_v13, 0.0  ;;  %v2578_v52 = vpop.permute.xlu1 %2577 }
 0x3d0   :  { %v2912_v6 = vmax.f32 %v2862_v44, 0.0  ;;  %v2807_v47 = vadd.f32 %v2757_v10, %v2503_v30  ;;  %v2159_v11 = vmul.f32 %v6764_v48, %v8591_v33  ;;  %v2505_v22 = vadd.f32 %v2455_v14, %v2201_v4  ;;  %v8594_v4 = vld [vmem:[#allocation334_spill] sm:$0xff] }
 0x3d1   :  { %v2457_v56 = vmul.f32 %v7039_v29, %v8592_v1  ;;  %v2458_v49 = vmul.f32 %v7039_v29, %v8593_v26  ;;  %v7276_v9 = vpop.permute.xlu0 %2637  ;;  %v2506_v18 = vadd.f32 %v2456_v24, %v7188_v61  ;;  %v2759_v13 = vmul.f32 %v7088_v39, %v2578_v52 }
 0x3d2   :  { %v3559_v2 = vpack.c.bf16 %v2912_v6, %v2911_v45  ;;  %v2864_v51 = vadd.f32 %v7177_v37, %v2807_v47  ;;  %v7282_v55 = vadd.f32 %v2168_v32, %v7027_v54  ;;  %v2170_v14 = vmul.f32 %v6764_v48, %v8594_v4  ;;  %v8600_v4 = vld [vmem:[#allocation74_spill] sm:$0xff] }
 0x3d3   :  { %v2913_v3 = vmax.f32 %v2863_v38, 0.0  ;;  %v2762_v30 = vmul.f32 %v7088_v39, %v7101_v43  ;;  %v3227_v42 = vld [vmem:[#allocation2] sm:$0xff]   ;;  %v2865_v44 = vadd.f32 %v7177_v37, %v2808_v53  ;;  %v2810_v10 = vadd.f32 %v2760_v7, %v2506_v18  ;;  %v8595_v38 = vld [vmem:[#allocation72_spill] sm:$0xff]  ;;  %v2586_v43 = vpop.permute.xlu1 %2585 }
 0x3d4   :  { %3228 = vst [vmem:[%s7687_s3] sm:$0xff] %v3227_v42   ;;  %3676 = vst [vmem:[#allocation2 + $0x8] sm:$0xff] %v3559_v2   ;;  %v2914_v61 = vmax.f32 %v2864_v51, 0.0  ;;  %v2809_v24 = vadd.f32 %v2759_v13, %v2505_v22  ;;  %v2209_v54 = vadd.f32 %v2159_v11, %v6937_v28  ;;  %v2507_v21 = vadd.f32 %v2457_v56, %v2203_v34  ;;  %v8596_v53 = vld [vmem:[#allocation52_spill] sm:$0xff]  ;;  %v8597_v28 = vld [vmem:[#allocation335_spill] sm:$0xff] }
 0x3d5   :  { %v2508_v32 = vadd.f32 %v2458_v49, %v7191_v63  ;;  %v2460_v45 = vmul.f32 %v7039_v29, %v8595_v38  ;;  %v7296_v6 = vpop.permute.xlu0 %2645  ;;  %v2459_v7 = vmul.f32 %v7039_v29, %v8596_v53  ;;  %v2761_v1 = vmul.f32 %v7088_v39, %v2586_v43  ;;  %v8598_v18 = vld [vmem:[#allocation336_spill] sm:$0xff]  ;;  %v8599_v51 = vld [vmem:[#allocation54_spill] sm:$0xff] }
 0x3d6   :  { %v3564_v47 = vpack.c.bf16 %v2914_v61, %v2913_v3  ;;  %v2866_v33 = vadd.f32 %v7177_v37, %v2809_v24  ;;  %v7303_v22 = vadd.f32 %v2170_v14, %v7044_v25  ;;  %v2161_v63 = vmul.f32 %v6764_v48, %v8597_v28  ;;  %v8601_v61 = vld [vmem:[#allocation337_spill] sm:$0xff] }
 0x3d7   :  { %v2812_v34 = vadd.f32 %v2762_v30, %v2508_v32  ;;  %v2764_v11 = vmul.f32 %v7088_v39, %v7146_v36  ;;  %v2915_v56 = vmax.f32 %v2865_v44, 0.0  ;;  %v2867_v26 = vadd.f32 %v7177_v37, %v2810_v10  ;;  %v2594_v3 = vpop.permute.xlu1 %2593 }
 0x3d8   :  { %3677 = vst [vmem:[#allocation2 + $0x10] sm:$0xff] %v3564_v47   ;;  %v2916_v49 = vmax.f32 %v2866_v33, 0.0  ;;  %v2811_v52 = vadd.f32 %v2761_v1, %v2507_v21  ;;  %v2172_v2 = vmul.f32 %v6764_v48, %v8598_v18  ;;  %v2461_v25 = vmul.f32 %v7039_v29, %v8599_v51  ;;  %v8602_v47 = vld [vmem:[#allocation45_spill] sm:$0xff] }
 0x3d9   :  { %v2510_v13 = vadd.f32 %v2460_v45, %v7197_v41  ;;  %v2462_v14 = vmul.f32 %v7039_v29, %v8600_v4  ;;  %v2509_v36 = vadd.f32 %v2459_v7, %v7249_v27  ;;  %v2763_v44 = vmul.f32 %v7088_v39, %v2594_v3  ;;  %v7324_v38 = vpop.permute.xlu0 %2653 }
 0x3da   :  { %v3569_v30 = vpack.c.bf16 %v2916_v49, %v2915_v56  ;;  %v2868_v42 = vadd.f32 %v7177_v37, %v2811_v52  ;;  %v2211_v10 = vadd.f32 %v2161_v63, %v6945_v31  ;;  %v2163_v24 = vmul.f32 %v6764_v48, %v8601_v61  ;;  %v8603_v63 = vld [vmem:[#allocation77_spill] sm:$0xff] }
 0x3db   :  { %v2869_v21 = vadd.f32 %v7177_v37, %v2812_v34  ;;  %v2814_v32 = vadd.f32 %v2764_v11, %v2510_v13  ;;  %v3231_v41 = vld [vmem:[#allocation2 + $0x8] sm:$0xff]   ;;  %v2917_v45 = vmax.f32 %v2867_v26, 0.0  ;;  %v2766_v27 = vmul.f32 %v7088_v39, %v7179_v5  ;;  %v2602_v28 = vpop.permute.xlu1 %2601 }
 0x3dc   :  { %3232 = vst [vmem:[%s7687_s3 + $0x8] sm:$0xff] %v3231_v41   ;;  %3678 = vst [vmem:[#allocation2 + $0x18] sm:$0xff] %v3569_v30   ;;  %v2918_v43 = vmax.f32 %v2868_v42, 0.0  ;;  %v2813_v31 = vadd.f32 %v2763_v44, %v2509_v36  ;;  %v7332_v53 = vadd.f32 %v2172_v2, %v7050_v16  ;;  %v2511_v7 = vadd.f32 %v2461_v25, %v7263_v23  ;;  %v8604_v16 = vld [vmem:[#allocation338_spill] sm:$0xff]  ;;  %v8605_v13 = vld [vmem:[#allocation339_spill] sm:$0xff] }
 0x3dd   :  { %v2463_v33 = vmul.f32 %v7039_v29, %v8602_v47  ;;  %v2512_v1 = vadd.f32 %v2462_v14, %v7202_v62  ;;  %v2464_v5 = vmul.f32 %v7039_v29, %v8603_v63  ;;  %v2765_v56 = vmul.f32 %v7088_v39, %v2602_v28  ;;  %v8606_v14 = vld [vmem:[#allocation57_spill] sm:$0xff]  ;;  %v8607_v36 = vld [vmem:[#allocation83_spill] sm:$0xff]  ;;  %v7357_v42 = vpop.permute.xlu0 %2661  ;;  %v8610_v63 = vld [vmem:[#allocation86_spill] sm:$0xff] }
 0x3de   :  { %v3574_v34 = vpack.c.bf16 %v2918_v43, %v2917_v45  ;;  %v2870_v11 = vadd.f32 %v7177_v37, %v2813_v31  ;;  %v2213_v26 = vadd.f32 %v2163_v24, %v6957_v58  ;;  %v2174_v49 = vmul.f32 %v6764_v48, %v8604_v16 }
 0x3df   :  { %v2919_v23 = vmax.f32 %v2869_v21, 0.0  ;;  %v2871_v52 = vadd.f32 %v7177_v37, %v2814_v32  ;;  %v3235_v18 = vld [vmem:[#allocation2 + $0x10] sm:$0xff]   ;;  %v2816_v2 = vadd.f32 %v2766_v27, %v2512_v1  ;;  %v2768_v62 = vmul.f32 %v7088_v39, %v7210_v8  ;;  %v2610_v8 = vpop.permute.xlu1 %2609 }
 0x3e0   :  { %3236 = vst [vmem:[%s7687_s3 + $0x10] sm:$0xff] %v3235_v18   ;;  %3679 = vst [vmem:[#allocation2 + $0x20] sm:$0xff] %v3574_v34   ;;  %v2920_v51 = vmax.f32 %v2870_v11, 0.0  ;;  %v2815_v25 = vadd.f32 %v2765_v56, %v2511_v7  ;;  %v2165_v58 = vmul.f32 %v6764_v48, %v8605_v13  ;;  %v2513_v4 = vadd.f32 %v2463_v33, %v2209_v54  ;;  %v8608_v54 = vld [vmem:[#allocation340_spill] sm:$0xff]  ;;  %v8611_v34 = vld [vmem:[#allocation66_spill] sm:$0xff] }
 0x3e1   :  { %v2465_v3 = vmul.f32 %v7039_v29, %v8606_v14  ;;  %v2466_v30 = vmul.f32 %v7039_v29, %v8607_v36  ;;  %v2514_v44 = vadd.f32 %v2464_v5, %v7206_v20  ;;  %v2767_v21 = vmul.f32 %v7088_v39, %v2610_v8  ;;  %v8614_v14 = vld [vmem:[#allocation69_spill] sm:$0xff]  ;;  %v8615_v36 = vld [vmem:[#allocation8_spill] sm:$0xff] }
 0x3e2   :  { %v3579_v61 = vpack.c.bf16 %v2920_v51, %v2919_v23  ;;  %v2872_v24 = vadd.f32 %v7177_v37, %v2815_v25  ;;  %v7363_v32 = vadd.f32 %v2174_v49, %v7063_v59  ;;  %v2176_v41 = vmul.f32 %v6764_v48, %v8608_v54  ;;  %v8609_v59 = vld [vmem:[#allocation100_spill] sm:$0xff] }
 0x3e3   :  { %v2921_v45 = vmax.f32 %v2871_v52, 0.0  ;;  %v2770_v27 = vmul.f32 %v7088_v39, %v7231_v46  ;;  %v3239_v43 = vld [vmem:[#allocation2 + $0x18] sm:$0xff]   ;;  %v2873_v31 = vadd.f32 %v7177_v37, %v2816_v2  ;;  %v2818_v7 = vadd.f32 %v2768_v62, %v2514_v44  ;;  %v2618_v46 = vpop.permute.xlu1 %2617  ;;  %v7388_v62 = vpop.permute.xlu0 %2669  ;;  %v8616_v54 = vld [vmem:[#allocation24_spill] sm:$0xff] }
 0x3e4   :  { %3240 = vst [vmem:[%s7687_s3 + $0x18] sm:$0xff] %v3239_v43   ;;  %3680 = vst [vmem:[#allocation2 + $0x28] sm:$0xff] %v3579_v61   ;;  %v2922_v20 = vmax.f32 %v2872_v24, 0.0  ;;  %v2817_v47 = vadd.f32 %v2767_v21, %v2513_v4  ;;  %v2215_v33 = vadd.f32 %v2165_v58, %v8609_v59  ;;  %v2515_v1 = vadd.f32 %v2465_v3, %v2211_v10  ;;  %v8612_v52 = vld [vmem:[#allocation341_spill] sm:$0xff]  ;;  %v8613_v58 = vld [vmem:[#allocation342_spill] sm:$0xff] }
 0x3e5   :  { %v2516_v28 = vadd.f32 %v2466_v30, %v7237_v35  ;;  %v2468_v5 = vmul.f32 %v7039_v29, %v8610_v63  ;;  %v2467_v11 = vmul.f32 %v7039_v29, %v8611_v34  ;;  %v2769_v49 = vmul.f32 %v7088_v39, %v2618_v46 }
 0x3e6   :  { %v3584_v56 = vpack.c.bf16 %v2922_v20, %v2921_v45  ;;  %v2874_v16 = vadd.f32 %v7177_v37, %v2817_v47  ;;  %v7382_v23 = vadd.f32 %v2176_v41, %v7079_v50  ;;  %v2167_v10 = vmul.f32 %v6764_v48, %v8612_v52  ;;  %v8617_v45 = vld [vmem:[#allocation344_spill] sm:$0xff]  ;;  %v8620_v52 = vld [vmem:[#allocation23_spill] sm:$0xff] }
 0x3e7   :  { %v2820_v18 = vadd.f32 %v2770_v27, %v2516_v28  ;;  %v2772_v35 = vmul.f32 %v7088_v39, %v7256_v60  ;;  %v3243_v2 = vld [vmem:[#allocation2 + $0x20] sm:$0xff]   ;;  %v2923_v51 = vmax.f32 %v2873_v31, 0.0  ;;  %v2875_v25 = vadd.f32 %v7177_v37, %v2818_v7  ;;  %v2626_v8 = vpop.permute.xlu1 %2625  ;;  %v8618_v28 = vld [vmem:[#allocation71_spill] sm:$0xff]  ;;  %v7418_v46 = vpop.permute.xlu0 %2677 }
 0x3e8   :  { %3244 = vst [vmem:[%s7687_s3 + $0x20] sm:$0xff] %v3243_v2   ;;  %3681 = vst [vmem:[#allocation2 + $0x30] sm:$0xff] %v3584_v56   ;;  %v2924_v50 = vmax.f32 %v2874_v16, 0.0  ;;  %v2819_v13 = vadd.f32 %v2769_v49, %v2515_v1  ;;  %v2178_v4 = vmul.f32 %v6764_v48, %v8613_v58  ;;  %v2469_v3 = vmul.f32 %v7039_v29, %v8614_v14  ;;  %v8623_v14 = vld [vmem:[#allocation73_spill] sm:$0xff] }
 0x3e9   :  { %v2518_v60 = vadd.f32 %v2468_v5, %v7245_v15  ;;  %v2470_v30 = vmul.f32 %v7039_v29, %v8615_v36  ;;  %v2517_v44 = vadd.f32 %v2467_v11, %v2213_v26  ;;  %v2771_v21 = vmul.f32 %v7088_v39, %v2626_v8 }
 0x3ea   :  { %v3589_v61 = vpack.c.bf16 %v2924_v50, %v2923_v51  ;;  %v2876_v24 = vadd.f32 %v7177_v37, %v2819_v13  ;;  %v2217_v41 = vadd.f32 %v2167_v10, %v8616_v54  ;;  %v2169_v27 = vmul.f32 %v6764_v48, %v8617_v45  ;;  %v8621_v10 = vld [vmem:[#allocation345_spill] sm:$0xff]  ;;  %v8622_v13 = vld [vmem:[#allocation346_spill] sm:$0xff] }
 0x3eb   :  { %v2877_v43 = vadd.f32 %v7177_v37, %v2820_v18  ;;  %v2822_v31 = vadd.f32 %v2772_v35, %v2518_v60  ;;  %v3247_v7 = vld [vmem:[#allocation2 + $0x28] sm:$0xff]   ;;  %v2925_v15 = vmax.f32 %v2875_v25, 0.0  ;;  %v2774_v20 = vmul.f32 %v7088_v39, %v7276_v9  ;;  %v2634_v34 = vpop.permute.xlu1 %2633  ;;  %v8624_v60 = vld [vmem:[#allocation13_spill] sm:$0xff] }
 0x3ec   :  { %3248 = vst [vmem:[%s7687_s3 + $0x28] sm:$0xff] %v3247_v7   ;;  %3682 = vst [vmem:[#allocation2 + $0x38] sm:$0xff] %v3589_v61   ;;  %v2926_v26 = vmax.f32 %v2876_v24, 0.0  ;;  %v2821_v47 = vadd.f32 %v2771_v21, %v2517_v44  ;;  %v7413_v59 = vadd.f32 %v2178_v4, %v7093_v17  ;;  %v2519_v1 = vadd.f32 %v2469_v3, %v2215_v33  ;;  %v8619_v9 = vld [vmem:[#allocation11_spill] sm:$0xff] }
 0x3ed   :  { %v2471_v63 = vmul.f32 %v7039_v29, %v8618_v28  ;;  %v2520_v5 = vadd.f32 %v2470_v30, %v7252_v19  ;;  %v2472_v11 = vmul.f32 %v7039_v29, %v8619_v9  ;;  %v2773_v49 = vmul.f32 %v7088_v39, %v2634_v34  ;;  %v8625_v21 = vld [vmem:[#allocation347_spill] sm:$0xff] }
 0x3ee   :  { %v3594_v56 = vpack.c.bf16 %v2926_v26, %v2925_v15  ;;  %v2878_v16 = vadd.f32 %v7177_v37, %v2821_v47  ;;  %v2219_v17 = vadd.f32 %v2169_v27, %v8620_v52  ;;  %v2180_v33 = vmul.f32 %v6764_v48, %v8621_v10  ;;  %v8626_v15 = vld [vmem:[#allocation102_spill] sm:$0xff] }
 0x3ef   :  { %v2927_v18 = vmax.f32 %v2877_v43, 0.0  ;;  %v2879_v35 = vadd.f32 %v7177_v37, %v2822_v31  ;;  %v3251_v19 = vld [vmem:[#allocation2 + $0x30] sm:$0xff]   ;;  %v2824_v2 = vadd.f32 %v2774_v20, %v2520_v5  ;;  %v2776_v51 = vmul.f32 %v7088_v39, %v7296_v6  ;;  %v2642_v30 = vpop.permute.xlu1 %2641  ;;  %v7449_v43 = vpop.permute.xlu0 %2685 }
 0x3f0   :  { %3252 = vst [vmem:[%s7687_s3 + $0x30] sm:$0xff] %v3251_v19   ;;  %3683 = vst [vmem:[#allocation2 + $0x40] sm:$0xff] %v3594_v56   ;;  %v2928_v25 = vmax.f32 %v2878_v16, 0.0  ;;  %v2823_v50 = vadd.f32 %v2773_v49, %v2519_v1  ;;  %v2171_v58 = vmul.f32 %v6764_v48, %v8622_v13  ;;  %v2521_v4 = vadd.f32 %v2471_v63, %v2217_v41  ;;  %v8627_v1 = vld [vmem:[#allocation208_spill] sm:$0xff]  ;;  %v8628_v63 = vld [vmem:[#allocation75_spill] sm:$0xff] }
 0x3f1   :  { %v2473_v3 = vmul.f32 %v7039_v29, %v8623_v14  ;;  %v2474_v36 = vmul.f32 %v7039_v29, %v8624_v60  ;;  %v2522_v6 = vadd.f32 %v2472_v11, %v7282_v55  ;;  %v2775_v61 = vmul.f32 %v7088_v39, %v2642_v30  ;;  %v8629_v16 = vld [vmem:[#allocation3_spill] sm:$0xff] }
 0x3f2   :  { %v3599_v8 = vpack.c.bf16 %v2928_v25, %v2927_v18  ;;  %v2880_v44 = vadd.f32 %v7177_v37, %v2823_v50  ;;  %v7443_v24 = vadd.f32 %v2180_v33, %v7107_v40  ;;  %v2182_v54 = vmul.f32 %v6764_v48, %v8625_v21 }
 0x3f3   :  { %v2929_v41 = vmax.f32 %v2879_v35, 0.0  ;;  %v2778_v45 = vmul.f32 %v7088_v39, %v7324_v38  ;;  %v3255_v27 = vld [vmem:[#allocation2 + $0x38] sm:$0xff]   ;;  %v2881_v55 = vadd.f32 %v7177_v37, %v2824_v2  ;;  %v2826_v31 = vadd.f32 %v2776_v51, %v2522_v6  ;;  %v2650_v28 = vpop.permute.xlu1 %2649  ;;  %v8631_v2 = vld [vmem:[#allocation78_spill] sm:$0xff]  ;;  %v7481_v13 = vpop.permute.xlu0 %2693 }
 0x3f4   :  { %3256 = vst [vmem:[%s7687_s3 + $0x38] sm:$0xff] %v3255_v27   ;;  %3684 = vst [vmem:[#allocation2 + $0x48] sm:$0xff] %v3599_v8   ;;  %v2930_v40 = vmax.f32 %v2880_v44, 0.0  ;;  %v2825_v7 = vadd.f32 %v2775_v61, %v2521_v4  ;;  %v2221_v20 = vadd.f32 %v2171_v58, %v8626_v15  ;;  %v2523_v26 = vadd.f32 %v2473_v3, %v2219_v17  ;;  %v8634_v6 = vld [vmem:[#allocation5_spill] sm:$0xff] }
 0x3f5   :  { %v2524_v47 = vadd.f32 %v2474_v36, %v7303_v22  ;;  %v2476_v38 = vmul.f32 %v7039_v29, %v8627_v1  ;;  %v2475_v5 = vmul.f32 %v7039_v29, %v8628_v63  ;;  %v2777_v11 = vmul.f32 %v7088_v39, %v2650_v28  ;;  %v8633_v36 = vld [vmem:[#allocation103_spill] sm:$0xff] }
 0x3f6   :  { %v3604_v34 = vpack.c.bf16 %v2930_v40, %v2929_v41  ;;  %v2882_v9 = vadd.f32 %v7177_v37, %v2825_v7  ;;  %v7464_v56 = vadd.f32 %v2182_v54, %v7117_v0  ;;  %v2173_v49 = vmul.f32 %v6764_v48, %v8629_v16  ;;  %v8630_v0 = vld [vmem:[#allocation4_spill] sm:$0xff]  ;;  %v8637_v28 = vld [vmem:[#allocation19_spill] sm:$0xff] }
 0x3f7   :  { %v2828_v52 = vadd.f32 %v2778_v45, %v2524_v47  ;;  %v2780_v22 = vmul.f32 %v7088_v39, %v7357_v42  ;;  %v3259_v17 = vld [vmem:[#allocation2 + $0x40] sm:$0xff]   ;;  %v2931_v10 = vmax.f32 %v2881_v55, 0.0  ;;  %v2883_v33 = vadd.f32 %v7177_v37, %v2826_v31  ;;  %v2658_v58 = vpop.permute.xlu1 %2657  ;;  %v8635_v31 = vld [vmem:[#allocation84_spill] sm:$0xff] }
 0x3f8   :  { %3260 = vst [vmem:[%s7687_s3 + $0x40] sm:$0xff] %v3259_v17   ;;  %3685 = vst [vmem:[#allocation2 + $0x50] sm:$0xff] %v3604_v34   ;;  %v2932_v18 = vmax.f32 %v2882_v9, 0.0  ;;  %v2827_v35 = vadd.f32 %v2777_v11, %v2523_v26  ;;  %v2184_v19 = vmul.f32 %v6764_v48, %v8630_v0  ;;  %v2477_v51 = vmul.f32 %v7039_v29, %v8631_v2  ;;  %v8632_v42 = vld [vmem:[#allocation14_spill] sm:$0xff]  ;;  %v7508_v9 = vpop.permute.xlu0 %2701  ;;  %v8639_v17 = vld [vmem:[#allocation87_spill] sm:$0xff] }
 0x3f9   :  { %v2526_v25 = vadd.f32 %v2476_v38, %v7332_v53  ;;  %v2478_v50 = vmul.f32 %v7039_v29, %v8632_v42  ;;  %v2525_v4 = vadd.f32 %v2475_v5, %v2221_v20  ;;  %v2779_v60 = vmul.f32 %v7088_v39, %v2658_v58  ;;  %v8636_v20 = vld [vmem:[#allocation94_spill] sm:$0xff]  ;;  %v8642_v42 = vld [vmem:[#allocation25_spill] sm:$0xff] }
 0x3fa   :  { %v3609_v14 = vpack.c.bf16 %v2932_v18, %v2931_v10  ;;  %v2884_v3 = vadd.f32 %v7177_v37, %v2827_v35  ;;  %v2223_v30 = vadd.f32 %v2173_v49, %v8633_v36  ;;  %v2175_v8 = vmul.f32 %v6764_v48, %v8634_v6  ;;  %v8638_v49 = vld [vmem:[#allocation6_spill] sm:$0xff] }
 0x3fb   :  { %v2885_v44 = vadd.f32 %v7177_v37, %v2828_v52  ;;  %v2830_v53 = vadd.f32 %v2780_v22, %v2526_v25  ;;  %v3263_v61 = vld [vmem:[#allocation2 + $0x48] sm:$0xff]   ;;  %v2933_v21 = vmax.f32 %v2883_v33, 0.0  ;;  %v2782_v54 = vmul.f32 %v7088_v39, %v7388_v62  ;;  %v2666_v15 = vpop.permute.xlu1 %2665  ;;  %v8640_v33 = vld [vmem:[#allocation98_spill] sm:$0xff] }
 0x3fc   :  { %3264 = vst [vmem:[%s7687_s3 + $0x48] sm:$0xff] %v3263_v61   ;;  %3686 = vst [vmem:[#allocation2 + $0x58] sm:$0xff] %v3609_v14   ;;  %v2934_v41 = vmax.f32 %v2884_v3, 0.0  ;;  %v2829_v45 = vadd.f32 %v2779_v60, %v2525_v4  ;;  %v7495_v27 = vadd.f32 %v2184_v19, %v7136_v57  ;;  %v2527_v55 = vadd.f32 %v2477_v51, %v2223_v30  ;;  %v8641_v51 = vld [vmem:[#allocation256_spill] sm:$0xff]  ;;  %v8643_v30 = vld [vmem:[#allocation114_spill] sm:$0xff]  ;;  %v2710_v61 = vpop.permute.xlu0 %2709 }
 0x3fd   :  { %v2479_v40 = vmul.f32 %v7039_v29, %v8635_v31  ;;  %v2528_v7 = vadd.f32 %v2478_v50, %v7363_v32  ;;  %v2480_v62 = vmul.f32 %v7039_v29, %v8636_v20  ;;  %v2781_v1 = vmul.f32 %v7088_v39, %v2666_v15  ;;  %v8647_v15 = vld [vmem:[#allocation27_spill] sm:$0xff] }
 0x3fe   :  { %v3614_v26 = vpack.c.bf16 %v2934_v41, %v2933_v21  ;;  %v2886_v47 = vadd.f32 %v7177_v37, %v2829_v45  ;;  %v2225_v38 = vadd.f32 %v2175_v8, %v7024_v12  ;;  %v2177_v57 = vmul.f32 %v6764_v48, %v8637_v28 }
 0x3ff   :  { %v2935_v63 = vmax.f32 %v2885_v44, 0.0  ;;  %v2887_v5 = vadd.f32 %v7177_v37, %v2830_v53  ;;  %v3267_v34 = vld [vmem:[#allocation2 + $0x50] sm:$0xff]   ;;  %v2832_v32 = vadd.f32 %v2782_v54, %v2528_v7  ;;  %v2784_v11 = vmul.f32 %v7088_v39, %v7418_v46  ;;  %v2674_v35 = vpop.permute.xlu1 %2673  ;;  %v8644_v53 = vld [vmem:[#allocation253_spill] sm:$0xff] }
 0x400   :  { %3268 = vst [vmem:[%s7687_s3 + $0x50] sm:$0xff] %v3267_v34   ;;  %3687 = vst [vmem:[#allocation2 + $0x60] sm:$0xff] %v3614_v26   ;;  %v2936_v16 = vmax.f32 %v2886_v47, 0.0  ;;  %v2831_v12 = vadd.f32 %v2781_v1, %v2527_v55  ;;  %v2186_v52 = vmul.f32 %v6764_v48, %v8638_v49  ;;  %v2529_v22 = vadd.f32 %v2479_v40, %v2225_v38  ;;  %v8645_v54 = vld [vmem:[#allocation88_spill] sm:$0xff] }
 0x401   :  { %v2481_v10 = vmul.f32 %v7039_v29, %v8639_v17  ;;  %v2482_v18 = vmul.f32 %v7039_v29, %v8640_v33  ;;  %v2530_v46 = vadd.f32 %v2480_v62, %v7382_v23  ;;  %v2783_v2 = vmul.f32 %v7088_v39, %v2674_v35  ;;  %v8646_v40 = vld [vmem:[#allocation104_spill] sm:$0xff]  ;;  %v8651_v17 = vld [vmem:[#allocation105_spill] sm:$0xff] }
 0x402   :  { %v3619_v0 = vpack.c.bf16 %v2936_v16, %v2935_v63  ;;  %v2888_v19 = vadd.f32 %v7177_v37, %v2831_v12  ;;  %v2227_v25 = vadd.f32 %v2177_v57, %v8641_v51  ;;  %v2179_v50 = vmul.f32 %v6764_v48, %v8642_v42  ;;  %v8648_v57 = vld [vmem:[#allocation20_spill] sm:$0xff]  ;;  %v8652_v33 = vld [vmem:[#allocation29_spill] sm:$0xff]  ;;  %v8653_v42 = vld [vmem:[#allocation259_spill] sm:$0xff] }
 0x403   :  { %v2937_v58 = vmax.f32 %v2887_v5, 0.0  ;;  %v2786_v4 = vmul.f32 %v7088_v39, %v7449_v43  ;;  %v3271_v14 = vld [vmem:[#allocation2 + $0x58] sm:$0xff]   ;;  %v2889_v3 = vadd.f32 %v7177_v37, %v2832_v32  ;;  %v2834_v60 = vadd.f32 %v2784_v11, %v2530_v46  ;;  %v2682_v21 = vpop.permute.xlu1 %2681  ;;  %v8649_v5 = vld [vmem:[#allocation10_spill] sm:$0xff] }
 0x404   :  { %3272 = vst [vmem:[%s7687_s3 + $0x58] sm:$0xff] %v3271_v14   ;;  %3688 = vst [vmem:[#allocation2 + $0x68] sm:$0xff] %v3619_v0   ;;  %v2938_v23 = vmax.f32 %v2888_v19, 0.0  ;;  %v2833_v36 = vadd.f32 %v2783_v2, %v2529_v22  ;;  %v7534_v6 = vadd.f32 %v2186_v52, %v8643_v30  ;;  %v2531_v8 = vadd.f32 %v2481_v10, %v2227_v25 }
 0x405   :  { %v2532_v44 = vadd.f32 %v2482_v18, %v7413_v59  ;;  %v2484_v43 = vmul.f32 %v7039_v29, %v8644_v53  ;;  %v2483_v41 = vmul.f32 %v7039_v29, %v8645_v54  ;;  %v2785_v31 = vmul.f32 %v7088_v39, %v2682_v21 }
 0x406   :  { %v3624_v45 = vpack.c.bf16 %v2938_v23, %v2937_v58  ;;  %v2890_v55 = vadd.f32 %v7177_v37, %v2833_v36  ;;  %v2229_v7 = vadd.f32 %v2179_v50, %v8646_v40  ;;  %v2181_v20 = vmul.f32 %v6764_v48, %v8647_v15  ;;  %v8655_v23 = vld [vmem:[#allocation21_spill] sm:$0xff] }
 0x407   :  { %v2836_v62 = vadd.f32 %v2786_v4, %v2532_v44  ;;  %v2788_v59 = vmul.f32 %v7088_v39, %v7481_v13  ;;  %v3275_v26 = vld [vmem:[#allocation2 + $0x60] sm:$0xff]   ;;  %v2939_v47 = vmax.f32 %v2889_v3, 0.0  ;;  %v2891_v1 = vadd.f32 %v7177_v37, %v2834_v60  ;;  %v2690_v16 = vpop.permute.xlu1 %2689 }
 0x408   :  { %3276 = vst [vmem:[%s7687_s3 + $0x60] sm:$0xff] %v3275_v26   ;;  %3689 = vst [vmem:[#allocation2 + $0x70] sm:$0xff] %v3624_v45   ;;  %v2940_v38 = vmax.f32 %v2890_v55, 0.0  ;;  %v2835_v28 = vadd.f32 %v2785_v31, %v2531_v8  ;;  %v2188_v63 = vmul.f32 %v6764_v48, %v8648_v57  ;;  %v2485_v34 = vmul.f32 %v7039_v29, %v8649_v5  ;;  %v8650_v13 = vld [vmem:[#allocation22_spill] sm:$0xff]  ;;  %v8660_v26 = vld [vmem:[#allocation101_spill] sm:$0xff] }
 0x409   :  { %v2534_v32 = vadd.f32 %v2484_v43, %v7443_v24  ;;  %v2486_v11 = vmul.f32 %v7039_v29, %v8650_v13  ;;  %v2533_v12 = vadd.f32 %v2483_v41, %v2229_v7  ;;  %v2787_v22 = vmul.f32 %v7088_v39, %v2690_v16  ;;  %v2718_v24 = vpop.permute.xlu0 %2717  ;;  %v8654_v4 = vld [vmem:[#allocation250_spill] sm:$0xff]  ;;  %v8657_v43 = vld [vmem:[#allocation31_spill] sm:$0xff] }
 0x40a   :  { %v3629_v49 = vpack.c.bf16 %v2940_v38, %v2939_v47  ;;  %v2892_v52 = vadd.f32 %v7177_v37, %v2835_v28  ;;  %v2231_v10 = vadd.f32 %v2181_v20, %v8651_v17  ;;  %v2183_v18 = vmul.f32 %v6764_v48, %v8652_v33  ;;  %v8656_v44 = vld [vmem:[#allocation106_spill] sm:$0xff]  ;;  %v8661_v5 = vld [vmem:[#allocation107_spill] sm:$0xff]  ;;  %v8663_v17 = vld [vmem:[#allocation217_spill] sm:$0xff] }
 0x40b   :  { %v2893_v35 = vadd.f32 %v7177_v37, %v2836_v62  ;;  %v2838_v46 = vadd.f32 %v2788_v59, %v2534_v32  ;;  %v3279_v0 = vld [vmem:[#allocation2 + $0x68] sm:$0xff]   ;;  %v2941_v19 = vmax.f32 %v2891_v1, 0.0  ;;  %v2790_v2 = vmul.f32 %v7088_v39, %v7508_v9  ;;  %v2698_v60 = vpop.permute.xlu1 %2697  ;;  %v8658_v7 = vld [vmem:[#allocation26_spill] sm:$0xff]  ;;  %v8659_v62 = vld [vmem:[#allocation12_spill] sm:$0xff] }
 0x40c   :  { %3280 = vst [vmem:[%s7687_s3 + $0x68] sm:$0xff] %v3279_v0   ;;  %3690 = vst [vmem:[#allocation2 + $0x78] sm:$0xff] %v3629_v49   ;;  %v2942_v51 = vmax.f32 %v2892_v52, 0.0  ;;  %v2837_v25 = vadd.f32 %v2787_v22, %v2533_v12  ;;  %v7571_v50 = vadd.f32 %v2188_v63, %v8653_v42  ;;  %v2535_v58 = vadd.f32 %v2485_v34, %v2231_v10  ;;  %v8662_v32 = vld [vmem:[#allocation33_spill] sm:$0xff] }
 0x40d   :  { %v2487_v14 = vmul.f32 %v7039_v29, %v8654_v4  ;;  %v2536_v3 = vadd.f32 %v2486_v11, %v7464_v56  ;;  %v2488_v9 = vmul.f32 %v7039_v29, %v8655_v23  ;;  %v2789_v8 = vmul.f32 %v7088_v39, %v2698_v60  ;;  %v2726_v1 = vpop.permute.xlu0 %2725  ;;  %v8666_v42 = vld [vmem:[#allocation109_spill] sm:$0xff] }
 0x40e   :  { %v3634_v36 = vpack.c.bf16 %v2942_v51, %v2941_v19  ;;  %v2894_v30 = vadd.f32 %v7177_v37, %v2837_v25  ;;  %v2233_v53 = vadd.f32 %v2183_v18, %v8656_v44  ;;  %v2185_v21 = vmul.f32 %v6764_v48, %v8657_v43  ;;  %v8667_v4 = vld [vmem:[#allocation41_spill] sm:$0xff]  ;;  %v8668_v44 = vld [vmem:[#allocation28_spill] sm:$0xff]  ;;  %v8669_v43 = vld [vmem:[#allocation95_spill] sm:$0xff] }
 0x40f   :  { %v2943_v54 = vmax.f32 %v2893_v35, 0.0  ;;  %v2895_v41 = vadd.f32 %v7177_v37, %v2838_v46  ;;  %v3283_v45 = vld [vmem:[#allocation2 + $0x70] sm:$0xff]   ;;  %v2840_v55 = vadd.f32 %v2790_v2, %v2536_v3  ;;  %v2792_v56 = vmul.f32 %v7088_v39, %v2710_v61  ;;  %v2706_v38 = vpop.permute.xlu1 %2705  ;;  %v8664_v35 = vld [vmem:[#allocation214_spill] sm:$0xff] }
 0x410   :  { %3284 = vst [vmem:[%s7687_s3 + $0x70] sm:$0xff] %v3283_v45   ;;  %3691 = vst [vmem:[#allocation2 + $0x80] sm:$0xff] %v3634_v36   ;;  %v2944_v31 = vmax.f32 %v2894_v30, 0.0  ;;  %v2839_v40 = vadd.f32 %v2789_v8, %v2535_v58  ;;  %v2190_v15 = vmul.f32 %v6764_v48, %v8658_v7  ;;  %v2537_v20 = vadd.f32 %v2487_v14, %v2233_v53 }
 0x411   :  { %v2489_v59 = vmul.f32 %v7039_v29, %v8659_v62  ;;  %v2490_v47 = vmul.f32 %v7039_v29, %v8660_v26  ;;  %v2538_v61 = vadd.f32 %v2488_v9, %v7495_v27  ;;  %v2791_v63 = vmul.f32 %v7088_v39, %v2706_v38  ;;  %v2734_v60 = vpop.permute.xlu0 %2733  ;;  %v8672_v62 = vld [vmem:[#allocation50_spill] sm:$0xff] }
 0x412   :  { %v3639_v28 = vpack.c.bf16 %v2944_v31, %v2943_v54  ;;  %v2896_v57 = vadd.f32 %v7177_v37, %v2839_v40  ;;  %v2235_v34 = vadd.f32 %v2185_v21, %v8661_v5  ;;  %v2187_v13 = vmul.f32 %v6764_v48, %v8662_v32 }
 0x413   :  { %v2945_v11 = vmax.f32 %v2895_v41, 0.0  ;;  %v2794_v16 = vmul.f32 %v7088_v39, %v2718_v24  ;;  %v3287_v12 = vld [vmem:[#allocation2 + $0x78] sm:$0xff]   ;;  %v2897_v49 = vadd.f32 %v7177_v37, %v2840_v55  ;;  %v2842_v52 = vadd.f32 %v2792_v56, %v2538_v61  ;;  %v8665_v24 = vld [vmem:[#allocation92_spill] sm:$0xff] }
 0x414   :  { %3288 = vst [vmem:[%s7687_s3 + $0x78] sm:$0xff] %v3287_v12   ;;  %3692 = vst [vmem:[#allocation2 + $0x88] sm:$0xff] %v3639_v28   ;;  %v2946_v27 = vmax.f32 %v2896_v57, 0.0  ;;  %v2841_v22 = vadd.f32 %v2791_v63, %v2537_v20  ;;  %v2240_v10 = vadd.f32 %v2190_v15, %v8663_v17  ;;  %v2539_v33 = vadd.f32 %v2489_v59, %v2235_v34  ;;  %v2714_v0 = vpop.permute.xlu1 %2713  ;;  %v8670_v41 = vld [vmem:[#allocation108_spill] sm:$0xff]  ;;  %v8671_v15 = vld [vmem:[#allocation110_spill] sm:$0xff] }
 0x415   :  { %v2540_v18 = vadd.f32 %v2490_v47, %v7534_v6  ;;  %v2492_v46 = vmul.f32 %v7039_v29, %v8664_v35  ;;  %v2491_v19 = vmul.f32 %v7039_v29, %v8665_v24  ;;  %v2793_v25 = vmul.f32 %v7088_v39, %v2714_v0  ;;  %v8673_v57 = vld [vmem:[#allocation115_spill] sm:$0xff]  ;;  %v8675_v12 = vld [vmem:[#allocation113_spill] sm:$0xff] }
 0x416   :  { %v3644_v2 = vpack.c.bf16 %v2946_v27, %v2945_v11  ;;  %v2898_v51 = vadd.f32 %v7177_v37, %v2841_v22  ;;  %v2237_v58 = vadd.f32 %v2187_v13, %v8666_v42  ;;  %v2189_v14 = vmul.f32 %v6764_v48, %v8667_v4  ;;  %v8674_v34 = vld [vmem:[#allocation99_spill] sm:$0xff]  ;;  %v2742_v11 = vpop.permute.xlu0 %2741  ;;  %v8679_v42 = vld [vmem:[#allocation112_spill] sm:$0xff] }
 0x417   :  { %v2844_v3 = vadd.f32 %v2794_v16, %v2540_v18  ;;  %v2796_v6 = vmul.f32 %v7088_v39, %v2726_v1  ;;  %v3291_v23 = vld [vmem:[#allocation2 + $0x80] sm:$0xff]   ;;  %v2947_v9 = vmax.f32 %v2897_v49, 0.0  ;;  %v2899_v36 = vadd.f32 %v7177_v37, %v2842_v52  ;;  %v8676_v17 = vld [vmem:[#allocation111_spill] sm:$0xff] }
 0x418   :  { %3292 = vst [vmem:[%s7687_s3 + $0x80] sm:$0xff] %v3291_v23   ;;  %3693 = vst [vmem:[#allocation2 + $0x90] sm:$0xff] %v3644_v2   ;;  %v2948_v30 = vmax.f32 %v2898_v51, 0.0  ;;  %v2843_v8 = vadd.f32 %v2793_v25, %v2539_v33  ;;  %v2192_v53 = vmul.f32 %v6764_v48, %v8668_v44  ;;  %v2493_v21 = vmul.f32 %v7039_v29, %v8669_v43  ;;  %v2722_v55 = vpop.permute.xlu1 %2721  ;;  %v8677_v18 = vld [vmem:[#allocation43_spill] sm:$0xff]  ;;  %v8678_v25 = vld [vmem:[#allocation17_spill] sm:$0xff] }
 0x419   :  { %v2542_v54 = vadd.f32 %v2492_v46, %v7571_v50  ;;  %v2494_v45 = vmul.f32 %v7039_v29, %v8670_v41  ;;  %v2541_v56 = vadd.f32 %v2491_v19, %v2237_v58  ;;  %v2795_v7 = vmul.f32 %v7088_v39, %v2722_v55 }
 0x41a   :  { %v3649_v31 = vpack.c.bf16 %v2948_v30, %v2947_v9  ;;  %v2900_v40 = vadd.f32 %v7177_v37, %v2843_v8  ;;  %v2239_v20 = vadd.f32 %v2189_v14, %v8671_v15  ;;  %v2191_v59 = vmul.f32 %v6764_v48, %v8672_v62  ;;  %v8680_v14 = vld [vmem:[#allocation211_spill] sm:$0xff]  ;;  %v3801_v62 = vld [vmem:[%s7686_s2] ss:$0 sm:$0xff] }
 0x41b   :  { %v2901_v26 = vadd.f32 %v7177_v37, %v2844_v3  ;;  %v2846_v47 = vadd.f32 %v2796_v6, %v2542_v54  ;;  %v3295_v1 = vld [vmem:[#allocation2 + $0x88] sm:$0xff]   ;;  %v2949_v50 = vmax.f32 %v2899_v36, 0.0  ;;  %v2798_v38 = vmul.f32 %v7088_v39, %v2734_v60 }
 0x41c   :  { %3296 = vst [vmem:[%s7687_s3 + $0x88] sm:$0xff] %v3295_v1   ;;  %3694 = vst [vmem:[#allocation2 + $0x98] sm:$0xff] %v3649_v31   ;;  %v2950_v61 = vmax.f32 %v2900_v40, 0.0  ;;  %v2845_v28 = vadd.f32 %v2795_v7, %v2541_v56  ;;  %v2242_v63 = vadd.f32 %v2192_v53, %v8673_v57  ;;  %v2543_v5 = vadd.f32 %v2493_v21, %v2239_v20  ;;  %v2730_v16 = vpop.permute.xlu1 %2729 }
 0x41d   :  { %v2495_v32 = vmul.f32 %v7039_v29, %v8674_v34  ;;  %v2544_v13 = vadd.f32 %v2494_v45, %v2240_v10  ;;  %v2496_v49 = vmul.f32 %v7039_v29, %v8675_v12  ;;  %v2797_v22 = vmul.f32 %v7088_v39, %v2730_v16 }
 0x41e   :  { %v3654_v52 = vpack.c.bf16 %v2950_v61, %v2949_v50  ;;  %v2902_v27 = vadd.f32 %v7177_v37, %v2845_v28  ;;  %v2241_v33 = vadd.f32 %v2191_v59, %v8676_v17  ;;  %v2193_v35 = vmul.f32 %v6764_v48, %v8677_v18 }
 0x41f   :  { %v2951_v46 = vmax.f32 %v2901_v26, 0.0  ;;  %v2903_v0 = vadd.f32 %v7177_v37, %v2846_v47  ;;  %v3299_v24 = vld [vmem:[#allocation2 + $0x90] sm:$0xff]   ;;  %v2848_v10 = vadd.f32 %v2798_v38, %v2544_v13  ;;  %v2800_v19 = vmul.f32 %v7088_v39, %v2742_v11 }
 0x420   :  { %3300 = vst [vmem:[%s7687_s3 + $0x90] sm:$0xff] %v3299_v24   ;;  %3695 = vst [vmem:[#allocation2 + $0xa0] sm:$0xff] %v3654_v52   ;;  %v2952_v2 = vmax.f32 %v2902_v27, 0.0  ;;  %v2847_v51 = vadd.f32 %v2797_v22, %v2543_v5  ;;  %v1939_v58 = vadd.f32 %v8679_v42, %v8678_v25  ;;  %v2545_v4 = vadd.f32 %v2495_v32, %v2241_v33  ;;  %v2738_v3 = vpop.permute.xlu1 %2737 }
 0x421   :  { %v2497_v48 = vmul.f32 %v7039_v29, %v8680_v14  ;;  %v2546_v6 = vadd.f32 %v2496_v49, %v2242_v63  ;;  %v2799_v9 = vmul.f32 %v7088_v39, %v2738_v3  ;;  %v2953_v30 = vmax.f32 %v2903_v0, 0.0 }
 0x422   :  { %v3659_v60 = vpack.c.bf16 %v2952_v2, %v2951_v46  ;;  %v2904_v23 = vadd.f32 %v7177_v37, %v2847_v51  ;;  %v2243_v36 = vadd.f32 %v2193_v35, %v1939_v58  ;;  %v2905_v44 = vadd.f32 %v7177_v37, %v2848_v10 }
 0x423   :  { %v3303_v8 = vld [vmem:[#allocation2 + $0x98] sm:$0xff]   ;;  %v2850_v53 = vadd.f32 %v2800_v19, %v2546_v6  ;;  %v2849_v29 = vadd.f32 %v2799_v9, %v2545_v4 }
 0x424   :  { %3304 = vst [vmem:[%s7687_s3 + $0x98] sm:$0xff] %v3303_v8   ;;  %3696 = vst [vmem:[#allocation2 + $0xa8] sm:$0xff] %v3659_v60   ;;  %v2954_v43 = vmax.f32 %v2904_v23, 0.0  ;;  %v2746_v21 = vpop.permute.xlu1 %2745  ;;  %v2547_v54 = vadd.f32 %v2497_v48, %v2243_v36  ;;  %v2955_v31 = vmax.f32 %v2905_v44, 0.0 }
 0x425   :  { %v2906_v45 = vadd.f32 %v7177_v37, %v2849_v29  ;;  %v2801_v55 = vmul.f32 %v7088_v39, %v2746_v21  ;;  %v2907_v40 = vadd.f32 %v7177_v37, %v2850_v53 }
 0x426   :  { %v3664_v41 = vpack.c.bf16 %v2954_v43, %v2953_v30 }
 0x427   :  { %v3307_v56 = vld [vmem:[#allocation2 + $0xa0] sm:$0xff]   ;;  %v2956_v7 = vmax.f32 %v2906_v45, 0.0  ;;  %v2851_v15 = vadd.f32 %v2801_v55, %v2547_v54  ;;  %v2957_v47 = vmax.f32 %v2907_v40, 0.0 }
 0x428   :  { %3308 = vst [vmem:[%s7687_s3 + $0xa0] sm:$0xff] %v3307_v56   ;;  %3697 = vst [vmem:[#allocation2 + $0xb0] sm:$0xff] %v3664_v41  }
 0x429   :  { %v3669_v20 = vpack.c.bf16 %v2956_v7, %v2955_v31  ;;  %v2908_v59 = vadd.f32 %v3801_v62, %v2851_v15 }
 0x42b   :  { %v3311_v26 = vld [vmem:[#allocation2 + $0xa8] sm:$0xff]   ;;  %3698 = vst [vmem:[#allocation2 + $0xb8] sm:$0xff] %v3669_v20   ;;  %v2958_v39 = vmax.f32 %v2908_v59, 0.0 }
 0x42c   :  { %3312 = vst [vmem:[%s7687_s3 + $0xa8] sm:$0xff] %v3311_v26  }
 0x42d   :  { %v3674_v37 = vpack.c.bf16 %v2958_v39, %v2957_v47 }
 0x42f   :  { %v3315_v1 = vld [vmem:[#allocation2 + $0xb0] sm:$0xff]   ;;  %3699 = vst [vmem:[#allocation2 + $0xc0] sm:$0xff] %v3674_v37  }
 0x430   :  { %3316 = vst [vmem:[%s7687_s3 + $0xb0] sm:$0xff] %v3315_v1  }
 0x432   :  { %v3319_v50 = vld [vmem:[#allocation2 + $0xb8] sm:$0xff]  }
 0x433   :  { %3320 = vst [vmem:[%s7687_s3 + $0xb8] sm:$0xff] %v3319_v50  }
 0x436   :  { %v3323_v38 = vld [vmem:[#allocation2 + $0xc0] sm:$0xf] }
 0x437   :  { %3324 = vst [vmem:[%s7687_s3 + $0xc0] sm:$0xf] %v3323_v38 }

// kernel: mnist_supcon_forward.4
= control target key start
LH: loop header
LB: loop body
LE: loop exit
PB: predicated region body
PF: predicated region fallthrough
CT: control target
= control target key end

     0   :  { %vm2294_vm0 = vmmov 0   ;;  %s2965_s0 = inlined_call_operand.vmem [shape: bf16[98,1152], index: 0, kind: input, shape index: {}]   ;;  %s2966_s1 = inlined_call_operand.vmem [shape: bf16[1152,128], index: 1, kind: input, shape index: {}]   ;;  %s2967_s2 = inlined_call_operand.vmem [shape: f32[1,128], index: 2, kind: input, shape index: {}]   ;;  %s2968_s3 = inlined_call_operand.vmem [shape: bf16[98,128], index: 3, kind: output, shape index: {}]  }
   0x1   :  { %v2130_v0 = vld [vmem:[%s2966_s1 + $0x78] sm:$0xff]   ;;  %v2132_v2 = vld [vmem:[%s2966_s1 + $0x70] sm:$0xff]   ;;  %v2134_v4 = vld [vmem:[%s2966_s1 + $0x68] sm:$0xff]  }
   0x2   :  { %v2131_v1 = vld [vmem:[%s2966_s1 + $0x38] sm:$0xff]   ;;  %2112 = vmatprep.subr.bf16.mxu1 %v2130_v0  ;;  %1821 = vmatprep.subr.bf16.mxu0 %v2130_v0  ;;  %v2133_v3 = vld [vmem:[%s2966_s1 + $0x30] sm:$0xff]   ;;  %v2135_v5 = vld [vmem:[%s2966_s1 + $0x28] sm:$0xff]  }
   0x3   :  { %2120 = vmatpush3.bf16.msra.mxu1 %v2131_v1  ;;  %1822 = vmatpush3.bf16.msra.mxu0 %v2131_v1  ;;  %v2136_v6 = vld [vmem:[%s2966_s1 + $0x60] sm:$0xff]   ;;  %v2138_v8 = vld [vmem:[%s2966_s1 + $0x58] sm:$0xff]   ;;  %v2140_v10 = vld [vmem:[%s2966_s1 + $0x50] sm:$0xff]  }
   0x4   :  { %2113 = vmatprep.subr.bf16.mxu1 %v2132_v2  ;;  %1823 = vmatprep.subr.bf16.mxu0 %v2132_v2  ;;  %v2137_v7 = vld [vmem:[%s2966_s1 + $0x20] sm:$0xff]   ;;  %v2139_v9 = vld [vmem:[%s2966_s1 + $0x18] sm:$0xff]   ;;  %v2141_v13 = vld [vmem:[%s2966_s1 + $0x10] sm:$0xff]  }
   0x5   :  { %v2148_v11 = vld [vmem:[%s2965_s0 + $0x124] ss:$36 sps:$4 sm:$0xff]   ;;  %v2152_v20 = vld [vmem:[%s2966_s1 + $0xf8] sm:$0xff]   ;;  %v2156_v24 = vld [vmem:[%s2966_s1 + $0xf0] sm:$0xff]  }
   0x6   :  { %v2151_v12 = vld [vmem:[%s2965_s0 + $0x4] ss:$36 sps:$4 sm:$0xff]   ;;  %1054 = vmatprep.mubr.bf16.mxu1 %v2148_v11  ;;  %v2154_v21 = vld [vmem:[%s2966_s1 + $0x178] sm:$0xff]   ;;  %v2158_v25 = vld [vmem:[%s2966_s1 + $0x170] sm:$0xff]  }
   0x7   :  { %2121 = vmatpush3.bf16.msra.mxu1 %v2133_v3  ;;  %1824 = vmatpush3.bf16.msra.mxu0 %v2133_v3  ;;  %v2142_v14 = vld [vmem:[%s2966_s1 + $0x48] sm:$0xff]   ;;  %v2144_v16 = vld [vmem:[%s2966_s1 + $0x40] sm:$0xff]   ;;  %v2153_v22 = vld [vmem:[%s2966_s1 + $0xb8] sm:$0xff]  }
   0x8   :  { %2114 = vmatprep.subr.bf16.mxu1 %v2134_v4  ;;  %1825 = vmatprep.subr.bf16.mxu0 %v2134_v4  ;;  %v2143_v15 = vld [vmem:[%s2966_s1 + $0x8] sm:$0xff]   ;;  %v2145_v17 = vld [vmem:[%s2966_s1] sm:$0xff]   ;;  %v2155_v23 = vld [vmem:[%s2966_s1 + $0x138] sm:$0xff]  }
   0x9   :  { %1022 = vmatprep.mubr.bf16.mxu0 %v2151_v12  ;;  %v2146_v18 = vld [vmem:[%s2965_s0 + $0x120] ss:$36 sps:$4 sm:$0xff]   ;;  %v2160_v26 = vld [vmem:[%s2965_s0 + $0x4c] ss:$36 sps:$4 sm:$0xff]   ;;  %v2174_v39 = vld [vmem:[%s2965_s0 + $0x94] ss:$36 sps:$4 sm:$0xff]  }
   0xa   :  { %v2149_v19 = vld [vmem:[%s2965_s0] ss:$36 sps:$4 sm:$0xff]   ;;  %v2157_v27 = vld [vmem:[%s2966_s1 + $0xb0] sm:$0xff]   ;;  %v2162_v30 = vld [vmem:[%s2966_s1 + $0xe8] sm:$0xff]  }
   0xb   :  { %2122 = vmatpush3.bf16.msra.mxu1 %v2135_v5  ;;  %1826 = vmatpush3.bf16.msra.mxu0 %v2135_v5  ;;  %v2166_v28 = vld [vmem:[%s2965_s0 + $0x16c] ss:$36 sps:$4 sm:$0xff]   ;;  %v2170_v36 = vld [vmem:[%s2966_s1 + $0xe0] sm:$0xff]   ;;  %v2180_v40 = vld [vmem:[%s2965_s0 + $0x1b4] ss:$36 sps:$4 sm:$0xff]  }
   0xc   :  { %2115 = vmatprep.subr.bf16.mxu1 %v2136_v6  ;;  %1827 = vmatprep.subr.bf16.mxu0 %v2136_v6  ;;  %v2159_v29 = vld [vmem:[%s2966_s1 + $0x130] sm:$0xff]   ;;  %v2163_v31 = vld [vmem:[%s2965_s0 + $0x48] ss:$36 sps:$4 sm:$0xff]   ;;  %v2172_v37 = vld [vmem:[%s2966_s1 + $0x160] sm:$0xff]   ;;  %v2293_v6 = vmov 0.0  }
   0xd   :  { %v2165_v32 = vld [vmem:[%s2966_s1 + $0x168] sm:$0xff]   ;;  %v2171_v38 = vld [vmem:[%s2966_s1 + $0xa0] sm:$0xff]   ;;  %v2176_v42 = vld [vmem:[%s2966_s1 + $0xd8] sm:$0xff]  }
   0xe   :  { %v2164_v33 = vld [vmem:[%s2966_s1 + $0xa8] sm:$0xff]   ;;  %v2173_v41 = vld [vmem:[%s2966_s1 + $0x120] sm:$0xff]   ;;  %v2177_v43 = vld [vmem:[%s2965_s0 + $0x90] ss:$36 sps:$4 sm:$0xff]  }
   0xf   :  { %2123 = vmatpush3.bf16.msra.mxu1 %v2137_v7  ;;  %1828 = vmatpush3.bf16.msra.mxu0 %v2137_v7  ;;  %v2169_v34 = vld [vmem:[%s2965_s0 + $0x168] ss:$36 sps:$4 sm:$0xff]   ;;  %v2179_v44 = vld [vmem:[%s2966_s1 + $0x158] sm:$0xff]   ;;  %v2183_v47 = vld [vmem:[%s2965_s0 + $0x1b0] ss:$36 sps:$4 sm:$0xff]  }
  0x10   :  { %2116 = vmatprep.subr.bf16.mxu1 %v2138_v8  ;;  %1829 = vmatprep.subr.bf16.mxu0 %v2138_v8  ;;  %v2168_v35 = vld [vmem:[%s2966_s1 + $0x128] sm:$0xff]   ;;  %v2178_v45 = vld [vmem:[%s2966_s1 + $0x98] sm:$0xff]   ;;  %v2184_v48 = vld [vmem:[%s2966_s1 + $0xd0] sm:$0xff]  }
  0x11   :  { %v2182_v46 = vld [vmem:[%s2966_s1 + $0x118] sm:$0xff]   ;;  %v2186_v49 = vld [vmem:[%s2966_s1 + $0x150] sm:$0xff]   ;;  %v2190_v53 = vld [vmem:[%s2966_s1 + $0xc8] sm:$0xff]  }
  0x12   :  { %v2185_v50 = vld [vmem:[%s2966_s1 + $0x90] sm:$0xff]   ;;  %v2188_v51 = vld [vmem:[%s2965_s0 + $0xdc] ss:$36 sps:$4 sm:$0xff]   ;;  %v2193_v55 = vld [vmem:[%s2966_s1 + $0x148] sm:$0xff]  }
  0x13   :  { %2124 = vmatpush3.bf16.msra.mxu1 %v2139_v9  ;;  %1830 = vmatpush3.bf16.msra.mxu0 %v2139_v9  ;;  %v2187_v52 = vld [vmem:[%s2966_s1 + $0x110] sm:$0xff]   ;;  %v2191_v54 = vld [vmem:[%s2965_s0 + $0xd8] ss:$36 sps:$4 sm:$0xff]   ;;  %v2192_v56 = vld [vmem:[%s2966_s1 + $0x88] sm:$0xff]  }
  0x14   :  { %2117 = vmatprep.subr.bf16.mxu1 %v2140_v10  ;;  %1831 = vmatprep.subr.bf16.mxu0 %v2140_v10  ;;  %v2194_v57 = vld [vmem:[%s2966_s1 + $0x108] sm:$0xff]   ;;  %v2195_v58 = vld [vmem:[%s2966_s1 + $0xc0] sm:$0xff]   ;;  %v2204_v63 = vld [vmem:[%s2965_s0 + $0x14] ss:$36 sps:$4 sm:$0xff]  }
  0x15   :  { %v2197_v59 = vld [vmem:[%s2966_s1 + $0x140] sm:$0xff]   ;;  %v2201_v61 = vld [vmem:[%s2965_s0 + $0xc] ss:$36 sps:$4 sm:$0xff]   ;;  %v2205_v2 = vld [vmem:[%s2966_s1 + $0x1f8] sm:$0xff]  }
  0x16   :  { %v2196_v60 = vld [vmem:[%s2966_s1 + $0x80] sm:$0xff]   ;;  %v2199_v0 = vld [vmem:[%s2965_s0 + $0x8] ss:$36 sps:$4 sm:$0xff]   ;;  %v2202_v1 = vld [vmem:[%s2965_s0 + $0x10] ss:$36 sps:$4 sm:$0xff]  }
  0x17   :  { %2125 = vmatpush3.bf16.msra.mxu1 %v2141_v13  ;;  %1832 = vmatpush3.bf16.msra.mxu0 %v2141_v13  ;;  %v2198_v62 = vld [vmem:[%s2966_s1 + $0x100] sm:$0xff]   ;;  %v2206_v3 = vld [vmem:[%s2966_s1 + $0x1b8] sm:$0xff]   ;;  %v2209_v5 = vld [vmem:[%s2966_s1 + $0x1f0] sm:$0xff]  }
  0x18   :  { %2118 = vmatprep.subr.bf16.mxu1 %v2142_v14  ;;  %1833 = vmatprep.subr.bf16.mxu0 %v2142_v14  ;;  %v2207_v4 = vld [vmem:[%s2965_s0 + $0x54] ss:$36 sps:$4 sm:$0xff]   ;;  %v2212_v8 = vld [vmem:[%s2965_s0 + $0x5c] ss:$36 sps:$4 sm:$0xff]   ;;  %v2216_v11 = vld [vmem:[%s2966_s1 + $0x1e8] sm:$0xff]  }
  0x19   :  { %v2210_v7 = vld [vmem:[%s2966_s1 + $0x238] sm:$0xff]   ;;  %v2214_v9 = vld [vmem:[%s2966_s1 + $0x1b0] sm:$0xff]  }
  0x1a   :  { %v2211_v10 = vld [vmem:[%s2965_s0 + $0x50] ss:$36 sps:$4 sm:$0xff]   ;;  %v2215_v13 = vld [vmem:[%s2965_s0 + $0x58] ss:$36 sps:$4 sm:$0xff]  }
  0x1b   :  { %2126 = vmatpush3.bf16.msra.mxu1 %v2143_v15  ;;  %1834 = vmatpush3.bf16.msra.mxu0 %v2143_v15  ;;  %v2217_v12 = vld [vmem:[%s2966_s1 + $0x230] sm:$0xff]   ;;  %v2218_v14 = vld [vmem:[%s2965_s0 + $0x9c] ss:$36 sps:$4 sm:$0xff]   ;;  %v2220_v15 = vld [vmem:[%s2966_s1 + $0x1a8] sm:$0xff]  }
  0x1c   :  { %2119 = vmatprep.subr.bf16.mxu1 %v2144_v16  ;;  %1835 = vmatprep.subr.bf16.mxu0 %v2144_v16  ;;  %v2222_v16 = vld [vmem:[%s2965_s0 + $0xa4] ss:$36 sps:$4 sm:$0xff]  }
  0x1f   :  { %2127 = vmatpush3.bf16.msra.mxu1 %v2145_v17  ;;  %1836 = vmatpush3.bf16.msra.mxu0 %v2145_v17  ;;  %v2225_v17 = vld [vmem:[%s2966_s1 + $0x1e0] sm:$0xff]  }
  0x20   :  { %1879 = vmatprep.subr.bf16.mxu1 %v2152_v20  ;;  %1937 = vmatprep.subr.bf16.mxu0 %v2154_v21  ;;  %v2221_v20 = vld [vmem:[%s2965_s0 + $0x98] ss:$36 sps:$4 sm:$0xff]   ;;  %v2224_v21 = vld [vmem:[%s2965_s0 + $0xa0] ss:$36 sps:$4 sm:$0xff]  }
  0x22   :  { %1055 = vmatmul.mubr.bf16.vlgmr.msra.gmra.mxu1 %v2146_v18  ;;  %1023 = vmatmul.mubr.bf16.vlgmr.msra.gmra.mxu0 %v2149_v19  ;;  %v2226_v18 = vld [vmem:[%s2966_s1 + $0x228] sm:$0xff]   ;;  %v2227_v19 = vld [vmem:[%s2966_s1 + $0x1a0] sm:$0xff]  }
  0x23   :  { %1880 = vmatpush3.bf16.msra.mxu1 %v2153_v22  ;;  %1938 = vmatpush3.bf16.msra.mxu0 %v2155_v23  ;;  %v2228_v22 = vld [vmem:[%s2965_s0 + $0xe4] ss:$36 sps:$4 sm:$0xff]   ;;  %v2231_v23 = vld [vmem:[%s2965_s0 + $0xec] ss:$36 sps:$4 sm:$0xff]  }
  0x24   :  { %1881 = vmatprep.subr.bf16.mxu1 %v2156_v24  ;;  %1939 = vmatprep.subr.bf16.mxu0 %v2158_v25  ;;  %v2234_v24 = vld [vmem:[%s2966_s1 + $0x1d8] sm:$0xff]   ;;  %v2235_v25 = vld [vmem:[%s2966_s1 + $0x220] sm:$0xff]  }
  0x25   :  { %1030 = vmatprep.mubr.bf16.mxu0 %v2160_v26  ;;  %1062 = vmatprep.mubr.bf16.mxu1 %v2166_v28  ;;  %v2236_v26 = vld [vmem:[%s2966_s1 + $0x198] sm:$0xff]   ;;  %v2233_v28 = vld [vmem:[%s2965_s0 + $0xe8] ss:$36 sps:$4 sm:$0xff]  }
  0x27   :  { %1882 = vmatpush3.bf16.msra.mxu1 %v2157_v27  ;;  %1940 = vmatpush3.bf16.msra.mxu0 %v2159_v29  ;;  %v2230_v27 = vld [vmem:[%s2965_s0 + $0xe0] ss:$36 sps:$4 sm:$0xff]   ;;  %v2237_v29 = vld [vmem:[%s2965_s0 + $0x12c] ss:$36 sps:$4 sm:$0xff]  }
  0x28   :  { %1883 = vmatprep.subr.bf16.mxu1 %v2162_v30  ;;  %1941 = vmatprep.subr.bf16.mxu0 %v2165_v32  ;;  %v2240_v30 = vld [vmem:[%s2965_s0 + $0x134] ss:$36 sps:$4 sm:$0xff]  }
  0x29   :  { %v2244_v32 = vld [vmem:[%s2966_s1 + $0x218] sm:$0xff]  }
  0x2a   :  { %1031 = vmatmul.mubr.bf16.gmra.mxu0 %v2163_v31  ;;  %1063 = vmatmul.mubr.bf16.gmra.mxu1 %v2169_v34  ;;  %v2243_v31 = vld [vmem:[%s2966_s1 + $0x1d0] sm:$0xff]   ;;  %v2252_v34 = vld [vmem:[%s2966_s1 + $0x1c8] sm:$0xff]  }
  0x2b   :  { %1884 = vmatpush3.bf16.msra.mxu1 %v2164_v33  ;;  %1942 = vmatpush3.bf16.msra.mxu0 %v2168_v35  ;;  %v2245_v33 = vld [vmem:[%s2966_s1 + $0x190] sm:$0xff]  }
  0x2c   :  { %1885 = vmatprep.subr.bf16.mxu1 %v2170_v36  ;;  %1943 = vmatprep.subr.bf16.mxu0 %v2172_v37  ;;  %v2253_v35 = vld [vmem:[%s2966_s1 + $0x210] sm:$0xff]   ;;  %v2254_v36 = vld [vmem:[%s2966_s1 + $0x188] sm:$0xff]  }
  0x2d   :  { %1038 = vmatprep.mubr.bf16.mxu0 %v2174_v39  ;;  %1070 = vmatprep.mubr.bf16.mxu1 %v2180_v40  ;;  %v2239_v37 = vld [vmem:[%s2965_s0 + $0x128] ss:$36 sps:$4 sm:$0xff]   ;;  %v2246_v39 = vld [vmem:[%s2965_s0 + $0x174] ss:$36 sps:$4 sm:$0xff]   ;;  %v2249_v40 = vld [vmem:[%s2965_s0 + $0x17c] ss:$36 sps:$4 sm:$0xff]  }
  0x2f   :  { %1886 = vmatpush3.bf16.msra.mxu1 %v2171_v38  ;;  %1944 = vmatpush3.bf16.msra.mxu0 %v2173_v41  ;;  %v2242_v38 = vld [vmem:[%s2965_s0 + $0x130] ss:$36 sps:$4 sm:$0xff]   ;;  %v2261_v41 = vld [vmem:[%s2966_s1 + $0x1c0] sm:$0xff]  }
  0x30   :  { %1887 = vmatprep.subr.bf16.mxu1 %v2176_v42  ;;  %1945 = vmatprep.subr.bf16.mxu0 %v2179_v44  ;;  %v2262_v42 = vld [vmem:[%s2966_s1 + $0x208] sm:$0xff]   ;;  %v2264_v44 = vld [vmem:[%s2966_s1 + $0x200] sm:$0xff]  }
  0x32   :  { %1039 = vmatmul.mubr.bf16.gmra.mxu0 %v2177_v43  ;;  %1071 = vmatmul.mubr.bf16.gmra.mxu1 %v2183_v47  ;;  %v2263_v43 = vld [vmem:[%s2966_s1 + $0x180] sm:$0xff]  }
  0x33   :  { %1888 = vmatpush3.bf16.msra.mxu1 %v2178_v45  ;;  %1946 = vmatpush3.bf16.msra.mxu0 %v2182_v46  ;;  %v2248_v45 = vld [vmem:[%s2965_s0 + $0x170] ss:$36 sps:$4 sm:$0xff]   ;;  %v2251_v46 = vld [vmem:[%s2965_s0 + $0x178] ss:$36 sps:$4 sm:$0xff]  }
  0x34   :  { %1889 = vmatprep.subr.bf16.mxu1 %v2184_v48  ;;  %1947 = vmatprep.subr.bf16.mxu0 %v2186_v49  ;;  %v2255_v47 = vld [vmem:[%s2965_s0 + $0x1bc] ss:$36 sps:$4 sm:$0xff]   ;;  %v2258_v48 = vld [vmem:[%s2965_s0 + $0x1c4] ss:$36 sps:$4 sm:$0xff]  }
  0x35   :  { %1046 = vmatprep.mubr.bf16.mxu0 %v2188_v51  ;;  %1111 = vmatprep.mubr.bf16.mxu1 %v2201_v61  ;;  %v2257_v49 = vld [vmem:[%s2965_s0 + $0x1b8] ss:$36 sps:$4 sm:$0xff]   ;;  %v2279_v61 = vld [vmem:[%s2965_s0 + $0xf0] ss:$36 sps:$4 sm:$0xff]  }
  0x36   :  { %v2267_v51 = vld [vmem:[%s2965_s0 + $0x1c] ss:$36 sps:$4 sm:$0xff]  }
  0x37   :  { %1890 = vmatpush3.bf16.msra.mxu1 %v2185_v50  ;;  %1948 = vmatpush3.bf16.msra.mxu0 %v2187_v52  ;;  %v2260_v50 = vld [vmem:[%s2965_s0 + $0x1c0] ss:$36 sps:$4 sm:$0xff]   ;;  %v2265_v52 = vld [vmem:[%s2965_s0 + $0x18] ss:$36 sps:$4 sm:$0xff]  }
  0x38   :  { %1891 = vmatprep.subr.bf16.mxu1 %v2190_v53  ;;  %1949 = vmatprep.subr.bf16.mxu0 %v2193_v55  ;;  %v2268_v53 = vld [vmem:[%s2965_s0 + $0x20] ss:$36 sps:$4 sm:$0xff]  }
  0x39   :  { %v2271_v55 = vld [vmem:[%s2965_s0 + $0x60] ss:$36 sps:$4 sm:$0xff]  }
  0x3a   :  { %1047 = vmatmul.mubr.bf16.gmra.mxu0 %v2191_v54  ;;  %v2269_v54 = vld [vmem:[%s2965_s0 + $0x64] ss:$36 sps:$4 sm:$0xff]  }
  0x3b   :  { %1892 = vmatpush3.bf16.msra.mxu1 %v2192_v56  ;;  %1950 = vmatpush3.bf16.msra.mxu0 %v2194_v57  ;;  %v2272_v56 = vld [vmem:[%s2965_s0 + $0x68] ss:$36 sps:$4 sm:$0xff]  }
  0x3c   :  { %1893 = vmatprep.subr.bf16.mxu1 %v2195_v58  ;;  %1951 = vmatprep.subr.bf16.mxu0 %v2197_v59  ;;  %v2273_v57 = vld [vmem:[%s2965_s0 + $0xac] ss:$36 sps:$4 sm:$0xff]  }
  0x3d   :  { %1200 = vmatprep.mubr.bf16.mxu0 %v2204_v63  ;;  %v2275_v58 = vld [vmem:[%s2965_s0 + $0xa8] ss:$36 sps:$4 sm:$0xff]   ;;  %v2276_v59 = vld [vmem:[%s2965_s0 + $0xb0] ss:$36 sps:$4 sm:$0xff]   ;;  %v2281_v63 = vld [vmem:[%s2965_s0 + $0x13c] ss:$36 sps:$4 sm:$0xff]  }
  0x3f   :  { %1894 = vmatpush3.bf16.msra.mxu1 %v2196_v60  ;;  %1952 = vmatpush3.bf16.msra.mxu0 %v2198_v62  ;;  %v2277_v60 = vld [vmem:[%s2965_s0 + $0xf4] ss:$36 sps:$4 sm:$0xff]  }
  0x40   :  { %1995 = vmatprep.subr.bf16.mxu1 %v2205_v2  ;;  %2068 = vmatprep.subr.bf16.mxu0 %v2293_v6  ;;  %v2280_v62 = vld [vmem:[%s2965_s0 + $0xf8] ss:$36 sps:$4 sm:$0xff]   ;;  %v2285_v2 = vld [vmem:[%s2965_s0 + $0x184] ss:$36 sps:$4 sm:$0xff]  }
  0x42   :  { %1112 = vmatmul.mubr.bf16.vlgmr.msra.gmra.mxu1 %v2199_v0  ;;  %1201 = vmatmul.mubr.bf16.vlgmr.msra.gmra.mxu0 %v2202_v1  ;;  %v2283_v0 = vld [vmem:[%s2965_s0 + $0x138] ss:$36 sps:$4 sm:$0xff]   ;;  %v2284_v1 = vld [vmem:[%s2965_s0 + $0x140] ss:$36 sps:$4 sm:$0xff]  }
  0x43   :  { %1996 = vmatpush3.bf16.msra.mxu1 %v2206_v3  ;;  %1119 = vmatprep.mubr.bf16.mxu1 %v2207_v4  ;;  %v2287_v3 = vld [vmem:[%s2965_s0 + $0x180] ss:$36 sps:$4 sm:$0xff]   ;;  %v2288_v4 = vld [vmem:[%s2965_s0 + $0x188] ss:$36 sps:$4 sm:$0xff]  }
  0x44   :  { %1997 = vmatprep.subr.bf16.mxu1 %v2209_v5  ;;  %2069 = vmatpush3.bf16.msra.mxu0 %v2210_v7  ;;  %v2289_v5 = vld [vmem:[%s2965_s0 + $0x1cc] ss:$36 sps:$4 sm:$0xff]  }
  0x45   :  { %1208 = vmatprep.mubr.bf16.mxu0 %v2212_v8  ;;  %2070 = vmatprep.subr.bf16.mxu0 %v2293_v6  ;;  %v2291_v7 = vld [vmem:[%s2965_s0 + $0x1c8] ss:$36 sps:$4 sm:$0xff]   ;;  %v2292_v8 = vld [vmem:[%s2965_s0 + $0x1d0] ss:$36 sps:$4 sm:$0xff]  }
  0x47   :  { %1998 = vmatpush3.bf16.msra.mxu1 %v2214_v9 }
  0x48   :  { %1999 = vmatprep.subr.bf16.mxu1 %v2216_v11  ;;  %2071 = vmatpush3.bf16.msra.mxu0 %v2217_v12 }
  0x49   :  { %2072 = vmatprep.subr.bf16.mxu0 %v2293_v6 }
  0x4a   :  { %1120 = vmatmul.mubr.bf16.gmra.mxu1 %v2211_v10  ;;  %1209 = vmatmul.mubr.bf16.gmra.mxu0 %v2215_v13 }
  0x4b   :  { %1127 = vmatprep.mubr.bf16.mxu1 %v2218_v14  ;;  %2000 = vmatpush3.bf16.msra.mxu1 %v2220_v15 }
  0x4c   :  { %1216 = vmatprep.mubr.bf16.mxu0 %v2222_v16  ;;  %2001 = vmatprep.subr.bf16.mxu1 %v2225_v17 }
  0x4d   :  { %2073 = vmatpush3.bf16.msra.mxu0 %v2226_v18 }
  0x4e   :  { %2074 = vmatprep.subr.bf16.mxu0 %v2293_v6 }
  0x4f   :  { %2002 = vmatpush3.bf16.msra.mxu1 %v2227_v19 }
  0x50   :  { %2003 = vmatprep.subr.bf16.mxu1 %v2234_v24 }
  0x51   :  { %2075 = vmatpush3.bf16.msra.mxu0 %v2235_v25 }
  0x52   :  { %1128 = vmatmul.mubr.bf16.gmra.mxu1 %v2221_v20  ;;  %1217 = vmatmul.mubr.bf16.gmra.mxu0 %v2224_v21 }
  0x53   :  { %1135 = vmatprep.mubr.bf16.mxu1 %v2228_v22  ;;  %1224 = vmatprep.mubr.bf16.mxu0 %v2231_v23 }
  0x54   :  { %2004 = vmatpush3.bf16.msra.mxu1 %v2236_v26  ;;  %2076 = vmatprep.subr.bf16.mxu0 %v2293_v6 }
  0x55   :  { %2005 = vmatprep.subr.bf16.mxu1 %v2243_v31  ;;  %2077 = vmatpush3.bf16.msra.mxu0 %v2244_v32 }
  0x56   :  { %2078 = vmatprep.subr.bf16.mxu0 %v2293_v6 }
  0x58   :  { %2006 = vmatpush3.bf16.msra.mxu1 %v2245_v33 }
  0x59   :  { %2007 = vmatprep.subr.bf16.mxu1 %v2252_v34  ;;  %2079 = vmatpush3.bf16.msra.mxu0 %v2253_v35 }
  0x5a   :  { %1136 = vmatmul.mubr.bf16.gmra.mxu1 %v2230_v27  ;;  %1225 = vmatmul.mubr.bf16.gmra.mxu0 %v2233_v28 }
  0x5b   :  { %1143 = vmatprep.mubr.bf16.mxu1 %v2237_v29  ;;  %1232 = vmatprep.mubr.bf16.mxu0 %v2240_v30 }
  0x5c   :  { %2008 = vmatpush3.bf16.msra.mxu1 %v2254_v36  ;;  %2080 = vmatprep.subr.bf16.mxu0 %v2293_v6 }
  0x5d   :  { %2009 = vmatprep.subr.bf16.mxu1 %v2261_v41  ;;  %2081 = vmatpush3.bf16.msra.mxu0 %v2262_v42 }
  0x5e   :  { %2082 = vmatprep.subr.bf16.mxu0 %v2293_v6 }
  0x60   :  { %2010 = vmatpush3.bf16.msra.mxu1 %v2263_v43 }
  0x61   :  { %2083 = vmatpush3.bf16.msra.mxu0 %v2264_v44 }
  0x62   :  { %1144 = vmatmul.mubr.bf16.gmra.mxu1 %v2239_v37  ;;  %1233 = vmatmul.mubr.bf16.gmra.mxu0 %v2242_v38 }
  0x63   :  { %1151 = vmatprep.mubr.bf16.mxu1 %v2246_v39  ;;  %1240 = vmatprep.mubr.bf16.mxu0 %v2249_v40 }
  0x6a   :  { %1152 = vmatmul.mubr.bf16.gmra.mxu1 %v2248_v45  ;;  %1241 = vmatmul.mubr.bf16.gmra.mxu0 %v2251_v46 }
  0x6b   :  { %1159 = vmatprep.mubr.bf16.mxu1 %v2255_v47  ;;  %1248 = vmatprep.mubr.bf16.mxu0 %v2258_v48 }
  0x72   :  { %1160 = vmatmul.mubr.bf16.gmra.mxu1 %v2257_v49  ;;  %1249 = vmatmul.mubr.bf16.gmra.mxu0 %v2260_v50 }
  0x73   :  { %1289 = vmatprep.mubr.bf16.mxu1 %v2267_v51  ;;  %2084 = vmatprep.mubr.msk.bf16.mxu0 %vm2294_vm0, %v2293_v6 }
  0x7a   :  { %1290 = vmatmul.mubr.bf16.vlgmr.msra.gmra.mxu1 %v2265_v52  ;;  %2085 = vmatmul.mubr.bf16.vlgmr.msra.gmra.mxu0 %v2268_v53 }
  0x7b   :  { %1297 = vmatprep.mubr.bf16.mxu1 %v2269_v54  ;;  %2088 = vmatprep.mubr.msk.bf16.mxu0 %vm2294_vm0, %v2293_v6 }
  0x82   :  { %1298 = vmatmul.mubr.bf16.gmra.mxu1 %v2271_v55  ;;  %2089 = vmatmul.mubr.bf16.gmra.mxu0 %v2272_v56 }
  0x83   :  { %1305 = vmatprep.mubr.bf16.mxu1 %v2273_v57  ;;  %2092 = vmatprep.mubr.msk.bf16.mxu0 %vm2294_vm0, %v2293_v6 }
  0x8a   :  { %1306 = vmatmul.mubr.bf16.gmra.mxu1 %v2275_v58  ;;  %2093 = vmatmul.mubr.bf16.gmra.mxu0 %v2276_v59 }
  0x8b   :  { %1313 = vmatprep.mubr.bf16.mxu1 %v2277_v60  ;;  %2096 = vmatprep.mubr.msk.bf16.mxu0 %vm2294_vm0, %v2293_v6 }
  0x92   :  { %1314 = vmatmul.mubr.bf16.gmra.mxu1 %v2279_v61  ;;  %2097 = vmatmul.mubr.bf16.gmra.mxu0 %v2280_v62 }
  0x93   :  { %1321 = vmatprep.mubr.bf16.mxu1 %v2281_v63  ;;  %2100 = vmatprep.mubr.msk.bf16.mxu0 %vm2294_vm0, %v2293_v6 }
  0x9a   :  { %1322 = vmatmul.mubr.bf16.gmra.mxu1 %v2283_v0  ;;  %2101 = vmatmul.mubr.bf16.gmra.mxu0 %v2284_v1 }
  0x9b   :  { %1329 = vmatprep.mubr.bf16.mxu1 %v2285_v2  ;;  %2104 = vmatprep.mubr.msk.bf16.mxu0 %vm2294_vm0, %v2293_v6 }
  0xa2   :  { %1330 = vmatmul.mubr.bf16.gmra.mxu1 %v2287_v3  ;;  %2105 = vmatmul.mubr.bf16.gmra.mxu0 %v2288_v4 }
  0xa3   :  { %1337 = vmatprep.mubr.bf16.mxu1 %v2289_v5  ;;  %2108 = vmatprep.mubr.msk.bf16.mxu0 %vm2294_vm0, %v2293_v6 }
  0xaa   :  { %1338 = vmatmul.mubr.bf16.gmra.mxu1 %v2291_v7  ;;  %2109 = vmatmul.mubr.bf16.gmra.mxu0 %v2292_v8 }
  0xe2   :  { %v1861_v9 = vpop.f32.mrf.mxu1  ;;  %v1837_v10 = vpop.f32.mrf.mxu0 }
  0xe4   :  { %v1862_v11 = vpop.f32.mrf.mxu1  ;;  %v1838_v12 = vpop.f32.mrf.mxu0 }
  0xe5   :  { %v2742_v13 = vadd.f32 %v1862_v11, %v1861_v9  ;;  %v2744_v14 = vadd.f32 %v1838_v12, %v1837_v10 }
  0xe6   :  { %v1864_v15 = vpop.f32.mrf.mxu1  ;;  %v1840_v6 = vpop.f32.mrf.mxu0 }
  0xe8   :  { %v1865_v16 = vpop.f32.mrf.mxu1  ;;  %v1841_v17 = vpop.f32.mrf.mxu0 }
  0xe9   :  { %v2746_v18 = vadd.f32 %v1865_v16, %v1864_v15  ;;  %v2748_v19 = vadd.f32 %v1841_v17, %v1840_v6 }
  0xea   :  { %v1843_v20 = vpop.f32.mrf.mxu0  ;;  %v1867_v21 = vpop.f32.mrf.mxu1 }
  0xec   :  { %v1844_v22 = vpop.f32.mrf.mxu0  ;;  %v1868_v23 = vpop.f32.mrf.mxu1 }
  0xed   :  { %v2750_v24 = vadd.f32 %v1844_v22, %v1843_v20  ;;  %v2752_v25 = vadd.f32 %v1868_v23, %v1867_v21 }
  0xee   :  { %v1846_v26 = vpop.f32.mrf.mxu0  ;;  %v1870_v27 = vpop.f32.mrf.mxu1 }
  0xef   :  { %2969 = vst [vmem:[#allocation3_spill] sm:$0xff] %v2752_v25 }
  0xf0   :  { %v1847_v28 = vpop.f32.mrf.mxu0  ;;  %v1871_v29 = vpop.f32.mrf.mxu1 }
  0xf1   :  { %v2754_v30 = vadd.f32 %v1847_v28, %v1846_v26  ;;  %v2756_v31 = vadd.f32 %v1871_v29, %v1870_v27 }
  0xf2   :  { %v1849_v32 = vpop.f32.mrf.mxu0  ;;  %v1873_v33 = vpop.f32.mrf.mxu1 }
  0xf3   :  { %2970 = vst [vmem:[#allocation4_spill] sm:$0xff] %v2756_v31 }
  0xf4   :  { %v1850_v34 = vpop.f32.mrf.mxu0  ;;  %v1874_v35 = vpop.f32.mrf.mxu1 }
  0xf5   :  { %v2758_v36 = vadd.f32 %v1850_v34, %v1849_v32  ;;  %v2760_v37 = vadd.f32 %v1874_v35, %v1873_v33 }
  0xf6   :  { %v1852_v38 = vpop.f32.mrf.mxu0  ;;  %v1876_v39 = vpop.f32.mrf.mxu1 }
  0xf7   :  { %2971 = vst [vmem:[#allocation5_spill] sm:$0xff] %v2760_v37 }
  0xf8   :  { %v1853_v40 = vpop.f32.mrf.mxu0  ;;  %v1877_v41 = vpop.f32.mrf.mxu1 }
  0xf9   :  { %v2762_v42 = vadd.f32 %v1853_v40, %v1852_v38  ;;  %v2764_v43 = vadd.f32 %v1877_v41, %v1876_v39 }
  0xfa   :  { %v1855_v44 = vpop.f32.mrf.mxu0 }
  0xfb   :  { %2972 = vst [vmem:[#allocation6_spill] sm:$0xff] %v2764_v43 }
  0xfc   :  { %v1856_v45 = vpop.f32.mrf.mxu0 }
  0xfd   :  { %v2766_v46 = vadd.f32 %v1856_v45, %v1855_v44 }
  0xfe   :  { %v1858_v47 = vpop.f32.mrf.mxu0 }
 0x100   :  { %v1859_v48 = vpop.f32.mrf.mxu0 }
 0x101   :  { %v2768_v49 = vadd.f32 %v1859_v48, %v1858_v47 }
 0x102   :  { %v1895_v50 = vpop.f32.mrf.mxu1  ;;  %v1953_v51 = vpop.f32.mrf.mxu0 }
 0x104   :  { %v1896_v52 = vpop.f32.mrf.mxu1  ;;  %v1954_v53 = vpop.f32.mrf.mxu0 }
 0x105   :  { %v1897_v31 = vadd.f32 %v1896_v52, %v1895_v50 }
 0x106   :  { %v1898_v54 = vpop.f32.mrf.mxu1  ;;  %v2770_v55 = vpop.f32.mrf.mxu0 }
 0x108   :  { %v1899_v56 = vpop.f32.mrf.mxu1  ;;  %v2772_v57 = vpop.f32.mrf.mxu0 }
 0x10a   :  { %v1901_v58 = vpop.f32.mrf.mxu1  ;;  %v2774_v59 = vpop.f32.mrf.mxu0 }
 0x10c   :  { %v1902_v60 = vpop.f32.mrf.mxu1  ;;  %v2776_v61 = vpop.f32.mrf.mxu0 }
 0x10e   :  { %v2778_v62 = vpop.f32.mrf.mxu1  ;;  %v2780_v63 = vpop.f32.mrf.mxu0 }
 0x110   :  { %v1905_v0 = vpop.f32.mrf.mxu1  ;;  %v2782_v1 = vpop.f32.mrf.mxu0 }
 0x112   :  { %v2784_v2 = vpop.f32.mrf.mxu1  ;;  %v2786_v3 = vpop.f32.mrf.mxu0 }
 0x114   :  { %v2788_v4 = vpop.f32.mrf.mxu1  ;;  %v2790_v5 = vpop.f32.mrf.mxu0 }
 0x116   :  { %v2792_v7 = vpop.f32.mrf.mxu1  ;;  %v2794_v8 = vpop.f32.mrf.mxu0 }
 0x118   :  { %v2796_v9 = vpop.f32.mrf.mxu1  ;;  %v2798_v10 = vpop.f32.mrf.mxu0 }
 0x11a   :  { %v2800_v11 = vpop.f32.mrf.mxu1  ;;  %v2802_v12 = vpop.f32.mrf.mxu0 }
 0x11c   :  { %v2804_v15 = vpop.f32.mrf.mxu1  ;;  %v2806_v6 = vpop.f32.mrf.mxu0 }
 0x11e   :  { %v2808_v16 = vpop.f32.mrf.mxu1  ;;  %v2810_v17 = vpop.f32.mrf.mxu0 }
 0x120   :  { %v2812_v20 = vpop.f32.mrf.mxu1  ;;  %v2814_v21 = vpop.f32.mrf.mxu0 }
 0x122   :  { %v2816_v22 = vpop.f32.mrf.mxu1  ;;  %v2818_v23 = vpop.f32.mrf.mxu0 }
 0x124   :  { %v2820_v26 = vpop.f32.mrf.mxu1  ;;  %v2822_v27 = vpop.f32.mrf.mxu0 }
 0x126   :  { %v2824_v28 = vpop.f32.mrf.mxu1  ;;  %v2826_v29 = vpop.f32.mrf.mxu0 }
 0x127   :  { %2973 = vst [vmem:[#allocation7_spill] sm:$0xff] %v2826_v29 }
 0x128   :  { %v2828_v32 = vpop.f32.mrf.mxu1  ;;  %v2830_v33 = vpop.f32.mrf.mxu0 }
 0x129   :  { %2974 = vst [vmem:[#allocation8_spill] sm:$0xff] %v2830_v33 }
 0x12a   :  { %v2832_v34 = vpop.f32.mrf.mxu1  ;;  %v2834_v35 = vpop.f32.mrf.mxu0 }
 0x12b   :  { %2975 = vst [vmem:[#allocation9_spill] sm:$0xff] %v2832_v34  ;;  %2976 = vst [vmem:[#allocation10_spill] sm:$0xff] %v2834_v35 }
 0x12c   :  { %v2836_v38 = vpop.f32.mrf.mxu1  ;;  %v2838_v39 = vpop.f32.mrf.mxu0 }
 0x12d   :  { %2977 = vst [vmem:[#allocation11_spill] sm:$0xff] %v2836_v38  ;;  %2978 = vst [vmem:[#allocation12_spill] sm:$0xff] %v2838_v39  ;;  %v2859_v39 = vld [vmem:[%s2967_s2] ss:$0 sm:$0xff] }
 0x12e   :  { %v2840_v40 = vpop.f32.mrf.mxu1  ;;  %v2842_v41 = vpop.f32.mrf.mxu0 }
 0x12f   :  { %2979 = vst [vmem:[#allocation13_spill] sm:$0xff] %v2840_v40  ;;  %2980 = vst [vmem:[#allocation14_spill] sm:$0xff] %v2842_v41  ;;  %v1028_v40 = vadd.f32 %v2748_v19, %v2859_v39 }
 0x130   :  { %v2844_v44 = vpop.f32.mrf.mxu1  ;;  %v2846_v45 = vpop.f32.mrf.mxu0 }
 0x131   :  { %2981 = vst [vmem:[#allocation15_spill] sm:$0xff] %v2844_v44  ;;  %2982 = vst [vmem:[#allocation16_spill] sm:$0xff] %v2846_v45  ;;  %v1025_v45 = vadd.f32 %v2744_v14, %v2859_v39  ;;  %v1955_v44 = vadd.f32 %v1954_v53, %v1953_v51  ;;  %v1906_v53 = vadd.f32 %v1905_v0, %v2778_v62 }
 0x132   :  { %v2848_v47 = vpop.f32.mrf.mxu1  ;;  %v2850_v48 = vpop.f32.mrf.mxu0  ;;  %v1909_v62 = vadd.f32 %v2788_v4, %v2784_v2  ;;  %v1967_v4 = vadd.f32 %v2790_v5, %v2786_v3  ;;  %v1970_v3 = vadd.f32 %v2798_v10, %v2794_v8  ;;  %v1052_v10 = vadd.f32 %v2768_v49, %v2859_v39 }
 0x133   :  { %2983 = vst [vmem:[#allocation17_spill] sm:$0xff] %v2848_v47  ;;  %2984 = vst [vmem:[#allocation18_spill] sm:$0xff] %v2850_v48  ;;  %v1976_v49 = vadd.f32 %v2814_v21, %v2810_v17  ;;  %v1060_v21 = vadd.f32 %v2746_v18, %v2859_v39  ;;  %v2992_v18 = vld [vmem:[#allocation7_spill] sm:$0xff] }
 0x134   :  { %v2852_v43 = vpop.f32.mrf.mxu1  ;;  %v2854_v37 = vpop.f32.mrf.mxu0 }
 0x135   :  { %2985 = vst [vmem:[#allocation19_spill] sm:$0xff] %v2852_v43  ;;  %2986 = vst [vmem:[#allocation20_spill] sm:$0xff] %v2854_v37  ;;  %v1114_v43 = vadd.f32 %v1897_v31, %v1025_v45  ;;  %v1900_v37 = vadd.f32 %v1899_v56, %v1898_v54  ;;  %v1958_v31 = vadd.f32 %v2772_v57, %v2770_v55 }
 0x136   :  { %v2861_v35 = vpop.f32.mrf.mxu1  ;;  %v2863_v41 = vpop.f32.mrf.mxu0 }
 0x137   :  { %2987 = vst [vmem:[#allocation21_spill] sm:$0xff] %v2861_v35  ;;  %2988 = vst [vmem:[#allocation22_spill] sm:$0xff] %v2863_v41  ;;  %v1203_v35 = vadd.f32 %v1955_v44, %v1114_v43  ;;  %v1117_v29 = vadd.f32 %v1900_v37, %v1028_v40  ;;  %v1903_v41 = vadd.f32 %v1902_v60, %v1901_v58 }
 0x138   :  { %v2867_v47 = vpop.f32.mrf.mxu1  ;;  %v2869_v48 = vpop.f32.mrf.mxu0  ;;  %v1961_v37 = vadd.f32 %v2776_v61, %v2774_v59  ;;  %v1964_v59 = vadd.f32 %v2782_v1, %v2780_v63  ;;  %v1044_v1 = vadd.f32 %v2762_v42, %v2859_v39  ;;  %v1049_v42 = vadd.f32 %v2766_v46, %v2859_v39 }
 0x139   :  { %2989 = vst [vmem:[#allocation23_spill] sm:$0xff] %v2867_v47  ;;  %v1033_v47 = vadd.f32 %v2750_v24, %v2859_v39  ;;  %v1206_v19 = vadd.f32 %v1958_v31, %v1117_v29 }
 0x13a   :  { %v2011_v50 = vpop.f32.mrf.mxu1  ;;  %v1380_v52 = vpop.f32.mrf.mxu0 }
 0x13b   :  { %v1122_v45 = vadd.f32 %v1903_v41, %v1033_v47 }
 0x13c   :  { %v2012_v25 = vpop.f32.mrf.mxu1  ;;  %v2086_v33 = vpop.f32.mrf.mxu0 }
 0x13d   :  { %v2013_v38 = vadd.f32 %v2012_v25, %v2011_v50  ;;  %v1036_v25 = vadd.f32 %v2754_v30, %v2859_v39  ;;  %v1041_v30 = vadd.f32 %v2758_v36, %v2859_v39  ;;  %v1912_v50 = vadd.f32 %v2796_v9, %v2792_v7 }
 0x13e   :  { %v2014_v34 = vpop.f32.mrf.mxu1  ;;  %v1383_v14 = vpop.f32.mrf.mxu0  ;;  %v1915_v9 = vadd.f32 %v2804_v15, %v2800_v11  ;;  %v1973_v15 = vadd.f32 %v2806_v6, %v2802_v12  ;;  %v1921_v12 = vadd.f32 %v2820_v26, %v2816_v22  ;;  %v1979_v26 = vadd.f32 %v2822_v27, %v2818_v23  ;;  %v2990_v23 = vld [vmem:[#allocation9_spill] sm:$0xff]  ;;  %v2991_v27 = vld [vmem:[#allocation11_spill] sm:$0xff] }
 0x13f   :  { %v1292_v51 = vadd.f32 %v2013_v38, %v1203_v35  ;;  %v1125_v40 = vadd.f32 %v1906_v53, %v1036_v25  ;;  %v1211_v35 = vadd.f32 %v1961_v37, %v1122_v45  ;;  %v1130_v2 = vadd.f32 %v1909_v62, %v1041_v30 }
 0x140   :  { %v2015_v54 = vpop.f32.mrf.mxu1  ;;  %v2087_v56 = vpop.f32.mrf.mxu0  ;;  %v1138_v11 = vadd.f32 %v1915_v9, %v1049_v42  ;;  %v2993_v9 = vld [vmem:[#allocation8_spill] sm:$0xff] }
 0x141   :  { %v2016_v43 = vadd.f32 %v2015_v54, %v2014_v34  ;;  %v1381_v24 = vadd.f32 %v1380_v52, %v1292_v51  ;;  %v1214_v47 = vadd.f32 %v1964_v59, %v1125_v40  ;;  %v1133_v56 = vadd.f32 %v1912_v50, %v1044_v1 }
 0x142   :  { %v2017_v58 = vpop.f32.mrf.mxu1  ;;  %v1388_v60 = vpop.f32.mrf.mxu0  ;;  %v1219_v7 = vadd.f32 %v1967_v4, %v1130_v2  ;;  %v1918_v40 = vadd.f32 %v2812_v20, %v2808_v16  ;;  %v1924_v2 = vadd.f32 %v2828_v32, %v2824_v28 }
 0x143   :  { %v1295_v33 = vadd.f32 %v2016_v43, %v1206_v19  ;;  %v1435_v38 = vmax.f32 %v1381_v24, 0.0 }
 0x144   :  { %v2018_v55 = vpop.f32.mrf.mxu1  ;;  %v2090_v57 = vpop.f32.mrf.mxu0 }
 0x145   :  { %v1384_v0 = vadd.f32 %v1383_v14, %v1295_v33  ;;  %v2019_v29 = vadd.f32 %v2018_v55, %v2017_v58  ;;  %v1222_v33 = vadd.f32 %v1970_v3, %v1133_v56 }
 0x146   :  { %v2020_v61 = vpop.f32.mrf.mxu1  ;;  %v1391_v34 = vpop.f32.mrf.mxu0 }
 0x147   :  { %v1436_v41 = vmax.f32 %v1384_v0, 0.0  ;;  %v1300_v44 = vadd.f32 %v2019_v29, %v1211_v35  ;;  %v1141_v29 = vadd.f32 %v1918_v40, %v1052_v10  ;;  %v2996_v40 = vld [vmem:[#allocation15_spill] sm:$0xff] }
 0x148   :  { %v2021_v52 = vpop.f32.mrf.mxu1  ;;  %v2091_v31 = vpop.f32.mrf.mxu0 }
 0x149   :  { %v1783_v14 = vpack.c.bf16 %v1436_v41, %v1435_v38  ;;  %v2022_v63 = vadd.f32 %v2021_v52, %v2020_v61  ;;  %v1389_v53 = vadd.f32 %v1388_v60, %v1300_v44  ;;  %v1057_v44 = vadd.f32 %v2742_v13, %v2859_v39 }
 0x14a   :  { %v2023_v51 = vpop.f32.mrf.mxu1  ;;  %v1396_v36 = vpop.f32.mrf.mxu0  ;;  %v1230_v31 = vadd.f32 %v1976_v49, %v1141_v29 }
 0x14b   :  { %1784 = vst [vmem:[#allocation2] sm:$0xff] %v1783_v14   ;;  %v1303_v54 = vadd.f32 %v2022_v63, %v1214_v47  ;;  %v1437_v58 = vmax.f32 %v1389_v53, 0.0  ;;  %v1146_v22 = vadd.f32 %v1921_v12, %v1057_v44 }
 0x14c   :  { %v2024_v19 = vpop.f32.mrf.mxu1  ;;  %v2094_v45 = vpop.f32.mrf.mxu0 }
 0x14d   :  { %v1392_v37 = vadd.f32 %v1391_v34, %v1303_v54  ;;  %v2025_v43 = vadd.f32 %v2024_v19, %v2023_v51  ;;  %v1227_v34 = vadd.f32 %v1973_v15, %v1138_v11  ;;  %v1235_v56 = vadd.f32 %v1979_v26, %v1146_v22  ;;  %v3004_v22 = vld [vmem:[#allocation5_spill] sm:$0xff] }
 0x14e   :  { %v2026_v5 = vpop.f32.mrf.mxu1  ;;  %v1399_v25 = vpop.f32.mrf.mxu0  ;;  %v1927_v19 = vadd.f32 %v2991_v27, %v2990_v23  ;;  %v1073_v26 = vadd.f32 %v3004_v22, %v2859_v39 }
 0x14f   :  { %v1438_v60 = vmax.f32 %v1392_v37, 0.0  ;;  %v1308_v24 = vadd.f32 %v2025_v43, %v1219_v7  ;;  %v1982_v37 = vadd.f32 %v2993_v9, %v2992_v18  ;;  %v3009_v9 = vld [vmem:[#allocation6_spill] sm:$0xff] }
 0x150   :  { %v2027_v55 = vpop.f32.mrf.mxu1  ;;  %v2095_v57 = vpop.f32.mrf.mxu0 }
 0x151   :  { %v1788_v35 = vpack.c.bf16 %v1438_v60, %v1437_v58  ;;  %v2028_v8 = vadd.f32 %v2027_v55, %v2026_v5  ;;  %v1397_v16 = vadd.f32 %v1396_v36, %v1308_v24  ;;  %v1149_v36 = vadd.f32 %v1924_v2, %v1060_v21  ;;  %v2994_v5 = vld [vmem:[#allocation3_spill] sm:$0xff] }
 0x152   :  { %v1537_v62 = vld [vmem:[#allocation2] sm:$0xff]   ;;  %v2029_v46 = vpop.f32.mrf.mxu1  ;;  %v1404_v0 = vpop.f32.mrf.mxu0 }
 0x153   :  { %1538 = vst [vmem:[%s2968_s3] sm:$0xff] %v1537_v62   ;;  %1815 = vst [vmem:[#allocation2 + $0x8] sm:$0xff] %v1788_v35   ;;  %v1311_v20 = vadd.f32 %v2028_v8, %v1222_v33  ;;  %v1439_v47 = vmax.f32 %v1397_v16, 0.0  ;;  %v1238_v24 = vadd.f32 %v1982_v37, %v1149_v36  ;;  %v2995_v33 = vld [vmem:[#allocation13_spill] sm:$0xff]  ;;  %v2997_v35 = vld [vmem:[#allocation10_spill] sm:$0xff]  ;;  %v1076_v37 = vadd.f32 %v3009_v9, %v2859_v39 }
 0x154   :  { %v2030_v59 = vpop.f32.mrf.mxu1  ;;  %v2098_v61 = vpop.f32.mrf.mxu0  ;;  %v1930_v55 = vadd.f32 %v2996_v40, %v2995_v33  ;;  %v2998_v8 = vld [vmem:[#allocation12_spill] sm:$0xff] }
 0x155   :  { %v1400_v6 = vadd.f32 %v1399_v25, %v1311_v20  ;;  %v2031_v30 = vadd.f32 %v2030_v59, %v2029_v46  ;;  %v1065_v25 = vadd.f32 %v2994_v5, %v2859_v39  ;;  %v1985_v10 = vadd.f32 %v2998_v8, %v2997_v35 }
 0x156   :  { %v2032_v38 = vpop.f32.mrf.mxu1  ;;  %v1407_v41 = vpop.f32.mrf.mxu0 }
 0x157   :  { %v1440_v50 = vmax.f32 %v1400_v6, 0.0  ;;  %v1316_v52 = vadd.f32 %v2031_v30, %v1227_v34  ;;  %v1154_v15 = vadd.f32 %v1927_v19, %v1065_v25 }
 0x158   :  { %v2033_v4 = vpop.f32.mrf.mxu1  ;;  %v2099_v14 = vpop.f32.mrf.mxu0 }
 0x159   :  { %v1793_v63 = vpack.c.bf16 %v1440_v50, %v1439_v47  ;;  %v2034_v17 = vadd.f32 %v2033_v4, %v2032_v38  ;;  %v1405_v28 = vadd.f32 %v1404_v0, %v1316_v52  ;;  %v2999_v0 = vld [vmem:[#allocation4_spill] sm:$0xff]  ;;  %v1243_v49 = vadd.f32 %v1985_v10, %v1154_v15  ;;  %v3000_v38 = vld [vmem:[#allocation17_spill] sm:$0xff]  ;;  %v3002_v52 = vld [vmem:[#allocation14_spill] sm:$0xff] }
 0x15a   :  { %v1541_v1 = vld [vmem:[#allocation2 + $0x8] sm:$0xff]   ;;  %v2035_v13 = vpop.f32.mrf.mxu1  ;;  %v1412_v51 = vpop.f32.mrf.mxu0  ;;  %v1068_v16 = vadd.f32 %v2999_v0, %v2859_v39 }
 0x15b   :  { %1542 = vst [vmem:[%s2968_s3 + $0x8] sm:$0xff] %v1541_v1   ;;  %1816 = vst [vmem:[#allocation2 + $0x10] sm:$0xff] %v1793_v63   ;;  %v1319_v32 = vadd.f32 %v2034_v17, %v1230_v31  ;;  %v1441_v42 = vmax.f32 %v1405_v28, 0.0  ;;  %v3003_v31 = vld [vmem:[#allocation16_spill] sm:$0xff] }
 0x15c   :  { %v2036_v53 = vpop.f32.mrf.mxu1  ;;  %v2102_v54 = vpop.f32.mrf.mxu0  ;;  %v1157_v12 = vadd.f32 %v1930_v55, %v1068_v16  ;;  %v1988_v2 = vadd.f32 %v3003_v31, %v3002_v52  ;;  %v3010_v55 = vld [vmem:[#allocation22_spill] sm:$0xff] }
 0x15d   :  { %v1408_v45 = vadd.f32 %v1407_v41, %v1319_v32  ;;  %v2037_v7 = vadd.f32 %v2036_v53, %v2035_v13  ;;  %v3001_v41 = vld [vmem:[#allocation19_spill] sm:$0xff]  ;;  %v3005_v13 = vld [vmem:[#allocation18_spill] sm:$0xff]  ;;  %v3007_v54 = vld [vmem:[#allocation21_spill] sm:$0xff] }
 0x15e   :  { %v2038_v43 = vpop.f32.mrf.mxu1  ;;  %v1415_v3 = vpop.f32.mrf.mxu0  ;;  %v1933_v44 = vadd.f32 %v3001_v41, %v3000_v38  ;;  %v1246_v1 = vadd.f32 %v1988_v2, %v1157_v12 }
 0x15f   :  { %v1442_v58 = vmax.f32 %v1408_v45, 0.0  ;;  %v1324_v60 = vadd.f32 %v2037_v7, %v1235_v56  ;;  %v3008_v56 = vld [vmem:[#allocation23_spill] sm:$0xff] }
 0x160   :  { %v2039_v57 = vpop.f32.mrf.mxu1  ;;  %v2103_v11 = vpop.f32.mrf.mxu0  ;;  %v1162_v53 = vadd.f32 %v1933_v44, %v1073_v26  ;;  %v1936_v23 = vadd.f32 %v3008_v56, %v3007_v54 }
 0x161   :  { %v1798_v62 = vpack.c.bf16 %v1442_v58, %v1441_v42  ;;  %v2040_v46 = vadd.f32 %v2039_v57, %v2038_v43  ;;  %v1413_v61 = vadd.f32 %v1412_v51, %v1324_v60  ;;  %v3006_v51 = vld [vmem:[#allocation20_spill] sm:$0xff]  ;;  %v1994_v57 = vadd.f32 %v2869_v48, %v3010_v55 }
 0x162   :  { %v1545_v20 = vld [vmem:[#allocation2 + $0x10] sm:$0xff]   ;;  %v2041_v29 = vpop.f32.mrf.mxu1  ;;  %v1420_v59 = vpop.f32.mrf.mxu0  ;;  %v1991_v28 = vadd.f32 %v3006_v51, %v3005_v13  ;;  %v1165_v58 = vadd.f32 %v1936_v23, %v1076_v37 }
 0x163   :  { %1546 = vst [vmem:[%s2968_s3 + $0x10] sm:$0xff] %v1545_v20   ;;  %1817 = vst [vmem:[#allocation2 + $0x18] sm:$0xff] %v1798_v62   ;;  %v1327_v34 = vadd.f32 %v2040_v46, %v1238_v24  ;;  %v1443_v63 = vmax.f32 %v1413_v61, 0.0 }
 0x164   :  { %v2042_v6 = vpop.f32.mrf.mxu1  ;;  %v2106_v30 = vpop.f32.mrf.mxu0  ;;  %v1251_v42 = vadd.f32 %v1991_v28, %v1162_v53  ;;  %v1254_v10 = vadd.f32 %v1994_v57, %v1165_v58 }
 0x165   :  { %v1416_v47 = vadd.f32 %v1415_v3, %v1327_v34  ;;  %v2043_v50 = vadd.f32 %v2042_v6, %v2041_v29 }
 0x166   :  { %v2044_v4 = vpop.f32.mrf.mxu1  ;;  %v1423_v14 = vpop.f32.mrf.mxu0 }
 0x167   :  { %v1444_v17 = vmax.f32 %v1416_v47, 0.0  ;;  %v1332_v21 = vadd.f32 %v2043_v50, %v1243_v49 }
 0x168   :  { %v2045_v32 = vpop.f32.mrf.mxu1  ;;  %v2107_v36 = vpop.f32.mrf.mxu0 }
 0x169   :  { %v1803_v27 = vpack.c.bf16 %v1444_v17, %v1443_v63  ;;  %v2046_v19 = vadd.f32 %v2045_v32, %v2044_v4  ;;  %v1421_v43 = vadd.f32 %v1420_v59, %v1332_v21 }
 0x16a   :  { %v1549_v45 = vld [vmem:[#allocation2 + $0x18] sm:$0xff]   ;;  %v2047_v7 = vpop.f32.mrf.mxu1  ;;  %v1428_v18 = vpop.f32.mrf.mxu0 }
 0x16b   :  { %1550 = vst [vmem:[%s2968_s3 + $0x18] sm:$0xff] %v1549_v45   ;;  %1818 = vst [vmem:[#allocation2 + $0x20] sm:$0xff] %v1803_v27   ;;  %v1335_v3 = vadd.f32 %v2046_v19, %v1246_v1  ;;  %v1445_v11 = vmax.f32 %v1421_v43, 0.0 }
 0x16c   :  { %v2048_v5 = vpop.f32.mrf.mxu1  ;;  %v2110_v25 = vpop.f32.mrf.mxu0 }
 0x16d   :  { %v1424_v60 = vadd.f32 %v1423_v14, %v1335_v3  ;;  %v2049_v24 = vadd.f32 %v2048_v5, %v2047_v7 }
 0x16e   :  { %v2050_v33 = vpop.f32.mrf.mxu1  ;;  %v1431_v40 = vpop.f32.mrf.mxu0 }
 0x16f   :  { %v1446_v39 = vmax.f32 %v1424_v60, 0.0  ;;  %v1340_v15 = vadd.f32 %v2049_v24, %v1251_v42 }
 0x170   :  { %v2051_v35 = vpop.f32.mrf.mxu1  ;;  %v2111_v8 = vpop.f32.mrf.mxu0 }
 0x171   :  { %v1808_v62 = vpack.c.bf16 %v1446_v39, %v1445_v11  ;;  %v2052_v46 = vadd.f32 %v2051_v35, %v2050_v33  ;;  %v1429_v16 = vadd.f32 %v1428_v18, %v1340_v15 }
 0x172   :  { %v1553_v0 = vld [vmem:[#allocation2 + $0x20] sm:$0xff]  }
 0x173   :  { %1554 = vst [vmem:[%s2968_s3 + $0x20] sm:$0xff] %v1553_v0   ;;  %1819 = vst [vmem:[#allocation2 + $0x28] sm:$0xff] %v1808_v62   ;;  %v1343_v20 = vadd.f32 %v2052_v46, %v1254_v10  ;;  %v1447_v59 = vmax.f32 %v1429_v16, 0.0 }
 0x175   :  { %v1432_v29 = vadd.f32 %v1431_v40, %v1343_v20 }
 0x177   :  { %v1448_v61 = vmax.f32 %v1432_v29, 0.0 }
 0x179   :  { %v1813_v48 = vpack.c.bf16 %v1448_v61, %v1447_v59 }
 0x17a   :  { %v1557_v34 = vld [vmem:[#allocation2 + $0x28] sm:$0xff]  }
 0x17b   :  { %1558 = vst [vmem:[%s2968_s3 + $0x28] sm:$0xff] %v1557_v34   ;;  %1820 = vst [vmem:[#allocation2 + $0x30] sm:$0xff] %v1813_v48  }
 0x182   :  { %v1561_v12 = vld [vmem:[#allocation2 + $0x30] sm:$0xf] }
 0x183   :  { %1562 = vst [vmem:[%s2968_s3 + $0x30] sm:$0xf] %v1561_v12 }

// kernel: mnist_supcon_forward.5
= control target key start
LH: loop header
LB: loop body
LE: loop exit
PB: predicated region body
PF: predicated region fallthrough
CT: control target
= control target key end

     0   :  { %8 = vsyncpa [#allocation3], 0  ;;  %v930_v28 = vlaneseq  ;;  %v6674_v32 = vmov 1966171168   ;;  %vm6676_vm0 = vmmov 0   ;;  %s8311_s0 = inlined_call_operand.vmem [shape: bf16[2,6272], index: 0, kind: input, shape index: {}]   ;;  %s8312_s1 = inlined_call_operand.vmem [shape: bf16[6272,128], index: 1, kind: input, shape index: {}]   ;;  %s8313_s2 = inlined_call_operand.vmem [shape: f32[1,128], index: 2, kind: input, shape index: {}]   ;;  %s8314_s3 = inlined_call_operand.hbm [shape: f32[2,128], index: 3, kind: output, shape index: {}]  }
   0x1   :  { %v6184_v0 = vld [vmem:[%s8312_s1 + $0x78] sm:$0xff]   ;;  %v6188_v4 = vld [vmem:[%s8312_s1 + $0x70] sm:$0xff]   ;;  %v6192_v8 = vld [vmem:[%s8312_s1 + $0x68] sm:$0xff]   ;;  %v928_v33 = vunpack.c.l.s4 %v6674_v32 }
   0x2   :  { %v6185_v1 = vld [vmem:[%s8312_s1 + $0x38] sm:$0xff]   ;;  %5621 = vmatprep.subr.bf16.mxu0 %v6184_v0  ;;  %v6189_v5 = vld [vmem:[%s8312_s1 + $0x30] sm:$0xff]   ;;  %v6193_v9 = vld [vmem:[%s8312_s1 + $0x28] sm:$0xff]   ;;  %v931_v34 = vshrl.u32 %v930_v28, 7 }
   0x3   :  { %v6186_v2 = vld [vmem:[%s8312_s1 + $0xf8] sm:$0xff]   ;;  %5622 = vmatpush3.bf16.msra.mxu0 %v6185_v1  ;;  %v6190_v6 = vld [vmem:[%s8312_s1 + $0xf0] sm:$0xff]   ;;  %v6194_v10 = vld [vmem:[%s8312_s1 + $0xe8] sm:$0xff]   ;;  %v929_v38 = vunpack.c.0.s8 %v928_v33 }
   0x4   :  { %v6187_v3 = vld [vmem:[%s8312_s1 + $0xb8] sm:$0xff]   ;;  %5643 = vmatprep.subr.bf16.mxu1 %v6186_v2  ;;  %5623 = vmatprep.subr.bf16.mxu0 %v6188_v4  ;;  %v6191_v7 = vld [vmem:[%s8312_s1 + $0xb0] sm:$0xff]   ;;  %v6195_v11 = vld [vmem:[%s8312_s1 + $0xa8] sm:$0xff]  }
   0x5   :  { %5644 = vmatpush3.bf16.msra.mxu1 %v6187_v3  ;;  %v6196_v12 = vld [vmem:[%s8312_s1 + $0x60] sm:$0xff]   ;;  %v6200_v16 = vld [vmem:[%s8312_s1 + $0x58] sm:$0xff]   ;;  %v6204_v20 = vld [vmem:[%s8312_s1 + $0x50] sm:$0xff]   ;;  %v6817_v44 = vsub.s32 %v929_v38, %v931_v34 }
   0x6   :  { %5645 = vmatprep.subr.bf16.mxu1 %v6190_v6  ;;  %v6197_v13 = vld [vmem:[%s8312_s1 + $0x20] sm:$0xff]   ;;  %v6201_v17 = vld [vmem:[%s8312_s1 + $0x18] sm:$0xff]   ;;  %v6205_v21 = vld [vmem:[%s8312_s1 + $0x10] sm:$0xff]  }
   0x7   :  { %5624 = vmatpush3.bf16.msra.mxu0 %v6189_v5  ;;  %v6198_v14 = vld [vmem:[%s8312_s1 + $0xe0] sm:$0xff]   ;;  %v6202_v18 = vld [vmem:[%s8312_s1 + $0xd8] sm:$0xff]   ;;  %v6206_v22 = vld [vmem:[%s8312_s1 + $0xd0] sm:$0xff]  }
   0x8   :  { %5625 = vmatprep.subr.bf16.mxu0 %v6192_v8  ;;  %v6199_v15 = vld [vmem:[%s8312_s1 + $0xa0] sm:$0xff]   ;;  %v6203_v19 = vld [vmem:[%s8312_s1 + $0x98] sm:$0xff]   ;;  %v6207_v23 = vld [vmem:[%s8312_s1 + $0x90] sm:$0xff]  }
   0x9   :  { %5646 = vmatpush3.bf16.msra.mxu1 %v6191_v7  ;;  %v6208_v24 = vld [vmem:[%s8312_s1 + $0x48] sm:$0xff]   ;;  %v6212_v29 = vld [vmem:[%s8312_s1 + $0x40] sm:$0xff]   ;;  %v6228_v50 = vld [vmem:[%s8312_s1 + $0x178] sm:$0xff]  }
   0xa   :  { %5647 = vmatprep.subr.bf16.mxu1 %v6194_v10  ;;  %v6209_v25 = vld [vmem:[%s8312_s1 + $0x8] sm:$0xff]   ;;  %v6213_v30 = vld [vmem:[%s8312_s1] sm:$0xff]   ;;  %v6230_v59 = vld [vmem:[%s8312_s1 + $0x1f8] sm:$0xff]  }
   0xb   :  { %5626 = vmatpush3.bf16.msra.mxu0 %v6193_v9  ;;  %v6210_v26 = vld [vmem:[%s8312_s1 + $0xc8] sm:$0xff]   ;;  %v6214_v31 = vld [vmem:[%s8312_s1 + $0xc0] sm:$0xff]   ;;  %v6229_v2 = vld [vmem:[%s8312_s1 + $0x138] sm:$0xff]  }
   0xc   :  { %5627 = vmatprep.subr.bf16.mxu0 %v6196_v12  ;;  %v6211_v27 = vld [vmem:[%s8312_s1 + $0x88] sm:$0xff]   ;;  %v6215_v35 = vld [vmem:[%s8311_s0] ss:$49 sps:$4 sm:$0xff]   ;;  %v6217_v36 = vld [vmem:[%s8311_s0 + $0x4] ss:$49 sps:$4 sm:$0xff]  }
   0xd   :  { %5648 = vmatpush3.bf16.msra.mxu1 %v6195_v11  ;;  %v6218_v37 = vld [vmem:[%s8311_s0 + $0x62] ss:$49 sps:$4 sm:$0xff]   ;;  %v6220_v39 = vld [vmem:[%s8311_s0 + $0x66] ss:$49 sps:$4 sm:$0xff]   ;;  %v6226_v43 = vld [vmem:[%s8311_s0 + $0x12a] ss:$49 sps:$4 sm:$0xff]   ;;  %v933_v46 = vrot.slane %v6215_v35, %v6817_v44  ;;  %v6830_v51 = vrot.slane %v6217_v36, %v6817_v44 }
   0xe   :  { %5649 = vmatprep.subr.bf16.mxu1 %v6198_v14  ;;  %v6221_v40 = vld [vmem:[%s8311_s0 + $0xc4] ss:$49 sps:$4 sm:$0xff]   ;;  %v6223_v41 = vld [vmem:[%s8311_s0 + $0xc8] ss:$49 sps:$4 sm:$0xff]   ;;  %v947_v47 = vrot.slane %v6218_v37, %v6817_v44  ;;  %v6833_v52 = vrot.slane %v6220_v39, %v6817_v44  ;;  %v6839_v54 = vrot.slane %v6226_v43, %v6817_v44 }
   0xf   :  { %5628 = vmatpush3.bf16.msra.mxu0 %v6197_v13  ;;  %v6224_v42 = vld [vmem:[%s8311_s0 + $0x126] ss:$49 sps:$4 sm:$0xff]   ;;  %v961_v48 = vrot.slane %v6221_v40, %v6817_v44  ;;  %v6836_v53 = vrot.slane %v6223_v41, %v6817_v44 }
  0x10   :  { %5629 = vmatprep.subr.bf16.mxu0 %v6200_v16  ;;  %v6227_v45 = vld [vmem:[%s8312_s1 + $0x80] sm:$0xff]   ;;  %v975_v49 = vrot.slane %v6224_v42, %v6817_v44  ;;  %v984_v55 = vcombine.high %v933_v46, %v947_v47  ;;  %v983_v57 = vcombine.low %v933_v46, %v947_v47  ;;  %v986_v60 = vcombine.high %v6830_v51, %v6833_v52  ;;  %v6231_v3 = vld [vmem:[%s8312_s1 + $0x1b8] sm:$0xff]   ;;  %v6232_v10 = vld [vmem:[%s8312_s1 + $0x170] sm:$0xff]  }
  0x11   :  { %5650 = vmatpush3.bf16.msra.mxu1 %v6199_v15  ;;  %v990_v61 = vcombine.high %v6836_v53, %v6839_v54  ;;  %v6234_v11 = vld [vmem:[%s8312_s1 + $0x1f0] sm:$0xff]   ;;  %v6236_v16 = vld [vmem:[%s8312_s1 + $0x168] sm:$0xff]   ;;  %v985_v36 = vcombine.low %v6830_v51, %v6833_v52  ;;  %v989_v37 = vcombine.low %v6836_v53, %v6839_v54  ;;  %v6256_v38 = vld [vmem:[%s8312_s1 + $0x140] sm:$0xff]  }
  0x12   :  { %5651 = vmatprep.subr.bf16.mxu1 %v6202_v18  ;;  %v988_v56 = vcombine.high %v961_v48, %v975_v49  ;;  %v987_v58 = vcombine.low %v961_v48, %v975_v49  ;;  %v1011_v62 = vrot.slane %v984_v55, %v6817_v44  ;;  %v997_v0 = vrot.slane %v983_v57, %v6817_v44  ;;  %v6233_v12 = vld [vmem:[%s8312_s1 + $0x130] sm:$0xff]   ;;  %v6237_v18 = vld [vmem:[%s8312_s1 + $0x128] sm:$0xff]   ;;  %v6258_v39 = vld [vmem:[%s8312_s1 + $0x1c0] sm:$0xff]  }
  0x13   :  { %5630 = vmatpush3.bf16.msra.mxu0 %v6201_v17  ;;  %v1018_v4 = vrot.slane %v986_v60, %v6817_v44  ;;  %v1046_v5 = vrot.slane %v990_v61, %v6817_v44  ;;  %v6235_v15 = vld [vmem:[%s8312_s1 + $0x1b0] sm:$0xff]   ;;  %v6238_v17 = vld [vmem:[%s8312_s1 + $0x1e8] sm:$0xff]   ;;  %v6257_v40 = vld [vmem:[%s8312_s1 + $0x100] sm:$0xff]   ;;  %v1004_v42 = vrot.slane %v985_v36, %v6817_v44  ;;  %v1032_v43 = vrot.slane %v989_v37, %v6817_v44 }
  0x14   :  { %5631 = vmatprep.subr.bf16.mxu0 %v6204_v20  ;;  %v1039_v63 = vrot.slane %v988_v56, %v6817_v44  ;;  %v1025_v1 = vrot.slane %v987_v58, %v6817_v44  ;;  %v6240_v20 = vld [vmem:[%s8312_s1 + $0x160] sm:$0xff]   ;;  %v6248_v28 = vld [vmem:[%s8312_s1 + $0x150] sm:$0xff]   ;;  %v6252_v32 = vld [vmem:[%s8312_s1 + $0x148] sm:$0xff]  }
  0x15   :  { %5652 = vmatpush3.bf16.msra.mxu1 %v6203_v19  ;;  %v1053_v13 = vcombine.low %v1018_v4, %v1046_v5  ;;  %v1054_v14 = vcombine.high %v1018_v4, %v1046_v5  ;;  %v6239_v19 = vld [vmem:[%s8312_s1 + $0x1a8] sm:$0xff]   ;;  %v6259_v41 = vld [vmem:[%s8312_s1 + $0x180] sm:$0xff]   ;;  %v6262_v46 = vld [vmem:[%s8312_s1 + $0x2f8] sm:$0xff]   ;;  %v1049_v48 = vcombine.low %v1004_v42, %v1032_v43  ;;  %v1050_v49 = vcombine.high %v1004_v42, %v1032_v43 }
  0x16   :  { %5653 = vmatprep.subr.bf16.mxu1 %v6206_v22  ;;  %v1051_v6 = vcombine.low %v1011_v62, %v1039_v63  ;;  %v1047_v7 = vcombine.low %v997_v0, %v1025_v1  ;;  %v1052_v8 = vcombine.high %v1011_v62, %v1039_v63  ;;  %v1048_v9 = vcombine.high %v997_v0, %v1025_v1  ;;  %v6241_v22 = vld [vmem:[%s8312_s1 + $0x120] sm:$0xff]   ;;  %v6254_v33 = vld [vmem:[%s8312_s1 + $0x1c8] sm:$0xff]   ;;  %v6261_v47 = vld [vmem:[%s8312_s1 + $0x238] sm:$0xff]  }
  0x17   :  { %5632 = vmatpush3.bf16.msra.mxu0 %v6205_v21  ;;  %v6242_v21 = vld [vmem:[%s8312_s1 + $0x1e0] sm:$0xff]   ;;  %v6253_v34 = vld [vmem:[%s8312_s1 + $0x108] sm:$0xff]   ;;  %v6264_v51 = vld [vmem:[%s8312_s1 + $0x270] sm:$0xff]  }
  0x18   :  { %5633 = vmatprep.subr.bf16.mxu0 %v6208_v24  ;;  %4217 = vmatprep.mubr.bf16.mxu0 %v1051_v6  ;;  %v6244_v24 = vld [vmem:[%s8312_s1 + $0x158] sm:$0xff]   ;;  %v6255_v35 = vld [vmem:[%s8312_s1 + $0x188] sm:$0xff]   ;;  %v6266_v52 = vld [vmem:[%s8312_s1 + $0x2f0] sm:$0xff]  }
  0x19   :  { %5654 = vmatpush3.bf16.msra.mxu1 %v6207_v23  ;;  %4258 = vmatprep.mubr.bf16.mxu1 %v1052_v8  ;;  %v6243_v23 = vld [vmem:[%s8312_s1 + $0x1a0] sm:$0xff]   ;;  %v6265_v53 = vld [vmem:[%s8312_s1 + $0x230] sm:$0xff]   ;;  %v6268_v55 = vld [vmem:[%s8312_s1 + $0x268] sm:$0xff]  }
  0x1a   :  { %5655 = vmatprep.subr.bf16.mxu1 %v6210_v26  ;;  %v6245_v26 = vld [vmem:[%s8312_s1 + $0x118] sm:$0xff]   ;;  %v6267_v54 = vld [vmem:[%s8312_s1 + $0x2b0] sm:$0xff]   ;;  %v6270_v56 = vld [vmem:[%s8312_s1 + $0x2e8] sm:$0xff]  }
  0x1b   :  { %5634 = vmatpush3.bf16.msra.mxu0 %v6209_v25  ;;  %v6246_v25 = vld [vmem:[%s8312_s1 + $0x1d8] sm:$0xff]   ;;  %v6269_v57 = vld [vmem:[%s8312_s1 + $0x228] sm:$0xff]   ;;  %v6274_v60 = vld [vmem:[%s8312_s1 + $0x2e0] sm:$0xff]  }
  0x1c   :  { %5635 = vmatprep.subr.bf16.mxu0 %v6212_v29  ;;  %v6250_v29 = vld [vmem:[%s8312_s1 + $0x1d0] sm:$0xff]   ;;  %v6271_v58 = vld [vmem:[%s8312_s1 + $0x2a8] sm:$0xff]   ;;  %v6273_v61 = vld [vmem:[%s8312_s1 + $0x220] sm:$0xff]  }
  0x1d   :  { %5656 = vmatpush3.bf16.msra.mxu1 %v6211_v27  ;;  %v6247_v27 = vld [vmem:[%s8312_s1 + $0x198] sm:$0xff]   ;;  %v6275_v62 = vld [vmem:[%s8312_s1 + $0x2a0] sm:$0xff]   ;;  %v6282_v4 = vld [vmem:[%s8312_s1 + $0x2d0] sm:$0xff]  }
  0x1e   :  { %5657 = vmatprep.subr.bf16.mxu1 %v6214_v31  ;;  %v6251_v31 = vld [vmem:[%s8312_s1 + $0x190] sm:$0xff]   ;;  %v6276_v63 = vld [vmem:[%s8312_s1 + $0x258] sm:$0xff]   ;;  %v6286_v8 = vld [vmem:[%s8312_s1 + $0x2c8] sm:$0xff]  }
  0x1f   :  { %5636 = vmatpush3.bf16.msra.mxu0 %v6213_v30  ;;  %v6249_v30 = vld [vmem:[%s8312_s1 + $0x110] sm:$0xff]   ;;  %v6278_v0 = vld [vmem:[%s8312_s1 + $0x2d8] sm:$0xff]   ;;  %v6308_v43 = vld [vmem:[%s8312_s1 + $0x368] sm:$0xff]  }
  0x20   :  { %5665 = vmatprep.subr.bf16.mxu0 %v6228_v50  ;;  %v6263_v50 = vld [vmem:[%s8312_s1 + $0x2b8] sm:$0xff]   ;;  %v6281_v5 = vld [vmem:[%s8312_s1 + $0x210] sm:$0xff]  }
  0x21   :  { %5658 = vmatpush3.bf16.msra.mxu1 %v6227_v45  ;;  %v6260_v45 = vld [vmem:[%s8312_s1 + $0x278] sm:$0xff]   ;;  %v6283_v6 = vld [vmem:[%s8312_s1 + $0x290] sm:$0xff]  }
  0x22   :  { %5687 = vmatprep.subr.bf16.mxu1 %v6230_v59  ;;  %4218 = vmatmul.mubr.bf16.vlgmr.msra.gmra.mxu0 %v1047_v7  ;;  %v6272_v59 = vld [vmem:[%s8312_s1 + $0x260] sm:$0xff]   ;;  %v6277_v1 = vld [vmem:[%s8312_s1 + $0x218] sm:$0xff]   ;;  %v6284_v7 = vld [vmem:[%s8312_s1 + $0x248] sm:$0xff]  }
  0x23   :  { %5666 = vmatpush3.bf16.msra.mxu0 %v6229_v2  ;;  %4299 = vmatprep.mubr.bf16.mxu0 %v1053_v13  ;;  %v6279_v2 = vld [vmem:[%s8312_s1 + $0x298] sm:$0xff]   ;;  %v6289_v13 = vld [vmem:[%s8312_s1 + $0x200] sm:$0xff]   ;;  %v6307_v42 = vld [vmem:[%s8312_s1 + $0x3b0] sm:$0xff]  }
  0x24   :  { %4259 = vmatmul.mubr.bf16.vlgmr.msra.gmra.mxu1 %v1048_v9  ;;  %5667 = vmatprep.subr.bf16.mxu0 %v6232_v10  ;;  %v6285_v9 = vld [vmem:[%s8312_s1 + $0x208] sm:$0xff]  }
  0x25   :  { %5688 = vmatpush3.bf16.msra.mxu1 %v6231_v3  ;;  %4340 = vmatprep.mubr.bf16.mxu1 %v1054_v14  ;;  %v6280_v3 = vld [vmem:[%s8312_s1 + $0x250] sm:$0xff]   ;;  %v6287_v10 = vld [vmem:[%s8312_s1 + $0x288] sm:$0xff]  }
  0x26   :  { %5689 = vmatprep.subr.bf16.mxu1 %v6234_v11  ;;  %v6288_v11 = vld [vmem:[%s8312_s1 + $0x240] sm:$0xff]   ;;  %v6291_v14 = vld [vmem:[%s8311_s0 + $0x8] ss:$49 sps:$4 sm:$0xff]  }
  0x27   :  { %5668 = vmatpush3.bf16.msra.mxu0 %v6233_v12  ;;  %v6290_v12 = vld [vmem:[%s8312_s1 + $0x2c0] sm:$0xff]  }
  0x28   :  { %5669 = vmatprep.subr.bf16.mxu0 %v6236_v16  ;;  %v6295_v16 = vld [vmem:[%s8311_s0 + $0xcc] ss:$49 sps:$4 sm:$0xff]  }
  0x29   :  { %5690 = vmatpush3.bf16.msra.mxu1 %v6235_v15  ;;  %v6293_v15 = vld [vmem:[%s8311_s0 + $0x6a] ss:$49 sps:$4 sm:$0xff]  }
  0x2a   :  { %5691 = vmatprep.subr.bf16.mxu1 %v6238_v17  ;;  %v6297_v17 = vld [vmem:[%s8311_s0 + $0x12e] ss:$49 sps:$4 sm:$0xff]  }
  0x2b   :  { %5670 = vmatpush3.bf16.msra.mxu0 %v6237_v18  ;;  %v1069_v18 = vrot.slane %v6291_v14, %v6817_v44 }
  0x2c   :  { %5671 = vmatprep.subr.bf16.mxu0 %v6240_v20  ;;  %v6299_v20 = vld [vmem:[%s8312_s1 + $0x280] sm:$0xff]  }
  0x2d   :  { %5692 = vmatpush3.bf16.msra.mxu1 %v6239_v19  ;;  %v1083_v19 = vrot.slane %v6293_v15, %v6817_v44 }
  0x2e   :  { %5693 = vmatprep.subr.bf16.mxu1 %v6242_v21  ;;  %v1097_v21 = vrot.slane %v6295_v16, %v6817_v44  ;;  %v6338_v16 = vld [vmem:[%s8312_s1 + $0x4f8] sm:$0xff]  }
  0x2f   :  { %5672 = vmatpush3.bf16.msra.mxu0 %v6241_v22  ;;  %v1111_v22 = vrot.slane %v6297_v17, %v6817_v44 }
  0x30   :  { %5673 = vmatprep.subr.bf16.mxu0 %v6244_v24  ;;  %v1120_v24 = vcombine.high %v1069_v18, %v1083_v19 }
  0x31   :  { %5694 = vmatpush3.bf16.msra.mxu1 %v6243_v23  ;;  %v6300_v23 = vld [vmem:[%s8312_s1 + $0x378] sm:$0xff]  }
  0x32   :  { %5695 = vmatprep.subr.bf16.mxu1 %v6246_v25  ;;  %v1119_v25 = vcombine.low %v1069_v18, %v1083_v19 }
  0x33   :  { %5674 = vmatpush3.bf16.msra.mxu0 %v6245_v26  ;;  %v1124_v26 = vcombine.high %v1097_v21, %v1111_v22 }
  0x34   :  { %5675 = vmatprep.subr.bf16.mxu0 %v6248_v28  ;;  %v6302_v28 = vld [vmem:[%s8312_s1 + $0x3f8] sm:$0xff]  }
  0x35   :  { %5696 = vmatpush3.bf16.msra.mxu1 %v6247_v27  ;;  %v1123_v27 = vcombine.low %v1097_v21, %v1111_v22  ;;  %v6337_v21 = vld [vmem:[%s8312_s1 + $0x438] sm:$0xff]  }
  0x36   :  { %5697 = vmatprep.subr.bf16.mxu1 %v6250_v29  ;;  %v1147_v29 = vrot.slane %v1120_v24, %v6817_v44 }
  0x37   :  { %5676 = vmatpush3.bf16.msra.mxu0 %v6249_v30  ;;  %v1133_v30 = vrot.slane %v1119_v25, %v6817_v44 }
  0x38   :  { %5677 = vmatprep.subr.bf16.mxu0 %v6252_v32  ;;  %v1161_v32 = vrot.slane %v1123_v27, %v6817_v44 }
  0x39   :  { %5698 = vmatpush3.bf16.msra.mxu1 %v6251_v31  ;;  %v1175_v31 = vrot.slane %v1124_v26, %v6817_v44  ;;  %v6340_v26 = vld [vmem:[%s8312_s1 + $0x470] sm:$0xff]  }
  0x3a   :  { %5699 = vmatprep.subr.bf16.mxu1 %v6254_v33  ;;  %v6301_v33 = vld [vmem:[%s8312_s1 + $0x338] sm:$0xff]   ;;  %v1183_v36 = vcombine.low %v1133_v30, %v1161_v32 }
  0x3b   :  { %5678 = vmatpush3.bf16.msra.mxu0 %v6253_v34  ;;  %v6303_v34 = vld [vmem:[%s8312_s1 + $0x3b8] sm:$0xff]   ;;  %v1188_v37 = vcombine.high %v1147_v29, %v1175_v31 }
  0x3c   :  { %5679 = vmatprep.subr.bf16.mxu0 %v6256_v38  ;;  %v1184_v38 = vcombine.high %v1133_v30, %v1161_v32  ;;  %v6341_v30 = vld [vmem:[%s8312_s1 + $0x430] sm:$0xff]   ;;  %v6344_v32 = vld [vmem:[%s8312_s1 + $0x468] sm:$0xff]  }
  0x3d   :  { %5700 = vmatpush3.bf16.msra.mxu1 %v6255_v35  ;;  %v1187_v35 = vcombine.low %v1147_v29, %v1175_v31  ;;  %v6342_v29 = vld [vmem:[%s8312_s1 + $0x4f0] sm:$0xff]  }
  0x3e   :  { %5701 = vmatprep.subr.bf16.mxu1 %v6258_v39  ;;  %v6304_v39 = vld [vmem:[%s8312_s1 + $0x370] sm:$0xff]  }
  0x3f   :  { %5680 = vmatpush3.bf16.msra.mxu0 %v6257_v40  ;;  %v6306_v40 = vld [vmem:[%s8312_s1 + $0x3f0] sm:$0xff]  }
  0x40   :  { %5709 = vmatprep.subr.bf16.mxu0 %v6260_v45  ;;  %v6310_v45 = vld [vmem:[%s8312_s1 + $0x3e8] sm:$0xff]   ;;  %v6343_v31 = vld [vmem:[%s8312_s1 + $0x4b0] sm:$0xff]  }
  0x41   :  { %5702 = vmatpush3.bf16.msra.mxu1 %v6259_v41  ;;  %v6305_v41 = vld [vmem:[%s8312_s1 + $0x330] sm:$0xff]  }
  0x42   :  { %5731 = vmatprep.subr.bf16.mxu1 %v6262_v46  ;;  %4300 = vmatmul.mubr.bf16.vlgmr.msra.gmra.mxu0 %v1049_v48  ;;  %v6309_v46 = vld [vmem:[%s8312_s1 + $0x328] sm:$0xff]   ;;  %v6312_v48 = vld [vmem:[%s8312_s1 + $0x360] sm:$0xff]  }
  0x43   :  { %5710 = vmatpush3.bf16.msra.mxu0 %v6261_v47  ;;  %4381 = vmatprep.mubr.bf16.mxu0 %v1187_v35  ;;  %v6311_v47 = vld [vmem:[%s8312_s1 + $0x3a8] sm:$0xff]  }
  0x44   :  { %4341 = vmatmul.mubr.bf16.vlgmr.msra.gmra.mxu1 %v1050_v49  ;;  %5711 = vmatprep.subr.bf16.mxu0 %v6264_v51  ;;  %v6314_v49 = vld [vmem:[%s8312_s1 + $0x3e0] sm:$0xff]   ;;  %v6347_v35 = vld [vmem:[%s8312_s1 + $0x4a8] sm:$0xff]  }
  0x45   :  { %5732 = vmatpush3.bf16.msra.mxu1 %v6263_v50  ;;  %4422 = vmatprep.mubr.bf16.mxu1 %v1188_v37  ;;  %v6313_v50 = vld [vmem:[%s8312_s1 + $0x320] sm:$0xff]  }
  0x46   :  { %5733 = vmatprep.subr.bf16.mxu1 %v6266_v52  ;;  %v6315_v51 = vld [vmem:[%s8312_s1 + $0x3a0] sm:$0xff]   ;;  %v6316_v52 = vld [vmem:[%s8312_s1 + $0x358] sm:$0xff]  }
  0x47   :  { %5712 = vmatpush3.bf16.msra.mxu0 %v6265_v53  ;;  %v6318_v53 = vld [vmem:[%s8312_s1 + $0x3d8] sm:$0xff]   ;;  %v6350_v37 = vld [vmem:[%s8312_s1 + $0x4e0] sm:$0xff]  }
  0x48   :  { %5713 = vmatprep.subr.bf16.mxu0 %v6268_v55  ;;  %v6319_v55 = vld [vmem:[%s8312_s1 + $0x398] sm:$0xff]  }
  0x49   :  { %5734 = vmatpush3.bf16.msra.mxu1 %v6267_v54  ;;  %v6317_v54 = vld [vmem:[%s8312_s1 + $0x318] sm:$0xff]  }
  0x4a   :  { %5735 = vmatprep.subr.bf16.mxu1 %v6270_v56  ;;  %v6320_v56 = vld [vmem:[%s8312_s1 + $0x350] sm:$0xff]  }
  0x4b   :  { %5714 = vmatpush3.bf16.msra.mxu0 %v6269_v57  ;;  %v6322_v57 = vld [vmem:[%s8312_s1 + $0x3d0] sm:$0xff]  }
  0x4c   :  { %5715 = vmatprep.subr.bf16.mxu0 %v6272_v59  ;;  %v6323_v59 = vld [vmem:[%s8312_s1 + $0x390] sm:$0xff]  }
  0x4d   :  { %5736 = vmatpush3.bf16.msra.mxu1 %v6271_v58  ;;  %v6321_v58 = vld [vmem:[%s8312_s1 + $0x310] sm:$0xff]  }
  0x4e   :  { %5737 = vmatprep.subr.bf16.mxu1 %v6274_v60  ;;  %v6324_v60 = vld [vmem:[%s8312_s1 + $0x348] sm:$0xff]  }
  0x4f   :  { %5716 = vmatpush3.bf16.msra.mxu0 %v6273_v61  ;;  %v6326_v61 = vld [vmem:[%s8312_s1 + $0x3c8] sm:$0xff]  }
  0x50   :  { %5717 = vmatprep.subr.bf16.mxu0 %v6276_v63  ;;  %v6327_v63 = vld [vmem:[%s8312_s1 + $0x388] sm:$0xff]  }
  0x51   :  { %5738 = vmatpush3.bf16.msra.mxu1 %v6275_v62  ;;  %v6325_v62 = vld [vmem:[%s8312_s1 + $0x308] sm:$0xff]  }
  0x52   :  { %5739 = vmatprep.subr.bf16.mxu1 %v6278_v0  ;;  %v6328_v0 = vld [vmem:[%s8312_s1 + $0x340] sm:$0xff]  }
  0x53   :  { %5718 = vmatpush3.bf16.msra.mxu0 %v6277_v1  ;;  %v6330_v1 = vld [vmem:[%s8312_s1 + $0x3c0] sm:$0xff]  }
  0x54   :  { %5719 = vmatprep.subr.bf16.mxu0 %v6280_v3  ;;  %v6332_v3 = vld [vmem:[%s8311_s0 + $0x6e] ss:$49 sps:$4 sm:$0xff]  }
  0x55   :  { %5740 = vmatpush3.bf16.msra.mxu1 %v6279_v2  ;;  %v6331_v2 = vld [vmem:[%s8311_s0 + $0xc] ss:$49 sps:$4 sm:$0xff]  }
  0x56   :  { %5741 = vmatprep.subr.bf16.mxu1 %v6282_v4  ;;  %v6333_v4 = vld [vmem:[%s8311_s0 + $0xd0] ss:$49 sps:$4 sm:$0xff]  }
  0x57   :  { %5720 = vmatpush3.bf16.msra.mxu0 %v6281_v5  ;;  %v6334_v5 = vld [vmem:[%s8311_s0 + $0x132] ss:$49 sps:$4 sm:$0xff]  }
  0x58   :  { %5721 = vmatprep.subr.bf16.mxu0 %v6284_v7  ;;  %v1076_v7 = vrot.slane %v6331_v2, %v6817_v44 }
  0x59   :  { %5742 = vmatpush3.bf16.msra.mxu1 %v6283_v6  ;;  %v6329_v6 = vld [vmem:[%s8312_s1 + $0x300] sm:$0xff]  }
  0x5a   :  { %5743 = vmatprep.subr.bf16.mxu1 %v6286_v8  ;;  %v1090_v8 = vrot.slane %v6332_v3, %v6817_v44 }
  0x5b   :  { %5722 = vmatpush3.bf16.msra.mxu0 %v6285_v9  ;;  %v1104_v9 = vrot.slane %v6333_v4, %v6817_v44 }
  0x5c   :  { %5723 = vmatprep.subr.bf16.mxu0 %v6288_v11  ;;  %v6335_v11 = vld [vmem:[%s8312_s1 + $0x380] sm:$0xff]   ;;  %v1121_v15 = vcombine.low %v1076_v7, %v1090_v8 }
  0x5d   :  { %5744 = vmatpush3.bf16.msra.mxu1 %v6287_v10  ;;  %v1118_v10 = vrot.slane %v6334_v5, %v6817_v44  ;;  %v6378_v5 = vld [vmem:[%s8312_s1 + $0x5f8] sm:$0xff]  }
  0x5e   :  { %5745 = vmatprep.subr.bf16.mxu1 %v6290_v12  ;;  %v6336_v12 = vld [vmem:[%s8312_s1 + $0x478] sm:$0xff]  }
  0x5f   :  { %5724 = vmatpush3.bf16.msra.mxu0 %v6289_v13  ;;  %v1122_v13 = vcombine.high %v1076_v7, %v1090_v8  ;;  %v1126_v14 = vcombine.high %v1104_v9, %v1118_v10  ;;  %v1125_v17 = vcombine.low %v1104_v9, %v1118_v10  ;;  %v6377_v10 = vld [vmem:[%s8312_s1 + $0x538] sm:$0xff]  }
  0x60   :  { %5753 = vmatprep.subr.bf16.mxu0 %v6300_v23  ;;  %v6339_v23 = vld [vmem:[%s8312_s1 + $0x4b8] sm:$0xff]  }
  0x61   :  { %5746 = vmatpush3.bf16.msra.mxu1 %v6299_v20  ;;  %v1154_v18 = vrot.slane %v1122_v13, %v6817_v44  ;;  %v1182_v19 = vrot.slane %v1126_v14, %v6817_v44  ;;  %v1140_v20 = vrot.slane %v1121_v15, %v6817_v44  ;;  %v1168_v22 = vrot.slane %v1125_v17, %v6817_v44  ;;  %v6380_v15 = vld [vmem:[%s8312_s1 + $0x570] sm:$0xff]  }
  0x62   :  { %5775 = vmatprep.subr.bf16.mxu1 %v6302_v28  ;;  %4382 = vmatmul.mubr.bf16.vlgmr.msra.gmra.mxu0 %v1183_v36  ;;  %v6348_v36 = vld [vmem:[%s8312_s1 + $0x460] sm:$0xff]  }
  0x63   :  { %5754 = vmatpush3.bf16.msra.mxu0 %v6301_v33  ;;  %v1189_v24 = vcombine.low %v1154_v18, %v1182_v19  ;;  %v1190_v25 = vcombine.high %v1154_v18, %v1182_v19  ;;  %v1185_v27 = vcombine.low %v1140_v20, %v1168_v22  ;;  %v1186_v28 = vcombine.high %v1140_v20, %v1168_v22  ;;  %v6346_v33 = vld [vmem:[%s8312_s1 + $0x4e8] sm:$0xff]   ;;  %v6382_v18 = vld [vmem:[%s8312_s1 + $0x5f0] sm:$0xff]  }
  0x64   :  { %4423 = vmatmul.mubr.bf16.vlgmr.msra.gmra.mxu1 %v1184_v38  ;;  %5755 = vmatprep.subr.bf16.mxu0 %v6304_v39  ;;  %v6349_v38 = vld [vmem:[%s8312_s1 + $0x420] sm:$0xff]   ;;  %v6381_v19 = vld [vmem:[%s8312_s1 + $0x530] sm:$0xff]   ;;  %v6386_v22 = vld [vmem:[%s8312_s1 + $0x5e8] sm:$0xff]  }
  0x65   :  { %5776 = vmatpush3.bf16.msra.mxu1 %v6303_v34  ;;  %4463 = vmatprep.mubr.bf16.mxu0 %v1189_v24  ;;  %v6345_v34 = vld [vmem:[%s8312_s1 + $0x428] sm:$0xff]   ;;  %v6351_v39 = vld [vmem:[%s8312_s1 + $0x4a0] sm:$0xff]   ;;  %v6383_v20 = vld [vmem:[%s8312_s1 + $0x5b0] sm:$0xff]  }
  0x66   :  { %5777 = vmatprep.subr.bf16.mxu1 %v6306_v40  ;;  %4504 = vmatprep.mubr.bf16.mxu1 %v1190_v25  ;;  %v6352_v40 = vld [vmem:[%s8312_s1 + $0x458] sm:$0xff]   ;;  %v6387_v24 = vld [vmem:[%s8312_s1 + $0x5a8] sm:$0xff]   ;;  %v6388_v25 = vld [vmem:[%s8312_s1 + $0x560] sm:$0xff]  }
  0x67   :  { %5756 = vmatpush3.bf16.msra.mxu0 %v6305_v41  ;;  %v6354_v41 = vld [vmem:[%s8312_s1 + $0x4d8] sm:$0xff]  }
  0x68   :  { %5757 = vmatprep.subr.bf16.mxu0 %v6308_v43  ;;  %v6355_v43 = vld [vmem:[%s8312_s1 + $0x498] sm:$0xff]  }
  0x69   :  { %5778 = vmatpush3.bf16.msra.mxu1 %v6307_v42  ;;  %v6353_v42 = vld [vmem:[%s8312_s1 + $0x418] sm:$0xff]  }
  0x6a   :  { %5779 = vmatprep.subr.bf16.mxu1 %v6310_v45  ;;  %v6356_v45 = vld [vmem:[%s8312_s1 + $0x450] sm:$0xff]  }
  0x6b   :  { %5758 = vmatpush3.bf16.msra.mxu0 %v6309_v46  ;;  %v6358_v46 = vld [vmem:[%s8312_s1 + $0x4d0] sm:$0xff]  }
  0x6c   :  { %5759 = vmatprep.subr.bf16.mxu0 %v6312_v48  ;;  %v6359_v48 = vld [vmem:[%s8312_s1 + $0x490] sm:$0xff]  }
  0x6d   :  { %5780 = vmatpush3.bf16.msra.mxu1 %v6311_v47  ;;  %v6357_v47 = vld [vmem:[%s8312_s1 + $0x410] sm:$0xff]  }
  0x6e   :  { %5781 = vmatprep.subr.bf16.mxu1 %v6314_v49  ;;  %v6360_v49 = vld [vmem:[%s8312_s1 + $0x448] sm:$0xff]  }
  0x6f   :  { %5760 = vmatpush3.bf16.msra.mxu0 %v6313_v50  ;;  %v6362_v50 = vld [vmem:[%s8312_s1 + $0x4c8] sm:$0xff]  }
  0x70   :  { %5761 = vmatprep.subr.bf16.mxu0 %v6316_v52  ;;  %v6363_v52 = vld [vmem:[%s8312_s1 + $0x488] sm:$0xff]  }
  0x71   :  { %5782 = vmatpush3.bf16.msra.mxu1 %v6315_v51  ;;  %v6361_v51 = vld [vmem:[%s8312_s1 + $0x408] sm:$0xff]  }
  0x72   :  { %5783 = vmatprep.subr.bf16.mxu1 %v6318_v53  ;;  %v6364_v53 = vld [vmem:[%s8312_s1 + $0x440] sm:$0xff]  }
  0x73   :  { %5762 = vmatpush3.bf16.msra.mxu0 %v6317_v54  ;;  %v6366_v54 = vld [vmem:[%s8312_s1 + $0x4c0] sm:$0xff]  }
  0x74   :  { %5763 = vmatprep.subr.bf16.mxu0 %v6320_v56  ;;  %v6367_v56 = vld [vmem:[%s8311_s0 + $0x10] ss:$49 sps:$4 sm:$0xff]  }
  0x75   :  { %5784 = vmatpush3.bf16.msra.mxu1 %v6319_v55  ;;  %v6365_v55 = vld [vmem:[%s8312_s1 + $0x400] sm:$0xff]  }
  0x76   :  { %5785 = vmatprep.subr.bf16.mxu1 %v6322_v57  ;;  %v6369_v57 = vld [vmem:[%s8311_s0 + $0x72] ss:$49 sps:$4 sm:$0xff]  }
  0x77   :  { %5764 = vmatpush3.bf16.msra.mxu0 %v6321_v58  ;;  %v6371_v58 = vld [vmem:[%s8311_s0 + $0xd4] ss:$49 sps:$4 sm:$0xff]  }
  0x78   :  { %5765 = vmatprep.subr.bf16.mxu0 %v6324_v60  ;;  %v1205_v60 = vrot.slane %v6367_v56, %v6817_v44  ;;  %v6412_v56 = vld [vmem:[%s8312_s1 + $0x678] sm:$0xff]  }
  0x79   :  { %5786 = vmatpush3.bf16.msra.mxu1 %v6323_v59  ;;  %v6373_v59 = vld [vmem:[%s8311_s0 + $0x136] ss:$49 sps:$4 sm:$0xff]  }
  0x7a   :  { %5787 = vmatprep.subr.bf16.mxu1 %v6326_v61  ;;  %v6375_v61 = vld [vmem:[%s8312_s1 + $0x480] sm:$0xff]  }
  0x7b   :  { %5766 = vmatpush3.bf16.msra.mxu0 %v6325_v62  ;;  %v1219_v62 = vrot.slane %v6369_v57, %v6817_v44 }
  0x7c   :  { %5767 = vmatprep.subr.bf16.mxu0 %v6328_v0  ;;  %v1247_v0 = vrot.slane %v6373_v59, %v6817_v44  ;;  %v6414_v59 = vld [vmem:[%s8312_s1 + $0x6f8] sm:$0xff]  }
  0x7d   :  { %5788 = vmatpush3.bf16.msra.mxu1 %v6327_v63  ;;  %v1233_v63 = vrot.slane %v6371_v58, %v6817_v44  ;;  %v1256_v2 = vcombine.high %v1205_v60, %v1219_v62  ;;  %v1255_v4 = vcombine.low %v1205_v60, %v1219_v62 }
  0x7e   :  { %5789 = vmatprep.subr.bf16.mxu1 %v6330_v1  ;;  %v6376_v1 = vld [vmem:[%s8312_s1 + $0x578] sm:$0xff]  }
  0x7f   :  { %5768 = vmatpush3.bf16.msra.mxu0 %v6329_v6  ;;  %v1260_v3 = vcombine.high %v1233_v63, %v1247_v0  ;;  %v1259_v6 = vcombine.low %v1233_v63, %v1247_v0  ;;  %v1283_v7 = vrot.slane %v1256_v2, %v6817_v44  ;;  %v1269_v9 = vrot.slane %v1255_v4, %v6817_v44  ;;  %v6413_v0 = vld [vmem:[%s8312_s1 + $0x638] sm:$0xff]  }
  0x80   :  { %5797 = vmatprep.subr.bf16.mxu0 %v6336_v12  ;;  %v6379_v12 = vld [vmem:[%s8312_s1 + $0x5b8] sm:$0xff]  }
  0x81   :  { %5790 = vmatpush3.bf16.msra.mxu1 %v6335_v11  ;;  %v1311_v8 = vrot.slane %v1260_v3, %v6817_v44  ;;  %v1297_v11 = vrot.slane %v1259_v6, %v6817_v44  ;;  %v6416_v6 = vld [vmem:[%s8312_s1 + $0x670] sm:$0xff]  }
  0x82   :  { %5819 = vmatprep.subr.bf16.mxu1 %v6338_v16  ;;  %4464 = vmatmul.mubr.bf16.vlgmr.msra.gmra.mxu0 %v1185_v27  ;;  %v6389_v27 = vld [vmem:[%s8312_s1 + $0x520] sm:$0xff]  }
  0x83   :  { %5798 = vmatpush3.bf16.msra.mxu0 %v6337_v21  ;;  %v1323_v13 = vcombine.low %v1283_v7, %v1311_v8  ;;  %v1324_v14 = vcombine.high %v1283_v7, %v1311_v8  ;;  %v1319_v16 = vcombine.low %v1269_v9, %v1297_v11  ;;  %v1320_v17 = vcombine.high %v1269_v9, %v1297_v11  ;;  %v6384_v21 = vld [vmem:[%s8312_s1 + $0x568] sm:$0xff]   ;;  %v6418_v7 = vld [vmem:[%s8312_s1 + $0x6f0] sm:$0xff]  }
  0x84   :  { %4505 = vmatmul.mubr.bf16.vlgmr.msra.gmra.mxu1 %v1186_v28  ;;  %5799 = vmatprep.subr.bf16.mxu0 %v6340_v26  ;;  %v6390_v26 = vld [vmem:[%s8312_s1 + $0x5e0] sm:$0xff]   ;;  %v6417_v8 = vld [vmem:[%s8312_s1 + $0x630] sm:$0xff]   ;;  %v6422_v11 = vld [vmem:[%s8312_s1 + $0x6e8] sm:$0xff]  }
  0x85   :  { %5820 = vmatpush3.bf16.msra.mxu1 %v6339_v23  ;;  %4545 = vmatprep.mubr.bf16.mxu0 %v1323_v13  ;;  %v6385_v23 = vld [vmem:[%s8312_s1 + $0x528] sm:$0xff]   ;;  %v6391_v28 = vld [vmem:[%s8312_s1 + $0x5a0] sm:$0xff]   ;;  %v6419_v9 = vld [vmem:[%s8312_s1 + $0x6b0] sm:$0xff]  }
  0x86   :  { %5821 = vmatprep.subr.bf16.mxu1 %v6342_v29  ;;  %4586 = vmatprep.mubr.bf16.mxu1 %v1324_v14  ;;  %v6392_v29 = vld [vmem:[%s8312_s1 + $0x558] sm:$0xff]   ;;  %v6423_v13 = vld [vmem:[%s8312_s1 + $0x6a8] sm:$0xff]   ;;  %v6424_v14 = vld [vmem:[%s8312_s1 + $0x660] sm:$0xff]  }
  0x87   :  { %5800 = vmatpush3.bf16.msra.mxu0 %v6341_v30  ;;  %v6394_v30 = vld [vmem:[%s8312_s1 + $0x5d8] sm:$0xff]  }
  0x88   :  { %5801 = vmatprep.subr.bf16.mxu0 %v6344_v32  ;;  %v6395_v32 = vld [vmem:[%s8312_s1 + $0x598] sm:$0xff]  }
  0x89   :  { %5822 = vmatpush3.bf16.msra.mxu1 %v6343_v31  ;;  %v6393_v31 = vld [vmem:[%s8312_s1 + $0x518] sm:$0xff]  }
  0x8a   :  { %5823 = vmatprep.subr.bf16.mxu1 %v6346_v33  ;;  %v6396_v33 = vld [vmem:[%s8312_s1 + $0x550] sm:$0xff]  }
  0x8b   :  { %5802 = vmatpush3.bf16.msra.mxu0 %v6345_v34  ;;  %v6398_v34 = vld [vmem:[%s8312_s1 + $0x5d0] sm:$0xff]  }
  0x8c   :  { %5803 = vmatprep.subr.bf16.mxu0 %v6348_v36  ;;  %v6399_v36 = vld [vmem:[%s8312_s1 + $0x590] sm:$0xff]  }
  0x8d   :  { %5824 = vmatpush3.bf16.msra.mxu1 %v6347_v35  ;;  %v6397_v35 = vld [vmem:[%s8312_s1 + $0x510] sm:$0xff]  }
  0x8e   :  { %5825 = vmatprep.subr.bf16.mxu1 %v6350_v37  ;;  %v6400_v37 = vld [vmem:[%s8312_s1 + $0x548] sm:$0xff]  }
  0x8f   :  { %5804 = vmatpush3.bf16.msra.mxu0 %v6349_v38  ;;  %v6402_v38 = vld [vmem:[%s8312_s1 + $0x5c8] sm:$0xff]  }
  0x90   :  { %5805 = vmatprep.subr.bf16.mxu0 %v6352_v40  ;;  %v6403_v40 = vld [vmem:[%s8312_s1 + $0x588] sm:$0xff]  }
  0x91   :  { %5826 = vmatpush3.bf16.msra.mxu1 %v6351_v39  ;;  %v6401_v39 = vld [vmem:[%s8312_s1 + $0x508] sm:$0xff]  }
  0x92   :  { %5827 = vmatprep.subr.bf16.mxu1 %v6354_v41  ;;  %v6404_v41 = vld [vmem:[%s8312_s1 + $0x540] sm:$0xff]  }
  0x93   :  { %5806 = vmatpush3.bf16.msra.mxu0 %v6353_v42  ;;  %v6406_v42 = vld [vmem:[%s8312_s1 + $0x5c0] sm:$0xff]  }
  0x94   :  { %5807 = vmatprep.subr.bf16.mxu0 %v6356_v45  ;;  %v6408_v45 = vld [vmem:[%s8311_s0 + $0x76] ss:$49 sps:$4 sm:$0xff]  }
  0x95   :  { %5828 = vmatpush3.bf16.msra.mxu1 %v6355_v43  ;;  %v6407_v43 = vld [vmem:[%s8311_s0 + $0x14] ss:$49 sps:$4 sm:$0xff]  }
  0x96   :  { %5829 = vmatprep.subr.bf16.mxu1 %v6358_v46  ;;  %v6409_v46 = vld [vmem:[%s8311_s0 + $0xd8] ss:$49 sps:$4 sm:$0xff]  }
  0x97   :  { %5808 = vmatpush3.bf16.msra.mxu0 %v6357_v47  ;;  %v6410_v47 = vld [vmem:[%s8311_s0 + $0x13a] ss:$49 sps:$4 sm:$0xff]  }
  0x98   :  { %5809 = vmatprep.subr.bf16.mxu0 %v6360_v49  ;;  %v1212_v49 = vrot.slane %v6407_v43, %v6817_v44 }
  0x99   :  { %5830 = vmatpush3.bf16.msra.mxu1 %v6359_v48  ;;  %v6405_v48 = vld [vmem:[%s8312_s1 + $0x500] sm:$0xff]  }
  0x9a   :  { %5831 = vmatprep.subr.bf16.mxu1 %v6362_v50  ;;  %v1226_v50 = vrot.slane %v6408_v45, %v6817_v44 }
  0x9b   :  { %5810 = vmatpush3.bf16.msra.mxu0 %v6361_v51  ;;  %v1240_v51 = vrot.slane %v6409_v46, %v6817_v44 }
  0x9c   :  { %5811 = vmatprep.subr.bf16.mxu0 %v6364_v53  ;;  %v6411_v53 = vld [vmem:[%s8312_s1 + $0x580] sm:$0xff]  }
  0x9d   :  { %5832 = vmatpush3.bf16.msra.mxu1 %v6363_v52  ;;  %v1254_v52 = vrot.slane %v6410_v47, %v6817_v44 }
  0x9e   :  { %5833 = vmatprep.subr.bf16.mxu1 %v6366_v54  ;;  %v1258_v54 = vcombine.high %v1212_v49, %v1226_v50 }
  0x9f   :  { %5812 = vmatpush3.bf16.msra.mxu0 %v6365_v55  ;;  %v1257_v55 = vcombine.low %v1212_v49, %v1226_v50  ;;  %v1262_v57 = vcombine.high %v1240_v51, %v1254_v52  ;;  %v1261_v58 = vcombine.low %v1240_v51, %v1254_v52 }
  0xa0   :  { %5841 = vmatprep.subr.bf16.mxu0 %v6376_v1  ;;  %v1290_v60 = vrot.slane %v1258_v54, %v6817_v44  ;;  %v6415_v1 = vld [vmem:[%s8312_s1 + $0x6b8] sm:$0xff]  }
  0xa1   :  { %5834 = vmatpush3.bf16.msra.mxu1 %v6375_v61  ;;  %v1276_v61 = vrot.slane %v1257_v55, %v6817_v44  ;;  %v1318_v62 = vrot.slane %v1262_v57, %v6817_v44  ;;  %v1304_v63 = vrot.slane %v1261_v58, %v6817_v44  ;;  %v6455_v54 = vld [vmem:[%s8312_s1 + $0x7b8] sm:$0xff]  }
  0xa2   :  { %5863 = vmatprep.subr.bf16.mxu1 %v6378_v5  ;;  %4546 = vmatmul.mubr.bf16.vlgmr.msra.gmra.mxu0 %v1319_v16  ;;  %v6425_v16 = vld [vmem:[%s8312_s1 + $0x620] sm:$0xff]  }
  0xa3   :  { %5842 = vmatpush3.bf16.msra.mxu0 %v6377_v10  ;;  %v1325_v2 = vcombine.low %v1290_v60, %v1318_v62  ;;  %v1321_v3 = vcombine.low %v1276_v61, %v1304_v63  ;;  %v1326_v4 = vcombine.high %v1290_v60, %v1318_v62  ;;  %v1322_v5 = vcombine.high %v1276_v61, %v1304_v63  ;;  %v6420_v10 = vld [vmem:[%s8312_s1 + $0x668] sm:$0xff]   ;;  %v6458_v60 = vld [vmem:[%s8312_s1 + $0x7f0] sm:$0xff]  }
  0xa4   :  { %4587 = vmatmul.mubr.bf16.vlgmr.msra.gmra.mxu1 %v1320_v17  ;;  %5843 = vmatprep.subr.bf16.mxu0 %v6380_v15  ;;  %v6426_v15 = vld [vmem:[%s8312_s1 + $0x6e0] sm:$0xff]   ;;  %v6457_v61 = vld [vmem:[%s8312_s1 + $0x730] sm:$0xff]   ;;  %v6460_v63 = vld [vmem:[%s8312_s1 + $0x768] sm:$0xff]  }
  0xa5   :  { %5864 = vmatpush3.bf16.msra.mxu1 %v6379_v12  ;;  %4627 = vmatprep.mubr.bf16.mxu0 %v1325_v2  ;;  %v6421_v12 = vld [vmem:[%s8312_s1 + $0x628] sm:$0xff]   ;;  %v6427_v17 = vld [vmem:[%s8312_s1 + $0x6a0] sm:$0xff]   ;;  %v6459_v62 = vld [vmem:[%s8312_s1 + $0x7b0] sm:$0xff]  }
  0xa6   :  { %5865 = vmatprep.subr.bf16.mxu1 %v6382_v18  ;;  %4668 = vmatprep.mubr.bf16.mxu1 %v1326_v4  ;;  %v6428_v18 = vld [vmem:[%s8312_s1 + $0x658] sm:$0xff]   ;;  %v6463_v2 = vld [vmem:[%s8312_s1 + $0x7a8] sm:$0xff]   ;;  %v6466_v4 = vld [vmem:[%s8312_s1 + $0x7e0] sm:$0xff]  }
  0xa7   :  { %5844 = vmatpush3.bf16.msra.mxu0 %v6381_v19  ;;  %v6430_v19 = vld [vmem:[%s8312_s1 + $0x6d8] sm:$0xff]  }
  0xa8   :  { %5845 = vmatprep.subr.bf16.mxu0 %v6384_v21  ;;  %v6431_v21 = vld [vmem:[%s8312_s1 + $0x698] sm:$0xff]  }
  0xa9   :  { %5866 = vmatpush3.bf16.msra.mxu1 %v6383_v20  ;;  %v6429_v20 = vld [vmem:[%s8312_s1 + $0x618] sm:$0xff]  }
  0xaa   :  { %5867 = vmatprep.subr.bf16.mxu1 %v6386_v22  ;;  %v6432_v22 = vld [vmem:[%s8312_s1 + $0x650] sm:$0xff]  }
  0xab   :  { %5846 = vmatpush3.bf16.msra.mxu0 %v6385_v23  ;;  %v6434_v23 = vld [vmem:[%s8312_s1 + $0x6d0] sm:$0xff]  }
  0xac   :  { %5847 = vmatprep.subr.bf16.mxu0 %v6388_v25  ;;  %v6435_v25 = vld [vmem:[%s8312_s1 + $0x690] sm:$0xff]  }
  0xad   :  { %5868 = vmatpush3.bf16.msra.mxu1 %v6387_v24  ;;  %v6433_v24 = vld [vmem:[%s8312_s1 + $0x610] sm:$0xff]  }
  0xae   :  { %5869 = vmatprep.subr.bf16.mxu1 %v6390_v26  ;;  %v6436_v26 = vld [vmem:[%s8312_s1 + $0x648] sm:$0xff]  }
  0xaf   :  { %5848 = vmatpush3.bf16.msra.mxu0 %v6389_v27  ;;  %v6438_v27 = vld [vmem:[%s8312_s1 + $0x6c8] sm:$0xff]  }
  0xb0   :  { %5849 = vmatprep.subr.bf16.mxu0 %v6392_v29  ;;  %v6439_v29 = vld [vmem:[%s8312_s1 + $0x688] sm:$0xff]  }
  0xb1   :  { %5870 = vmatpush3.bf16.msra.mxu1 %v6391_v28  ;;  %v6437_v28 = vld [vmem:[%s8312_s1 + $0x608] sm:$0xff]  }
  0xb2   :  { %5871 = vmatprep.subr.bf16.mxu1 %v6394_v30  ;;  %v6440_v30 = vld [vmem:[%s8312_s1 + $0x640] sm:$0xff]  }
  0xb3   :  { %5850 = vmatpush3.bf16.msra.mxu0 %v6393_v31  ;;  %v6442_v31 = vld [vmem:[%s8312_s1 + $0x6c0] sm:$0xff]  }
  0xb4   :  { %5851 = vmatprep.subr.bf16.mxu0 %v6396_v33  ;;  %v6443_v33 = vld [vmem:[%s8311_s0 + $0x18] ss:$49 sps:$4 sm:$0xff]  }
  0xb5   :  { %5872 = vmatpush3.bf16.msra.mxu1 %v6395_v32  ;;  %v6441_v32 = vld [vmem:[%s8312_s1 + $0x600] sm:$0xff]  }
  0xb6   :  { %5873 = vmatprep.subr.bf16.mxu1 %v6398_v34  ;;  %v6445_v34 = vld [vmem:[%s8311_s0 + $0x7a] ss:$49 sps:$4 sm:$0xff]  }
  0xb7   :  { %5852 = vmatpush3.bf16.msra.mxu0 %v6397_v35  ;;  %v6447_v35 = vld [vmem:[%s8311_s0 + $0xdc] ss:$49 sps:$4 sm:$0xff]  }
  0xb8   :  { %5853 = vmatprep.subr.bf16.mxu0 %v6400_v37  ;;  %v1341_v37 = vrot.slane %v6443_v33, %v6817_v44 }
  0xb9   :  { %5874 = vmatpush3.bf16.msra.mxu1 %v6399_v36  ;;  %v6449_v36 = vld [vmem:[%s8311_s0 + $0x13e] ss:$49 sps:$4 sm:$0xff]  }
  0xba   :  { %5875 = vmatprep.subr.bf16.mxu1 %v6402_v38  ;;  %v1355_v38 = vrot.slane %v6445_v34, %v6817_v44 }
  0xbb   :  { %5854 = vmatpush3.bf16.msra.mxu0 %v6401_v39  ;;  %v1369_v39 = vrot.slane %v6447_v35, %v6817_v44  ;;  %v6490_v35 = vld [vmem:[%s8312_s1 + $0x8f8] sm:$0xff]  }
  0xbc   :  { %5855 = vmatprep.subr.bf16.mxu0 %v6404_v41  ;;  %v1383_v41 = vrot.slane %v6449_v36, %v6817_v44  ;;  %v1392_v43 = vcombine.high %v1341_v37, %v1355_v38  ;;  %v1391_v45 = vcombine.low %v1341_v37, %v1355_v38 }
  0xbd   :  { %5876 = vmatpush3.bf16.msra.mxu1 %v6403_v40  ;;  %v6451_v40 = vld [vmem:[%s8312_s1 + $0x680] sm:$0xff]  }
  0xbe   :  { %5877 = vmatprep.subr.bf16.mxu1 %v6406_v42  ;;  %v6452_v42 = vld [vmem:[%s8312_s1 + $0x778] sm:$0xff]   ;;  %v1396_v46 = vcombine.high %v1369_v39, %v1383_v41  ;;  %v1395_v47 = vcombine.low %v1369_v39, %v1383_v41  ;;  %v1419_v49 = vrot.slane %v1392_v43, %v6817_v44  ;;  %v1405_v50 = vrot.slane %v1391_v45, %v6817_v44 }
  0xbf   :  { %5856 = vmatpush3.bf16.msra.mxu0 %v6405_v48  ;;  %v6454_v48 = vld [vmem:[%s8312_s1 + $0x7f8] sm:$0xff]  }
  0xc0   :  { %5885 = vmatprep.subr.bf16.mxu0 %v6412_v56  ;;  %v1447_v51 = vrot.slane %v1396_v46, %v6817_v44  ;;  %v1433_v52 = vrot.slane %v1395_v47, %v6817_v44  ;;  %v6492_v46 = vld [vmem:[%s8312_s1 + $0x870] sm:$0xff]  }
  0xc1   :  { %5878 = vmatpush3.bf16.msra.mxu1 %v6411_v53  ;;  %v6453_v53 = vld [vmem:[%s8312_s1 + $0x738] sm:$0xff]  }
  0xc2   :  { %5907 = vmatprep.subr.bf16.mxu1 %v6414_v59  ;;  %4628 = vmatmul.mubr.bf16.vlgmr.msra.gmra.mxu0 %v1321_v3  ;;  %v1459_v55 = vcombine.low %v1419_v49, %v1447_v51  ;;  %v1455_v56 = vcombine.low %v1405_v50, %v1433_v52  ;;  %v1460_v57 = vcombine.high %v1419_v49, %v1447_v51  ;;  %v6456_v59 = vld [vmem:[%s8312_s1 + $0x770] sm:$0xff]   ;;  %v6464_v3 = vld [vmem:[%s8312_s1 + $0x760] sm:$0xff]  }
  0xc3   :  { %5886 = vmatpush3.bf16.msra.mxu0 %v6413_v0  ;;  %v1456_v58 = vcombine.high %v1405_v50, %v1433_v52  ;;  %v6462_v0 = vld [vmem:[%s8312_s1 + $0x7e8] sm:$0xff]   ;;  %v6494_v49 = vld [vmem:[%s8312_s1 + $0x8f0] sm:$0xff]  }
  0xc4   :  { %4669 = vmatmul.mubr.bf16.vlgmr.msra.gmra.mxu1 %v1322_v5  ;;  %5887 = vmatprep.subr.bf16.mxu0 %v6416_v6  ;;  %v6465_v5 = vld [vmem:[%s8312_s1 + $0x720] sm:$0xff]   ;;  %v6493_v50 = vld [vmem:[%s8312_s1 + $0x830] sm:$0xff]   ;;  %v6496_v52 = vld [vmem:[%s8312_s1 + $0x868] sm:$0xff]  }
  0xc5   :  { %5908 = vmatpush3.bf16.msra.mxu1 %v6415_v1  ;;  %4709 = vmatprep.mubr.bf16.mxu0 %v1459_v55  ;;  %v6461_v1 = vld [vmem:[%s8312_s1 + $0x728] sm:$0xff]   ;;  %v6467_v6 = vld [vmem:[%s8312_s1 + $0x7a0] sm:$0xff]   ;;  %v6495_v51 = vld [vmem:[%s8312_s1 + $0x8b0] sm:$0xff]  }
  0xc6   :  { %5909 = vmatprep.subr.bf16.mxu1 %v6418_v7  ;;  %4750 = vmatprep.mubr.bf16.mxu1 %v1460_v57  ;;  %v6468_v7 = vld [vmem:[%s8312_s1 + $0x758] sm:$0xff]   ;;  %v6499_v55 = vld [vmem:[%s8312_s1 + $0x8a8] sm:$0xff]   ;;  %v6502_v57 = vld [vmem:[%s8312_s1 + $0x8e0] sm:$0xff]  }
  0xc7   :  { %5888 = vmatpush3.bf16.msra.mxu0 %v6417_v8  ;;  %v6470_v8 = vld [vmem:[%s8312_s1 + $0x7d8] sm:$0xff]  }
  0xc8   :  { %5889 = vmatprep.subr.bf16.mxu0 %v6420_v10  ;;  %v6471_v10 = vld [vmem:[%s8312_s1 + $0x798] sm:$0xff]  }
  0xc9   :  { %5910 = vmatpush3.bf16.msra.mxu1 %v6419_v9  ;;  %v6469_v9 = vld [vmem:[%s8312_s1 + $0x718] sm:$0xff]  }
  0xca   :  { %5911 = vmatprep.subr.bf16.mxu1 %v6422_v11  ;;  %v6472_v11 = vld [vmem:[%s8312_s1 + $0x750] sm:$0xff]  }
  0xcb   :  { %5890 = vmatpush3.bf16.msra.mxu0 %v6421_v12  ;;  %v6474_v12 = vld [vmem:[%s8312_s1 + $0x7d0] sm:$0xff]  }
  0xcc   :  { %5891 = vmatprep.subr.bf16.mxu0 %v6424_v14  ;;  %v6475_v14 = vld [vmem:[%s8312_s1 + $0x790] sm:$0xff]  }
  0xcd   :  { %5912 = vmatpush3.bf16.msra.mxu1 %v6423_v13  ;;  %v6473_v13 = vld [vmem:[%s8312_s1 + $0x710] sm:$0xff]  }
  0xce   :  { %5913 = vmatprep.subr.bf16.mxu1 %v6426_v15  ;;  %v6476_v15 = vld [vmem:[%s8312_s1 + $0x748] sm:$0xff]  }
  0xcf   :  { %5892 = vmatpush3.bf16.msra.mxu0 %v6425_v16  ;;  %v6478_v16 = vld [vmem:[%s8312_s1 + $0x7c8] sm:$0xff]  }
  0xd0   :  { %5893 = vmatprep.subr.bf16.mxu0 %v6428_v18  ;;  %v6479_v18 = vld [vmem:[%s8312_s1 + $0x788] sm:$0xff]  }
  0xd1   :  { %5914 = vmatpush3.bf16.msra.mxu1 %v6427_v17  ;;  %v6477_v17 = vld [vmem:[%s8312_s1 + $0x708] sm:$0xff]  }
  0xd2   :  { %5915 = vmatprep.subr.bf16.mxu1 %v6430_v19  ;;  %v6480_v19 = vld [vmem:[%s8312_s1 + $0x740] sm:$0xff]  }
  0xd3   :  { %5894 = vmatpush3.bf16.msra.mxu0 %v6429_v20  ;;  %v6482_v20 = vld [vmem:[%s8312_s1 + $0x7c0] sm:$0xff]  }
  0xd4   :  { %5895 = vmatprep.subr.bf16.mxu0 %v6432_v22  ;;  %v6484_v22 = vld [vmem:[%s8311_s0 + $0x7e] ss:$49 sps:$4 sm:$0xff]  }
  0xd5   :  { %5916 = vmatpush3.bf16.msra.mxu1 %v6431_v21  ;;  %v6483_v21 = vld [vmem:[%s8311_s0 + $0x1c] ss:$49 sps:$4 sm:$0xff]  }
  0xd6   :  { %5917 = vmatprep.subr.bf16.mxu1 %v6434_v23  ;;  %v6485_v23 = vld [vmem:[%s8311_s0 + $0xe0] ss:$49 sps:$4 sm:$0xff]  }
  0xd7   :  { %5896 = vmatpush3.bf16.msra.mxu0 %v6433_v24  ;;  %v6486_v24 = vld [vmem:[%s8311_s0 + $0x142] ss:$49 sps:$4 sm:$0xff]  }
  0xd8   :  { %5897 = vmatprep.subr.bf16.mxu0 %v6436_v26  ;;  %v1348_v26 = vrot.slane %v6483_v21, %v6817_v44 }
  0xd9   :  { %5918 = vmatpush3.bf16.msra.mxu1 %v6435_v25  ;;  %v6481_v25 = vld [vmem:[%s8312_s1 + $0x700] sm:$0xff]  }
  0xda   :  { %5919 = vmatprep.subr.bf16.mxu1 %v6438_v27  ;;  %v1362_v27 = vrot.slane %v6484_v22, %v6817_v44 }
  0xdb   :  { %5898 = vmatpush3.bf16.msra.mxu0 %v6437_v28  ;;  %v1376_v28 = vrot.slane %v6485_v23, %v6817_v44 }
  0xdc   :  { %5899 = vmatprep.subr.bf16.mxu0 %v6440_v30  ;;  %v6487_v30 = vld [vmem:[%s8312_s1 + $0x780] sm:$0xff]   ;;  %v1393_v34 = vcombine.low %v1348_v26, %v1362_v27 }
  0xdd   :  { %5920 = vmatpush3.bf16.msra.mxu1 %v6439_v29  ;;  %v1390_v29 = vrot.slane %v6486_v24, %v6817_v44  ;;  %v6530_v24 = vld [vmem:[%s8312_s1 + $0x9f8] sm:$0xff]  }
  0xde   :  { %5921 = vmatprep.subr.bf16.mxu1 %v6442_v31  ;;  %v6488_v31 = vld [vmem:[%s8312_s1 + $0x878] sm:$0xff]   ;;  %v1412_v39 = vrot.slane %v1393_v34, %v6817_v44  ;;  %v6532_v34 = vld [vmem:[%s8312_s1 + $0x970] sm:$0xff]  }
  0xdf   :  { %5900 = vmatpush3.bf16.msra.mxu0 %v6441_v32  ;;  %v1394_v32 = vcombine.high %v1348_v26, %v1362_v27  ;;  %v1398_v33 = vcombine.high %v1376_v28, %v1390_v29  ;;  %v1397_v36 = vcombine.low %v1376_v28, %v1390_v29  ;;  %v6529_v29 = vld [vmem:[%s8312_s1 + $0x938] sm:$0xff]  }
  0xe0   :  { %5929 = vmatprep.subr.bf16.mxu0 %v6452_v42  ;;  %v6491_v42 = vld [vmem:[%s8312_s1 + $0x8b8] sm:$0xff]  }
  0xe1   :  { %5922 = vmatpush3.bf16.msra.mxu1 %v6451_v40  ;;  %v1426_v37 = vrot.slane %v1394_v32, %v6817_v44  ;;  %v1454_v38 = vrot.slane %v1398_v33, %v6817_v44  ;;  %v6489_v40 = vld [vmem:[%s8312_s1 + $0x838] sm:$0xff]   ;;  %v1440_v41 = vrot.slane %v1397_v36, %v6817_v44 }
  0xe2   :  { %5951 = vmatprep.subr.bf16.mxu1 %v6454_v48  ;;  %4710 = vmatmul.mubr.bf16.vlgmr.msra.gmra.mxu0 %v1455_v56  ;;  %v6500_v56 = vld [vmem:[%s8312_s1 + $0x860] sm:$0xff]  }
  0xe3   :  { %5930 = vmatpush3.bf16.msra.mxu0 %v6453_v53  ;;  %v1461_v43 = vcombine.low %v1426_v37, %v1454_v38  ;;  %v1462_v45 = vcombine.high %v1426_v37, %v1454_v38  ;;  %v1457_v47 = vcombine.low %v1412_v39, %v1440_v41  ;;  %v1458_v48 = vcombine.high %v1412_v39, %v1440_v41  ;;  %v6498_v53 = vld [vmem:[%s8312_s1 + $0x8e8] sm:$0xff]   ;;  %v6534_v37 = vld [vmem:[%s8312_s1 + $0x9f0] sm:$0xff]  }
  0xe4   :  { %4751 = vmatmul.mubr.bf16.vlgmr.msra.gmra.mxu1 %v1456_v58  ;;  %5931 = vmatprep.subr.bf16.mxu0 %v6456_v59  ;;  %v6501_v58 = vld [vmem:[%s8312_s1 + $0x820] sm:$0xff]   ;;  %v6533_v38 = vld [vmem:[%s8312_s1 + $0x930] sm:$0xff]   ;;  %v6538_v41 = vld [vmem:[%s8312_s1 + $0x9e8] sm:$0xff]  }
  0xe5   :  { %5952 = vmatpush3.bf16.msra.mxu1 %v6455_v54  ;;  %4791 = vmatprep.mubr.bf16.mxu0 %v1461_v43  ;;  %v6497_v54 = vld [vmem:[%s8312_s1 + $0x828] sm:$0xff]   ;;  %v6503_v59 = vld [vmem:[%s8312_s1 + $0x8a0] sm:$0xff]   ;;  %v6535_v39 = vld [vmem:[%s8312_s1 + $0x9b0] sm:$0xff]  }
  0xe6   :  { %5953 = vmatprep.subr.bf16.mxu1 %v6458_v60  ;;  %4832 = vmatprep.mubr.bf16.mxu1 %v1462_v45  ;;  %v6504_v60 = vld [vmem:[%s8312_s1 + $0x858] sm:$0xff]   ;;  %v6539_v43 = vld [vmem:[%s8312_s1 + $0x9a8] sm:$0xff]   ;;  %v6540_v45 = vld [vmem:[%s8312_s1 + $0x960] sm:$0xff]  }
  0xe7   :  { %5932 = vmatpush3.bf16.msra.mxu0 %v6457_v61  ;;  %v6506_v61 = vld [vmem:[%s8312_s1 + $0x8d8] sm:$0xff]  }
  0xe8   :  { %5933 = vmatprep.subr.bf16.mxu0 %v6460_v63  ;;  %v6507_v63 = vld [vmem:[%s8312_s1 + $0x898] sm:$0xff]  }
  0xe9   :  { %5954 = vmatpush3.bf16.msra.mxu1 %v6459_v62  ;;  %v6505_v62 = vld [vmem:[%s8312_s1 + $0x818] sm:$0xff]  }
  0xea   :  { %5955 = vmatprep.subr.bf16.mxu1 %v6462_v0  ;;  %v6508_v0 = vld [vmem:[%s8312_s1 + $0x850] sm:$0xff]  }
  0xeb   :  { %5934 = vmatpush3.bf16.msra.mxu0 %v6461_v1  ;;  %v6510_v1 = vld [vmem:[%s8312_s1 + $0x8d0] sm:$0xff]  }
  0xec   :  { %5935 = vmatprep.subr.bf16.mxu0 %v6464_v3  ;;  %v6511_v3 = vld [vmem:[%s8312_s1 + $0x890] sm:$0xff]  }
  0xed   :  { %5956 = vmatpush3.bf16.msra.mxu1 %v6463_v2  ;;  %v6509_v2 = vld [vmem:[%s8312_s1 + $0x810] sm:$0xff]  }
  0xee   :  { %5957 = vmatprep.subr.bf16.mxu1 %v6466_v4  ;;  %v6512_v4 = vld [vmem:[%s8312_s1 + $0x848] sm:$0xff]  }
  0xef   :  { %5936 = vmatpush3.bf16.msra.mxu0 %v6465_v5  ;;  %v6514_v5 = vld [vmem:[%s8312_s1 + $0x8c8] sm:$0xff]  }
  0xf0   :  { %5937 = vmatprep.subr.bf16.mxu0 %v6468_v7  ;;  %v6515_v7 = vld [vmem:[%s8312_s1 + $0x888] sm:$0xff]  }
  0xf1   :  { %5958 = vmatpush3.bf16.msra.mxu1 %v6467_v6  ;;  %v6513_v6 = vld [vmem:[%s8312_s1 + $0x808] sm:$0xff]  }
  0xf2   :  { %5959 = vmatprep.subr.bf16.mxu1 %v6470_v8  ;;  %v6516_v8 = vld [vmem:[%s8312_s1 + $0x840] sm:$0xff]  }
  0xf3   :  { %5938 = vmatpush3.bf16.msra.mxu0 %v6469_v9  ;;  %v6518_v9 = vld [vmem:[%s8312_s1 + $0x8c0] sm:$0xff]  }
  0xf4   :  { %5939 = vmatprep.subr.bf16.mxu0 %v6472_v11  ;;  %v6519_v11 = vld [vmem:[%s8311_s0 + $0x20] ss:$49 sps:$4 sm:$0xff]  }
  0xf5   :  { %5960 = vmatpush3.bf16.msra.mxu1 %v6471_v10  ;;  %v6517_v10 = vld [vmem:[%s8312_s1 + $0x800] sm:$0xff]  }
  0xf6   :  { %5961 = vmatprep.subr.bf16.mxu1 %v6474_v12  ;;  %v6521_v12 = vld [vmem:[%s8311_s0 + $0x82] ss:$49 sps:$4 sm:$0xff]  }
  0xf7   :  { %5940 = vmatpush3.bf16.msra.mxu0 %v6473_v13  ;;  %v6523_v13 = vld [vmem:[%s8311_s0 + $0xe4] ss:$49 sps:$4 sm:$0xff]  }
  0xf8   :  { %5941 = vmatprep.subr.bf16.mxu0 %v6476_v15  ;;  %v1477_v15 = vrot.slane %v6519_v11, %v6817_v44  ;;  %v6564_v11 = vld [vmem:[%s8312_s1 + $0xa78] sm:$0xff]  }
  0xf9   :  { %5962 = vmatpush3.bf16.msra.mxu1 %v6475_v14  ;;  %v6525_v14 = vld [vmem:[%s8311_s0 + $0x146] ss:$49 sps:$4 sm:$0xff]  }
  0xfa   :  { %5963 = vmatprep.subr.bf16.mxu1 %v6478_v16  ;;  %v6527_v16 = vld [vmem:[%s8312_s1 + $0x880] sm:$0xff]  }
  0xfb   :  { %5942 = vmatpush3.bf16.msra.mxu0 %v6477_v17  ;;  %v1491_v17 = vrot.slane %v6521_v12, %v6817_v44 }
  0xfc   :  { %5943 = vmatprep.subr.bf16.mxu0 %v6480_v19  ;;  %v1519_v19 = vrot.slane %v6525_v14, %v6817_v44  ;;  %v6566_v14 = vld [vmem:[%s8312_s1 + $0xaf8] sm:$0xff]  }
  0xfd   :  { %5964 = vmatpush3.bf16.msra.mxu1 %v6479_v18  ;;  %v1505_v18 = vrot.slane %v6523_v13, %v6817_v44  ;;  %v1528_v21 = vcombine.high %v1477_v15, %v1491_v17  ;;  %v1527_v23 = vcombine.low %v1477_v15, %v1491_v17 }
  0xfe   :  { %5965 = vmatprep.subr.bf16.mxu1 %v6482_v20  ;;  %v6528_v20 = vld [vmem:[%s8312_s1 + $0x978] sm:$0xff]  }
  0xff   :  { %5944 = vmatpush3.bf16.msra.mxu0 %v6481_v25  ;;  %v1532_v22 = vcombine.high %v1505_v18, %v1519_v19  ;;  %v1531_v25 = vcombine.low %v1505_v18, %v1519_v19  ;;  %v1555_v26 = vrot.slane %v1528_v21, %v6817_v44  ;;  %v1541_v28 = vrot.slane %v1527_v23, %v6817_v44  ;;  %v6565_v19 = vld [vmem:[%s8312_s1 + $0xa38] sm:$0xff]  }
 0x100   :  { %5973 = vmatprep.subr.bf16.mxu0 %v6488_v31  ;;  %v6531_v31 = vld [vmem:[%s8312_s1 + $0x9b8] sm:$0xff]  }
 0x101   :  { %5966 = vmatpush3.bf16.msra.mxu1 %v6487_v30  ;;  %v1583_v27 = vrot.slane %v1532_v22, %v6817_v44  ;;  %v1569_v30 = vrot.slane %v1531_v25, %v6817_v44  ;;  %v6568_v25 = vld [vmem:[%s8312_s1 + $0xa70] sm:$0xff]  }
 0x102   :  { %5995 = vmatprep.subr.bf16.mxu1 %v6490_v35  ;;  %4792 = vmatmul.mubr.bf16.vlgmr.msra.gmra.mxu0 %v1457_v47  ;;  %v6541_v47 = vld [vmem:[%s8312_s1 + $0x920] sm:$0xff]  }
 0x103   :  { %5974 = vmatpush3.bf16.msra.mxu0 %v6489_v40  ;;  %v1595_v32 = vcombine.low %v1555_v26, %v1583_v27  ;;  %v1596_v33 = vcombine.high %v1555_v26, %v1583_v27  ;;  %v1591_v35 = vcombine.low %v1541_v28, %v1569_v30  ;;  %v1592_v36 = vcombine.high %v1541_v28, %v1569_v30  ;;  %v6536_v40 = vld [vmem:[%s8312_s1 + $0x968] sm:$0xff]   ;;  %v6570_v26 = vld [vmem:[%s8312_s1 + $0xaf0] sm:$0xff]  }
 0x104   :  { %4833 = vmatmul.mubr.bf16.vlgmr.msra.gmra.mxu1 %v1458_v48  ;;  %5975 = vmatprep.subr.bf16.mxu0 %v6492_v46  ;;  %v6542_v46 = vld [vmem:[%s8312_s1 + $0x9e0] sm:$0xff]   ;;  %v6569_v27 = vld [vmem:[%s8312_s1 + $0xa30] sm:$0xff]   ;;  %v6574_v30 = vld [vmem:[%s8312_s1 + $0xae8] sm:$0xff]  }
 0x105   :  { %5996 = vmatpush3.bf16.msra.mxu1 %v6491_v42  ;;  %4873 = vmatprep.mubr.bf16.mxu0 %v1595_v32  ;;  %v6537_v42 = vld [vmem:[%s8312_s1 + $0x928] sm:$0xff]   ;;  %v6543_v48 = vld [vmem:[%s8312_s1 + $0x9a0] sm:$0xff]   ;;  %v6571_v28 = vld [vmem:[%s8312_s1 + $0xab0] sm:$0xff]  }
 0x106   :  { %5997 = vmatprep.subr.bf16.mxu1 %v6494_v49  ;;  %4914 = vmatprep.mubr.bf16.mxu1 %v1596_v33  ;;  %v6544_v49 = vld [vmem:[%s8312_s1 + $0x958] sm:$0xff]   ;;  %v6575_v32 = vld [vmem:[%s8312_s1 + $0xaa8] sm:$0xff]   ;;  %v6576_v33 = vld [vmem:[%s8312_s1 + $0xa60] sm:$0xff]  }
 0x107   :  { %5976 = vmatpush3.bf16.msra.mxu0 %v6493_v50  ;;  %v6546_v50 = vld [vmem:[%s8312_s1 + $0x9d8] sm:$0xff]  }
 0x108   :  { %5977 = vmatprep.subr.bf16.mxu0 %v6496_v52  ;;  %v6547_v52 = vld [vmem:[%s8312_s1 + $0x998] sm:$0xff]  }
 0x109   :  { %5998 = vmatpush3.bf16.msra.mxu1 %v6495_v51  ;;  %v6545_v51 = vld [vmem:[%s8312_s1 + $0x918] sm:$0xff]  }
 0x10a   :  { %5999 = vmatprep.subr.bf16.mxu1 %v6498_v53  ;;  %v6548_v53 = vld [vmem:[%s8312_s1 + $0x950] sm:$0xff]  }
 0x10b   :  { %5978 = vmatpush3.bf16.msra.mxu0 %v6497_v54  ;;  %v6550_v54 = vld [vmem:[%s8312_s1 + $0x9d0] sm:$0xff]  }
 0x10c   :  { %5979 = vmatprep.subr.bf16.mxu0 %v6500_v56  ;;  %v6551_v56 = vld [vmem:[%s8312_s1 + $0x990] sm:$0xff]  }
 0x10d   :  { %6000 = vmatpush3.bf16.msra.mxu1 %v6499_v55  ;;  %v6549_v55 = vld [vmem:[%s8312_s1 + $0x910] sm:$0xff]  }
 0x10e   :  { %6001 = vmatprep.subr.bf16.mxu1 %v6502_v57  ;;  %v6552_v57 = vld [vmem:[%s8312_s1 + $0x948] sm:$0xff]  }
 0x10f   :  { %5980 = vmatpush3.bf16.msra.mxu0 %v6501_v58  ;;  %v6554_v58 = vld [vmem:[%s8312_s1 + $0x9c8] sm:$0xff]  }
 0x110   :  { %5981 = vmatprep.subr.bf16.mxu0 %v6504_v60  ;;  %v6555_v60 = vld [vmem:[%s8312_s1 + $0x988] sm:$0xff]  }
 0x111   :  { %6002 = vmatpush3.bf16.msra.mxu1 %v6503_v59  ;;  %v6553_v59 = vld [vmem:[%s8312_s1 + $0x908] sm:$0xff]  }
 0x112   :  { %6003 = vmatprep.subr.bf16.mxu1 %v6506_v61  ;;  %v6556_v61 = vld [vmem:[%s8312_s1 + $0x940] sm:$0xff]  }
 0x113   :  { %5982 = vmatpush3.bf16.msra.mxu0 %v6505_v62  ;;  %v6558_v62 = vld [vmem:[%s8312_s1 + $0x9c0] sm:$0xff]  }
 0x114   :  { %5983 = vmatprep.subr.bf16.mxu0 %v6508_v0  ;;  %v6560_v0 = vld [vmem:[%s8311_s0 + $0x86] ss:$49 sps:$4 sm:$0xff]  }
 0x115   :  { %6004 = vmatpush3.bf16.msra.mxu1 %v6507_v63  ;;  %v6559_v63 = vld [vmem:[%s8311_s0 + $0x24] ss:$49 sps:$4 sm:$0xff]  }
 0x116   :  { %6005 = vmatprep.subr.bf16.mxu1 %v6510_v1  ;;  %v6561_v1 = vld [vmem:[%s8311_s0 + $0xe8] ss:$49 sps:$4 sm:$0xff]  }
 0x117   :  { %5984 = vmatpush3.bf16.msra.mxu0 %v6509_v2  ;;  %v6562_v2 = vld [vmem:[%s8311_s0 + $0x14a] ss:$49 sps:$4 sm:$0xff]  }
 0x118   :  { %5985 = vmatprep.subr.bf16.mxu0 %v6512_v4  ;;  %v1484_v4 = vrot.slane %v6559_v63, %v6817_v44 }
 0x119   :  { %6006 = vmatpush3.bf16.msra.mxu1 %v6511_v3  ;;  %v6557_v3 = vld [vmem:[%s8312_s1 + $0x900] sm:$0xff]  }
 0x11a   :  { %6007 = vmatprep.subr.bf16.mxu1 %v6514_v5  ;;  %v1498_v5 = vrot.slane %v6560_v0, %v6817_v44 }
 0x11b   :  { %5986 = vmatpush3.bf16.msra.mxu0 %v6513_v6  ;;  %v1512_v6 = vrot.slane %v6561_v1, %v6817_v44 }
 0x11c   :  { %5987 = vmatprep.subr.bf16.mxu0 %v6516_v8  ;;  %v6563_v8 = vld [vmem:[%s8312_s1 + $0x980] sm:$0xff]  }
 0x11d   :  { %6008 = vmatpush3.bf16.msra.mxu1 %v6515_v7  ;;  %v1526_v7 = vrot.slane %v6562_v2, %v6817_v44 }
 0x11e   :  { %6009 = vmatprep.subr.bf16.mxu1 %v6518_v9  ;;  %v1530_v9 = vcombine.high %v1484_v4, %v1498_v5 }
 0x11f   :  { %5988 = vmatpush3.bf16.msra.mxu0 %v6517_v10  ;;  %v1529_v10 = vcombine.low %v1484_v4, %v1498_v5  ;;  %v1534_v12 = vcombine.high %v1512_v6, %v1526_v7  ;;  %v1533_v13 = vcombine.low %v1512_v6, %v1526_v7 }
 0x120   :  { %6017 = vmatprep.subr.bf16.mxu0 %v6528_v20  ;;  %v1562_v15 = vrot.slane %v1530_v9, %v6817_v44  ;;  %v6567_v20 = vld [vmem:[%s8312_s1 + $0xab8] sm:$0xff]  }
 0x121   :  { %6010 = vmatpush3.bf16.msra.mxu1 %v6527_v16  ;;  %v1548_v16 = vrot.slane %v1529_v10, %v6817_v44  ;;  %v1590_v17 = vrot.slane %v1534_v12, %v6817_v44  ;;  %v1576_v18 = vrot.slane %v1533_v13, %v6817_v44  ;;  %v6607_v9 = vld [vmem:[%s8312_s1 + $0xbb8] sm:$0xff]  }
 0x122   :  { %6039 = vmatprep.subr.bf16.mxu1 %v6530_v24  ;;  %4874 = vmatmul.mubr.bf16.vlgmr.msra.gmra.mxu0 %v1591_v35  ;;  %v6577_v35 = vld [vmem:[%s8312_s1 + $0xa20] sm:$0xff]  }
 0x123   :  { %6018 = vmatpush3.bf16.msra.mxu0 %v6529_v29  ;;  %v1597_v21 = vcombine.low %v1562_v15, %v1590_v17  ;;  %v1593_v22 = vcombine.low %v1548_v16, %v1576_v18  ;;  %v1598_v23 = vcombine.high %v1562_v15, %v1590_v17  ;;  %v1594_v24 = vcombine.high %v1548_v16, %v1576_v18  ;;  %v6572_v29 = vld [vmem:[%s8312_s1 + $0xa68] sm:$0xff]   ;;  %v6610_v15 = vld [vmem:[%s8312_s1 + $0xbf0] sm:$0xff]  }
 0x124   :  { %4915 = vmatmul.mubr.bf16.vlgmr.msra.gmra.mxu1 %v1592_v36  ;;  %6019 = vmatprep.subr.bf16.mxu0 %v6532_v34  ;;  %v6578_v34 = vld [vmem:[%s8312_s1 + $0xae0] sm:$0xff]   ;;  %v6609_v16 = vld [vmem:[%s8312_s1 + $0xb30] sm:$0xff]   ;;  %v6612_v18 = vld [vmem:[%s8312_s1 + $0xb68] sm:$0xff]  }
 0x125   :  { %6040 = vmatpush3.bf16.msra.mxu1 %v6531_v31  ;;  %4955 = vmatprep.mubr.bf16.mxu0 %v1597_v21  ;;  %v6573_v31 = vld [vmem:[%s8312_s1 + $0xa28] sm:$0xff]   ;;  %v6579_v36 = vld [vmem:[%s8312_s1 + $0xaa0] sm:$0xff]   ;;  %v6611_v17 = vld [vmem:[%s8312_s1 + $0xbb0] sm:$0xff]  }
 0x126   :  { %6041 = vmatprep.subr.bf16.mxu1 %v6534_v37  ;;  %4996 = vmatprep.mubr.bf16.mxu1 %v1598_v23  ;;  %v6580_v37 = vld [vmem:[%s8312_s1 + $0xa58] sm:$0xff]   ;;  %v6615_v21 = vld [vmem:[%s8312_s1 + $0xba8] sm:$0xff]   ;;  %v6618_v23 = vld [vmem:[%s8312_s1 + $0xbe0] sm:$0xff]  }
 0x127   :  { %6020 = vmatpush3.bf16.msra.mxu0 %v6533_v38  ;;  %v6582_v38 = vld [vmem:[%s8312_s1 + $0xad8] sm:$0xff]  }
 0x128   :  { %6021 = vmatprep.subr.bf16.mxu0 %v6536_v40  ;;  %v6583_v40 = vld [vmem:[%s8312_s1 + $0xa98] sm:$0xff]  }
 0x129   :  { %6042 = vmatpush3.bf16.msra.mxu1 %v6535_v39  ;;  %v6581_v39 = vld [vmem:[%s8312_s1 + $0xa18] sm:$0xff]  }
 0x12a   :  { %6043 = vmatprep.subr.bf16.mxu1 %v6538_v41  ;;  %v6584_v41 = vld [vmem:[%s8312_s1 + $0xa50] sm:$0xff]  }
 0x12b   :  { %6022 = vmatpush3.bf16.msra.mxu0 %v6537_v42  ;;  %v6586_v42 = vld [vmem:[%s8312_s1 + $0xad0] sm:$0xff]  }
 0x12c   :  { %6023 = vmatprep.subr.bf16.mxu0 %v6540_v45  ;;  %v6587_v45 = vld [vmem:[%s8312_s1 + $0xa90] sm:$0xff]  }
 0x12d   :  { %6044 = vmatpush3.bf16.msra.mxu1 %v6539_v43  ;;  %v6585_v43 = vld [vmem:[%s8312_s1 + $0xa10] sm:$0xff]  }
 0x12e   :  { %6045 = vmatprep.subr.bf16.mxu1 %v6542_v46  ;;  %v6588_v46 = vld [vmem:[%s8312_s1 + $0xa48] sm:$0xff]  }
 0x12f   :  { %6024 = vmatpush3.bf16.msra.mxu0 %v6541_v47  ;;  %v6590_v47 = vld [vmem:[%s8312_s1 + $0xac8] sm:$0xff]  }
 0x130   :  { %6025 = vmatprep.subr.bf16.mxu0 %v6544_v49  ;;  %v6591_v49 = vld [vmem:[%s8312_s1 + $0xa88] sm:$0xff]  }
 0x131   :  { %6046 = vmatpush3.bf16.msra.mxu1 %v6543_v48  ;;  %v6589_v48 = vld [vmem:[%s8312_s1 + $0xa08] sm:$0xff]  }
 0x132   :  { %6047 = vmatprep.subr.bf16.mxu1 %v6546_v50  ;;  %v6592_v50 = vld [vmem:[%s8312_s1 + $0xa40] sm:$0xff]  }
 0x133   :  { %6026 = vmatpush3.bf16.msra.mxu0 %v6545_v51  ;;  %v6594_v51 = vld [vmem:[%s8312_s1 + $0xac0] sm:$0xff]  }
 0x134   :  { %6027 = vmatprep.subr.bf16.mxu0 %v6548_v53  ;;  %v6595_v53 = vld [vmem:[%s8311_s0 + $0x28] ss:$49 sps:$4 sm:$0xff]  }
 0x135   :  { %6048 = vmatpush3.bf16.msra.mxu1 %v6547_v52  ;;  %v6593_v52 = vld [vmem:[%s8312_s1 + $0xa00] sm:$0xff]  }
 0x136   :  { %6049 = vmatprep.subr.bf16.mxu1 %v6550_v54  ;;  %v6597_v54 = vld [vmem:[%s8311_s0 + $0x8a] ss:$49 sps:$4 sm:$0xff]  }
 0x137   :  { %6028 = vmatpush3.bf16.msra.mxu0 %v6549_v55  ;;  %v6599_v55 = vld [vmem:[%s8311_s0 + $0xec] ss:$49 sps:$4 sm:$0xff]  }
 0x138   :  { %6029 = vmatprep.subr.bf16.mxu0 %v6552_v57  ;;  %v1613_v57 = vrot.slane %v6595_v53, %v6817_v44 }
 0x139   :  { %6050 = vmatpush3.bf16.msra.mxu1 %v6551_v56  ;;  %v6601_v56 = vld [vmem:[%s8311_s0 + $0x14e] ss:$49 sps:$4 sm:$0xff]  }
 0x13a   :  { %6051 = vmatprep.subr.bf16.mxu1 %v6554_v58  ;;  %v1627_v58 = vrot.slane %v6597_v54, %v6817_v44 }
 0x13b   :  { %6030 = vmatpush3.bf16.msra.mxu0 %v6553_v59  ;;  %v1641_v59 = vrot.slane %v6599_v55, %v6817_v44 }
 0x13c   :  { %6031 = vmatprep.subr.bf16.mxu0 %v6556_v61  ;;  %v1655_v61 = vrot.slane %v6601_v56, %v6817_v44  ;;  %v1664_v63 = vcombine.high %v1613_v57, %v1627_v58  ;;  %v1663_v0 = vcombine.low %v1613_v57, %v1627_v58 }
 0x13d   :  { %6052 = vmatpush3.bf16.msra.mxu1 %v6555_v60  ;;  %v6603_v60 = vld [vmem:[%s8312_s1 + $0xa80] sm:$0xff]  }
 0x13e   :  { %6053 = vmatprep.subr.bf16.mxu1 %v6558_v62  ;;  %v6604_v62 = vld [vmem:[%s8312_s1 + $0xb78] sm:$0xff]   ;;  %v1668_v1 = vcombine.high %v1641_v59, %v1655_v61  ;;  %v1667_v2 = vcombine.low %v1641_v59, %v1655_v61  ;;  %v1691_v4 = vrot.slane %v1664_v63, %v6817_v44  ;;  %v1677_v5 = vrot.slane %v1663_v0, %v6817_v44 }
 0x13f   :  { %6032 = vmatpush3.bf16.msra.mxu0 %v6557_v3  ;;  %v6606_v3 = vld [vmem:[%s8312_s1 + $0xbf8] sm:$0xff]   ;;  %v6675_v61 = vmov 0.0  }
 0x140   :  { %6061 = vmatprep.subr.bf16.mxu0 %v6564_v11  ;;  %v1719_v6 = vrot.slane %v1668_v1, %v6817_v44  ;;  %v1705_v7 = vrot.slane %v1667_v2, %v6817_v44  ;;  %v6640_v63 = vld [vmem:[%s8312_s1 + $0xc38] sm:$0xff]   ;;  %v6641_v1 = vld [vmem:[%s8312_s1 + $0xc30] sm:$0xff]   ;;  %v6642_v2 = vld [vmem:[%s8312_s1 + $0xc28] sm:$0xff]  }
 0x141   :  { %6054 = vmatpush3.bf16.msra.mxu1 %v6563_v8  ;;  %v6605_v8 = vld [vmem:[%s8312_s1 + $0xb38] sm:$0xff]  }
 0x142   :  { %6083 = vmatprep.subr.bf16.mxu1 %v6566_v14  ;;  %4956 = vmatmul.mubr.bf16.vlgmr.msra.gmra.mxu0 %v1593_v22  ;;  %v1731_v10 = vcombine.low %v1691_v4, %v1719_v6  ;;  %v1727_v11 = vcombine.low %v1677_v5, %v1705_v7  ;;  %v1732_v12 = vcombine.high %v1691_v4, %v1719_v6  ;;  %v6608_v14 = vld [vmem:[%s8312_s1 + $0xb70] sm:$0xff]   ;;  %v6616_v22 = vld [vmem:[%s8312_s1 + $0xb60] sm:$0xff]  }
 0x143   :  { %6062 = vmatpush3.bf16.msra.mxu0 %v6565_v19  ;;  %v1728_v13 = vcombine.high %v1677_v5, %v1705_v7  ;;  %v6614_v19 = vld [vmem:[%s8312_s1 + $0xbe8] sm:$0xff]   ;;  %v6648_v4 = vld [vmem:[%s8311_s0 + $0x30] ss:$49 sps:$4 sm:$0x11]  }
 0x144   :  { %4997 = vmatmul.mubr.bf16.vlgmr.msra.gmra.mxu1 %v1594_v24  ;;  %6063 = vmatprep.subr.bf16.mxu0 %v6568_v25  ;;  %v6617_v24 = vld [vmem:[%s8312_s1 + $0xb20] sm:$0xff]  }
 0x145   :  { %6084 = vmatpush3.bf16.msra.mxu1 %v6567_v20  ;;  %5037 = vmatprep.mubr.bf16.mxu0 %v1731_v10  ;;  %v6613_v20 = vld [vmem:[%s8312_s1 + $0xb28] sm:$0xff]   ;;  %v6619_v25 = vld [vmem:[%s8312_s1 + $0xba0] sm:$0xff]  }
 0x146   :  { %6085 = vmatprep.subr.bf16.mxu1 %v6570_v26  ;;  %5078 = vmatprep.mubr.bf16.mxu1 %v1732_v12  ;;  %v6620_v26 = vld [vmem:[%s8312_s1 + $0xb58] sm:$0xff]   ;;  %v6649_v5 = vld [vmem:[%s8311_s0 + $0x92] ss:$49 sps:$4 sm:$0x11]  }
 0x147   :  { %6064 = vmatpush3.bf16.msra.mxu0 %v6569_v27  ;;  %v6622_v27 = vld [vmem:[%s8312_s1 + $0xbd8] sm:$0xff]   ;;  %v6650_v6 = vld [vmem:[%s8311_s0 + $0xf4] ss:$49 sps:$4 sm:$0x11]   ;;  %v1752_v10 = vrot.slane %v6649_v5, %v6817_v44 }
 0x148   :  { %6065 = vmatprep.subr.bf16.mxu0 %v6572_v29  ;;  %v6623_v29 = vld [vmem:[%s8312_s1 + $0xb98] sm:$0xff]   ;;  %v6651_v7 = vld [vmem:[%s8311_s0 + $0x156] ss:$49 sps:$4 sm:$0x11]  }
 0x149   :  { %6086 = vmatpush3.bf16.msra.mxu1 %v6571_v28  ;;  %v6621_v28 = vld [vmem:[%s8312_s1 + $0xb18] sm:$0xff]   ;;  %v1766_v12 = vrot.slane %v6651_v7, %v6817_v44 }
 0x14a   :  { %6087 = vmatprep.subr.bf16.mxu1 %v6574_v30  ;;  %v6624_v30 = vld [vmem:[%s8312_s1 + $0xb50] sm:$0xff]  }
 0x14b   :  { %6066 = vmatpush3.bf16.msra.mxu0 %v6573_v31  ;;  %v6626_v31 = vld [vmem:[%s8312_s1 + $0xbd0] sm:$0xff]  }
 0x14c   :  { %6067 = vmatprep.subr.bf16.mxu0 %v6576_v33  ;;  %v6627_v33 = vld [vmem:[%s8312_s1 + $0xb90] sm:$0xff]  }
 0x14d   :  { %6088 = vmatpush3.bf16.msra.mxu1 %v6575_v32  ;;  %v6625_v32 = vld [vmem:[%s8312_s1 + $0xb10] sm:$0xff]  }
 0x14e   :  { %6089 = vmatprep.subr.bf16.mxu1 %v6578_v34  ;;  %v6628_v34 = vld [vmem:[%s8312_s1 + $0xb48] sm:$0xff]  }
 0x14f   :  { %6068 = vmatpush3.bf16.msra.mxu0 %v6577_v35  ;;  %v6630_v35 = vld [vmem:[%s8312_s1 + $0xbc8] sm:$0xff]  }
 0x150   :  { %6069 = vmatprep.subr.bf16.mxu0 %v6580_v37  ;;  %v6631_v37 = vld [vmem:[%s8312_s1 + $0xb88] sm:$0xff]  }
 0x151   :  { %6090 = vmatpush3.bf16.msra.mxu1 %v6579_v36  ;;  %v6629_v36 = vld [vmem:[%s8312_s1 + $0xb08] sm:$0xff]  }
 0x152   :  { %6091 = vmatprep.subr.bf16.mxu1 %v6582_v38  ;;  %v6632_v38 = vld [vmem:[%s8312_s1 + $0xb40] sm:$0xff]  }
 0x153   :  { %6070 = vmatpush3.bf16.msra.mxu0 %v6581_v39  ;;  %v6634_v39 = vld [vmem:[%s8312_s1 + $0xbc0] sm:$0xff]  }
 0x154   :  { %6071 = vmatprep.subr.bf16.mxu0 %v6584_v41  ;;  %v6636_v41 = vld [vmem:[%s8311_s0 + $0x8e] ss:$49 sps:$4 sm:$0xff]  }
 0x155   :  { %6092 = vmatpush3.bf16.msra.mxu1 %v6583_v40  ;;  %v6635_v40 = vld [vmem:[%s8311_s0 + $0x2c] ss:$49 sps:$4 sm:$0xff]  }
 0x156   :  { %6093 = vmatprep.subr.bf16.mxu1 %v6586_v42  ;;  %v6637_v42 = vld [vmem:[%s8311_s0 + $0xf0] ss:$49 sps:$4 sm:$0xff]  }
 0x157   :  { %6072 = vmatpush3.bf16.msra.mxu0 %v6585_v43  ;;  %v6638_v43 = vld [vmem:[%s8311_s0 + $0x152] ss:$49 sps:$4 sm:$0xff]  }
 0x158   :  { %6073 = vmatprep.subr.bf16.mxu0 %v6588_v46  ;;  %v1634_v46 = vrot.slane %v6636_v41, %v6817_v44 }
 0x159   :  { %6094 = vmatpush3.bf16.msra.mxu1 %v6587_v45  ;;  %v1620_v45 = vrot.slane %v6635_v40, %v6817_v44 }
 0x15a   :  { %6095 = vmatprep.subr.bf16.mxu1 %v6590_v47  ;;  %v6633_v47 = vld [vmem:[%s8312_s1 + $0xb00] sm:$0xff]  }
 0x15b   :  { %6074 = vmatpush3.bf16.msra.mxu0 %v6589_v48  ;;  %v1648_v48 = vrot.slane %v6637_v42, %v6817_v44 }
 0x15c   :  { %6075 = vmatprep.subr.bf16.mxu0 %v6592_v50  ;;  %v1666_v50 = vcombine.high %v1620_v45, %v1634_v46 }
 0x15d   :  { %6096 = vmatpush3.bf16.msra.mxu1 %v6591_v49  ;;  %v1662_v49 = vrot.slane %v6638_v43, %v6817_v44 }
 0x15e   :  { %6097 = vmatprep.subr.bf16.mxu1 %v6594_v51  ;;  %v6639_v51 = vld [vmem:[%s8312_s1 + $0xb80] sm:$0xff]   ;;  %v1698_v55 = vrot.slane %v1666_v50, %v6817_v44 }
 0x15f   :  { %6076 = vmatpush3.bf16.msra.mxu0 %v6593_v52  ;;  %v1665_v52 = vcombine.low %v1620_v45, %v1634_v46  ;;  %v1670_v53 = vcombine.high %v1648_v48, %v1662_v49  ;;  %v1669_v54 = vcombine.low %v1648_v48, %v1662_v49 }
 0x160   :  { %6105 = vmatprep.subr.bf16.mxu0 %v6604_v62 }
 0x161   :  { %6098 = vmatpush3.bf16.msra.mxu1 %v6603_v60  ;;  %v1684_v56 = vrot.slane %v1665_v52, %v6817_v44  ;;  %v1726_v57 = vrot.slane %v1670_v53, %v6817_v44  ;;  %v1712_v58 = vrot.slane %v1669_v54, %v6817_v44 }
 0x162   :  { %6127 = vmatprep.subr.bf16.mxu1 %v6606_v3  ;;  %5038 = vmatmul.mubr.bf16.vlgmr.msra.gmra.mxu0 %v1727_v11  ;;  %v6643_v3 = vld [vmem:[%s8312_s1 + $0xc20] sm:$0xff]   ;;  %v1759_v11 = vrot.slane %v6650_v6, %v6817_v44 }
 0x163   :  { %6106 = vmatpush3.bf16.msra.mxu0 %v6605_v8  ;;  %v1733_v59 = vcombine.low %v1698_v55, %v1726_v57  ;;  %v1729_v60 = vcombine.low %v1684_v56, %v1712_v58  ;;  %v1734_v62 = vcombine.high %v1698_v55, %v1726_v57  ;;  %v1730_v0 = vcombine.high %v1684_v56, %v1712_v58  ;;  %v6644_v8 = vld [vmem:[%s8312_s1 + $0xc18] sm:$0xff]  }
 0x164   :  { %5079 = vmatmul.mubr.bf16.vlgmr.msra.gmra.mxu1 %v1728_v13  ;;  %6107 = vmatprep.subr.bf16.mxu0 %v6608_v14  ;;  %v6645_v13 = vld [vmem:[%s8312_s1 + $0xc10] sm:$0xff]  }
 0x165   :  { %6128 = vmatpush3.bf16.msra.mxu1 %v6607_v9  ;;  %5119 = vmatprep.mubr.bf16.mxu0 %v1733_v59  ;;  %v1745_v9 = vrot.slane %v6648_v4, %v6817_v44 }
 0x166   :  { %6129 = vmatprep.subr.bf16.mxu1 %v6610_v15  ;;  %5160 = vmatprep.mubr.bf16.mxu1 %v1734_v62  ;;  %v1768_v15 = vcombine.low %v1759_v11, %v1766_v12 }
 0x167   :  { %6108 = vmatpush3.bf16.msra.mxu0 %v6609_v16  ;;  %v1767_v14 = vcombine.low %v1745_v9, %v1752_v10  ;;  %v6646_v16 = vld [vmem:[%s8312_s1 + $0xc08] sm:$0xff]  }
 0x168   :  { %6109 = vmatprep.subr.bf16.mxu0 %v6612_v18  ;;  %v1782_v18 = vrot.slane %v1768_v15, %v6817_v44 }
 0x169   :  { %6130 = vmatpush3.bf16.msra.mxu1 %v6611_v17  ;;  %v1775_v17 = vrot.slane %v1767_v14, %v6817_v44  ;;  %v5228_v14 = vld [vmem:[%s8313_s2] ss:$0 sm:$0xff] }
 0x16a   :  { %6131 = vmatprep.subr.bf16.mxu1 %v6614_v19  ;;  %v6647_v19 = vld [vmem:[%s8312_s1 + $0xc00] sm:$0xff]  }
 0x16b   :  { %6110 = vmatpush3.bf16.msra.mxu0 %v6613_v20  ;;  %v1783_v20 = vcombine.low %v1775_v17, %v1782_v18 }
 0x16c   :  { %6111 = vmatprep.subr.bf16.mxu0 %v6616_v22 }
 0x16d   :  { %6132 = vmatpush3.bf16.msra.mxu1 %v6615_v21  ;;  %v5637_v21 = vpop.f32.mrf.mxu0 }
 0x16e   :  { %6133 = vmatprep.subr.bf16.mxu1 %v6618_v23  ;;  %v5659_v23 = vpop.f32.mrf.mxu1 }
 0x16f   :  { %6112 = vmatpush3.bf16.msra.mxu0 %v6617_v24  ;;  %v5638_v22 = vpop.f32.mrf.mxu0 }
 0x170   :  { %6113 = vmatprep.subr.bf16.mxu0 %v6620_v26 }
 0x171   :  { %6134 = vmatpush3.bf16.msra.mxu1 %v6619_v25  ;;  %v5640_v24 = vpop.f32.mrf.mxu0  ;;  %v5660_v25 = vpop.f32.mrf.mxu1 }
 0x172   :  { %6135 = vmatprep.subr.bf16.mxu1 %v6622_v27 }
 0x173   :  { %6114 = vmatpush3.bf16.msra.mxu0 %v6621_v28  ;;  %v5641_v26 = vpop.f32.mrf.mxu0  ;;  %v8152_v27 = vpop.f32.mrf.mxu1 }
 0x174   :  { %6115 = vmatprep.subr.bf16.mxu0 %v6624_v30 }
 0x175   :  { %6136 = vmatpush3.bf16.msra.mxu1 %v6623_v29  ;;  %v5681_v28 = vpop.f32.mrf.mxu0  ;;  %v5663_v29 = vpop.f32.mrf.mxu1 }
 0x176   :  { %6137 = vmatprep.subr.bf16.mxu1 %v6626_v31 }
 0x177   :  { %6116 = vmatpush3.bf16.msra.mxu0 %v6625_v32  ;;  %v5682_v44 = vpop.f32.mrf.mxu0  ;;  %v5703_v30 = vpop.f32.mrf.mxu1 }
 0x178   :  { %6117 = vmatprep.subr.bf16.mxu0 %v6628_v34 }
 0x179   :  { %6138 = vmatpush3.bf16.msra.mxu1 %v6627_v33  ;;  %v5684_v31 = vpop.f32.mrf.mxu0  ;;  %v5704_v32 = vpop.f32.mrf.mxu1 }
 0x17a   :  { %6139 = vmatprep.subr.bf16.mxu1 %v6630_v35 }
 0x17b   :  { %6118 = vmatpush3.bf16.msra.mxu0 %v6629_v36  ;;  %v5685_v33 = vpop.f32.mrf.mxu0  ;;  %v8154_v34 = vpop.f32.mrf.mxu1 }
 0x17c   :  { %6119 = vmatprep.subr.bf16.mxu0 %v6632_v38 }
 0x17d   :  { %6140 = vmatpush3.bf16.msra.mxu1 %v6631_v37  ;;  %v5725_v35 = vpop.f32.mrf.mxu0  ;;  %v8156_v36 = vpop.f32.mrf.mxu1 }
 0x17e   :  { %6141 = vmatprep.subr.bf16.mxu1 %v6634_v39 }
 0x17f   :  { %6120 = vmatpush3.bf16.msra.mxu0 %v6633_v47  ;;  %v5726_v37 = vpop.f32.mrf.mxu0  ;;  %v8158_v38 = vpop.f32.mrf.mxu1 }
 0x180   :  { %6158 = vmatprep.subr.bf16.mxu0 %v6675_v61 }
 0x181   :  { %6142 = vmatpush3.bf16.msra.mxu1 %v6639_v51  ;;  %v8160_v39 = vpop.f32.mrf.mxu0  ;;  %v8162_v40 = vpop.f32.mrf.mxu1 }
 0x182   :  { %5120 = vmatmul.mubr.bf16.vlgmr.msra.gmra.mxu0 %v1729_v60 }
 0x183   :  { %6159 = vmatpush3.bf16.msra.mxu0 %v6640_v63  ;;  %6174 = vmatprep.mubr.msk.bf16.mxu0 %vm6676_vm0, %v6675_v61  ;;  %v8164_v41 = vpop.f32.mrf.mxu0  ;;  %v8166_v42 = vpop.f32.mrf.mxu1 }
 0x184   :  { %5161 = vmatmul.mubr.bf16.vlgmr.msra.gmra.mxu1 %v1730_v0  ;;  %6160 = vmatprep.subr.bf16.mxu0 %v6675_v61 }
 0x185   :  { %v8168_v43 = vpop.f32.mrf.mxu0  ;;  %v8170_v45 = vpop.f32.mrf.mxu1 }
 0x187   :  { %6161 = vmatpush3.bf16.msra.mxu0 %v6641_v1  ;;  %v8172_v46 = vpop.f32.mrf.mxu0  ;;  %v8174_v47 = vpop.f32.mrf.mxu1 }
 0x188   :  { %6162 = vmatprep.subr.bf16.mxu0 %v6675_v61 }
 0x189   :  { %v8176_v48 = vpop.f32.mrf.mxu0  ;;  %v8178_v49 = vpop.f32.mrf.mxu1 }
 0x18b   :  { %6163 = vmatpush3.bf16.msra.mxu0 %v6642_v2  ;;  %v8180_v50 = vpop.f32.mrf.mxu0  ;;  %v8182_v51 = vpop.f32.mrf.mxu1 }
 0x18c   :  { %6164 = vmatprep.subr.bf16.mxu0 %v6675_v61 }
 0x18d   :  { %v8184_v52 = vpop.f32.mrf.mxu0  ;;  %v8186_v53 = vpop.f32.mrf.mxu1 }
 0x18f   :  { %6165 = vmatpush3.bf16.msra.mxu0 %v6643_v3  ;;  %v8188_v54 = vpop.f32.mrf.mxu0  ;;  %v8190_v55 = vpop.f32.mrf.mxu1 }
 0x190   :  { %6166 = vmatprep.subr.bf16.mxu0 %v6675_v61 }
 0x191   :  { %v8192_v56 = vpop.f32.mrf.mxu0  ;;  %v8194_v57 = vpop.f32.mrf.mxu1 }
 0x193   :  { %6167 = vmatpush3.bf16.msra.mxu0 %v6644_v8  ;;  %v8196_v58 = vpop.f32.mrf.mxu0  ;;  %v8198_v59 = vpop.f32.mrf.mxu1 }
 0x194   :  { %6168 = vmatprep.subr.bf16.mxu0 %v6675_v61 }
 0x195   :  { %v8200_v60 = vpop.f32.mrf.mxu0 }
 0x197   :  { %6169 = vmatpush3.bf16.msra.mxu0 %v6645_v13  ;;  %v8204_v62 = vpop.f32.mrf.mxu0  ;;  %v5639_v13 = vadd.f32 %v5638_v22, %v5637_v21  ;;  %v5664_v22 = vadd.f32 %v5663_v29, %v8152_v27  ;;  %v5749_v27 = vadd.f32 %v8162_v40, %v8158_v38  ;;  %v5730_v29 = vadd.f32 %v8164_v41, %v8160_v39 }
 0x198   :  { %6170 = vmatprep.subr.bf16.mxu0 %v6675_v61  ;;  %v5793_v38 = vadd.f32 %v8178_v49, %v8174_v47  ;;  %v5774_v39 = vadd.f32 %v8180_v50, %v8176_v48  ;;  %v5815_v41 = vadd.f32 %v8188_v54, %v8184_v52  ;;  %v5818_v47 = vadd.f32 %v8196_v58, %v8192_v56 }
 0x199   :  { %v8208_v0 = vpop.f32.mrf.mxu0  ;;  %v4220_v18 = vadd.f32 %v5639_v13, %v5228_v14  ;;  %v5727_v13 = vadd.f32 %v5726_v37, %v5725_v35  ;;  %v5859_v50 = vadd.f32 %v8204_v62, %v8200_v60 }
 0x19b   :  { %6171 = vmatpush3.bf16.msra.mxu0 %v6646_v16  ;;  %v8212_v2 = vpop.f32.mrf.mxu0 }
 0x19c   :  { %6172 = vmatprep.subr.bf16.mxu0 %v6675_v61  ;;  %v8202_v61 = vpop.f32.mrf.mxu1 }
 0x19e   :  { %v8206_v63 = vpop.f32.mrf.mxu1 }
 0x19f   :  { %6173 = vmatpush3.bf16.msra.mxu0 %v6647_v19  ;;  %v5661_v19 = vadd.f32 %v5660_v25, %v5659_v23 }
 0x1a0   :  { %v8210_v1 = vpop.f32.mrf.mxu1 }
 0x1a2   :  { %6175 = vmatmul.mubr.bf16.vlgmr.msra.gmra.mxu0 %v1783_v20  ;;  %v8214_v3 = vpop.f32.mrf.mxu1  ;;  %v8216_v4 = vpop.f32.mrf.mxu0  ;;  %v5642_v20 = vadd.f32 %v5641_v26, %v5640_v24  ;;  %v5708_v26 = vadd.f32 %v8156_v36, %v8154_v34  ;;  %v5752_v34 = vadd.f32 %v8170_v45, %v8166_v42  ;;  %v5796_v42 = vadd.f32 %v8186_v53, %v8182_v51 }
 0x1a3   :  { %v5840_v51 = vadd.f32 %v8202_v61, %v8198_v59 }
 0x1a4   :  { %v8218_v5 = vpop.f32.mrf.mxu1  ;;  %v8220_v6 = vpop.f32.mrf.mxu0  ;;  %v4223_v21 = vadd.f32 %v5642_v20, %v5228_v14  ;;  %v5837_v14 = vadd.f32 %v8194_v57, %v8190_v55  ;;  %v5862_v55 = vadd.f32 %v8212_v2, %v8208_v0 }
 0x1a5   :  { %8315 = vst [vmem:[#allocation5_spill] sm:$0xff] %v8218_v5  ;;  %v5686_v5 = vadd.f32 %v5685_v33, %v5684_v31  ;;  %v5771_v33 = vadd.f32 %v8172_v46, %v8168_v43  ;;  %v5903_v60 = vadd.f32 %v8220_v6, %v8216_v4 }
 0x1a6   :  { %v8222_v7 = vpop.f32.mrf.mxu1  ;;  %v8224_v8 = vpop.f32.mrf.mxu0 }
 0x1a7   :  { %8316 = vst [vmem:[#allocation6_spill] sm:$0xff] %v8222_v7  ;;  %8317 = vst [vmem:[#allocation7_spill] sm:$0xff] %v8224_v8  ;;  %v5683_v8 = vadd.f32 %v5682_v44, %v5681_v28  ;;  %v5705_v7 = vadd.f32 %v5704_v32, %v5703_v30 }
 0x1a8   :  { %v8226_v9 = vpop.f32.mrf.mxu1  ;;  %v8228_v10 = vpop.f32.mrf.mxu0 }
 0x1a9   :  { %8318 = vst [vmem:[#allocation8_spill] sm:$0xff] %v8226_v9  ;;  %8319 = vst [vmem:[#allocation9_spill] sm:$0xff] %v8228_v10 }
 0x1aa   :  { %v8230_v11 = vpop.f32.mrf.mxu1 }
 0x1ab   :  { %8320 = vst [vmem:[#allocation10_spill] sm:$0xff] %v8230_v11 }
 0x1ac   :  { %v8237_v15 = vpop.f32.mrf.mxu1 }
 0x1ad   :  { %8322 = vst [vmem:[#allocation12_spill] sm:$0xff] %v8237_v15 }
 0x1c2   :  { %v8232_v12 = vpop.f32.mrf.mxu0 }
 0x1c3   :  { %8321 = vst [vmem:[#allocation11_spill] sm:$0xff] %v8232_v12  ;;  %v4261_v12 = vadd.f32 %v5661_v19, %v4220_v18  ;;  %v5881_v19 = vadd.f32 %v8210_v1, %v8206_v63  ;;  %v8328_v1 = vld [vmem:[#allocation7_spill] sm:$0xff] }
 0x1c4   :  { %v8239_v16 = vpop.f32.mrf.mxu0  ;;  %v8241_v17 = vpop.f32.mrf.mxu1 }
 0x1c5   :  { %8323 = vst [vmem:[#allocation13_spill] sm:$0xff] %v8239_v16  ;;  %8324 = vst [vmem:[#allocation14_spill] sm:$0xff] %v8241_v17  ;;  %v4302_v9 = vadd.f32 %v5683_v8, %v4261_v12  ;;  %v4264_v17 = vadd.f32 %v5664_v22, %v4223_v21  ;;  %v8325_v21 = vld [vmem:[#allocation5_spill] sm:$0xff] }
 0x1c6   :  { %v8243_v10 = vpop.f32.mrf.mxu0  ;;  %v8245_v11 = vpop.f32.mrf.mxu1  ;;  %v5884_v22 = vadd.f32 %v8325_v21, %v8214_v3 }
 0x1c7   :  { %v4343_v24 = vadd.f32 %v5705_v7, %v4302_v9  ;;  %v4305_v25 = vadd.f32 %v5686_v5, %v4264_v17 }
 0x1c8   :  { %v8248_v15 = vpop.f32.mrf.mxu0  ;;  %v8250_v16 = vpop.f32.mrf.mxu1 }
 0x1c9   :  { %v4384_v44 = vadd.f32 %v5727_v13, %v4343_v24  ;;  %v4346_v32 = vadd.f32 %v5708_v26, %v4305_v25  ;;  %v8326_v24 = vld [vmem:[#allocation6_spill] sm:$0xff]  ;;  %v8327_v25 = vld [vmem:[#allocation8_spill] sm:$0xff]  ;;  %v8329_v26 = vld [vmem:[#allocation9_spill] sm:$0xff] }
 0x1ca   :  { %v8256_v28 = vpop.f32.mrf.mxu1  ;;  %v5925_v63 = vadd.f32 %v8327_v25, %v8326_v24  ;;  %v5906_v0 = vadd.f32 %v8329_v26, %v8328_v1 }
 0x1cb   :  { %v4425_v35 = vadd.f32 %v5749_v27, %v4384_v44  ;;  %v4387_v37 = vadd.f32 %v5730_v29, %v4346_v32  ;;  %v8330_v27 = vld [vmem:[#allocation11_spill] sm:$0xff] }
 0x1cc   :  { %v8331_v29 = vld [vmem:[#allocation13_spill] sm:$0xff] }
 0x1cd   :  { %v4466_v7 = vadd.f32 %v5771_v33, %v4425_v35  ;;  %v4428_v40 = vadd.f32 %v5752_v34, %v4387_v37  ;;  %v5947_v32 = vadd.f32 %v8331_v29, %v8330_v27  ;;  %v8332_v35 = vld [vmem:[#allocation10_spill] sm:$0xff]  ;;  %v8333_v37 = vld [vmem:[#allocation12_spill] sm:$0xff] }
 0x1ce   :  { %v5928_v3 = vadd.f32 %v8333_v37, %v8332_v35 }
 0x1cf   :  { %v4507_v46 = vadd.f32 %v5793_v38, %v4466_v7  ;;  %v4469_v9 = vadd.f32 %v5774_v39, %v4428_v40  ;;  %v8334_v39 = vld [vmem:[#allocation14_spill] sm:$0xff] }
 0x1d0   :  { %v5969_v40 = vadd.f32 %v8245_v11, %v8334_v39 }
 0x1d1   :  { %v4548_v12 = vadd.f32 %v5815_v41, %v4507_v46  ;;  %v4510_v49 = vadd.f32 %v5796_v42, %v4469_v9  ;;  %v5950_v41 = vadd.f32 %v8248_v15, %v8243_v10 }
 0x1d3   :  { %v4589_v17 = vadd.f32 %v5837_v14, %v4548_v12  ;;  %v4551_v18 = vadd.f32 %v5818_v47, %v4510_v49  ;;  %v5972_v49 = vadd.f32 %v8256_v28, %v8250_v16 }
 0x1d5   :  { %v4630_v53 = vadd.f32 %v5859_v50, %v4589_v17  ;;  %v4592_v58 = vadd.f32 %v5840_v51, %v4551_v18 }
 0x1d7   :  { %v4671_v62 = vadd.f32 %v5881_v19, %v4630_v53  ;;  %v4633_v20 = vadd.f32 %v5862_v55, %v4592_v58 }
 0x1d9   :  { %v4712_v61 = vadd.f32 %v5903_v60, %v4671_v62  ;;  %v4674_v44 = vadd.f32 %v5884_v22, %v4633_v20 }
 0x1db   :  { %v4753_v6 = vadd.f32 %v5925_v63, %v4712_v61  ;;  %v4715_v33 = vadd.f32 %v5906_v0, %v4674_v44 }
 0x1dd   :  { %v4794_v38 = vadd.f32 %v5947_v32, %v4753_v6  ;;  %v4756_v46 = vadd.f32 %v5928_v3, %v4715_v33 }
 0x1df   :  { %v4835_v14 = vadd.f32 %v5969_v40, %v4794_v38  ;;  %v4797_v47 = vadd.f32 %v5950_v41, %v4756_v46 }
 0x1e1   :  { %v4838_v11 = vadd.f32 %v5972_v49, %v4797_v47 }
 0x1e2   :  { %v8252_v23 = vpop.f32.mrf.mxu0 }
 0x1e4   :  { %v5990_v30 = vpop.f32.mrf.mxu0  ;;  %v8262_v31 = vpop.f32.mrf.mxu1 }
 0x1e5   :  { %v5991_v9 = vadd.f32 %v5990_v30, %v8252_v23 }
 0x1e6   :  { %v5992_v36 = vpop.f32.mrf.mxu0  ;;  %v6012_v5 = vpop.f32.mrf.mxu1 }
 0x1e7   :  { %v4876_v50 = vadd.f32 %v5991_v9, %v4835_v14  ;;  %v6013_v17 = vadd.f32 %v6012_v5, %v8262_v31 }
 0x1e8   :  { %v5993_v8 = vpop.f32.mrf.mxu0  ;;  %v6014_v43 = vpop.f32.mrf.mxu1 }
 0x1e9   :  { %v5994_v18 = vadd.f32 %v5993_v8, %v5992_v36  ;;  %v4917_v10 = vadd.f32 %v6013_v17, %v4876_v50 }
 0x1ea   :  { %v6015_v48 = vpop.f32.mrf.mxu1 }
 0x1eb   :  { %v4879_v15 = vadd.f32 %v5994_v18, %v4838_v11  ;;  %v6016_v58 = vadd.f32 %v6015_v48, %v6014_v43 }
 0x1ed   :  { %v4920_v22 = vadd.f32 %v6016_v58, %v4879_v15 }
 0x202   :  { %v6033_v45 = vpop.f32.mrf.mxu0 }
 0x204   :  { %v6034_v52 = vpop.f32.mrf.mxu0  ;;  %v6055_v54 = vpop.f32.mrf.mxu1 }
 0x205   :  { %v6035_v19 = vadd.f32 %v6034_v52, %v6033_v45 }
 0x206   :  { %v6036_v56 = vpop.f32.mrf.mxu0  ;;  %v6056_v57 = vpop.f32.mrf.mxu1 }
 0x207   :  { %v4958_v30 = vadd.f32 %v6035_v19, %v4917_v10  ;;  %v6057_v60 = vadd.f32 %v6056_v57, %v6055_v54 }
 0x208   :  { %v6037_v13 = vpop.f32.mrf.mxu0  ;;  %v6058_v59 = vpop.f32.mrf.mxu1 }
 0x209   :  { %v6038_v62 = vadd.f32 %v6037_v13, %v6036_v56  ;;  %v4999_v28 = vadd.f32 %v6057_v60, %v4958_v30 }
 0x20a   :  { %v6059_v4 = vpop.f32.mrf.mxu1 }
 0x20b   :  { %v4961_v61 = vadd.f32 %v6038_v62, %v4920_v22  ;;  %v6060_v31 = vadd.f32 %v6059_v4, %v6058_v59 }
 0x20d   :  { %v5002_v52 = vadd.f32 %v6060_v31, %v4961_v61 }
 0x222   :  { %v6077_v2 = vpop.f32.mrf.mxu0 }
 0x224   :  { %v6078_v34 = vpop.f32.mrf.mxu0  ;;  %v6099_v7 = vpop.f32.mrf.mxu1 }
 0x225   :  { %v6079_v16 = vadd.f32 %v6078_v34, %v6077_v2 }
 0x226   :  { %v6080_v42 = vpop.f32.mrf.mxu0  ;;  %v6100_v12 = vpop.f32.mrf.mxu1 }
 0x227   :  { %v5040_v8 = vadd.f32 %v6079_v16, %v4999_v28  ;;  %v6101_v24 = vadd.f32 %v6100_v12, %v6099_v7 }
 0x228   :  { %v6081_v51 = vpop.f32.mrf.mxu0  ;;  %v6102_v53 = vpop.f32.mrf.mxu1 }
 0x229   :  { %v6082_v45 = vadd.f32 %v6081_v51, %v6080_v42  ;;  %v5081_v48 = vadd.f32 %v6101_v24, %v5040_v8 }
 0x22a   :  { %v6103_v23 = vpop.f32.mrf.mxu1 }
 0x22b   :  { %v5043_v1 = vadd.f32 %v6082_v45, %v5002_v52  ;;  %v6104_v54 = vadd.f32 %v6103_v23, %v6102_v53 }
 0x22d   :  { %v5084_v0 = vadd.f32 %v6104_v54, %v5043_v1 }
 0x242   :  { %v6121_v55 = vpop.f32.mrf.mxu0 }
 0x244   :  { %v6122_v20 = vpop.f32.mrf.mxu0  ;;  %v6143_v21 = vpop.f32.mrf.mxu1 }
 0x245   :  { %v6123_v25 = vadd.f32 %v6122_v20, %v6121_v55 }
 0x246   :  { %v6124_v36 = vpop.f32.mrf.mxu0  ;;  %v6144_v5 = vpop.f32.mrf.mxu1 }
 0x247   :  { %v5122_v56 = vadd.f32 %v6123_v25, %v5081_v48  ;;  %v6145_v57 = vadd.f32 %v6144_v5, %v6143_v21 }
 0x248   :  { %v6125_v63 = vpop.f32.mrf.mxu0  ;;  %v6146_v43 = vpop.f32.mrf.mxu1 }
 0x249   :  { %v6126_v13 = vadd.f32 %v6125_v63, %v6124_v36  ;;  %v5163_v59 = vadd.f32 %v6145_v57, %v5122_v56 }
 0x24a   :  { %v6147_v26 = vpop.f32.mrf.mxu1 }
 0x24b   :  { %v5125_v2 = vadd.f32 %v6126_v13, %v5084_v0  ;;  %v6148_v44 = vadd.f32 %v6147_v26, %v6146_v43 }
 0x24d   :  { %v5166_v4 = vadd.f32 %v6148_v44, %v5125_v2 }
 0x262   :  { %v5203_v27 = vpop.f32.mrf.mxu0 }
 0x263   :  { %v5204_v29 = vadd.f32 %v5203_v27, %v5163_v59 }
 0x264   :  { %v6176_v32 = vpop.f32.mrf.mxu0 }
 0x265   :  { %5210 = vst [vmem:[#allocation2] sm:$0xff] %v5204_v29 }
 0x266   :  { %v5206_v6 = vpop.f32.mrf.mxu0 }
 0x267   :  { %v5207_v33 = vadd.f32 %v5206_v6, %v5166_v4 }
 0x268   :  { %v6177_v35 = vpop.f32.mrf.mxu0 }
 0x269   :  { %5211 = vst [vmem:[#allocation2 + $0x8] sm:$0xff] %v5207_v33 }
 0x26a   :  { %5216 = vsyncadd [#allocation3], 224  ;;  %s6677_s2 = smov [#allocation2]  }
 0x26b   :  { %s5217_s9 = sshll.u32 %s6677_s2, 4  ;;  %s5218_s9 = int_to_ptr.vmem [resolvable:$true] %s5217_s9 }
 0x26c   :  { %s6652_s10 = scalar_lea.vmem %s5218_s9, 32  ;;  %s6656_s11 = scalar_lea.vmem %s5218_s9, 256 }
 0x26d   :  { %p6653_p0 = scmp.ne.s32.totalorder %s5218_s9, %s6652_s10  ;;  %p6657_p1 = scmp.lt.s32.totalorder %s5218_s9, %s5218_s9 }
 0x26e   :  { %p6658_p2 = scmp.lt.s32.totalorder %s6656_s11, %s6652_s10 }
 0x270   :  { %p6659_p3 = por %p6658_p2, %p6657_p1 }
 0x272   :  { %p6660_p4 = pnand %p6659_p3, %p6653_p0 }
 0x274   :  { %6663 = shalt.err (!%p6660_p4)
}
 0x275   :  { %s6678_s12 = smov 32   ;;  %s6679_s13 = smov 2  }
 0x276   :  { %5223 = dma.vmem_to_hbm [thread:$0]  %s5218_s9, 32, %s8314_s3, [#allocation3], %s6678_s12, %s6678_s12, %s6679_s13  }
 0x277   :  { %6672 = dma.done.wait [#allocation3], 256  }
 0x278   :  { %6673 = vsyncadd [#allocation3], 4294967040 }
 0x279   :  { %5227 = vsyncpa [#allocation3], 1 }

</bundles_post_ra>
